<compile_context>
chip_gen: v6e
topology: v6e:2x2x1
jax: 0.10.0
libtpu: 0.0.40
codegen_flags: <defaults>
</compile_context>

<pallas_src>
import functools

import jax
import jax.numpy as jnp
from jax import lax
from jax.experimental import pallas as pl
from jax.experimental.pallas import tpu as pltpu


_VMEM_LIMIT = 32 * 1024 * 1024  # safe on v5e/v6e (128 MiB) and v7x (64 MiB physical)


# ----------------------------------------------------------------------------
# Fused kernel: qkv projection -> per-head attention -> output projection
# ----------------------------------------------------------------------------
def emsa_fused_kernel(x_ref, wqkv_ref, wproj_ref, bproj_ref, o_ref, attn_scratch,
                      *, num_heads, head_dim):
    """Processes one batch element per grid step.

    x_ref:        (N, C)   input tokens (f32)
    wqkv_ref:     (C, 3C)  bf16, columns per-head contiguous [q_h*scale|k_h|v_h]
    wproj_ref:    (C, C)   bf16 output-projection weight
    bproj_ref:    (1, C)   f32 output-projection bias
    o_ref:        (N, C)   output tile (f32)
    attn_scratch: (N, C)   f32 VMEM scratch holding per-head PV results
    """
    x = x_ref[...].astype(jnp.bfloat16)                          # (N, C)

    # Fused q/k/v projection: one MXU matmul, f32 accumulation.
    qkv = jnp.dot(x, wqkv_ref[...],
                  preferred_element_type=jnp.float32)            # (N, 3C) f32

    d = head_dim
    for h in range(num_heads):                                   # static unroll
        base = 3 * d * h
        q_h = qkv[:, base:base + d].astype(jnp.bfloat16)         # pre-scaled
        k_h = qkv[:, base + d:base + 2 * d].astype(jnp.bfloat16)
        v_h = qkv[:, base + 2 * d:base + 3 * d].astype(jnp.bfloat16)

        # scores (N, N) = q_h @ k_h.T  (contract over head_dim on the MXU)
        s = lax.dot_general(q_h, k_h, (((1,), (1,)), ((), ())),
                            preferred_element_type=jnp.float32)

        # softmax in f32; reciprocal goes to the EUP slot (approx).
        m = jnp.max(s, axis=-1, keepdims=True)
        p = jnp.exp(s - m)
        denom = jnp.sum(p, axis=-1, keepdims=True)
        p = p * pl.reciprocal(denom, approx=True)

        # PV for this head -> write straight into the (N, C) scratch slab.
        attn_scratch[:, h * d:(h + 1) * d] = jnp.dot(
            p.astype(jnp.bfloat16), v_h, preferred_element_type=jnp.float32)

    # Output projection (+ bias) -> single lane-dense (N, C) store.
    out = jnp.dot(attn_scratch[...].astype(jnp.bfloat16), wproj_ref[...],
                  preferred_element_type=jnp.float32)
    o_ref[...] = (out + bproj_ref[...]).astype(o_ref.dtype)


# ----------------------------------------------------------------------------
# Forward wrapper (default config path)
# ----------------------------------------------------------------------------
@functools.partial(jax.jit, static_argnames=("H", "W", "num_heads"))
def emsa_forward(x, params, H, W, num_heads):
    B, N, C = x.shape
    head_dim = C // num_heads

    wqkv = params["w_qkv_fused"]            # (C, 3C) bf16, per-head [q|k|v]
    wproj = params["w_proj_bf16"]           # (C, C) bf16
    bproj = params["bproj"].reshape(1, C)   # (1, C) f32

    flops = B * (2 * N * C * (3 * C)                        # qkv projection
                 + num_heads * 2 * (2 * N * N * head_dim)   # QK^T + PV
                 + 2 * N * C * C)                           # output projection
    bytes_accessed = (x.size * 4 + wqkv.size * 2 + wproj.size * 2
                      + bproj.size * 4 + B * N * C * 4)
    cost = pl.CostEstimate(flops=flops,
                           transcendentals=B * num_heads * N * N,
                           bytes_accessed=bytes_accessed)

    kern = functools.partial(emsa_fused_kernel,
                             num_heads=num_heads, head_dim=head_dim)

    return pl.pallas_call(
        kern,
        out_shape=jax.ShapeDtypeStruct((B, N, C), x.dtype),
        grid=(B,),
        in_specs=[
            pl.BlockSpec((None, N, C), lambda b: (b, 0, 0)),   # x (one batch slab)
            pl.BlockSpec((C, 3 * C), lambda b: (0, 0)),        # fused qkv weight
            pl.BlockSpec((C, C), lambda b: (0, 0)),            # proj weight
            pl.BlockSpec((1, C), lambda b: (0, 0)),            # proj bias
        ],
        out_specs=pl.BlockSpec((None, N, C), lambda b: (b, 0, 0)),
        scratch_shapes=[pltpu.VMEM((N, C), jnp.float32)],
        compiler_params=pltpu.CompilerParams(
            dimension_semantics=("parallel",),   # shard B across TCs (v7x megacore)
            vmem_limit_bytes=_VMEM_LIMIT,
        ),
        cost_estimate=cost,
    )(x, wqkv, wproj, bproj)


# ----------------------------------------------------------------------------
# Pure-JAX reference (mirrors the PyTorch forward for the default config)
# ----------------------------------------------------------------------------
def emsa_reference(x, params, H, W, num_heads):
    B, N, C = x.shape
    head_dim = C // num_heads
    scale = head_dim ** (-0.5)
    q = (x @ params["wq"]).reshape(B, N, num_heads, head_dim).transpose(0, 2, 1, 3)
    kv = (x @ params["wkv"]).reshape(B, N, 2, num_heads, head_dim).transpose(2, 0, 3, 1, 4)
    k, v = kv[0], kv[1]
    attn = jnp.einsum("bhnd,bhmd->bhnm", q, k) * scale
    attn = jax.nn.softmax(attn, axis=-1)
    out = jnp.einsum("bhnm,bhmd->bhnd", attn, v)
    out = out.transpose(0, 2, 1, 3).reshape(B, N, C)
    return out @ params["wproj"] + params["bproj"]


# ----------------------------------------------------------------------------
# Parameter init (deterministic, synthetic; weights stored as (in, out) = W^T)
# ----------------------------------------------------------------------------
def init_params(key, dim, num_heads):
    head_dim = dim // num_heads
    scale = head_dim ** (-0.5)
    k0, k1, k2, k3 = jax.random.split(key, 4)
    s = 0.05
    wq = s * jax.random.normal(k0, (dim, dim), jnp.float32)
    wkv = s * jax.random.normal(k1, (dim, 2 * dim), jnp.float32)
    wproj = s * jax.random.normal(k2, (dim, dim), jnp.float32)
    bproj = s * jax.random.normal(k3, (dim,), jnp.float32)

    # Fused qkv weight, per-head-contiguous columns [q_h*scale | k_h | v_h]
    # (zero runtime cost: init-time permutation; scale folded into q columns).
    wk, wv = wkv[:, :dim], wkv[:, dim:]
    blocks = []
    for h in range(num_heads):
        lo, hi = h * head_dim, (h + 1) * head_dim
        blocks += [wq[:, lo:hi] * scale, wk[:, lo:hi], wv[:, lo:hi]]
    w_qkv_fused = jnp.concatenate(blocks, axis=1)          # (C, 3C)

    return {
        # f32 originals — used by the pure-JAX reference
        "wq": wq, "wkv": wkv, "wproj": wproj, "bproj": bproj,
        # kernel-side fused / pre-cast (bf16) weights
        "w_qkv_fused": w_qkv_fused.astype(jnp.bfloat16),
        "w_proj_bf16": wproj.astype(jnp.bfloat16),
    }


if __name__ == "__main__":
    B, H, W, C = 2, 16, 16, 64
    num_heads = 4
    N = H * W

    root = jax.random.PRNGKey(0)
    kx, kp = jax.random.split(root)
    x = jax.random.normal(kx, (B, N, C), jnp.float32)
    params = init_params(kp, C, num_heads)

    y = emsa_forward(x, params, H, W, num_heads)
    y = jax.block_until_ready(y)

    y_ref = emsa_reference(x, params, H, W, num_heads)
    assert y.shape == (B, N, C)
    # tolerance accounts for bf16 MXU operands (f32 accumulation) and the
    # approximate (EUP) reciprocal in the softmax denominator.
    assert jnp.allclose(y, y_ref, atol=1e-2, rtol=1e-2), "mismatch vs reference"

    print("KERNEL_OK")
</pallas_src>

<mosaic_0001>
module attributes {stable_mosaic.version = 11 : i64} {
  func.func @emsa_fused_kernel(%arg0: i32, %arg1: memref<1x256x64xf32, #tpu.memory_space<vmem>>, %arg2: memref<64x192xbf16, #tpu.memory_space<vmem>>, %arg3: memref<64x64xbf16, #tpu.memory_space<vmem>>, %arg4: memref<1x64xf32, #tpu.memory_space<vmem>>, %arg5: memref<1x256x64xf32, #tpu.memory_space<vmem>>, %arg6: memref<256x64xf32, #tpu.memory_space<vmem>>) attributes {dimension_semantics = [#tpu.dimension_semantics<parallel>], iteration_bounds = array<i64: 2>, scalar_prefetch = 0 : i64, scratch_operands = 1 : i64, tpu.core_type = #tpu.core_type<tc>, window_params = [{transform_indices = @transform_0, window_bounds = array<i64: 1, 256, 64>}, {pipeline_mode = #tpu.pipeline_mode<synchronous>, transform_indices = @transform_1, window_bounds = array<i64: 64, 192>}, {pipeline_mode = #tpu.pipeline_mode<synchronous>, transform_indices = @transform_2, window_bounds = array<i64: 64, 64>}, {pipeline_mode = #tpu.pipeline_mode<synchronous>, transform_indices = @transform_3, window_bounds = array<i64: 1, 64>}, {transform_indices = @transform_4, window_bounds = array<i64: 1, 256, 64>}]} {
    %c0 = arith.constant 0 : index
    %c0_0 = arith.constant 0 : index
    %c0_1 = arith.constant 0 : index
    %0 = vector.load %arg1[%c0, %c0_0, %c0_1] : memref<1x256x64xf32, #tpu.memory_space<vmem>>, vector<1x256x64xf32>
    %1 = vector.shape_cast %0 : vector<1x256x64xf32> to vector<256x64xf32>
    %2 = arith.truncf %1 : vector<256x64xf32> to vector<256x64xbf16>
    %c0_2 = arith.constant 0 : index
    %c0_3 = arith.constant 0 : index
    %3 = vector.load %arg2[%c0_2, %c0_3] : memref<64x192xbf16, #tpu.memory_space<vmem>>, vector<64x192xbf16>
    %cst = arith.constant dense<0.000000e+00> : vector<256x192xf32>
    %4 = tpu.matmul %2, %3, %cst {dimension_numbers = #tpu.dot_dimension_numbers<[1], [0], [0], [1], [0, 0, 1, 1], [], []>} : vector<256x64xbf16>, vector<64x192xbf16>, vector<256x192xf32> -> vector<256x192xf32>
    %5 = vector.extract_strided_slice %4 {offsets = [0, 0], sizes = [256, 16], strides = [1, 1]} : vector<256x192xf32> to vector<256x16xf32>
    %6 = arith.truncf %5 : vector<256x16xf32> to vector<256x16xbf16>
    %7 = vector.extract_strided_slice %4 {offsets = [0, 16], sizes = [256, 16], strides = [1, 1]} : vector<256x192xf32> to vector<256x16xf32>
    %8 = arith.truncf %7 : vector<256x16xf32> to vector<256x16xbf16>
    %9 = vector.extract_strided_slice %4 {offsets = [0, 32], sizes = [256, 16], strides = [1, 1]} : vector<256x192xf32> to vector<256x16xf32>
    %10 = arith.truncf %9 : vector<256x16xf32> to vector<256x16xbf16>
    %cst_4 = arith.constant dense<0.000000e+00> : vector<256x256xf32>
    %11 = tpu.matmul %6, %8, %cst_4 {dimension_numbers = #tpu.dot_dimension_numbers<[1], [1], [0], [0], [0, 0, 1, 0], [], []>} : vector<256x16xbf16>, vector<256x16xbf16>, vector<256x256xf32> -> vector<256x256xf32>
    %cst_5 = arith.constant dense<0xFF800000> : vector<256xf32>
    %12 = vector.multi_reduction <maximumf>, %11, %cst_5 [1] : vector<256x256xf32> to vector<256xf32>
    %13 = vector.shape_cast %12 : vector<256xf32> to vector<256x1xf32>
    %14 = vector.broadcast %13 : vector<256x1xf32> to vector<256x256xf32>
    %15 = arith.subf %11, %14 : vector<256x256xf32>
    %16 = math.exp %15 : vector<256x256xf32>
    %cst_6 = arith.constant dense<0.000000e+00> : vector<256xf32>
    %17 = vector.multi_reduction <add>, %16, %cst_6 [1] : vector<256x256xf32> to vector<256xf32>
    %18 = vector.shape_cast %17 : vector<256xf32> to vector<256x1xf32>
    %19 = tpu.reciprocal %18 {approx = true} : vector<256x1xf32> -> vector<256x1xf32>
    %20 = vector.broadcast %19 : vector<256x1xf32> to vector<256x256xf32>
    %21 = arith.mulf %16, %20 : vector<256x256xf32>
    %22 = arith.truncf %21 : vector<256x256xf32> to vector<256x256xbf16>
    %cst_7 = arith.constant dense<0.000000e+00> : vector<256x16xf32>
    %23 = tpu.matmul %22, %10, %cst_7 {dimension_numbers = #tpu.dot_dimension_numbers<[1], [0], [0], [1], [0, 0, 1, 1], [], []>} : vector<256x256xbf16>, vector<256x16xbf16>, vector<256x16xf32> -> vector<256x16xf32>
    %c0_8 = arith.constant 0 : index
    %c0_9 = arith.constant 0 : index
    %24 = vector.load %arg6[%c0_8, %c0_9] : memref<256x64xf32, #tpu.memory_space<vmem>>, vector<256x16xf32>
    tpu.vector_store %arg6[%c0_8, %c0_9], %23 {strides = array<i32>} : memref<256x64xf32, #tpu.memory_space<vmem>>, vector<256x16xf32>,
    %25 = vector.extract_strided_slice %4 {offsets = [0, 48], sizes = [256, 16], strides = [1, 1]} : vector<256x192xf32> to vector<256x16xf32>
    %26 = arith.truncf %25 : vector<256x16xf32> to vector<256x16xbf16>
    %27 = vector.extract_strided_slice %4 {offsets = [0, 64], sizes = [256, 16], strides = [1, 1]} : vector<256x192xf32> to vector<256x16xf32>
    %28 = arith.truncf %27 : vector<256x16xf32> to vector<256x16xbf16>
    %29 = vector.extract_strided_slice %4 {offsets = [0, 80], sizes = [256, 16], strides = [1, 1]} : vector<256x192xf32> to vector<256x16xf32>
    %30 = arith.truncf %29 : vector<256x16xf32> to vector<256x16xbf16>
    %cst_10 = arith.constant dense<0.000000e+00> : vector<256x256xf32>
    %31 = tpu.matmul %26, %28, %cst_10 {dimension_numbers = #tpu.dot_dimension_numbers<[1], [1], [0], [0], [0, 0, 1, 0], [], []>} : vector<256x16xbf16>, vector<256x16xbf16>, vector<256x256xf32> -> vector<256x256xf32>
    %cst_11 = arith.constant dense<0xFF800000> : vector<256xf32>
    %32 = vector.multi_reduction <maximumf>, %31, %cst_11 [1] : vector<256x256xf32> to vector<256xf32>
    %33 = vector.shape_cast %32 : vector<256xf32> to vector<256x1xf32>
    %34 = vector.broadcast %33 : vector<256x1xf32> to vector<256x256xf32>
    %35 = arith.subf %31, %34 : vector<256x256xf32>
    %36 = math.exp %35 : vector<256x256xf32>
    %cst_12 = arith.constant dense<0.000000e+00> : vector<256xf32>
    %37 = vector.multi_reduction <add>, %36, %cst_12 [1] : vector<256x256xf32> to vector<256xf32>
    %38 = vector.shape_cast %37 : vector<256xf32> to vector<256x1xf32>
    %39 = tpu.reciprocal %38 {approx = true} : vector<256x1xf32> -> vector<256x1xf32>
    %40 = vector.broadcast %39 : vector<256x1xf32> to vector<256x256xf32>
    %41 = arith.mulf %36, %40 : vector<256x256xf32>
    %42 = arith.truncf %41 : vector<256x256xf32> to vector<256x256xbf16>
    %cst_13 = arith.constant dense<0.000000e+00> : vector<256x16xf32>
    %43 = tpu.matmul %42, %30, %cst_13 {dimension_numbers = #tpu.dot_dimension_numbers<[1], [0], [0], [1], [0, 0, 1, 1], [], []>} : vector<256x256xbf16>, vector<256x16xbf16>, vector<256x16xf32> -> vector<256x16xf32>
    %c0_14 = arith.constant 0 : index
    %c16 = arith.constant 16 : index
    %44 = vector.load %arg6[%c0_14, %c16] : memref<256x64xf32, #tpu.memory_space<vmem>>, vector<256x16xf32>
    tpu.vector_store %arg6[%c0_14, %c16], %43 {strides = array<i32>} : memref<256x64xf32, #tpu.memory_space<vmem>>, vector<256x16xf32>,
    %45 = vector.extract_strided_slice %4 {offsets = [0, 96], sizes = [256, 16], strides = [1, 1]} : vector<256x192xf32> to vector<256x16xf32>
    %46 = arith.truncf %45 : vector<256x16xf32> to vector<256x16xbf16>
    %47 = vector.extract_strided_slice %4 {offsets = [0, 112], sizes = [256, 16], strides = [1, 1]} : vector<256x192xf32> to vector<256x16xf32>
    %48 = arith.truncf %47 : vector<256x16xf32> to vector<256x16xbf16>
    %49 = vector.extract_strided_slice %4 {offsets = [0, 128], sizes = [256, 16], strides = [1, 1]} : vector<256x192xf32> to vector<256x16xf32>
    %50 = arith.truncf %49 : vector<256x16xf32> to vector<256x16xbf16>
    %cst_15 = arith.constant dense<0.000000e+00> : vector<256x256xf32>
    %51 = tpu.matmul %46, %48, %cst_15 {dimension_numbers = #tpu.dot_dimension_numbers<[1], [1], [0], [0], [0, 0, 1, 0], [], []>} : vector<256x16xbf16>, vector<256x16xbf16>, vector<256x256xf32> -> vector<256x256xf32>
    %cst_16 = arith.constant dense<0xFF800000> : vector<256xf32>
    %52 = vector.multi_reduction <maximumf>, %51, %cst_16 [1] : vector<256x256xf32> to vector<256xf32>
    %53 = vector.shape_cast %52 : vector<256xf32> to vector<256x1xf32>
    %54 = vector.broadcast %53 : vector<256x1xf32> to vector<256x256xf32>
    %55 = arith.subf %51, %54 : vector<256x256xf32>
    %56 = math.exp %55 : vector<256x256xf32>
    %cst_17 = arith.constant dense<0.000000e+00> : vector<256xf32>
    %57 = vector.multi_reduction <add>, %56, %cst_17 [1] : vector<256x256xf32> to vector<256xf32>
    %58 = vector.shape_cast %57 : vector<256xf32> to vector<256x1xf32>
    %59 = tpu.reciprocal %58 {approx = true} : vector<256x1xf32> -> vector<256x1xf32>
    %60 = vector.broadcast %59 : vector<256x1xf32> to vector<256x256xf32>
    %61 = arith.mulf %56, %60 : vector<256x256xf32>
    %62 = arith.truncf %61 : vector<256x256xf32> to vector<256x256xbf16>
    %cst_18 = arith.constant dense<0.000000e+00> : vector<256x16xf32>
    %63 = tpu.matmul %62, %50, %cst_18 {dimension_numbers = #tpu.dot_dimension_numbers<[1], [0], [0], [1], [0, 0, 1, 1], [], []>} : vector<256x256xbf16>, vector<256x16xbf16>, vector<256x16xf32> -> vector<256x16xf32>
    %c0_19 = arith.constant 0 : index
    %c32 = arith.constant 32 : index
    %64 = vector.load %arg6[%c0_19, %c32] : memref<256x64xf32, #tpu.memory_space<vmem>>, vector<256x16xf32>
    tpu.vector_store %arg6[%c0_19, %c32], %63 {strides = array<i32>} : memref<256x64xf32, #tpu.memory_space<vmem>>, vector<256x16xf32>,
    %65 = vector.extract_strided_slice %4 {offsets = [0, 144], sizes = [256, 16], strides = [1, 1]} : vector<256x192xf32> to vector<256x16xf32>
    %66 = arith.truncf %65 : vector<256x16xf32> to vector<256x16xbf16>
    %67 = vector.extract_strided_slice %4 {offsets = [0, 160], sizes = [256, 16], strides = [1, 1]} : vector<256x192xf32> to vector<256x16xf32>
    %68 = arith.truncf %67 : vector<256x16xf32> to vector<256x16xbf16>
    %69 = vector.extract_strided_slice %4 {offsets = [0, 176], sizes = [256, 16], strides = [1, 1]} : vector<256x192xf32> to vector<256x16xf32>
    %70 = arith.truncf %69 : vector<256x16xf32> to vector<256x16xbf16>
    %cst_20 = arith.constant dense<0.000000e+00> : vector<256x256xf32>
    %71 = tpu.matmul %66, %68, %cst_20 {dimension_numbers = #tpu.dot_dimension_numbers<[1], [1], [0], [0], [0, 0, 1, 0], [], []>} : vector<256x16xbf16>, vector<256x16xbf16>, vector<256x256xf32> -> vector<256x256xf32>
    %cst_21 = arith.constant dense<0xFF800000> : vector<256xf32>
    %72 = vector.multi_reduction <maximumf>, %71, %cst_21 [1] : vector<256x256xf32> to vector<256xf32>
    %73 = vector.shape_cast %72 : vector<256xf32> to vector<256x1xf32>
    %74 = vector.broadcast %73 : vector<256x1xf32> to vector<256x256xf32>
    %75 = arith.subf %71, %74 : vector<256x256xf32>
    %76 = math.exp %75 : vector<256x256xf32>
    %cst_22 = arith.constant dense<0.000000e+00> : vector<256xf32>
    %77 = vector.multi_reduction <add>, %76, %cst_22 [1] : vector<256x256xf32> to vector<256xf32>
    %78 = vector.shape_cast %77 : vector<256xf32> to vector<256x1xf32>
    %79 = tpu.reciprocal %78 {approx = true} : vector<256x1xf32> -> vector<256x1xf32>
    %80 = vector.broadcast %79 : vector<256x1xf32> to vector<256x256xf32>
    %81 = arith.mulf %76, %80 : vector<256x256xf32>
    %82 = arith.truncf %81 : vector<256x256xf32> to vector<256x256xbf16>
    %cst_23 = arith.constant dense<0.000000e+00> : vector<256x16xf32>
    %83 = tpu.matmul %82, %70, %cst_23 {dimension_numbers = #tpu.dot_dimension_numbers<[1], [0], [0], [1], [0, 0, 1, 1], [], []>} : vector<256x256xbf16>, vector<256x16xbf16>, vector<256x16xf32> -> vector<256x16xf32>
    %c0_24 = arith.constant 0 : index
    %c48 = arith.constant 48 : index
    %84 = vector.load %arg6[%c0_24, %c48] : memref<256x64xf32, #tpu.memory_space<vmem>>, vector<256x16xf32>
    tpu.vector_store %arg6[%c0_24, %c48], %83 {strides = array<i32>} : memref<256x64xf32, #tpu.memory_space<vmem>>, vector<256x16xf32>,
    %c0_25 = arith.constant 0 : index
    %c0_26 = arith.constant 0 : index
    %85 = vector.load %arg6[%c0_25, %c0_26] : memref<256x64xf32, #tpu.memory_space<vmem>>, vector<256x64xf32>
    %86 = arith.truncf %85 : vector<256x64xf32> to vector<256x64xbf16>
    %c0_27 = arith.constant 0 : index
    %c0_28 = arith.constant 0 : index
    %87 = vector.load %arg3[%c0_27, %c0_28] : memref<64x64xbf16, #tpu.memory_space<vmem>>, vector<64x64xbf16>
    %cst_29 = arith.constant dense<0.000000e+00> : vector<256x64xf32>
    %88 = tpu.matmul %86, %87, %cst_29 {dimension_numbers = #tpu.dot_dimension_numbers<[1], [0], [0], [1], [0, 0, 1, 1], [], []>} : vector<256x64xbf16>, vector<64x64xbf16>, vector<256x64xf32> -> vector<256x64xf32>
    %c0_30 = arith.constant 0 : index
    %c0_31 = arith.constant 0 : index
    %89 = vector.load %arg4[%c0_30, %c0_31] : memref<1x64xf32, #tpu.memory_space<vmem>>, vector<1x64xf32>
    %90 = vector.broadcast %89 : vector<1x64xf32> to vector<256x64xf32>
    %91 = arith.addf %88, %90 : vector<256x64xf32>
    %c0_32 = arith.constant 0 : index
    %c0_33 = arith.constant 0 : index
    %c0_34 = arith.constant 0 : index
    %92 = vector.load %arg5[%c0_32, %c0_33, %c0_34] : memref<1x256x64xf32, #tpu.memory_space<vmem>>, vector<1x256x64xf32>
    %93 = vector.shape_cast %92 : vector<1x256x64xf32> to vector<256x64xf32>
    %94 = vector.shape_cast %91 : vector<256x64xf32> to vector<1x256x64xf32>
    tpu.vector_store %arg5[%c0_32, %c0_33, %c0_34], %94 {strides = array<i32>} : memref<1x256x64xf32, #tpu.memory_space<vmem>>, vector<1x256x64xf32>,
    return
  }
  func.func @transform_0(%arg0: i32) -> (i32, i32, i32) {
    %c0_i32 = arith.constant 0 : i32
    %c0_i32_0 = arith.constant 0 : i32
    %c0_i32_1 = arith.constant 0 : i32
    return %arg0, %c0_i32, %c0_i32_0 : i32, i32, i32
  }
  func.func @transform_1(%arg0: i32) -> (i32, i32) {
    %c0_i32 = arith.constant 0 : i32
    %c0_i32_0 = arith.constant 0 : i32
    %c0_i32_1 = arith.constant 0 : i32
    return %c0_i32, %c0_i32_0 : i32, i32
  }
  func.func @transform_2(%arg0: i32) -> (i32, i32) {
    %c0_i32 = arith.constant 0 : i32
    %c0_i32_0 = arith.constant 0 : i32
    %c0_i32_1 = arith.constant 0 : i32
    return %c0_i32, %c0_i32_0 : i32, i32
  }
  func.func @transform_3(%arg0: i32) -> (i32, i32) {
    %c0_i32 = arith.constant 0 : i32
    %c0_i32_0 = arith.constant 0 : i32
    %c0_i32_1 = arith.constant 0 : i32
    return %c0_i32, %c0_i32_0 : i32, i32
  }
  func.func @transform_4(%arg0: i32) -> (i32, i32, i32) {
    %c0_i32 = arith.constant 0 : i32
    %c0_i32_0 = arith.constant 0 : i32
    %c0_i32_1 = arith.constant 0 : i32
    return %arg0, %c0_i32, %c0_i32_0 : i32, i32, i32
  }
}

</mosaic_0001>

<bundles_post_ra>
// kernel: emsa_forward.1
= control target key start
LH: loop header
LB: loop body
LE: loop exit
PB: predicated region body
PF: predicated region fallthrough
CT: control target
= control target key end

     0   :  { %s7411_s15 = smov 0   ;;  %s11442_s0 = inlined_call_operand.vmem [shape: f32[2,256,64], index: 0, kind: input, shape index: {}]   ;;  %s11443_s1 = inlined_call_operand.vmem [shape: bf16[64,192], index: 1, kind: input, shape index: {}]   ;;  %s11444_s2 = inlined_call_operand.vmem [shape: bf16[64,64], index: 2, kind: input, shape index: {}]   ;;  %s11445_s3 = inlined_call_operand.vmem [shape: f32[1,64], index: 3, kind: input, shape index: {}]   ;;  %s11446_s4 = inlined_call_operand.vmem [shape: f32[2,256,64], index: 4, kind: output, shape index: {}]  }
   0x1 LB: > { %s5716_s16 = sadd.s32 4294967295, %s7376_s15   ;;  %p5720_p0 = scmp.ge.s32.totalorder %s7376_s15, 1  ;;  %s7376_s15 = sphi %s7411_s15, %s14_s15  }
   0x2   : > { %p162_p1 = scmp.lt.s32.totalorder %s7376_s15, 3 }
   0x4   : > { %p163_p2 = pnand %p5720_p0, %p162_p1 }
   0x6   : > { %166 = sbr.rel (%p163_p2) target bundleno = 3009 (0xbc1), region = 36 }
   0xb   : > { %v6586_v0 = vld [vmem:[%s11443_s1 + $0x34] ss:$8 sps:$4 sm:$0xff]   ;;  %p188_p3 = scmp.lt.s32.totalorder %s5716_s16, 1  ;;  %v6588_v1 = vld [vmem:[%s11443_s1 + $0x30] ss:$8 sps:$4 sm:$0xff]   ;;  %v7378_v2 = vmov 0  }
   0xc   : > { %376 = vmatprep.mubr.bf16.mxu0 %v7378_v2  ;;  %352 = vmatprep.subr.bf16.mxu0 %v6586_v0  ;;  %v6589_v3 = vld [vmem:[%s11443_s1 + $0x24] ss:$8 sps:$4 sm:$0xff]   ;;  %v6591_v4 = vld [vmem:[%s11443_s1 + $0x20] ss:$8 sps:$4 sm:$0xff]   ;;  %v6592_v5 = vld [vmem:[%s11443_s1 + $0x14] ss:$8 sps:$4 sm:$0xff]  }
   0xd   : > { %s12607_s16 = smov (!%p188_p3, %s5716_s16), 1  ;;  %353 = vmatpush1.bf16.msra.mxu0 %v6588_v1  ;;  %v6594_v6 = vld [vmem:[%s11443_s1 + $0x10] ss:$8 sps:$4 sm:$0xff]   ;;  %v6595_v7 = vld [vmem:[%s11443_s1 + $0x4] ss:$8 sps:$4 sm:$0xff]   ;;  %vm295_vm0 = vcmask 523264  }
   0xe   : > { %354 = vmatprep.subr.bf16.mxu0 %v6589_v3  ;;  %s5836_s27 = sshll.u32 %s12607_s16, 8  ;;  %v6597_v8 = vld [vmem:[%s11443_s1] ss:$8 sps:$4 sm:$0xff]   ;;  %vm601_vm1 = vcmask 130048   ;;  %s7379_s11 = smov 112   ;;  %vm2846_vm2 = vcmask 261248  }
   0xf   : > { %s7449_s8 = scalar_lea.vmem %s11442_s0, %s5836_s27  ;;  %s7380_s12 = smov 64   ;;  %vm4049_vm3 = vcmask 392448   ;;  %vm5300_vm4 = vcmask 523648  }
  0x10   : > { %v199_v9 = vld [vmem:[%s7449_s8] sm:$0xff]  ;;  %v200_v10 = vld [vmem:[%s7449_s8 + $0x8] sm:$0xff]  ;;  %v201_v12 = vld [vmem:[%s7449_s8 + $0x10] sm:$0xff]  ;;  %s7381_s13 = smov 80   ;;  %s7382_s14 = smov 16  }
  0x11   : > { %355 = vmatpush1.bf16.msra.mxu0 %v6591_v4  ;;  %v231_v11 = vpack.c.bf16 %v200_v10, %v199_v9  ;;  %v202_v13 = vld [vmem:[%s7449_s8 + $0x18] sm:$0xff]  ;;  %v203_v15 = vld [vmem:[%s7449_s8 + $0x20] sm:$0xff]  ;;  %v204_v16 = vld [vmem:[%s7449_s8 + $0x28] sm:$0xff]  ;;  %s7383_s17 = smov 32   ;;  %s7384_s18 = smov 96  }
  0x12   : > { %356 = vmatprep.subr.bf16.mxu0 %v6592_v5  ;;  %v232_v14 = vpack.c.bf16 %v202_v13, %v201_v12  ;;  %v233_v17 = vpack.c.bf16 %v204_v16, %v203_v15  ;;  %v205_v18 = vld [vmem:[%s7449_s8 + $0x30] sm:$0xff]  ;;  %v206_v19 = vld [vmem:[%s7449_s8 + $0x38] sm:$0xff]  ;;  %v207_v21 = vld [vmem:[%s7449_s8 + $0x40] sm:$0xff]  ;;  %s7385_s19 = smov 48   ;;  %s11338_s7 = scalar_lea.vmem %s11446_s4, %s5836_s27 }
  0x13   : > { %v234_v20 = vpack.c.bf16 %v206_v19, %v205_v18  ;;  %v208_v22 = vld [vmem:[%s7449_s8 + $0x48] sm:$0xff]  ;;  %v209_v24 = vld [vmem:[%s7449_s8 + $0x50] sm:$0xff]  ;;  %v210_v25 = vld [vmem:[%s7449_s8 + $0x58] sm:$0xff] }
  0x14   : > { %v235_v23 = vpack.c.bf16 %v208_v22, %v207_v21  ;;  %v236_v26 = vpack.c.bf16 %v210_v25, %v209_v24  ;;  %v211_v27 = vld [vmem:[%s7449_s8 + $0x60] sm:$0xff]  ;;  %v212_v28 = vld [vmem:[%s7449_s8 + $0x68] sm:$0xff]  ;;  %v213_v30 = vld [vmem:[%s7449_s8 + $0x70] sm:$0xff] }
  0x15   : > { %357 = vmatpush1.bf16.msra.mxu0 %v6594_v6  ;;  %v237_v29 = vpack.c.bf16 %v212_v28, %v211_v27  ;;  %v214_v31 = vld [vmem:[%s7449_s8 + $0x78] sm:$0xff]  ;;  %v215_v33 = vld [vmem:[%s7449_s8 + $0x80] sm:$0xff]  ;;  %v216_v34 = vld [vmem:[%s7449_s8 + $0x88] sm:$0xff] }
  0x16   : > { %358 = vmatprep.subr.bf16.mxu0 %v6595_v7  ;;  %v238_v32 = vpack.c.bf16 %v214_v31, %v213_v30  ;;  %v239_v35 = vpack.c.bf16 %v216_v34, %v215_v33  ;;  %v217_v36 = vld [vmem:[%s7449_s8 + $0x90] sm:$0xff]  ;;  %v218_v37 = vld [vmem:[%s7449_s8 + $0x98] sm:$0xff]  ;;  %v219_v39 = vld [vmem:[%s7449_s8 + $0xa0] sm:$0xff] }
  0x17   : > { %v240_v38 = vpack.c.bf16 %v218_v37, %v217_v36  ;;  %v220_v40 = vld [vmem:[%s7449_s8 + $0xa8] sm:$0xff]  ;;  %v221_v42 = vld [vmem:[%s7449_s8 + $0xb0] sm:$0xff]  ;;  %v222_v43 = vld [vmem:[%s7449_s8 + $0xb8] sm:$0xff] }
  0x18   : > { %v241_v41 = vpack.c.bf16 %v220_v40, %v219_v39  ;;  %v242_v44 = vpack.c.bf16 %v222_v43, %v221_v42  ;;  %v223_v45 = vld [vmem:[%s7449_s8 + $0xc0] sm:$0xff]  ;;  %v224_v46 = vld [vmem:[%s7449_s8 + $0xc8] sm:$0xff]  ;;  %v225_v48 = vld [vmem:[%s7449_s8 + $0xd0] sm:$0xff] }
  0x19   : > { %359 = vmatpush1.bf16.msra.mxu0 %v6597_v8  ;;  %v243_v47 = vpack.c.bf16 %v224_v46, %v223_v45  ;;  %v226_v49 = vld [vmem:[%s7449_s8 + $0xd8] sm:$0xff]  ;;  %v227_v51 = vld [vmem:[%s7449_s8 + $0xe0] sm:$0xff]  ;;  %v228_v52 = vld [vmem:[%s7449_s8 + $0xe8] sm:$0xff] }
  0x1a   : > { %v244_v50 = vpack.c.bf16 %v226_v49, %v225_v48  ;;  %v245_v53 = vpack.c.bf16 %v228_v52, %v227_v51  ;;  %v229_v54 = vld [vmem:[%s7449_s8 + $0xf0] sm:$0xff]  ;;  %v230_v55 = vld [vmem:[%s7449_s8 + $0xf8] sm:$0xff] }
  0x1b   : > { %v246_v56 = vpack.c.bf16 %v230_v55, %v229_v54 }
  0x1c   : > { %5733 = vmatmul.mubr.msk.bf16.vlgmr.msra.gmra.mxu0 %vm295_vm0, %v231_v11 }
  0x1d   : > { %386 = vmatprep.mubr.bf16.mxu0 %v7378_v2 }
  0x24   : > { %5734 = vmatmul.mubr.msk.bf16.gmra.mxu0 %vm295_vm0, %v232_v14 }
  0x25   : > { %396 = vmatprep.mubr.bf16.mxu0 %v7378_v2 }
  0x2c   : > { %5735 = vmatmul.mubr.msk.bf16.gmra.mxu0 %vm295_vm0, %v233_v17 }
  0x2d   : > { %406 = vmatprep.mubr.bf16.mxu0 %v7378_v2 }
  0x34   : > { %5736 = vmatmul.mubr.msk.bf16.gmra.mxu0 %vm295_vm0, %v234_v20 }
  0x35   : > { %416 = vmatprep.mubr.bf16.mxu0 %v7378_v2 }
  0x3c   : > { %5737 = vmatmul.mubr.msk.bf16.gmra.mxu0 %vm295_vm0, %v235_v23 }
  0x3d   : > { %426 = vmatprep.mubr.bf16.mxu0 %v7378_v2 }
  0x44   : > { %5738 = vmatmul.mubr.msk.bf16.gmra.mxu0 %vm295_vm0, %v236_v26 }
  0x45   : > { %436 = vmatprep.mubr.bf16.mxu0 %v7378_v2 }
  0x4c   : > { %5739 = vmatmul.mubr.msk.bf16.gmra.mxu0 %vm295_vm0, %v237_v29 }
  0x4d   : > { %446 = vmatprep.mubr.bf16.mxu0 %v7378_v2 }
  0x54   : > { %5740 = vmatmul.mubr.msk.bf16.gmra.mxu0 %vm295_vm0, %v238_v32 }
  0x55   : > { %456 = vmatprep.mubr.bf16.mxu0 %v7378_v2 }
  0x5c   : > { %5741 = vmatmul.mubr.msk.bf16.gmra.mxu0 %vm295_vm0, %v239_v35 }
  0x5d   : > { %466 = vmatprep.mubr.bf16.mxu0 %v7378_v2 }
  0x64   : > { %5742 = vmatmul.mubr.msk.bf16.gmra.mxu0 %vm295_vm0, %v240_v38 }
  0x65   : > { %476 = vmatprep.mubr.bf16.mxu0 %v7378_v2 }
  0x6c   : > { %5743 = vmatmul.mubr.msk.bf16.gmra.mxu0 %vm295_vm0, %v241_v41 }
  0x6d   : > { %486 = vmatprep.mubr.bf16.mxu0 %v7378_v2 }
  0x74   : > { %5744 = vmatmul.mubr.msk.bf16.gmra.mxu0 %vm295_vm0, %v242_v44 }
  0x75   : > { %496 = vmatprep.mubr.bf16.mxu0 %v7378_v2 }
  0x7c   : > { %5745 = vmatmul.mubr.msk.bf16.gmra.mxu0 %vm295_vm0, %v243_v47 }
  0x7d   : > { %506 = vmatprep.mubr.bf16.mxu0 %v7378_v2 }
  0x84   : > { %5746 = vmatmul.mubr.msk.bf16.gmra.mxu0 %vm295_vm0, %v244_v50 }
  0x85   : > { %516 = vmatprep.mubr.bf16.mxu0 %v7378_v2 }
  0x8c   : > { %5747 = vmatmul.mubr.msk.bf16.gmra.mxu0 %vm295_vm0, %v245_v53 }
  0x8d   : > { %526 = vmatprep.mubr.bf16.mxu0 %v7378_v2 }
  0x94   : > { %5748 = vmatmul.mubr.msk.bf16.gmra.mxu0 %vm295_vm0, %v246_v56 }
  0xdc   : > { %v378_v57 = vpop.f32.mrf.mxu0 }
  0xde   : > { %v7517_v58 = vpop.f32.mrf.mxu0 }
  0xe0   : > { %v382_v59 = vpop.f32.mrf.mxu0 }
  0xe1   : > { %v7519_v60 = vpack.c.bf16 %v382_v59, %v378_v57 }
  0xe2   : > { %v7521_v61 = vpop.f32.mrf.mxu0 }
  0xe3   : > { %11765 = vst [vmem:[#allocation3_spill] sm:$0xff] %v7519_v60  ;;  %569 = vrot.lane.b32.xlu0 %v7519_v60, %s7379_s11  ;;  %5854 = vmatprep.mubr.msk.bf16.mxu1 %vm601_vm1, %v7519_v60 }
  0xe4   : > { %v388_v62 = vpop.f32.mrf.mxu0 }
  0xe6   : > { %v7527_v63 = vpop.f32.mrf.mxu0 }
  0xe7   : > { %1676 = vrot.lane.b32.xlu0 %v7519_v60, %s7380_s12 }
  0xe8   : > { %v392_v0 = vpop.f32.mrf.mxu0 }
  0xe9   : > { %v7531_v1 = vpack.c.bf16 %v392_v0, %v388_v62 }
  0xea   : > { %v7533_v2 = vpop.f32.mrf.mxu0 }
  0xeb   : > { %11766 = vst [vmem:[#allocation4_spill] sm:$0xff] %v7531_v1  ;;  %1644 = vrot.lane.b32.xlu0 %v7519_v60, %s7381_s13  ;;  %1646 = vrot.lane.b32.xlu1 %v7531_v1, %s7381_s13 }
  0xec   : > { %v398_v3 = vpop.f32.mrf.mxu0 }
  0xee   : > { %v7539_v4 = vpop.f32.mrf.mxu0 }
  0xef   : > { %2927 = vrot.lane.b32.xlu0 %v7519_v60, %s7382_s14  ;;  %2929 = vrot.lane.b32.xlu1 %v7531_v1, %s7382_s14 }
  0xf0   : > { %v402_v5 = vpop.f32.mrf.mxu0 }
  0xf1   : > { %v7545_v6 = vpack.c.bf16 %v402_v5, %v398_v3 }
  0xf2   : > { %v7547_v7 = vpop.f32.mrf.mxu0 }
  0xf3   : > { %11767 = vst [vmem:[#allocation5_spill] sm:$0xff] %v7545_v6  ;;  %2895 = vrot.lane.b32.xlu0 %v7519_v60, %s7383_s17  ;;  %2899 = vrot.lane.b32.xlu1 %v7545_v6, %s7383_s17 }
  0xf4   : > { %v408_v8 = vpop.f32.mrf.mxu0 }
  0xf6   : > { %v410_v9 = vpop.f32.mrf.mxu0 }
  0xf7   : > { %571 = vrot.lane.b32.xlu0 %v7531_v1, %s7379_s11 }
  0xf8   : > { %v412_v10 = vpop.f32.mrf.mxu0 }
  0xf9   : > { %v7555_v11 = vpack.c.bf16 %v412_v10, %v408_v8 }
  0xfa   : > { %v414_v12 = vpop.f32.mrf.mxu0 }
  0xfb   : > { %11768 = vst [vmem:[#allocation6_spill] sm:$0xff] %v7555_v11  ;;  %1678 = vrot.lane.b32.xlu0 %v7531_v1, %s7380_s12  ;;  %1650 = vrot.lane.b32.xlu1 %v7555_v11, %s7381_s13  ;;  %v7607_v37 = vpack.c.bf16 %v414_v12, %v410_v9 }
  0xfc   : > { %v418_v13 = vpop.f32.mrf.mxu0 }
  0xfd   : > { %11776 = vst [vmem:[#allocation14_spill] sm:$0xff] %v7607_v37 }
  0xfe   : > { %v420_v14 = vpop.f32.mrf.mxu0 }
  0xff   : > { %2897 = vrot.lane.b32.xlu0 %v7531_v1, %s7383_s17  ;;  %2933 = vrot.lane.b32.xlu1 %v7555_v11, %s7382_s14 }
 0x100   : > { %v422_v15 = vpop.f32.mrf.mxu0 }
 0x101   : > { %v7565_v16 = vpack.c.bf16 %v422_v15, %v418_v13 }
 0x102   : > { %v424_v17 = vpop.f32.mrf.mxu0 }
 0x103   : > { %11769 = vst [vmem:[#allocation7_spill] sm:$0xff] %v7565_v16  ;;  %v7567_v18 = vpack.c.bf16 %v424_v17, %v420_v14  ;;  %573 = vrot.lane.b32.xlu0 %v7545_v6, %s7379_s11  ;;  %2903 = vrot.lane.b32.xlu1 %v7565_v16, %s7383_s17 }
 0x104   : > { %v428_v19 = vpop.f32.mrf.mxu0 }
 0x105   : > { %11770 = vst [vmem:[#allocation8_spill] sm:$0xff] %v7567_v18 }
 0x106   : > { %v430_v20 = vpop.f32.mrf.mxu0 }
 0x107   : > { %1680 = vrot.lane.b32.xlu0 %v7545_v6, %s7380_s12  ;;  %4138 = vrot.lane.b32.xlu1 %v7567_v18, %s7384_s18 }
 0x108   : > { %v432_v21 = vpop.f32.mrf.mxu0 }
 0x109   : > { %v7577_v22 = vpack.c.bf16 %v432_v21, %v428_v19 }
 0x10a   : > { %v434_v23 = vpop.f32.mrf.mxu0 }
 0x10b   : > { %11771 = vst [vmem:[#allocation9_spill] sm:$0xff] %v7577_v22  ;;  %1648 = vrot.lane.b32.xlu0 %v7545_v6, %s7381_s13  ;;  %1654 = vrot.lane.b32.xlu1 %v7577_v22, %s7381_s13  ;;  %v7583_v26 = vpack.c.bf16 %v434_v23, %v430_v20 }
 0x10c   : > { %v438_v24 = vpop.f32.mrf.mxu0 }
 0x10d   : > { %11772 = vst [vmem:[#allocation10_spill] sm:$0xff] %v7583_v26 }
 0x10e   : > { %v440_v25 = vpop.f32.mrf.mxu0 }
 0x10f   : > { %2931 = vrot.lane.b32.xlu0 %v7545_v6, %s7382_s14  ;;  %2937 = vrot.lane.b32.xlu1 %v7577_v22, %s7382_s14 }
 0x110   : > { %v442_v27 = vpop.f32.mrf.mxu0 }
 0x111   : > { %v7593_v29 = vpack.c.bf16 %v442_v27, %v438_v24 }
 0x112   : > { %v444_v28 = vpop.f32.mrf.mxu0 }
 0x113   : > { %575 = vrot.lane.b32.xlu0 %v7555_v11, %s7379_s11  ;;  %4140 = vrot.lane.b32.xlu1 %v7583_v26, %s7384_s18  ;;  %11773 = vst [vmem:[#allocation11_spill] sm:$0xff] %v7593_v29  ;;  %v7595_v32 = vpack.c.bf16 %v444_v28, %v440_v25 }
 0x114   : > { %v448_v30 = vpop.f32.mrf.mxu0 }
 0x115   : > { %11774 = vst [vmem:[#allocation12_spill] sm:$0xff] %v7595_v32 }
 0x116   : > { %v450_v31 = vpop.f32.mrf.mxu0 }
 0x117   : > { %1682 = vrot.lane.b32.xlu0 %v7555_v11, %s7380_s12  ;;  %581 = vrot.lane.b32.xlu1 %v7593_v29, %s7379_s11 }
 0x118   : > { %v452_v33 = vpop.f32.mrf.mxu0 }
 0x119   : > { %v7605_v35 = vpack.c.bf16 %v452_v33, %v448_v30 }
 0x11a   : > { %v454_v34 = vpop.f32.mrf.mxu0 }
 0x11b   : > { %2901 = vrot.lane.b32.xlu0 %v7555_v11, %s7383_s17  ;;  %4142 = vrot.lane.b32.xlu1 %v7595_v32, %s7384_s18  ;;  %11775 = vst [vmem:[#allocation13_spill] sm:$0xff] %v7605_v35  ;;  %v7625_v42 = vpack.c.bf16 %v454_v34, %v450_v31 }
 0x11c   : > { %v458_v36 = vpop.f32.mrf.mxu0 }
 0x11d   : > { %11777 = vst [vmem:[#allocation15_spill] sm:$0xff] %v7625_v42 }
 0x11e   : > { %v7609_v38 = vpop.f32.mrf.mxu0 }
 0x11f   : > { %4136 = vrot.lane.b32.xlu0 %v7607_v37, %s7384_s18  ;;  %1658 = vrot.lane.b32.xlu1 %v7605_v35, %s7381_s13 }
 0x120   : > { %v462_v39 = vpop.f32.mrf.mxu0 }
 0x121   : > { %v7637_v44 = vpack.c.bf16 %v462_v39, %v458_v36 }
 0x122   : > { %v7619_v40 = vpop.f32.mrf.mxu0 }
 0x123   : > { %577 = vrot.lane.b32.xlu0 %v7565_v16, %s7379_s11  ;;  %2941 = vrot.lane.b32.xlu1 %v7605_v35, %s7382_s14  ;;  %11778 = vst [vmem:[#allocation16_spill] sm:$0xff] %v7637_v44 }
 0x124   : > { %v468_v41 = vpop.f32.mrf.mxu0 }
 0x126   : > { %v7631_v43 = vpop.f32.mrf.mxu0 }
 0x127   : > { %1684 = vrot.lane.b32.xlu0 %v7565_v16, %s7380_s12  ;;  %2909 = vrot.lane.b32.xlu1 %v7605_v35, %s7383_s17 }
 0x128   : > { %v472_v45 = vpop.f32.mrf.mxu0 }
 0x129   : > { %v7655_v49 = vpack.c.bf16 %v472_v45, %v468_v41 }
 0x12a   : > { %v7639_v46 = vpop.f32.mrf.mxu0 }
 0x12b   : > { %1652 = vrot.lane.b32.xlu0 %v7565_v16, %s7381_s13  ;;  %1417 = vrot.lane.b32.xlu1 %v7605_v35, %s7384_s18  ;;  %11779 = vst [vmem:[#allocation17_spill] sm:$0xff] %v7655_v49 }
 0x12c   : > { %v478_v47 = vpop.f32.mrf.mxu0 }
 0x12e   : > { %v7649_v48 = vpop.f32.mrf.mxu0 }
 0x12f   : > { %2935 = vrot.lane.b32.xlu0 %v7565_v16, %s7382_s14  ;;  %4144 = vrot.lane.b32.xlu1 %v7625_v42, %s7384_s18 }
 0x130   : > { %v482_v50 = vpop.f32.mrf.mxu0 }
 0x131   : > { %v7671_v53 = vpack.c.bf16 %v482_v50, %v478_v47 }
 0x132   : > { %v7661_v51 = vpop.f32.mrf.mxu0 }
 0x133   : > { %579 = vrot.lane.b32.xlu0 %v7577_v22, %s7379_s11  ;;  %585 = vrot.lane.b32.xlu1 %v7637_v44, %s7379_s11  ;;  %11780 = vst [vmem:[#allocation18_spill] sm:$0xff] %v7671_v53 }
 0x134   : > { %v488_v52 = vpop.f32.mrf.mxu0 }
 0x136   : > { %v490_v54 = vpop.f32.mrf.mxu0 }
 0x137   : > { %1686 = vrot.lane.b32.xlu0 %v7577_v22, %s7380_s12  ;;  %1692 = vrot.lane.b32.xlu1 %v7637_v44, %s7380_s12 }
 0x138   : > { %v492_v55 = vpop.f32.mrf.mxu0 }
 0x139   : > { %v7685_v59 = vpack.c.bf16 %v492_v55, %v488_v52 }
 0x13a   : > { %v494_v56 = vpop.f32.mrf.mxu0 }
 0x13b   : > { %2905 = vrot.lane.b32.xlu0 %v7577_v22, %s7383_s17  ;;  %2943 = vrot.lane.b32.xlu1 %v7637_v44, %s7382_s14  ;;  %11781 = vst [vmem:[#allocation19_spill] sm:$0xff] %v7685_v59  ;;  %v7703_v12 = vpack.c.bf16 %v494_v56, %v490_v54 }
 0x13c   : > { %v498_v57 = vpop.f32.mrf.mxu0 }
 0x13d   : > { %11782 = vst [vmem:[#allocation20_spill] sm:$0xff] %v7703_v12 }
 0x13e   : > { %v500_v0 = vpop.f32.mrf.mxu0 }
 0x13f   : > { %1688 = vrot.lane.b32.xlu0 %v7593_v29, %s7380_s12  ;;  %587 = vrot.lane.b32.xlu1 %v7655_v49, %s7379_s11 }
 0x140   : > { %v502_v5 = vpop.f32.mrf.mxu0 }
 0x141   : > { %v7717_v17 = vpack.c.bf16 %v502_v5, %v498_v57 }
 0x142   : > { %v504_v8 = vpop.f32.mrf.mxu0 }
 0x143   : > { %1656 = vrot.lane.b32.xlu0 %v7593_v29, %s7381_s13  ;;  %1694 = vrot.lane.b32.xlu1 %v7655_v49, %s7380_s12  ;;  %11785 = vst [vmem:[#allocation23_spill] sm:$0xff] %v7717_v17 }
 0x144   : > { %v508_v13 = vpop.f32.mrf.mxu0 }
 0x146   : > { %v510_v19 = vpop.f32.mrf.mxu0 }
 0x147   : > { %2939 = vrot.lane.b32.xlu0 %v7593_v29, %s7382_s14  ;;  %1662 = vrot.lane.b32.xlu1 %v7655_v49, %s7381_s13 }
 0x148   : > { %v512_v23 = vpop.f32.mrf.mxu0 }
 0x149   : > { %v7741_v31 = vpack.c.bf16 %v512_v23, %v508_v13  ;;  %v7777_v13 = vpack.c.bf16 %v504_v8, %v500_v0 }
 0x14a   : > { %v514_v25 = vpop.f32.mrf.mxu0 }
 0x14b   : > { %2907 = vrot.lane.b32.xlu0 %v7593_v29, %s7383_s17  ;;  %589 = vrot.lane.b32.xlu1 %v7671_v53, %s7379_s11  ;;  %11789 = vst [vmem:[#allocation27_spill] sm:$0xff] %v7741_v31  ;;  %11796 = vst [vmem:[#allocation34_spill] sm:$0xff] %v7777_v13  ;;  %v7797_v8 = vpack.c.bf16 %v514_v25, %v510_v19 }
 0x14c   : > { %v518_v30 = vpop.f32.mrf.mxu0 }
 0x14d   : > { %11801 = vst [vmem:[#allocation39_spill] sm:$0xff] %v7797_v8 }
 0x14e   : > { %v520_v36 = vpop.f32.mrf.mxu0 }
 0x14f   : > { %1415 = vrot.lane.b32.xlu0 %v7593_v29, %s7384_s18  ;;  %1696 = vrot.lane.b32.xlu1 %v7671_v53, %s7380_s12 }
 0x150   : > { %v522_v45 = vpop.f32.mrf.mxu0 }
 0x151   : > { %v7767_v54 = vpack.c.bf16 %v522_v45, %v518_v30 }
 0x152   : > { %v524_v47 = vpop.f32.mrf.mxu0 }
 0x153   : > { %583 = vrot.lane.b32.xlu0 %v7605_v35, %s7379_s11  ;;  %2947 = vrot.lane.b32.xlu1 %v7671_v53, %s7382_s14  ;;  %11794 = vst [vmem:[#allocation32_spill] sm:$0xff] %v7767_v54 }
 0x154   : > { %v528_v55 = vpop.f32.mrf.mxu0 }
 0x155   : > { %v7687_v62 = vpop.permute.xlu0 %569 }
 0x156   : > { %v530_v5 = vpop.f32.mrf.mxu0 }
 0x157   : > { %1690 = vrot.lane.b32.xlu0 %v7605_v35, %s7380_s12  ;;  %591 = vrot.lane.b32.xlu1 %v7685_v59, %s7379_s11 }
 0x158   : > { %v532_v30 = vpop.f32.mrf.mxu0 }
 0x159   : > { %v7693_v3 = vpop.permute.xlu0 %1676  ;;  %v7795_v0 = vpack.c.bf16 %v532_v30, %v528_v55  ;;  %v7825_v55 = vpack.c.bf16 %v7547_v7, %v7539_v4  ;;  %v7827_v30 = vpack.c.bf16 %v524_v47, %v520_v36  ;;  %v7855_v36 = vpack.c.bf16 %v7639_v46, %v7631_v43 }
 0x15a   : > { %v7877_v43 = vpack.c.bf16 %v7521_v61, %v7517_v58 }
 0x15b   : > { %1660 = vrot.lane.b32.xlu0 %v7637_v44, %s7381_s13  ;;  %1698 = vrot.lane.b32.xlu1 %v7685_v59, %s7380_s12  ;;  %11800 = vst [vmem:[#allocation38_spill] sm:$0xff] %v7795_v0  ;;  %11806 = vst [vmem:[#allocation44_spill] sm:$0xff] %v7825_v55 }
 0x15c   : > { %11807 = vst [vmem:[#allocation45_spill] sm:$0xff] %v7827_v30  ;;  %11810 = vst [vmem:[#allocation48_spill] sm:$0xff] %v7855_v36 }
 0x15d   : > { %v7699_v9 = vpop.permute.xlu0 %1644  ;;  %v7701_v10 = vpop.permute.xlu1 %1646  ;;  %11814 = vst [vmem:[#allocation52_spill] sm:$0xff] %v7877_v43 }
 0x15f   : > { %2911 = vrot.lane.b32.xlu0 %v7637_v44, %s7383_s17  ;;  %1666 = vrot.lane.b32.xlu1 %v7685_v59, %s7381_s13 }
 0x161   : > { %v7709_v14 = vpop.permute.xlu0 %2927  ;;  %v7711_v15 = vpop.permute.xlu1 %2929 }
 0x162   : > { %11783 = vst [vmem:[#allocation21_spill] sm:$0xff] %v7709_v14  ;;  %11784 = vst [vmem:[#allocation22_spill] sm:$0xff] %v7711_v15 }
 0x163   : > { %2945 = vrot.lane.b32.xlu0 %v7655_v49, %s7382_s14  ;;  %4152 = vrot.lane.b32.xlu1 %v7703_v12, %s7384_s18 }
 0x165   : > { %v7719_v20 = vpop.permute.xlu0 %2895  ;;  %v7725_v21 = vpop.permute.xlu1 %2899 }
 0x166   : > { %11786 = vst [vmem:[#allocation24_spill] sm:$0xff] %v7719_v20  ;;  %11787 = vst [vmem:[#allocation25_spill] sm:$0xff] %v7725_v21 }
 0x167   : > { %2913 = vrot.lane.b32.xlu0 %v7655_v49, %s7383_s17  ;;  %593 = vrot.lane.b32.xlu1 %v7717_v17, %s7379_s11 }
 0x169   : > { %v7727_v24 = vpop.permute.xlu0 %571 }
 0x16b   : > { %1664 = vrot.lane.b32.xlu0 %v7671_v53, %s7381_s13  ;;  %1700 = vrot.lane.b32.xlu1 %v7717_v17, %s7380_s12 }
 0x16d   : > { %v7733_v27 = vpop.permute.xlu0 %1678  ;;  %v7735_v28 = vpop.permute.xlu1 %1650 }
 0x16e   : > { %11788 = vst [vmem:[#allocation26_spill] sm:$0xff] %v7735_v28 }
 0x16f   : > { %2915 = vrot.lane.b32.xlu0 %v7671_v53, %s7383_s17  ;;  %2951 = vrot.lane.b32.xlu1 %v7717_v17, %s7382_s14 }
 0x171   : > { %v7743_v33 = vpop.permute.xlu0 %2897  ;;  %v7745_v34 = vpop.permute.xlu1 %2933 }
 0x172   : > { %11790 = vst [vmem:[#allocation28_spill] sm:$0xff] %v7743_v33  ;;  %11791 = vst [vmem:[#allocation29_spill] sm:$0xff] %v7745_v34 }
 0x173   : > { %2949 = vrot.lane.b32.xlu0 %v7685_v59, %s7382_s14  ;;  %595 = vrot.lane.b32.xlu1 %v7741_v31, %s7379_s11 }
 0x175   : > { %v7751_v39 = vpop.permute.xlu0 %573  ;;  %v7753_v41 = vpop.permute.xlu1 %2903 }
 0x176   : > { %11792 = vst [vmem:[#allocation30_spill] sm:$0xff] %v7753_v41 }
 0x177   : > { %2917 = vrot.lane.b32.xlu0 %v7685_v59, %s7383_s17  ;;  %1702 = vrot.lane.b32.xlu1 %v7741_v31, %s7380_s12 }
 0x179   : > { %v7759_v50 = vpop.permute.xlu0 %1680  ;;  %v7761_v52 = vpop.permute.xlu1 %4138 }
 0x17a   : > { %11793 = vst [vmem:[#allocation31_spill] sm:$0xff] %v7761_v52 }
 0x17b   : > { %1668 = vrot.lane.b32.xlu0 %v7717_v17, %s7381_s13  ;;  %1670 = vrot.lane.b32.xlu1 %v7741_v31, %s7381_s13 }
 0x17d   : > { %v7769_v56 = vpop.permute.xlu0 %1648  ;;  %v7771_v57 = vpop.permute.xlu1 %1654 }
 0x17e   : > { %11795 = vst [vmem:[#allocation33_spill] sm:$0xff] %v7771_v57 }
 0x17f   : > { %2919 = vrot.lane.b32.xlu0 %v7717_v17, %s7383_s17  ;;  %597 = vrot.lane.b32.xlu1 %v7767_v54, %s7379_s11 }
 0x181   : > { %v7779_v23 = vpop.permute.xlu0 %2931  ;;  %v7781_v12 = vpop.permute.xlu1 %2937 }
 0x182   : > { %11797 = vst [vmem:[#allocation35_spill] sm:$0xff] %v7779_v23  ;;  %11798 = vst [vmem:[#allocation36_spill] sm:$0xff] %v7781_v12 }
 0x183   : > { %4154 = vrot.lane.b32.xlu0 %v7777_v13, %s7384_s18  ;;  %1704 = vrot.lane.b32.xlu1 %v7767_v54, %s7380_s12 }
 0x185   : > { %v7787_v45 = vpop.permute.xlu0 %575  ;;  %v7789_v42 = vpop.permute.xlu1 %4140 }
 0x186   : > { %11799 = vst [vmem:[#allocation37_spill] sm:$0xff] %v7789_v42 }
 0x187   : > { %2953 = vrot.lane.b32.xlu0 %v7741_v31, %s7382_s14  ;;  %2955 = vrot.lane.b32.xlu1 %v7767_v54, %s7382_s14 }
 0x189   : > { %v7799_v32 = vpop.permute.xlu0 %1682  ;;  %v7801_v13 = vpop.permute.xlu1 %581 }
 0x18a   : > { %v669_v12 = vsel %vm601_vm1, %v7801_v13, 0 }
 0x18b   : > { %4156 = vrot.lane.b32.xlu0 %v7797_v8, %s7384_s18  ;;  %1706 = vrot.lane.b32.xlu1 %v7795_v0, %s7380_s12 }
 0x18d   : > { %v7807_v26 = vpop.permute.xlu0 %2901  ;;  %v7809_v18 = vpop.permute.xlu1 %4142 }
 0x18e   : > { %11802 = vst [vmem:[#allocation40_spill] sm:$0xff] %v7807_v26  ;;  %11803 = vst [vmem:[#allocation41_spill] sm:$0xff] %v7809_v18 }
 0x18f   : > { %1672 = vrot.lane.b32.xlu0 %v7767_v54, %s7381_s13  ;;  %1674 = vrot.lane.b32.xlu1 %v7795_v0, %s7381_s13 }
 0x191   : > { %v7815_v19 = vpop.permute.xlu0 %4136  ;;  %v7817_v25 = vpop.permute.xlu1 %1658 }
 0x192   : > { %11804 = vst [vmem:[#allocation42_spill] sm:$0xff] %v7815_v19  ;;  %11805 = vst [vmem:[#allocation43_spill] sm:$0xff] %v7817_v25 }
 0x193   : > { %1431 = vrot.lane.b32.xlu0 %v7767_v54, %s7384_s18  ;;  %1413 = vrot.lane.b32.xlu1 %v7577_v22, %s7384_s18 }
 0x195   : > { %v7829_v8 = vpop.permute.xlu0 %577  ;;  %v7831_v37 = vpop.permute.xlu1 %2941 }
 0x197   : > { %4158 = vrot.lane.b32.xlu0 %v7827_v30, %s7384_s18  ;;  %4134 = vrot.lane.b32.xlu1 %v7825_v55, %s7384_s18  ;;  %v534_v55 = vpop.f32.mrf.mxu0 }
 0x199   : > { %v7837_v19 = vpop.permute.xlu0 %1684  ;;  %v7839_v41 = vpop.permute.xlu1 %2909 }
 0x19a   : > { %11808 = vst [vmem:[#allocation46_spill] sm:$0xff] %v7839_v41  ;;  %v7865_v41 = vpack.c.bf16 %v534_v55, %v530_v5 }
 0x19b   : > { %1411 = vrot.lane.b32.xlu1 %v7565_v16, %s7384_s18  ;;  %599 = vrot.lane.b32.xlu0 %v7795_v0, %s7379_s11 }
 0x19c   : > { %11813 = vst [vmem:[#allocation51_spill] sm:$0xff] %v7865_v41 }
 0x19d   : > { %v7845_v4 = vpop.permute.xlu0 %1652  ;;  %v7847_v7 = vpop.permute.xlu1 %1417 }
 0x19e   : > { %11809 = vst [vmem:[#allocation47_spill] sm:$0xff] %v7845_v4 }
 0x19f   : > { %1409 = vrot.lane.b32.xlu1 %v7555_v11, %s7384_s18  ;;  %2957 = vrot.lane.b32.xlu0 %v7795_v0, %s7382_s14 }
 0x1a1   : > { %v7857_v47 = vpop.permute.xlu0 %2935  ;;  %v7859_v30 = vpop.permute.xlu1 %4144 }
 0x1a2   : > { %11811 = vst [vmem:[#allocation49_spill] sm:$0xff] %v7857_v47  ;;  %11812 = vst [vmem:[#allocation50_spill] sm:$0xff] %v7859_v30 }
 0x1a3   : > { %4148 = vrot.lane.b32.xlu1 %v7855_v36, %s7384_s18  ;;  %1433 = vrot.lane.b32.xlu0 %v7795_v0, %s7384_s18 }
 0x1a5   : > { %v7867_v52 = vpop.permute.xlu0 %579  ;;  %v7869_v26 = vpop.permute.xlu1 %585 }
 0x1a7   : > { %1405 = vrot.lane.b32.xlu1 %v7531_v1, %s7384_s18  ;;  %4160 = vrot.lane.b32.xlu0 %v7865_v41, %s7384_s18  ;;  %v7905_v41 = vpack.c.bf16 %v7533_v2, %v7527_v63 }
 0x1a9   : > { %v7879_v46 = vpop.permute.xlu0 %1686  ;;  %v7881_v36 = vpop.permute.xlu1 %1692  ;;  %11817 = vst [vmem:[#allocation55_spill] sm:$0xff] %v7905_v41 }
 0x1ab   : > { %4130 = vrot.lane.b32.xlu1 %v7877_v43, %s7384_s18  ;;  %1429 = vrot.lane.b32.xlu0 %v7741_v31, %s7384_s18 }
 0x1ad   : > { %v7887_v5 = vpop.permute.xlu0 %2905  ;;  %v7889_v55 = vpop.permute.xlu1 %2943 }
 0x1ae   : > { %11815 = vst [vmem:[#allocation53_spill] sm:$0xff] %v7887_v5  ;;  %11816 = vst [vmem:[#allocation54_spill] sm:$0xff] %v7889_v55  ;;  %v7909_v5 = vpack.c.bf16 %v7661_v51, %v7649_v48 }
 0x1af   : > { %1403 = vrot.lane.b32.xlu1 %v7519_v60, %s7384_s18  ;;  %2921 = vrot.lane.b32.xlu0 %v7741_v31, %s7383_s17 }
 0x1b0   : > { %11818 = vst [vmem:[#allocation56_spill] sm:$0xff] %v7909_v5 }
 0x1b1   : > { %v7895_v58 = vpop.permute.xlu0 %1688  ;;  %v7897_v61 = vpop.permute.xlu1 %587 }
 0x1b3   : > { %4098 = vrot.lane.b32.xlu1 %v7877_v43, %s7379_s11  ;;  %1427 = vrot.lane.b32.xlu0 %v7717_v17, %s7384_s18 }
 0x1b5   : > { %v7911_v42 = vpop.permute.xlu0 %1656  ;;  %v7913_v21 = vpop.permute.xlu1 %1694 }
 0x1b6   : > { %11819 = vst [vmem:[#allocation57_spill] sm:$0xff] %v7911_v42 }
 0x1b7   : > { %4100 = vrot.lane.b32.xlu1 %v7905_v41, %s7379_s11  ;;  %4150 = vrot.lane.b32.xlu0 %v7909_v5, %s7384_s18 }
 0x1b9   : > { %v7919_v43 = vpop.permute.xlu0 %2939  ;;  %v7921_v18 = vpop.permute.xlu1 %1662 }
 0x1ba   : > { %11820 = vst [vmem:[#allocation58_spill] sm:$0xff] %v7921_v18 }
 0x1bb   : > { %1425 = vrot.lane.b32.xlu0 %v7685_v59, %s7384_s18 }
 0x1bd   : > { %v7925_v63 = vpop.permute.xlu0 %2907  ;;  %v7927_v2 = vpop.permute.xlu1 %589 }
 0x1be   : > { %11821 = vst [vmem:[#allocation59_spill] sm:$0xff] %v7925_v63 }
 0x1bf   : > { %2923 = vrot.lane.b32.xlu0 %v7767_v54, %s7383_s17 }
 0x1c1   : > { %v1416_v48 = vpop.permute.xlu0 %1415  ;;  %v7931_v51 = vpop.permute.xlu1 %1696 }
 0x1c3   : > { %1423 = vrot.lane.b32.xlu0 %v7671_v53, %s7384_s18 }
 0x1c5   : > { %v584_v5 = vpop.permute.xlu0 %583  ;;  %v7935_v33 = vpop.permute.xlu1 %2947 }
 0x1c6   : > { %11822 = vst [vmem:[#allocation60_spill] sm:$0xff] %v7935_v33 }
 0x1c7   : > { %4132 = vrot.lane.b32.xlu0 %v7905_v41, %s7384_s18 }
 0x1c9   : > { %v7939_v30 = vpop.permute.xlu0 %1690  ;;  %v7941_v63 = vpop.permute.xlu1 %591 }
 0x1cb   : > { %1407 = vrot.lane.b32.xlu0 %v7545_v6, %s7384_s18 }
 0x1cd   : > { %v7945_v20 = vpop.permute.xlu0 %1660  ;;  %v7947_v18 = vpop.permute.xlu1 %1698 }
 0x1ce   : > { %11823 = vst [vmem:[#allocation61_spill] sm:$0xff] %v7945_v20  ;;  %v7965_v20 = vpack.c.bf16 %v7619_v40, %v7609_v38 }
 0x1cf   : > { %1421 = vrot.lane.b32.xlu0 %v7655_v49, %s7384_s18 }
 0x1d0   : > { %11828 = vst [vmem:[#allocation66_spill] sm:$0xff] %v7965_v20 }
 0x1d1   : > { %v7951_v14 = vpop.permute.xlu0 %2911  ;;  %v7953_v55 = vpop.permute.xlu1 %1666 }
 0x1d2   : > { %11824 = vst [vmem:[#allocation62_spill] sm:$0xff] %v7951_v14  ;;  %11825 = vst [vmem:[#allocation63_spill] sm:$0xff] %v7953_v55 }
 0x1d3   : > { %2925 = vrot.lane.b32.xlu0 %v7795_v0, %s7383_s17 }
 0x1d5   : > { %v7957_v41 = vpop.permute.xlu0 %2945  ;;  %v7959_v25 = vpop.permute.xlu1 %4152 }
 0x1d6   : > { %11826 = vst [vmem:[#allocation64_spill] sm:$0xff] %v7957_v41  ;;  %11827 = vst [vmem:[#allocation65_spill] sm:$0xff] %v7959_v25 }
 0x1d7   : > { %1419 = vrot.lane.b32.xlu0 %v7637_v44, %s7384_s18 }
 0x1d9   : > { %v7967_v15 = vpop.permute.xlu0 %2913  ;;  %v594_v42 = vpop.permute.xlu1 %593 }
 0x1da   : > { %11829 = vst [vmem:[#allocation67_spill] sm:$0xff] %v7967_v15 }
 0x1db   : > { %4146 = vrot.lane.b32.xlu0 %v7965_v20, %s7384_s18 }
 0x1dd   : > { %v7971_v14 = vpop.permute.xlu0 %1664  ;;  %v7973_v55 = vpop.permute.xlu1 %1700 }
 0x1de   : > { %11830 = vst [vmem:[#allocation68_spill] sm:$0xff] %v7971_v14 }
 0x1e1   : > { %v7975_v41 = vpop.permute.xlu0 %2915  ;;  %v7977_v25 = vpop.permute.xlu1 %2951 }
 0x1e2   : > { %11831 = vst [vmem:[#allocation69_spill] sm:$0xff] %v7975_v41  ;;  %11832 = vst [vmem:[#allocation70_spill] sm:$0xff] %v7977_v25 }
 0x1e5   : > { %v7979_v23 = vpop.permute.xlu0 %2949  ;;  %v596_v38 = vpop.permute.xlu1 %595 }
 0x1e6   : > { %11833 = vst [vmem:[#allocation71_spill] sm:$0xff] %v7979_v23 }
 0x1e9   : > { %v7981_v33 = vpop.permute.xlu0 %2917  ;;  %v7985_v15 = vpop.permute.xlu1 %1702 }
 0x1ea   : > { %11834 = vst [vmem:[#allocation72_spill] sm:$0xff] %v7981_v33 }
 0x1ed   : > { %v7983_v40 = vpop.permute.xlu0 %1668  ;;  %v7991_v14 = vpop.permute.xlu1 %1670 }
 0x1ee   : > { %11835 = vst [vmem:[#allocation73_spill] sm:$0xff] %v7983_v40  ;;  %11838 = vst [vmem:[#allocation76_spill] sm:$0xff] %v7991_v14 }
 0x1f1   : > { %v7987_v57 = vpop.permute.xlu0 %2919  ;;  %v598_v41 = vpop.permute.xlu1 %597 }
 0x1f2   : > { %11836 = vst [vmem:[#allocation74_spill] sm:$0xff] %v7987_v57 }
 0x1f5   : > { %v7989_v20 = vpop.permute.xlu0 %4154  ;;  %v7999_v23 = vpop.permute.xlu1 %1704 }
 0x1f6   : > { %11837 = vst [vmem:[#allocation75_spill] sm:$0xff] %v7989_v20  ;;  %v672_v20 = vsel %vm601_vm1, %v584_v5, 0  ;;  %v666_v5 = vsel %vm601_vm1, %v7867_v52, 0 }
 0x1f9   : > { %v7993_v34 = vpop.permute.xlu0 %2953  ;;  %v8001_v25 = vpop.permute.xlu1 %2955 }
 0x1fd   : > { %v7995_v4 = vpop.permute.xlu0 %4156  ;;  %v1707_v57 = vpop.permute.xlu1 %1706 }
 0x1fe   : > { %11839 = vst [vmem:[#allocation77_spill] sm:$0xff] %v7995_v4 }
 0x201   : > { %v7997_v47 = vpop.permute.xlu0 %1672  ;;  %v8010_v4 = vpop.permute.xlu1 %1674 }
 0x202   : > { %11840 = vst [vmem:[#allocation78_spill] sm:$0xff] %v7997_v47 }
 0x205   : > { %v1432_v33 = vpop.permute.xlu0 %1431 }
 0x209   : > { %v8003_v40 = vpop.permute.xlu0 %4158 }
 0x20d   : > { %v600_v28 = vpop.permute.xlu0 %599 }
 0x20e   : > { %6538 = vmatprep.subr.msk.bf16.mxu1 %vm601_vm1, %v600_v28 }
 0x20f   : > { %5839 = vmatpush3.bf16.xpose.msra.mxu1 %v672_v20  ;;  %v1414_v20 = vpop.permute.xlu1 %1413 }
 0x210   : > { %6539 = vmatprep.subr.msk.bf16.mxu1 %vm601_vm1, %v598_v41 }
 0x211   : > { %v8008_v14 = vpop.permute.xlu0 %2957 }
 0x215   : > { %v1434_v47 = vpop.permute.xlu0 %1433 }
 0x216   : > { %5886 = vmatprep.subr.bf16.mxu0 %v1434_v47  ;;  %v8020_v47 = vpop.permute.xlu1 %4134 }
 0x217   : > { %5841 = vmatpush3.bf16.xpose.msra.mxu1 %v669_v12  ;;  %5887 = vmatpush3.bf16.msra.mxu0 %v7847_v7 }
 0x218   : > { %6540 = vmatprep.subr.msk.bf16.mxu1 %vm601_vm1, %v596_v38  ;;  %5888 = vmatprep.subr.bf16.mxu0 %v1432_v33  ;;  %v663_v33 = vsel %vm601_vm1, %v7829_v8, 0 }
 0x219   : > { %v8016_v28 = vpop.permute.xlu0 %4160 }
 0x21a   : > { %v1412_v7 = vpop.permute.xlu1 %1411 }
 0x21b   : > { %5889 = vmatpush3.bf16.msra.mxu0 %v1416_v48 }
 0x21d   : > { %v1430_v41 = vpop.permute.xlu0 %1429 }
 0x21e   : > { %5890 = vmatprep.subr.bf16.mxu0 %v1430_v41  ;;  %v1410_v38 = vpop.permute.xlu1 %1409 }
 0x21f   : > { %5843 = vmatpush3.bf16.xpose.msra.mxu1 %v666_v5  ;;  %5891 = vmatpush3.bf16.msra.mxu0 %v1414_v20 }
 0x220   : > { %6541 = vmatprep.subr.msk.bf16.mxu1 %vm601_vm1, %v594_v42  ;;  %v660_v42 = vsel %vm601_vm1, %v7787_v45, 0 }
 0x221   : > { %v8023_v12 = vpop.permute.xlu0 %2921 }
 0x222   : > { %v8039_v41 = vpop.permute.xlu1 %4148 }
 0x225   : > { %v1428_v13 = vpop.permute.xlu0 %1427 }
 0x226   : > { %5892 = vmatprep.subr.bf16.mxu0 %v1428_v13  ;;  %v1406_v13 = vpop.permute.xlu1 %1405 }
 0x227   : > { %5845 = vmatpush3.bf16.xpose.msra.mxu1 %v663_v33  ;;  %5893 = vmatpush3.bf16.msra.mxu0 %v1412_v7 }
 0x228   : > { %6542 = vmatprep.subr.msk.bf16.mxu1 %vm601_vm1, %v7941_v63  ;;  %v657_v63 = vsel %vm601_vm1, %v7751_v39, 0 }
 0x229   : > { %v8029_v52 = vpop.permute.xlu0 %4150 }
 0x22a   : > { %v8049_v39 = vpop.permute.xlu1 %4130 }
 0x22d   : > { %v1426_v48 = vpop.permute.xlu0 %1425 }
 0x22e   : > { %5894 = vmatprep.subr.bf16.mxu0 %v1426_v48 }
 0x22f   : > { %5847 = vmatpush3.bf16.xpose.msra.mxu1 %v660_v42  ;;  %5895 = vmatpush3.bf16.msra.mxu0 %v1410_v38  ;;  %v1404_v38 = vpop.permute.xlu1 %1403 }
 0x230   : > { %6543 = vmatprep.subr.msk.bf16.mxu1 %vm601_vm1, %v7927_v2  ;;  %v654_v2 = vsel %vm601_vm1, %v7727_v24, 0  ;;  %v1772_v24 = vsel %vm601_vm1, %v7879_v46, 0 }
 0x231   : > { %v8035_v20 = vpop.permute.xlu0 %2923 }
 0x235   : > { %v1424_v8 = vpop.permute.xlu0 %1423 }
 0x236   : > { %5896 = vmatprep.subr.bf16.mxu0 %v1424_v8  ;;  %v11854_v8 = vld [vmem:[#allocation43_spill] sm:$0xff] }
 0x237   : > { %5849 = vmatpush3.bf16.xpose.msra.mxu1 %v657_v63  ;;  %v11855_v63 = vld [vmem:[#allocation54_spill] sm:$0xff] }
 0x238   : > { %6544 = vmatprep.subr.msk.bf16.mxu1 %vm601_vm1, %v7897_v61  ;;  %v651_v61 = vsel %vm601_vm1, %v7687_v62, 0  ;;  %v1775_v62 = vsel %vm601_vm1, %v7895_v58, 0  ;;  %v11852_v58 = vld [vmem:[#allocation64_spill] sm:$0xff] }
 0x239   : > { %v8043_v5 = vpop.permute.xlu0 %4132 }
 0x23d   : > { %v1408_v45 = vpop.permute.xlu0 %1407 }
 0x23e   : > { %5897 = vmatpush3.bf16.msra.mxu0 %v1408_v45  ;;  %v11856_v45 = vld [vmem:[#allocation21_spill] sm:$0xff] }
 0x23f   : > { %5851 = vmatpush3.bf16.xpose.msra.mxu1 %v654_v2  ;;  %v11857_v2 = vld [vmem:[#allocation61_spill] sm:$0xff] }
 0x240   : > { %6545 = vmatprep.subr.msk.bf16.mxu1 %vm601_vm1, %v7869_v26  ;;  %v1778_v26 = vsel %vm601_vm1, %v7939_v30, 0  ;;  %v11848_v30 = vld [vmem:[#allocation33_spill] sm:$0xff] }
 0x241   : > { %v1422_v7 = vpop.permute.xlu0 %1421 }
 0x242   : > { %5898 = vmatprep.subr.bf16.mxu0 %v1422_v7 }
 0x243   : > { %5899 = vmatpush3.bf16.msra.mxu0 %v1406_v13  ;;  %v3008_v13 = vsel %vm601_vm1, %v11856_v45, 0 }
 0x245   : > { %v8051_v33 = vpop.permute.xlu0 %2925 }
 0x247   : > { %5853 = vmatpush3.bf16.xpose.msra.mxu1 %v651_v61  ;;  %v11858_v61 = vld [vmem:[#allocation58_spill] sm:$0xff] }
 0x248   : > { %6546 = vmatprep.subr.msk.bf16.mxu1 %vm601_vm1, %v1707_v57  ;;  %v1769_v57 = vsel %vm601_vm1, %v7837_v19, 0  ;;  %v11846_v19 = vld [vmem:[#allocation71_spill] sm:$0xff] }
 0x249   : > { %v1420_v48 = vpop.permute.xlu0 %1419 }
 0x24a   : > { %5900 = vmatprep.subr.bf16.mxu0 %v1420_v48 }
 0x24b   : > { %5901 = vmatpush3.bf16.msra.mxu0 %v1404_v38 }
 0x24e   : > { %5855 = vmatmul.mubr.msk.bf16.vlgmr.msra.gmra.mxu1 %vm601_vm1, %v7519_v60 }
 0x24f   : > { %5856 = vmatprep.mubr.msk.bf16.mxu1 %vm601_vm1, %v7531_v1  ;;  %5999 = vmatpush3.bf16.xpose.msra.mxu1 %v1778_v26 }
 0x250   : > { %6547 = vmatprep.subr.msk.bf16.mxu1 %vm601_vm1, %v7999_v23  ;;  %v1763_v23 = vsel %vm601_vm1, %v7759_v50, 0 }
 0x256   : > { %5857 = vmatmul.mubr.msk.bf16.gmra.mxu1 %vm601_vm1, %v7531_v1  ;;  %v11869_v1 = vld [vmem:[#allocation77_spill] sm:$0xff] }
 0x257   : > { %5858 = vmatprep.mubr.msk.bf16.mxu1 %vm601_vm1, %v7545_v6  ;;  %6001 = vmatpush3.bf16.xpose.msra.mxu1 %v1775_v62 }
 0x258   : > { %6548 = vmatprep.subr.msk.bf16.mxu1 %vm601_vm1, %v7985_v15  ;;  %v1766_v15 = vsel %vm601_vm1, %v7799_v32, 0  ;;  %v1757_v32 = vsel %vm601_vm1, %v7693_v3, 0  ;;  %v3029_v3 = vsel %vm601_vm1, %v7831_v37, 0  ;;  %v11841_v37 = vld [vmem:[#allocation36_spill] sm:$0xff] }
 0x25e   : > { %5859 = vmatmul.mubr.msk.bf16.gmra.mxu1 %vm601_vm1, %v7545_v6 }
 0x25f   : > { %5860 = vmatprep.mubr.msk.bf16.mxu1 %vm601_vm1, %v7555_v11  ;;  %6003 = vmatpush3.bf16.xpose.msra.mxu1 %v1772_v24 }
 0x260   : > { %6549 = vmatprep.subr.msk.bf16.mxu1 %vm601_vm1, %v7973_v55  ;;  %v11851_v55 = vld [vmem:[#allocation57_spill] sm:$0xff] }
 0x266   : > { %5861 = vmatmul.mubr.msk.bf16.gmra.mxu1 %vm601_vm1, %v7555_v11 }
 0x267   : > { %5862 = vmatprep.mubr.msk.bf16.mxu1 %vm601_vm1, %v7565_v16  ;;  %6005 = vmatpush3.bf16.xpose.msra.mxu1 %v1769_v57  ;;  %v11859_v57 = vld [vmem:[#allocation68_spill] sm:$0xff] }
 0x268   : > { %6550 = vmatprep.subr.msk.bf16.mxu1 %vm601_vm1, %v7947_v18  ;;  %v1760_v18 = vsel %vm601_vm1, %v7733_v27, 0  ;;  %v11843_v27 = vld [vmem:[#allocation70_spill] sm:$0xff] }
 0x26e   : > { %5863 = vmatmul.mubr.msk.bf16.gmra.mxu1 %vm601_vm1, %v7565_v16 }
 0x26f   : > { %5864 = vmatprep.mubr.msk.bf16.mxu1 %vm601_vm1, %v7577_v22  ;;  %6007 = vmatpush3.bf16.xpose.msra.mxu1 %v1766_v15 }
 0x270   : > { %6551 = vmatprep.subr.msk.bf16.mxu1 %vm601_vm1, %v7931_v51  ;;  %v11853_v51 = vld [vmem:[#allocation22_spill] sm:$0xff] }
 0x271   : > { %v3011_v42 = vsel %vm601_vm1, %v11853_v51, 0 }
 0x276   : > { %5865 = vmatmul.mubr.msk.bf16.gmra.mxu1 %vm601_vm1, %v7577_v22 }
 0x277   : > { %5866 = vmatprep.mubr.msk.bf16.mxu1 %vm601_vm1, %v7593_v29  ;;  %6009 = vmatpush3.bf16.xpose.msra.mxu1 %v1763_v23 }
 0x278   : > { %6552 = vmatprep.subr.msk.bf16.mxu1 %vm601_vm1, %v7913_v21  ;;  %v11842_v21 = vld [vmem:[#allocation26_spill] sm:$0xff] }
 0x27e   : > { %5867 = vmatmul.mubr.msk.bf16.gmra.mxu1 %vm601_vm1, %v7593_v29 }
 0x27f   : > { %5868 = vmatprep.mubr.msk.bf16.mxu1 %vm601_vm1, %v7605_v35  ;;  %6011 = vmatpush3.bf16.xpose.msra.mxu1 %v1760_v18 }
 0x280   : > { %6553 = vmatprep.subr.msk.bf16.mxu1 %vm601_vm1, %v7881_v36  ;;  %v11849_v36 = vld [vmem:[#allocation60_spill] sm:$0xff] }
 0x286   : > { %5869 = vmatmul.mubr.msk.bf16.gmra.mxu1 %vm601_vm1, %v7605_v35 }
 0x287   : > { %5870 = vmatprep.mubr.msk.bf16.mxu1 %vm601_vm1, %v7637_v44  ;;  %6013 = vmatpush3.bf16.xpose.msra.mxu1 %v1757_v32 }
 0x288   : > { %6554 = vmatprep.subr.msk.bf16.mxu1 %vm601_vm1, %v8008_v14  ;;  %v3026_v14 = vsel %vm601_vm1, %v7919_v43, 0  ;;  %v11850_v43 = vld [vmem:[#allocation35_spill] sm:$0xff] }
 0x289   : > { %v3014_v46 = vsel %vm601_vm1, %v11850_v43, 0 }
 0x28e   : > { %5871 = vmatmul.mubr.msk.bf16.gmra.mxu1 %vm601_vm1, %v7637_v44 }
 0x28f   : > { %5872 = vmatprep.mubr.msk.bf16.mxu1 %vm601_vm1, %v7655_v49 }
 0x296   : > { %5873 = vmatmul.mubr.msk.bf16.gmra.mxu1 %vm601_vm1, %v7655_v49 }
 0x297   : > { %5874 = vmatprep.mubr.msk.bf16.mxu1 %vm601_vm1, %v7671_v53 }
 0x29e   : > { %5875 = vmatmul.mubr.msk.bf16.gmra.mxu1 %vm601_vm1, %v7671_v53 }
 0x29f   : > { %5876 = vmatprep.mubr.msk.bf16.mxu1 %vm601_vm1, %v7685_v59 }
 0x2a6   : > { %5877 = vmatmul.mubr.msk.bf16.gmra.mxu1 %vm601_vm1, %v7685_v59  ;;  %v11872_v59 = vld [vmem:[#allocation75_spill] sm:$0xff] }
 0x2a7   : > { %5878 = vmatprep.mubr.msk.bf16.mxu1 %vm601_vm1, %v7717_v17 }
 0x2ae   : > { %5879 = vmatmul.mubr.msk.bf16.gmra.mxu1 %vm601_vm1, %v7717_v17 }
 0x2af   : > { %5880 = vmatprep.mubr.msk.bf16.mxu1 %vm601_vm1, %v7741_v31 }
 0x2b6   : > { %5881 = vmatmul.mubr.msk.bf16.gmra.mxu1 %vm601_vm1, %v7741_v31  ;;  %v11875_v31 = vld [vmem:[#allocation65_spill] sm:$0xff] }
 0x2b7   : > { %5882 = vmatprep.mubr.msk.bf16.mxu1 %vm601_vm1, %v7767_v54 }
 0x2be   : > { %5883 = vmatmul.mubr.msk.bf16.gmra.mxu1 %vm601_vm1, %v7767_v54 }
 0x2bf   : > { %5884 = vmatprep.mubr.msk.bf16.mxu1 %vm601_vm1, %v7795_v0 }
 0x2c6   : > { %5885 = vmatmul.mubr.msk.bf16.gmra.mxu1 %vm601_vm1, %v7795_v0 }
 0x2c7   : > { %6014 = vmatprep.mubr.msk.bf16.mxu1 %vm601_vm1, %v7699_v9 }
 0x2ce   : > { %6015 = vmatmul.mubr.msk.bf16.vlgmr.msra.gmra.mxu1 %vm601_vm1, %v7699_v9  ;;  %v3023_v9 = vsel %vm601_vm1, %v11841_v37, 0  ;;  %v11860_v37 = vld [vmem:[#allocation63_spill] sm:$0xff] }
 0x2cf   : > { %6159 = vmatpush3.bf16.xpose.msra.mxu1 %v3029_v3  ;;  %6016 = vmatprep.mubr.msk.bf16.mxu1 %vm601_vm1, %v7701_v10 }
 0x2d0   : > { %6555 = vmatprep.subr.msk.bf16.mxu1 %vm601_vm1, %v8001_v25 }
 0x2d6   : > { %6017 = vmatmul.mubr.msk.bf16.gmra.mxu1 %vm601_vm1, %v7701_v10  ;;  %v11844_v10 = vld [vmem:[#allocation49_spill] sm:$0xff] }
 0x2d7   : > { %6161 = vmatpush3.bf16.xpose.msra.mxu1 %v3026_v14  ;;  %6018 = vmatprep.mubr.msk.bf16.mxu1 %vm601_vm1, %v7769_v56  ;;  %v3020_v50 = vsel %vm601_vm1, %v11844_v10, 0 }
 0x2d8   : > { %6556 = vmatprep.subr.msk.bf16.mxu1 %vm601_vm1, %v7993_v34  ;;  %v11845_v34 = vld [vmem:[#allocation47_spill] sm:$0xff] }
 0x2de   : > { %6019 = vmatmul.mubr.msk.bf16.gmra.mxu1 %vm601_vm1, %v7769_v56  ;;  %v11847_v56 = vld [vmem:[#allocation29_spill] sm:$0xff] }
 0x2df   : > { %6163 = vmatpush3.bf16.xpose.msra.mxu1 %v3023_v9  ;;  %6020 = vmatprep.mubr.msk.bf16.mxu1 %vm601_vm1, %v11842_v21  ;;  %v3017_v25 = vsel %vm601_vm1, %v11847_v56, 0 }
 0x2e0   : > { %6557 = vmatprep.subr.msk.bf16.mxu1 %vm601_vm1, %v11843_v27 }
 0x2e6   : > { %6021 = vmatmul.mubr.msk.bf16.gmra.mxu1 %vm601_vm1, %v11842_v21 }
 0x2e7   : > { %6165 = vmatpush3.bf16.xpose.msra.mxu1 %v3020_v50  ;;  %6022 = vmatprep.mubr.msk.bf16.mxu1 %vm601_vm1, %v11845_v34 }
 0x2e8   : > { %6558 = vmatprep.subr.msk.bf16.mxu1 %vm601_vm1, %v11846_v19  ;;  %v11861_v19 = vld [vmem:[#allocation73_spill] sm:$0xff] }
 0x2ee   : > { %6023 = vmatmul.mubr.msk.bf16.gmra.mxu1 %vm601_vm1, %v11845_v34 }
 0x2ef   : > { %6167 = vmatpush3.bf16.xpose.msra.mxu1 %v3017_v25  ;;  %6024 = vmatprep.mubr.msk.bf16.mxu1 %vm601_vm1, %v11848_v30 }
 0x2f0   : > { %6559 = vmatprep.subr.msk.bf16.mxu1 %vm601_vm1, %v11849_v36 }
 0x2f6   : > { %6025 = vmatmul.mubr.msk.bf16.gmra.mxu1 %vm601_vm1, %v11848_v30 }
 0x2f7   : > { %6169 = vmatpush3.bf16.xpose.msra.mxu1 %v3014_v46  ;;  %6026 = vmatprep.mubr.msk.bf16.mxu1 %vm601_vm1, %v11851_v55 }
 0x2f8   : > { %6560 = vmatprep.subr.msk.bf16.mxu1 %vm601_vm1, %v11852_v58 }
 0x2fe   : > { %6027 = vmatmul.mubr.msk.bf16.gmra.mxu1 %vm601_vm1, %v11851_v55  ;;  %v11862_v55 = vld [vmem:[#allocation76_spill] sm:$0xff] }
 0x2ff   : > { %6171 = vmatpush3.bf16.xpose.msra.mxu1 %v3011_v42  ;;  %6028 = vmatprep.mubr.msk.bf16.mxu1 %vm601_vm1, %v11854_v8 }
 0x300   : > { %6561 = vmatprep.subr.msk.bf16.mxu1 %vm601_vm1, %v11855_v63 }
 0x306   : > { %6029 = vmatmul.mubr.msk.bf16.gmra.mxu1 %vm601_vm1, %v11854_v8 }
 0x307   : > { %6173 = vmatpush3.bf16.xpose.msra.mxu1 %v3008_v13  ;;  %6030 = vmatprep.mubr.msk.bf16.mxu1 %vm601_vm1, %v11857_v2  ;;  %v11863_v13 = vld [vmem:[#allocation78_spill] sm:$0xff] }
 0x308   : > { %6562 = vmatprep.subr.msk.bf16.mxu1 %vm601_vm1, %v8016_v28 }
 0x30e   : > { %v8216_v7 = vpop.f32.mrf.mxu1  ;;  %6031 = vmatmul.mubr.msk.bf16.gmra.mxu1 %vm601_vm1, %v11857_v2 }
 0x30f   : > { %6032 = vmatprep.mubr.msk.bf16.mxu1 %vm601_vm1, %v11858_v61 }
 0x310   : > { %v8222_v48 = vpop.f32.mrf.mxu1 }
 0x311   : > { %v891_v38 = vmax.f32 %v8216_v7, %v8222_v48 }
 0x312   : > { %v8226_v26 = vpop.f32.mrf.mxu1 }
 0x313   : > { %892 = vmax.xlane.f32.xlu1 %v891_v38 }
 0x314   : > { %v8228_v62 = vpop.f32.mrf.mxu1 }
 0x315   : > { %v894_v28 = vmax.f32 %v8226_v26, %v8228_v62 }
 0x316   : > { %v8232_v24 = vpop.f32.mrf.mxu1  ;;  %6033 = vmatmul.mubr.msk.bf16.gmra.mxu1 %vm601_vm1, %v11858_v61 }
 0x317   : > { %6034 = vmatprep.mubr.msk.bf16.mxu1 %vm601_vm1, %v11859_v57  ;;  %895 = vmax.xlane.f32.xlu0 %v894_v28 }
 0x318   : > { %v8238_v15 = vpop.f32.mrf.mxu1 }
 0x319   : > { %v897_v23 = vmax.f32 %v8232_v24, %v8238_v15 }
 0x31a   : > { %v8242_v18 = vpop.f32.mrf.mxu1 }
 0x31b   : > { %898 = vmax.xlane.f32.xlu1 %v897_v23 }
 0x31c   : > { %v8244_v32 = vpop.f32.mrf.mxu1 }
 0x31d   : > { %v900_v3 = vmax.f32 %v8242_v18, %v8244_v32 }
 0x31e   : > { %v8248_v14 = vpop.f32.mrf.mxu1  ;;  %6035 = vmatmul.mubr.msk.bf16.gmra.mxu1 %vm601_vm1, %v11859_v57 }
 0x31f   : > { %6036 = vmatprep.mubr.msk.bf16.mxu1 %vm601_vm1, %v11860_v37  ;;  %901 = vmax.xlane.f32.xlu1 %v900_v3 }
 0x320   : > { %v8254_v9 = vpop.f32.mrf.mxu1 }
 0x321   : > { %v903_v21 = vmax.f32 %v8248_v14, %v8254_v9 }
 0x322   : > { %v8258_v27 = vpop.f32.mrf.mxu1 }
 0x323   : > { %904 = vmax.xlane.f32.xlu0 %v903_v21 }
 0x324   : > { %v8260_v10 = vpop.f32.mrf.mxu1 }
 0x325   : > { %v906_v50 = vmax.f32 %v8258_v27, %v8260_v10 }
 0x326   : > { %v8264_v34 = vpop.f32.mrf.mxu1  ;;  %6037 = vmatmul.mubr.msk.bf16.gmra.mxu1 %vm601_vm1, %v11860_v37 }
 0x327   : > { %6038 = vmatprep.mubr.msk.bf16.mxu1 %vm601_vm1, %v11861_v19  ;;  %907 = vmax.xlane.f32.xlu1 %v906_v50 }
 0x328   : > { %v8270_v56 = vpop.f32.mrf.mxu1 }
 0x329   : > { %v909_v25 = vmax.f32 %v8264_v34, %v8270_v56 }
 0x32a   : > { %v8274_v30 = vpop.f32.mrf.mxu1 }
 0x32b   : > { %910 = vmax.xlane.f32.xlu1 %v909_v25 }
 0x32c   : > { %v8276_v36 = vpop.f32.mrf.mxu1 }
 0x32d   : > { %v912_v43 = vmax.f32 %v8274_v30, %v8276_v36 }
 0x32e   : > { %v8280_v46 = vpop.f32.mrf.mxu1  ;;  %6039 = vmatmul.mubr.msk.bf16.gmra.mxu1 %vm601_vm1, %v11861_v19 }
 0x32f   : > { %6040 = vmatprep.mubr.msk.bf16.mxu1 %vm601_vm1, %v11862_v55  ;;  %913 = vmax.xlane.f32.xlu1 %v912_v43  ;;  %v11864_v43 = vld [vmem:[#allocation24_spill] sm:$0xff] }
 0x330   : > { %v8286_v58 = vpop.f32.mrf.mxu1 }
 0x331   : > { %v915_v51 = vmax.f32 %v8280_v46, %v8286_v58 }
 0x332   : > { %v8290_v42 = vpop.f32.mrf.mxu1 }
 0x333   : > { %916 = vmax.xlane.f32.xlu0 %v915_v51 }
 0x334   : > { %v8292_v8 = vpop.f32.mrf.mxu1 }
 0x335   : > { %v918_v63 = vmax.f32 %v8290_v42, %v8292_v8 }
 0x336   : > { %v8296_v45 = vpop.f32.mrf.mxu1  ;;  %6041 = vmatmul.mubr.msk.bf16.gmra.mxu1 %vm601_vm1, %v11862_v55 }
 0x337   : > { %6042 = vmatprep.mubr.msk.bf16.mxu1 %vm601_vm1, %v11863_v13  ;;  %919 = vmax.xlane.f32.xlu1 %v918_v63 }
 0x338   : > { %v8302_v2 = vpop.f32.mrf.mxu1 }
 0x339   : > { %v921_v61 = vmax.f32 %v8296_v45, %v8302_v2 }
 0x33a   : > { %v8306_v38 = vpop.f32.mrf.mxu1 }
 0x33b   : > { %922 = vmax.xlane.f32.xlu1 %v921_v61 }
 0x33c   : > { %v8308_v28 = vpop.f32.mrf.mxu1 }
 0x33d   : > { %v924_v57 = vmax.f32 %v8306_v38, %v8308_v28 }
 0x33e   : > { %v8312_v23 = vpop.f32.mrf.mxu1  ;;  %6043 = vmatmul.mubr.msk.bf16.gmra.mxu1 %vm601_vm1, %v11863_v13 }
 0x33f   : > { %6044 = vmatprep.mubr.msk.bf16.mxu1 %vm601_vm1, %v8010_v4  ;;  %925 = vmax.xlane.f32.xlu1 %v924_v57  ;;  %v11865_v57 = vld [vmem:[#allocation50_spill] sm:$0xff] }
 0x340   : > { %v8318_v3 = vpop.f32.mrf.mxu1 }
 0x341   : > { %v927_v37 = vmax.f32 %v8312_v23, %v8318_v3 }
 0x342   : > { %v8322_v21 = vpop.f32.mrf.mxu1 }
 0x343   : > { %928 = vmax.xlane.f32.xlu1 %v927_v37 }
 0x344   : > { %v8324_v50 = vpop.f32.mrf.mxu1 }
 0x345   : > { %v930_v19 = vmax.f32 %v8322_v21, %v8324_v50 }
 0x346   : > { %v8328_v25 = vpop.f32.mrf.mxu1  ;;  %6045 = vmatmul.mubr.msk.bf16.gmra.mxu1 %vm601_vm1, %v8010_v4  ;;  %v4232_v4 = vsel %vm601_vm1, %v11865_v57, 0 }
 0x347   : > { %6174 = vmatprep.mubr.msk.bf16.mxu1 %vm601_vm1, %v11864_v43  ;;  %931 = vmax.xlane.f32.xlu0 %v930_v19  ;;  %v11866_v19 = vld [vmem:[#allocation28_spill] sm:$0xff] }
 0x348   : > { %v8334_v55 = vpop.f32.mrf.mxu1 }
 0x349   : > { %v933_v51 = vmax.f32 %v8328_v25, %v8334_v55 }
 0x34a   : > { %v8338_v63 = vpop.f32.mrf.mxu1 }
 0x34b   : > { %934 = vmax.xlane.f32.xlu1 %v933_v51 }
 0x34c   : > { %v8340_v13 = vpop.f32.mrf.mxu1 }
 0x34d   : > { %v936_v61 = vmax.f32 %v8338_v63, %v8340_v13 }
 0x34e   : > { %v8346_v37 = vpop.f32.mrf.mxu1  ;;  %6175 = vmatmul.mubr.msk.bf16.vlgmr.msra.gmra.mxu1 %vm601_vm1, %v11864_v43 }
 0x34f   : > { %6319 = vmatpush3.bf16.xpose.msra.mxu1 %v4232_v4  ;;  %6176 = vmatprep.mubr.msk.bf16.mxu1 %vm601_vm1, %v11866_v19  ;;  %v11867_v4 = vld [vmem:[#allocation41_spill] sm:$0xff] }
 0x350   : > { %937 = vmax.xlane.f32.xlu0 %v936_v61  ;;  %6563 = vmatprep.subr.msk.bf16.mxu1 %vm601_vm1, %v8003_v40  ;;  %v8354_v51 = vpop.f32.mrf.mxu1  ;;  %v4229_v49 = vsel %vm601_vm1, %v11867_v4, 0  ;;  %v11868_v40 = vld [vmem:[#allocation25_spill] sm:$0xff] }
 0x351   : > { %v939_v44 = vmax.f32 %v8346_v37, %v8354_v51 }
 0x352   : > { %v8358_v60 = vpop.f32.mrf.mxu1 }
 0x354   : > { %940 = vmax.xlane.f32.xlu0 %v939_v44  ;;  %v8360_v57 = vpop.f32.mrf.mxu1 }
 0x355   : > { %v942_v43 = vmax.f32 %v8358_v60, %v8360_v57 }
 0x356   : > { %v8366_v61 = vpop.f32.mrf.mxu1  ;;  %6177 = vmatmul.mubr.msk.bf16.gmra.mxu1 %vm601_vm1, %v11866_v19  ;;  %v11870_v19 = vld [vmem:[#allocation37_spill] sm:$0xff] }
 0x357   : > { %6321 = vmatpush3.bf16.xpose.msra.mxu1 %v4229_v49  ;;  %943 = vmax.xlane.f32.xlu1 %v942_v43  ;;  %v4226_v43 = vsel %vm601_vm1, %v11870_v19, 0 }
 0x358   : > { %6178 = vmatprep.mubr.msk.bf16.mxu1 %vm601_vm1, %v11868_v40  ;;  %6564 = vmatprep.subr.msk.bf16.mxu1 %vm601_vm1, %v11869_v1  ;;  %v8374_v44 = vpop.f32.mrf.mxu1  ;;  %v11871_v1 = vld [vmem:[#allocation40_spill] sm:$0xff] }
 0x359   : > { %v945_v11 = vmax.f32 %v8366_v61, %v8374_v44 }
 0x35a   : > { %v8378_v6 = vpop.f32.mrf.mxu1 }
 0x35b   : > { %946 = vmax.xlane.f32.xlu0 %v945_v11 }
 0x35c   : > { %v8380_v4 = vpop.f32.mrf.mxu1 }
 0x35d   : > { %v948_v49 = vmax.f32 %v8378_v6, %v8380_v4 }
 0x35e   : > { %v8386_v53 = vpop.f32.mrf.mxu1  ;;  %6179 = vmatmul.mubr.msk.bf16.gmra.mxu1 %vm601_vm1, %v11868_v40 }
 0x35f   : > { %6323 = vmatpush3.bf16.xpose.msra.mxu1 %v4226_v43  ;;  %949 = vmax.xlane.f32.xlu1 %v948_v49  ;;  %v11873_v49 = vld [vmem:[#allocation31_spill] sm:$0xff] }
 0x360   : > { %6180 = vmatprep.mubr.msk.bf16.mxu1 %vm601_vm1, %v11871_v1  ;;  %6565 = vmatprep.subr.msk.bf16.mxu1 %vm601_vm1, %v11872_v59  ;;  %v8394_v11 = vpop.f32.mrf.mxu1  ;;  %v4223_v43 = vsel %vm601_vm1, %v11873_v49, 0  ;;  %v11874_v59 = vld [vmem:[#allocation30_spill] sm:$0xff] }
 0x361   : > { %v951_v22 = vmax.f32 %v8386_v53, %v8394_v11 }
 0x362   : > { %v8398_v16 = vpop.f32.mrf.mxu1 }
 0x363   : > { %952 = vmax.xlane.f32.xlu0 %v951_v22 }
 0x364   : > { %v8400_v19 = vpop.f32.mrf.mxu1 }
 0x365   : > { %v954_v40 = vmax.f32 %v8398_v16, %v8400_v19 }
 0x366   : > { %v8406_v17 = vpop.f32.mrf.mxu1  ;;  %6181 = vmatmul.mubr.msk.bf16.gmra.mxu1 %vm601_vm1, %v11871_v1 }
 0x367   : > { %6325 = vmatpush3.bf16.xpose.msra.mxu1 %v4223_v43  ;;  %955 = vmax.xlane.f32.xlu1 %v954_v40  ;;  %v11878_v40 = vld [vmem:[#allocation42_spill] sm:$0xff] }
 0x368   : > { %6182 = vmatprep.mubr.msk.bf16.mxu1 %vm601_vm1, %v11874_v59  ;;  %6566 = vmatprep.subr.msk.bf16.mxu1 %vm601_vm1, %v11875_v31  ;;  %v8414_v22 = vpop.f32.mrf.mxu1  ;;  %v4220_v43 = vsel %vm601_vm1, %v11878_v40, 0  ;;  %v11880_v31 = vld [vmem:[#allocation53_spill] sm:$0xff] }
 0x369   : > { %v957_v29 = vmax.f32 %v8406_v17, %v8414_v22 }
 0x36a   : > { %v8418_v54 = vpop.f32.mrf.mxu1 }
 0x36b   : > { %11876 = vst [vmem:[#allocation36_spill] sm:$0xff] %v8418_v54  ;;  %958 = vmax.xlane.f32.xlu0 %v957_v29 }
 0x36c   : > { %v8420_v49 = vpop.f32.mrf.mxu1 }
 0x36d   : > { %11877 = vst [vmem:[#allocation26_spill] sm:$0xff] %v8420_v49  ;;  %v960_v1 = vmax.f32 %v8418_v54, %v8420_v49 }
 0x36e   : > { %v8426_v35 = vpop.f32.mrf.mxu1  ;;  %6183 = vmatmul.mubr.msk.bf16.gmra.mxu1 %vm601_vm1, %v11874_v59 }
 0x36f   : > { %11879 = vst [vmem:[#allocation70_spill] sm:$0xff] %v8426_v35  ;;  %6327 = vmatpush3.bf16.xpose.msra.mxu1 %v4220_v43  ;;  %961 = vmax.xlane.f32.xlu1 %v960_v1  ;;  %v4217_v1 = vsel %vm601_vm1, %v8020_v47, 0 }
 0x370   : > { %6184 = vmatprep.mubr.msk.bf16.mxu1 %vm601_vm1, %v11880_v31  ;;  %6567 = vmatprep.subr.msk.bf16.mxu1 %vm601_vm1, %v8029_v52  ;;  %v8434_v29 = vpop.f32.mrf.mxu1  ;;  %v11885_v52 = vld [vmem:[#allocation59_spill] sm:$0xff] }
 0x371   : > { %11881 = vst [vmem:[#allocation49_spill] sm:$0xff] %v8434_v29  ;;  %v963_v0 = vmax.f32 %v8426_v35, %v8434_v29 }
 0x372   : > { %v8438_v49 = vpop.f32.mrf.mxu1 }
 0x373   : > { %11882 = vst [vmem:[#allocation47_spill] sm:$0xff] %v8438_v49  ;;  %964 = vmax.xlane.f32.xlu1 %v963_v0 }
 0x374   : > { %v8440_v40 = vpop.f32.mrf.mxu1 }
 0x375   : > { %11883 = vst [vmem:[#allocation71_spill] sm:$0xff] %v8440_v40  ;;  %v966_v59 = vmax.f32 %v8438_v49, %v8440_v40 }
 0x376   : > { %v8446_v43 = vpop.f32.mrf.mxu1  ;;  %6185 = vmatmul.mubr.msk.bf16.gmra.mxu1 %vm601_vm1, %v11880_v31 }
 0x377   : > { %11884 = vst [vmem:[#allocation29_spill] sm:$0xff] %v8446_v43  ;;  %6329 = vmatpush3.bf16.xpose.msra.mxu1 %v4217_v1  ;;  %6186 = vmatprep.mubr.msk.bf16.mxu1 %vm601_vm1, %v11885_v52  ;;  %v4214_v1 = vsel %vm601_vm1, %v8043_v5, 0 }
 0x378   : > { %967 = vmax.xlane.f32.xlu0 %v966_v59  ;;  %6568 = vmatprep.subr.msk.bf16.mxu1 %vm601_vm1, %v8039_v41  ;;  %v8454_v0 = vpop.f32.mrf.mxu1  ;;  %v4147_v41 = vpop.permute.xlu0 %4146 }
 0x379   : > { %11886 = vst [vmem:[#allocation33_spill] sm:$0xff] %v8454_v0  ;;  %v969_v40 = vmax.f32 %v8446_v43, %v8454_v0  ;;  %v11890_v0 = vld [vmem:[#allocation46_spill] sm:$0xff] }
 0x37a   : > { %v8458_v49 = vpop.f32.mrf.mxu1 }
 0x37b   : > { %11887 = vst [vmem:[#allocation60_spill] sm:$0xff] %v8458_v49 }
 0x37c   : > { %970 = vmax.xlane.f32.xlu0 %v969_v40  ;;  %v8460_v47 = vpop.f32.mrf.mxu1 }
 0x37d   : > { %11888 = vst [vmem:[#allocation35_spill] sm:$0xff] %v8460_v47  ;;  %v972_v31 = vmax.f32 %v8458_v49, %v8460_v47 }
 0x37e   : > { %v8466_v59 = vpop.f32.mrf.mxu1  ;;  %6187 = vmatmul.mubr.msk.bf16.gmra.mxu1 %vm601_vm1, %v11885_v52 }
 0x37f   : > { %11889 = vst [vmem:[#allocation57_spill] sm:$0xff] %v8466_v59  ;;  %6331 = vmatpush3.bf16.xpose.msra.mxu1 %v4214_v1  ;;  %973 = vmax.xlane.f32.xlu1 %v972_v31  ;;  %v4211_v31 = vsel %vm601_vm1, %v8049_v39, 0 }
 0x380   : > { %6188 = vmatprep.mubr.msk.bf16.mxu1 %vm601_vm1, %v11890_v0  ;;  %6569 = vmatprep.subr.msk.bf16.mxu1 %vm601_vm1, %v4147_v41  ;;  %v8473_v40 = vpop.f32.mrf.mxu1  ;;  %v11895_v41 = vld [vmem:[#allocation62_spill] sm:$0xff] }
 0x381   : > { %11891 = vst [vmem:[#allocation64_spill] sm:$0xff] %v8473_v40  ;;  %v975_v47 = vmax.f32 %v8466_v59, %v8473_v40 }
 0x382   : > { %v8477_v49 = vpop.f32.mrf.mxu1 }
 0x383   : > { %11892 = vst [vmem:[#allocation22_spill] sm:$0xff] %v8477_v49  ;;  %976 = vmax.xlane.f32.xlu1 %v975_v47 }
 0x384   : > { %v8479_v5 = vpop.f32.mrf.mxu1 }
 0x385   : > { %11893 = vst [vmem:[#allocation43_spill] sm:$0xff] %v8479_v5  ;;  %v978_v52 = vmax.f32 %v8477_v49, %v8479_v5 }
 0x386   : > { %v8485_v1 = vpop.f32.mrf.mxu1  ;;  %6189 = vmatmul.mubr.msk.bf16.gmra.mxu1 %vm601_vm1, %v11890_v0  ;;  %v11900_v0 = vld [vmem:[#allocation67_spill] sm:$0xff] }
 0x387   : > { %11894 = vst [vmem:[#allocation54_spill] sm:$0xff] %v8485_v1  ;;  %6333 = vmatpush3.bf16.xpose.msra.mxu1 %v4211_v31  ;;  %6190 = vmatprep.mubr.msk.bf16.mxu1 %vm601_vm1, %v11895_v41 }
 0x388   : > { %979 = vmax.xlane.f32.xlu0 %v978_v52  ;;  %v8491_v40 = vpop.f32.mrf.mxu1 }
 0x389   : > { %11896 = vst [vmem:[#allocation21_spill] sm:$0xff] %v8491_v40  ;;  %v981_v47 = vmax.f32 %v8485_v1, %v8491_v40 }
 0x38a   : > { %v8495_v59 = vpop.f32.mrf.mxu1 }
 0x38b   : > { %11897 = vst [vmem:[#allocation61_spill] sm:$0xff] %v8495_v59 }
 0x38c   : > { %982 = vmax.xlane.f32.xlu0 %v981_v47  ;;  %v8497_v5 = vpop.f32.mrf.mxu1  ;;  %v8511_v47 = vpop.permute.xlu1 %4098 }
 0x38d   : > { %11898 = vst [vmem:[#allocation58_spill] sm:$0xff] %v8497_v5  ;;  %v984_v39 = vmax.f32 %v8495_v59, %v8497_v5 }
 0x38e   : > { %v8501_v49 = vpop.f32.mrf.mxu1  ;;  %6191 = vmatmul.mubr.msk.bf16.gmra.mxu1 %vm601_vm1, %v11895_v41 }
 0x38f   : > { %11899 = vst [vmem:[#allocation68_spill] sm:$0xff] %v8501_v49  ;;  %985 = vmax.xlane.f32.xlu1 %v984_v39  ;;  %6192 = vmatprep.mubr.msk.bf16.mxu1 %vm601_vm1, %v11900_v0  ;;  %v11905_v39 = vld [vmem:[#allocation69_spill] sm:$0xff] }
 0x390   : > { %v8507_v52 = vpop.f32.mrf.mxu1 }
 0x391   : > { %11901 = vst [vmem:[#allocation63_spill] sm:$0xff] %v8507_v52  ;;  %v1997_v31 = vmax.f32 %v8501_v49, %v8507_v52  ;;  %v8525_v52 = vpop.permute.xlu1 %4100 }
 0x392   : > { %v8513_v40 = vpop.f32.mrf.mxu1 }
 0x393   : > { %11902 = vst [vmem:[#allocation73_spill] sm:$0xff] %v8513_v40  ;;  %1998 = vmax.xlane.f32.xlu0 %v1997_v31 }
 0x394   : > { %v8515_v5 = vpop.f32.mrf.mxu1 }
 0x395   : > { %11903 = vst [vmem:[#allocation76_spill] sm:$0xff] %v8515_v5  ;;  %v2000_v59 = vmax.f32 %v8513_v40, %v8515_v5 }
 0x396   : > { %v8519_v41 = vpop.f32.mrf.mxu1  ;;  %6193 = vmatmul.mubr.msk.bf16.gmra.mxu1 %vm601_vm1, %v11900_v0 }
 0x397   : > { %11904 = vst [vmem:[#allocation78_spill] sm:$0xff] %v8519_v41  ;;  %6194 = vmatprep.mubr.msk.bf16.mxu1 %vm601_vm1, %v11905_v39  ;;  %2001 = vmax.xlane.f32.xlu0 %v2000_v59 }
 0x398   : > { %v8527_v49 = vpop.f32.mrf.mxu1 }
 0x399   : > { %11906 = vst [vmem:[#allocation24_spill] sm:$0xff] %v8527_v49  ;;  %v2003_v31 = vmax.f32 %v8519_v41, %v8527_v49  ;;  %v11910_v41 = vld [vmem:[#allocation72_spill] sm:$0xff] }
 0x39a   : > { %v8531_v1 = vpop.f32.mrf.mxu1 }
 0x39b   : > { %11907 = vst [vmem:[#allocation50_spill] sm:$0xff] %v8531_v1  ;;  %2004 = vmax.xlane.f32.xlu0 %v2003_v31 }
 0x39c   : > { %v893_v5 = vpop.xlane.xlu1 %892  ;;  %v8533_v40 = vpop.f32.mrf.mxu1 }
 0x39d   : > { %11908 = vst [vmem:[#allocation28_spill] sm:$0xff] %v8533_v40  ;;  %v987_v43 = vsub.f32 %v8216_v7, %v893_v5  ;;  %v988_v0 = vsub.f32 %v8222_v48, %v893_v5  ;;  %v2006_v59 = vmax.f32 %v8531_v1, %v8533_v40 }
 0x39e   : > { %v8539_v29 = vpop.f32.mrf.mxu1  ;;  %6195 = vmatmul.mubr.msk.bf16.gmra.mxu1 %vm601_vm1, %v11905_v39 }
 0x39f   : > { %11909 = vst [vmem:[#allocation41_spill] sm:$0xff] %v8539_v29  ;;  %v1051_v35 = vmul.f32 1.442695, %v987_v43  ;;  %v1053_v49 = vmul.f32 1.442695, %v988_v0  ;;  %2007 = vmax.xlane.f32.xlu1 %v2006_v59  ;;  %6196 = vmatprep.mubr.msk.bf16.mxu1 %vm601_vm1, %v11910_v41 }
 0x3a0   : > { %v8545_v31 = vpop.f32.mrf.mxu1  ;;  %v896_v54 = vpop.xlane.xlu0 %895 }
 0x3a1   : > { %11911 = vst [vmem:[#allocation25_spill] sm:$0xff] %v8545_v31  ;;  %6602 = vpow2.f32 %v1051_v35  ;;  %v989_v7 = vsub.f32 %v8226_v26, %v896_v54  ;;  %v990_v48 = vsub.f32 %v8228_v62, %v896_v54  ;;  %v11914_v62 = vld [vmem:[#allocation74_spill] sm:$0xff] }
 0x3a2   : > { %6604 = vpow2.f32 %v1053_v49  ;;  %v8549_v5 = vpop.f32.mrf.mxu1 }
 0x3a3   : > { %11912 = vst [vmem:[#allocation77_spill] sm:$0xff] %v8549_v5  ;;  %v1055_v40 = vmul.f32 1.442695, %v989_v7  ;;  %v1057_v1 = vmul.f32 1.442695, %v990_v48 }
 0x3a4   : > { %v899_v39 = vpop.xlane.xlu1 %898  ;;  %v8551_v43 = vpop.f32.mrf.mxu1 }
 0x3a5   : > { %11913 = vst [vmem:[#allocation37_spill] sm:$0xff] %v8551_v43  ;;  %6606 = vpow2.f32 %v1055_v40  ;;  %v991_v0 = vsub.f32 %v8232_v24, %v899_v39  ;;  %v992_v59 = vsub.f32 %v8238_v15, %v899_v39  ;;  %v2012_v35 = vmax.f32 %v8549_v5, %v8551_v43 }
 0x3a6   : > { %6608 = vpow2.f32 %v1057_v1  ;;  %6197 = vmatmul.mubr.msk.bf16.gmra.mxu1 %vm601_vm1, %v11910_v41  ;;  %v8563_v15 = vpop.f32.mrf.mxu1 }
 0x3a7   : > { %v1059_v54 = vmul.f32 1.442695, %v991_v0  ;;  %v1061_v26 = vmul.f32 1.442695, %v992_v59  ;;  %2013 = vmax.xlane.f32.xlu1 %v2012_v35  ;;  %6198 = vmatprep.mubr.msk.bf16.mxu1 %vm601_vm1, %v11914_v62  ;;  %11915 = vst [vmem:[#allocation40_spill] sm:$0xff] %v8563_v15 }
 0x3a8   : > { %v902_v49 = vpop.xlane.xlu1 %901  ;;  %v8569_v59 = vpop.f32.mrf.mxu1 }
 0x3a9   : > { %6610 = vpow2.f32 %v1059_v54  ;;  %v993_v40 = vsub.f32 %v8242_v18, %v902_v49  ;;  %v994_v24 = vsub.f32 %v8244_v32, %v902_v49  ;;  %11916 = vst [vmem:[#allocation75_spill] sm:$0xff] %v8569_v59  ;;  %v11917_v49 = vld [vmem:[#allocation44_spill] sm:$0xff] }
 0x3aa   : > { %6612 = vpow2.f32 %v1061_v26 }
 0x3ab   : > { %v1063_v7 = vmul.f32 1.442695, %v993_v40  ;;  %v1065_v1 = vmul.f32 1.442695, %v994_v24  ;;  %v8585_v40 = vpop.f32.mrf.mxu1 }
 0x3ac   : > { %v905_v48 = vpop.xlane.xlu0 %904  ;;  %11918 = vst [vmem:[#allocation31_spill] sm:$0xff] %v8585_v40 }
 0x3ad   : > { %6614 = vpow2.f32 %v1063_v7  ;;  %v995_v41 = vsub.f32 %v8248_v14, %v905_v48  ;;  %v996_v39 = vsub.f32 %v8254_v9, %v905_v48 }
 0x3ae   : > { %v8567_v0 = vpop.eup %6602  ;;  %6616 = vpow2.f32 %v1065_v1  ;;  %6199 = vmatmul.mubr.msk.bf16.gmra.mxu1 %vm601_vm1, %v11914_v62 }
 0x3af   : > { %v8573_v18 = vpop.eup %6604  ;;  %v1067_v32 = vmul.f32 1.442695, %v995_v41  ;;  %v1069_v35 = vmul.f32 1.442695, %v996_v39  ;;  %6200 = vmatprep.mubr.msk.bf16.mxu1 %vm601_vm1, %v8023_v12 }
 0x3b0   : > { %v908_v54 = vpop.xlane.xlu1 %907  ;;  %v1179_v14 = vadd.f32 %v8573_v18, %v8567_v0 }
 0x3b1   : > { %6618 = vpow2.f32 %v1067_v32  ;;  %v997_v9 = vsub.f32 %v8258_v27, %v908_v54  ;;  %v998_v26 = vsub.f32 %v8260_v10, %v908_v54  ;;  %4102 = vrot.lane.b32.xlu0 %v11917_v49, %s7379_s11  ;;  %v8595_v32 = vpop.f32.mrf.mxu1 }
 0x3b2   : > { %v8583_v62 = vpop.eup %6606  ;;  %6620 = vpow2.f32 %v1069_v35  ;;  %1180 = vadd.xlane.f32.xlu1 %v1179_v14  ;;  %11919 = vst [vmem:[#allocation30_spill] sm:$0xff] %v8595_v32 }
 0x3b3   : > { %v8587_v24 = vpop.eup %6608  ;;  %v1071_v7 = vmul.f32 1.442695, %v997_v9  ;;  %v1073_v1 = vmul.f32 1.442695, %v998_v26 }
 0x3b4   : > { %v911_v48 = vpop.xlane.xlu1 %910  ;;  %v1182_v41 = vadd.f32 %v8587_v24, %v8583_v62 }
 0x3b5   : > { %6622 = vpow2.f32 %v1071_v7  ;;  %v999_v27 = vsub.f32 %v8264_v34, %v911_v48  ;;  %v1000_v10 = vsub.f32 %v8270_v56, %v911_v48 }
 0x3b6   : > { %v8593_v39 = vpop.eup %6610  ;;  %6624 = vpow2.f32 %v1073_v1  ;;  %1183 = vadd.xlane.f32.xlu1 %v1182_v41  ;;  %6201 = vmatmul.mubr.msk.bf16.gmra.mxu1 %vm601_vm1, %v8023_v12  ;;  %v8609_v1 = vpop.f32.mrf.mxu1 }
 0x3b7   : > { %v8599_v35 = vpop.eup %6612  ;;  %v1075_v54 = vmul.f32 1.442695, %v999_v27  ;;  %v1077_v14 = vmul.f32 1.442695, %v1000_v10  ;;  %6202 = vmatprep.mubr.msk.bf16.mxu1 %vm601_vm1, %v8035_v20  ;;  %11920 = vst [vmem:[#allocation65_spill] sm:$0xff] %v8609_v1 }
 0x3b8   : > { %v914_v9 = vpop.xlane.xlu1 %913  ;;  %v1185_v34 = vadd.f32 %v8599_v35, %v8593_v39 }
 0x3b9   : > { %6626 = vpow2.f32 %v1075_v54  ;;  %v1001_v56 = vsub.f32 %v8274_v30, %v914_v9  ;;  %v1002_v26 = vsub.f32 %v8276_v36, %v914_v9  ;;  %v8618_v36 = vpop.f32.mrf.mxu1 }
 0x3ba   : > { %v8607_v7 = vpop.eup %6614  ;;  %6628 = vpow2.f32 %v1077_v14  ;;  %1186 = vadd.xlane.f32.xlu1 %v1185_v34  ;;  %11922 = vst [vmem:[#allocation53_spill] sm:$0xff] %v8618_v36 }
 0x3bb   : > { %v8611_v12 = vpop.eup %6616  ;;  %v1079_v48 = vmul.f32 1.442695, %v1001_v56  ;;  %v1081_v41 = vmul.f32 1.442695, %v1002_v26 }
 0x3bc   : > { %v917_v27 = vpop.xlane.xlu0 %916  ;;  %v1188_v10 = vadd.f32 %v8611_v12, %v8607_v7 }
 0x3bd   : > { %6630 = vpow2.f32 %v1079_v48  ;;  %v1003_v54 = vsub.f32 %v8280_v46, %v917_v27  ;;  %v1004_v9 = vsub.f32 %v8286_v58, %v917_v27 }
 0x3be   : > { %v8616_v30 = vpop.eup %6618  ;;  %6632 = vpow2.f32 %v1081_v41  ;;  %1189 = vadd.xlane.f32.xlu1 %v1188_v10  ;;  %6203 = vmatmul.mubr.msk.bf16.gmra.mxu1 %vm601_vm1, %v8035_v20  ;;  %v8632_v41 = vpop.f32.mrf.mxu1 }
 0x3bf   : > { %11921 = vst [vmem:[#allocation42_spill] sm:$0xff] %v8616_v30  ;;  %v8623_v14 = vpop.eup %6620  ;;  %6204 = vmatprep.mubr.msk.bf16.mxu1 %vm601_vm1, %v8051_v33  ;;  %v1083_v56 = vmul.f32 1.442695, %v1003_v54  ;;  %11923 = vst [vmem:[#allocation59_spill] sm:$0xff] %v8632_v41  ;;  %v1085_v58 = vmul.f32 1.442695, %v1004_v9 }
 0x3c0   : > { %v920_v34 = vpop.xlane.xlu1 %919  ;;  %v1191_v46 = vadd.f32 %v8623_v14, %v8616_v30 }
 0x3c1   : > { %v1005_v26 = vsub.f32 %v8290_v42, %v920_v34  ;;  %v1006_v27 = vsub.f32 %v8292_v8, %v920_v34  ;;  %6634 = vpow2.f32 %v1083_v56  ;;  %v8642_v42 = vpop.f32.mrf.mxu1 }
 0x3c2   : > { %v8630_v48 = vpop.eup %6622  ;;  %1192 = vadd.xlane.f32.xlu1 %v1191_v46  ;;  %11925 = vst [vmem:[#allocation62_spill] sm:$0xff] %v8642_v42  ;;  %6636 = vpow2.f32 %v1085_v58 }
 0x3c3   : > { %v8635_v20 = vpop.eup %6624  ;;  %v1087_v43 = vmul.f32 1.442695, %v1005_v26  ;;  %v1089_v30 = vmul.f32 1.442695, %v1006_v27 }
 0x3c4   : > { %v923_v10 = vpop.xlane.xlu1 %922  ;;  %v1194_v49 = vadd.f32 %v8635_v20, %v8630_v48 }
 0x3c5   : > { %v1007_v54 = vsub.f32 %v8296_v45, %v923_v10  ;;  %v1008_v9 = vsub.f32 %v8302_v2, %v923_v10  ;;  %6638 = vpow2.f32 %v1087_v43  ;;  %v8656_v2 = vpop.f32.mrf.mxu1 }
 0x3c6   : > { %v8640_v5 = vpop.eup %6626  ;;  %1195 = vadd.xlane.f32.xlu1 %v1194_v49  ;;  %6205 = vmatmul.mubr.msk.bf16.gmra.mxu1 %vm601_vm1, %v8051_v33  ;;  %11926 = vst [vmem:[#allocation67_spill] sm:$0xff] %v8656_v2  ;;  %6640 = vpow2.f32 %v1089_v30 }
 0x3c7   : > { %11924 = vst [vmem:[#allocation46_spill] sm:$0xff] %v8640_v5  ;;  %v8647_v8 = vpop.eup %6628  ;;  %6334 = vmatprep.mubr.msk.bf16.mxu1 %vm601_vm1, %v8511_v47  ;;  %v1091_v46 = vmul.f32 1.442695, %v1007_v54  ;;  %v1093_v49 = vmul.f32 1.442695, %v1008_v9 }
 0x3c8   : > { %v926_v34 = vpop.xlane.xlu1 %925  ;;  %v1197_v45 = vadd.f32 %v8647_v8, %v8640_v5  ;;  %v8666_v5 = vpop.f32.mrf.mxu1 }
 0x3c9   : > { %v1009_v56 = vsub.f32 %v8306_v38, %v926_v34  ;;  %v1010_v33 = vsub.f32 %v8308_v28, %v926_v34  ;;  %6642 = vpow2.f32 %v1091_v46  ;;  %v2009_v38 = vmax.f32 %v8539_v29, %v8545_v31  ;;  %11927 = vst [vmem:[#allocation69_spill] sm:$0xff] %v8666_v5 }
 0x3ca   : > { %v8654_v26 = vpop.eup %6630  ;;  %1198 = vadd.xlane.f32.xlu1 %v1197_v45  ;;  %6644 = vpow2.f32 %v1093_v49  ;;  %v2015_v46 = vmax.f32 %v8563_v15, %v8569_v59 }
 0x3cb   : > { %v8659_v58 = vpop.eup %6632  ;;  %v1095_v43 = vmul.f32 1.442695, %v1009_v56  ;;  %v1097_v30 = vmul.f32 1.442695, %v1010_v33  ;;  %v8678_v56 = vpop.f32.mrf.mxu1 }
 0x3cc   : > { %v929_v27 = vpop.xlane.xlu1 %928  ;;  %v1200_v10 = vadd.f32 %v8659_v58, %v8654_v26 }
 0x3cd   : > { %v1011_v54 = vsub.f32 %v8312_v23, %v929_v27  ;;  %v1012_v28 = vsub.f32 %v8318_v3, %v929_v27  ;;  %6646 = vpow2.f32 %v1095_v43 }
 0x3ce   : > { %1201 = vadd.xlane.f32.xlu1 %v1200_v10  ;;  %6335 = vmatmul.mubr.msk.bf16.vlgmr.msra.gmra.mxu1 %vm601_vm1, %v8511_v47  ;;  %v8674_v45 = vpop.eup %6634  ;;  %6648 = vpow2.f32 %v1097_v30  ;;  %v8685_v10 = vpop.f32.mrf.mxu1 }
 0x3cf   : > { %6336 = vmatprep.mubr.msk.bf16.mxu1 %vm601_vm1, %v8525_v52  ;;  %v1099_v23 = vmul.f32 1.442695, %v1011_v54  ;;  %v1101_v3 = vmul.f32 1.442695, %v1012_v28  ;;  %v8681_v49 = vpop.eup %6636 }
 0x3d0   : > { %2010 = vmax.xlane.f32.xlu0 %v2009_v38  ;;  %v932_v9 = vpop.xlane.xlu0 %931  ;;  %v1203_v43 = vadd.f32 %v8681_v49, %v8674_v45 }
 0x3d1   : > { %v1013_v34 = vsub.f32 %v8322_v21, %v932_v9  ;;  %v1014_v47 = vsub.f32 %v8324_v50, %v932_v9  ;;  %6650 = vpow2.f32 %v1099_v23 }
 0x3d2   : > { %v8683_v27 = vpop.eup %6638  ;;  %6652 = vpow2.f32 %v1101_v3 }
 0x3d3   : > { %v1103_v33 = vmul.f32 1.442695, %v1013_v34  ;;  %v1105_v21 = vmul.f32 1.442695, %v1014_v47  ;;  %v8691_v54 = vpop.eup %6640 }
 0x3d4   : > { %2016 = vmax.xlane.f32.xlu0 %v2015_v46  ;;  %v1206_v30 = vadd.f32 %v8691_v54, %v8683_v27  ;;  %v935_v9 = vpop.xlane.xlu1 %934 }
 0x3d5   : > { %6654 = vpow2.f32 %v1103_v33  ;;  %v11928_v33 = vld [vmem:[#allocation14_spill] sm:$0xff] }
 0x3d6   : > { %6337 = vmatmul.mubr.msk.bf16.gmra.mxu1 %vm601_vm1, %v8525_v52  ;;  %v8693_v38 = vpop.eup %6642  ;;  %6656 = vpow2.f32 %v1105_v21 }
 0x3d7   : > { %v8697_v28 = vpop.eup %6644 }
 0x3d8   : > { %1204 = vadd.xlane.f32.xlu0 %v1203_v43  ;;  %v1209_v3 = vadd.f32 %v8697_v28, %v8693_v38 }
 0x3d9   : > { %v938_v50 = vpop.xlane.xlu0 %937 }
 0x3da   : > { %v8699_v52 = vpop.eup %6646 }
 0x3db   : > { %v8705_v47 = vpop.eup %6648 }
 0x3dc   : > { %1207 = vadd.xlane.f32.xlu0 %v1206_v30 }
 0x3dd   : > { %v941_v23 = vpop.xlane.xlu0 %940 }
 0x3de   : > { %v1019_v34 = vsub.f32 %v8346_v37, %v941_v23  ;;  %v1020_v46 = vsub.f32 %v8354_v51, %v941_v23  ;;  %v8711_v31 = vpop.eup %6650  ;;  %v1212_v37 = vadd.f32 %v8705_v47, %v8699_v52 }
 0x3df   : > { %4104 = vrot.lane.b32.xlu1 %v11928_v33, %s7379_s11  ;;  %v8715_v51 = vpop.eup %6652 }
 0x3e0   : > { %v1115_v21 = vmul.f32 1.442695, %v1019_v34  ;;  %v1117_v43 = vmul.f32 1.442695, %v1020_v46  ;;  %v944_v59 = vpop.xlane.xlu1 %943  ;;  %1210 = vadd.xlane.f32.xlu0 %v1209_v3  ;;  %v1016_v46 = vsub.f32 %v8334_v55, %v935_v9 }
 0x3e1   : > { %v1021_v30 = vsub.f32 %v8358_v60, %v944_v59  ;;  %v1022_v15 = vsub.f32 %v8360_v57, %v944_v59  ;;  %v1215_v60 = vadd.f32 %v8715_v51, %v8711_v31  ;;  %v1015_v59 = vsub.f32 %v8328_v25, %v935_v9 }
 0x3e2   : > { %6658 = vpow2.f32 %v1115_v21  ;;  %v8717_v34 = vpop.eup %6654 }
 0x3e3   : > { %6660 = vpow2.f32 %v1117_v43  ;;  %v1119_v23 = vmul.f32 1.442695, %v1021_v30  ;;  %v1121_v29 = vmul.f32 1.442695, %v1022_v15  ;;  %v8721_v57 = vpop.eup %6656  ;;  %v1107_v21 = vmul.f32 1.442695, %v1015_v59 }
 0x3e4   : > { %1213 = vadd.xlane.f32.xlu0 %v1212_v37  ;;  %v1218_v3 = vadd.f32 %v8721_v57, %v8717_v34  ;;  %v1017_v15 = vsub.f32 %v8338_v63, %v938_v50  ;;  %v1109_v43 = vmul.f32 1.442695, %v1016_v46 }
 0x3e5   : > { %6662 = vpow2.f32 %v1119_v23 }
 0x3e6   : > { %6664 = vpow2.f32 %v1121_v29  ;;  %v1018_v29 = vsub.f32 %v8340_v13, %v938_v50  ;;  %v1111_v23 = vmul.f32 1.442695, %v1017_v15  ;;  %v947_v13 = vpop.xlane.xlu0 %946 }
 0x3e7   : > { %6666 = vpow2.f32 %v1107_v21  ;;  %v1023_v50 = vsub.f32 %v8366_v61, %v947_v13  ;;  %v1024_v59 = vsub.f32 %v8374_v44, %v947_v13 }
 0x3e8   : > { %1216 = vadd.xlane.f32.xlu0 %v1215_v60  ;;  %6668 = vpow2.f32 %v1109_v43  ;;  %v1113_v25 = vmul.f32 1.442695, %v1018_v29  ;;  %v950_v46 = vpop.xlane.xlu1 %949 }
 0x3e9   : > { %6670 = vpow2.f32 %v1111_v23  ;;  %v1025_v21 = vsub.f32 %v8378_v6, %v950_v46  ;;  %v1125_v43 = vmul.f32 1.442695, %v1024_v59  ;;  %v1026_v29 = vsub.f32 %v8380_v4, %v950_v46 }
 0x3ea   : > { %6672 = vpow2.f32 %v1113_v25  ;;  %v2024_v46 = vmax.f32 %v8632_v41, %v8642_v42 }
 0x3eb   : > { %v1129_v61 = vmul.f32 1.442695, %v1026_v29 }
 0x3ec   : > { %1219 = vadd.xlane.f32.xlu0 %v1218_v3  ;;  %v1123_v3 = vmul.f32 1.442695, %v1023_v50  ;;  %v953_v25 = vpop.xlane.xlu0 %952  ;;  %v2018_v50 = vmax.f32 %v8585_v40, %v8595_v32 }
 0x3ee   : > { %6674 = vpow2.f32 %v1123_v3 }
 0x3ef   : > { %v8729_v30 = vpop.eup %6658  ;;  %6676 = vpow2.f32 %v1125_v43  ;;  %v11932_v43 = vld [vmem:[#allocation8_spill] sm:$0xff] }
 0x3f0   : > { %11929 = vst [vmem:[#allocation72_spill] sm:$0xff] %v8729_v30  ;;  %v8731_v37 = vpop.eup %6660 }
 0x3f1   : > { %v1227_v55 = vadd.f32 %v8731_v37, %v8729_v30 }
 0x3f2   : > { %v8733_v60 = vpop.eup %6662 }
 0x3f3   : > { %v8737_v9 = vpop.eup %6664  ;;  %1228 = vadd.xlane.f32.xlu0 %v1227_v55  ;;  %v1127_v55 = vmul.f32 1.442695, %v1025_v21 }
 0x3f4   : > { %v1230_v63 = vadd.f32 %v8737_v9, %v8733_v60  ;;  %v8744_v15 = vpop.eup %6666  ;;  %v8755_v6 = vpop.xlane.xlu0 %958 }
 0x3f5   : > { %v8747_v23 = vpop.eup %6668  ;;  %6678 = vpow2.f32 %v1127_v55 }
 0x3f6   : > { %v8749_v33 = vpop.eup %6670  ;;  %v1221_v44 = vadd.f32 %v8747_v23, %v8744_v15  ;;  %6680 = vpow2.f32 %v1129_v61 }
 0x3f7   : > { %1231 = vadd.xlane.f32.xlu0 %v1230_v63  ;;  %v8753_v63 = vpop.eup %6672 }
 0x3f8   : > { %v1224_v4 = vadd.f32 %v8753_v63, %v8749_v33 }
 0x3fb   : > { %v8763_v59 = vpop.eup %6674 }
 0x3fc   : > { %11930 = vst [vmem:[#allocation74_spill] sm:$0xff] %v8763_v59  ;;  %v8767_v3 = vpop.eup %6676 }
 0x3fd   : > { %11931 = vst [vmem:[#allocation79_spill] sm:$0xff] %v8767_v3  ;;  %v1233_v55 = vadd.f32 %v8767_v3, %v8763_v59  ;;  %v8790_v3 = vpop.f32.mrf.mxu1 }
 0x401   : > { %v8759_v13 = vpop.xlane.xlu0 %967 }
 0x402   : > { %v8773_v29 = vpop.eup %6678 }
 0x403   : > { %1222 = vadd.xlane.f32.xlu1 %v1221_v44  ;;  %11933 = vst [vmem:[#allocation80_spill] sm:$0xff] %v8773_v29  ;;  %v8777_v61 = vpop.eup %6680 }
 0x405   : > { %v8769_v21 = vpop.xlane.xlu0 %970 }
 0x407   : > { %1225 = vadd.xlane.f32.xlu1 %v1224_v4  ;;  %v1236_v4 = vadd.f32 %v8777_v61, %v8773_v29 }
 0x40b   : > { %2019 = vmax.xlane.f32.xlu1 %v2018_v50  ;;  %v956_v50 = vpop.xlane.xlu1 %955 }
 0x40c   : > { %v1029_v59 = vsub.f32 %v8398_v16, %v956_v50  ;;  %v1030_v30 = vsub.f32 %v8400_v19, %v956_v50  ;;  %v11939_v19 = vld [vmem:[#allocation10_spill] sm:$0xff] }
 0x40d   : > { %4106 = vrot.lane.b32.xlu0 %v11932_v43, %s7379_s11  ;;  %v1027_v43 = vsub.f32 %v8386_v53, %v953_v25  ;;  %v8797_v53 = vpop.f32.mrf.mxu1 }
 0x40f   : > { %2025 = vmax.xlane.f32.xlu1 %v2024_v46  ;;  %v1028_v46 = vsub.f32 %v8394_v11, %v953_v25  ;;  %v962_v41 = vpop.xlane.xlu1 %961  ;;  %v1131_v40 = vmul.f32 1.442695, %v1027_v43  ;;  %v1137_v11 = vmul.f32 1.442695, %v1030_v30  ;;  %v8803_v16 = vpop.f32.mrf.mxu1 }
 0x410   : > { %11938 = vst [vmem:[#allocation85_spill] sm:$0xff] %v8803_v16 }
 0x411   : > { %v8779_v44 = vpop.xlane.xlu0 %979  ;;  %6682 = vpow2.f32 %v1131_v40  ;;  %v2021_v40 = vmax.f32 %v8609_v1, %v8618_v36 }
 0x413   : > { %1234 = vadd.xlane.f32.xlu1 %v1233_v55  ;;  %v1133_v55 = vmul.f32 1.442695, %v1028_v46  ;;  %v2027_v46 = vmax.f32 %v8656_v2, %v8666_v5  ;;  %v1031_v5 = vsub.f32 %v8406_v17, %v8755_v6 }
 0x415   : > { %v8783_v42 = vpop.xlane.xlu0 %982  ;;  %6684 = vpow2.f32 %v1133_v55 }
 0x416   : > { %11934 = vst [vmem:[#allocation81_spill] sm:$0xff] %v8783_v42  ;;  %v1135_v42 = vmul.f32 1.442695, %v1029_v59  ;;  %v8810_v59 = vpop.f32.mrf.mxu1 }
 0x417   : > { %1237 = vadd.xlane.f32.xlu1 %v1236_v4  ;;  %v8795_v4 = vpop.xlane.xlu1 %964  ;;  %11940 = vst [vmem:[#allocation86_spill] sm:$0xff] %v8810_v59 }
 0x418   : > { %6686 = vpow2.f32 %v1135_v42 }
 0x419   : > { %6688 = vpow2.f32 %v1137_v11 }
 0x41b   : > { %v8801_v43 = vpop.xlane.xlu1 %973 }
 0x41c   : > { %v8787_v32 = vpop.xlane.xlu0 %1998 }
 0x41d   : > { %11935 = vst [vmem:[#allocation82_spill] sm:$0xff] %v8787_v32 }
 0x41e   : > { %v8815_v42 = vpop.eup %6682 }
 0x41f   : > { %v8812_v30 = vpop.xlane.xlu1 %976  ;;  %11941 = vst [vmem:[#allocation87_spill] sm:$0xff] %v8815_v42 }
 0x420   : > { %v8793_v29 = vpop.xlane.xlu0 %2001 }
 0x421   : > { %11936 = vst [vmem:[#allocation83_spill] sm:$0xff] %v8793_v29  ;;  %v1139_v29 = vmul.f32 1.442695, %v1031_v5  ;;  %v2030_v5 = vmax.f32 %v8678_v56, %v8685_v10 }
 0x422   : > { %v8821_v11 = vpop.eup %6684 }
 0x423   : > { %v8819_v55 = vpop.xlane.xlu1 %985  ;;  %11943 = vst [vmem:[#allocation89_spill] sm:$0xff] %v8821_v11  ;;  %v1239_v1 = vadd.f32 %v8821_v11, %v8815_v42  ;;  %v11949_v42 = vld [vmem:[#allocation26_spill] sm:$0xff] }
 0x424   : > { %v8799_v25 = vpop.xlane.xlu0 %2004  ;;  %11942 = vst [vmem:[#allocation88_spill] sm:$0xff] %v8819_v55  ;;  %v1034_v11 = vsub.f32 %v11949_v42, %v962_v41 }
 0x425   : > { %11937 = vst [vmem:[#allocation84_spill] sm:$0xff] %v8799_v25 }
 0x428   : > { %4108 = vrot.lane.b32.xlu1 %v11939_v19, %s7379_s11  ;;  %v4103_v50 = vpop.permute.xlu0 %4102  ;;  %v8823_v19 = vpop.eup %6686 }
 0x429   : > { %6338 = vmatprep.mubr.msk.bf16.mxu1 %vm601_vm1, %v4103_v50  ;;  %11944 = vst [vmem:[#allocation90_spill] sm:$0xff] %v8823_v19  ;;  %v8825_v36 = vpop.xlane.xlu1 %2007  ;;  %v8829_v25 = vpop.eup %6688 }
 0x42a   : > { %6339 = vmatmul.mubr.msk.bf16.gmra.mxu1 %vm601_vm1, %v4103_v50  ;;  %11945 = vst [vmem:[#allocation91_spill] sm:$0xff] %v8825_v36  ;;  %11946 = vst [vmem:[#allocation92_spill] sm:$0xff] %v8829_v25  ;;  %v11948_v36 = vld [vmem:[#allocation36_spill] sm:$0xff] }
 0x42b   : > { %v1033_v32 = vsub.f32 %v11948_v36, %v962_v41 }
 0x42c   : > { %2022 = vmax.xlane.f32.xlu0 %v2021_v40  ;;  %v1242_v40 = vadd.f32 %v8829_v25, %v8823_v19  ;;  %v1145_v19 = vmul.f32 1.442695, %v1034_v11 }
 0x430   : > { %2028 = vmax.xlane.f32.xlu0 %v2027_v46  ;;  %v8831_v50 = vpop.xlane.xlu1 %2013  ;;  %v1032_v46 = vsub.f32 %v8414_v22, %v8755_v6 }
 0x431   : > { %11947 = vst [vmem:[#allocation93_spill] sm:$0xff] %v8831_v50  ;;  %v1143_v50 = vmul.f32 1.442695, %v1033_v32  ;;  %v2036_v32 = vmax.f32 %v8803_v16, %v8810_v59 }
 0x434   : > { %1240 = vadd.xlane.f32.xlu0 %v1239_v1  ;;  %v1141_v1 = vmul.f32 1.442695, %v1032_v46  ;;  %v8857_v46 = vpop.f32.mrf.mxu1 }
 0x438   : > { %1243 = vadd.xlane.f32.xlu0 %v1242_v40 }
 0x43b   : > { %v1181_v2 = vpop.xlane.xlu1 %1180 }
 0x43c   : > { %6690 = vrcp.f32 %v1181_v2 }
 0x43f   : > { %v1184_v55 = vpop.xlane.xlu1 %1183 }
 0x440   : > { %6692 = vrcp.f32 %v1184_v55  ;;  %v11950_v55 = vld [vmem:[#allocation12_spill] sm:$0xff] }
 0x441   : > { %6694 = vpow2.f32 %v1139_v29 }
 0x442   : > { %6696 = vpow2.f32 %v1141_v1 }
 0x443   : > { %v1187_v25 = vpop.xlane.xlu1 %1186  ;;  %6698 = vpow2.f32 %v1143_v50 }
 0x444   : > { %6700 = vpow2.f32 %v1145_v19 }
 0x445   : > { %6702 = vrcp.f32 %v1187_v25 }
 0x447   : > { %v1190_v17 = vpop.xlane.xlu1 %1189 }
 0x448   : > { %6704 = vrcp.f32 %v1190_v17 }
 0x449   : > { %v6691_v22 = vpop.eup %6690 }
 0x44a   : > { %v1308_v2 = vmul.f32 %v6691_v22, %v8573_v18  ;;  %v1307_v25 = vmul.f32 %v6691_v22, %v8567_v0  ;;  %v8863_v22 = vpop.f32.mrf.mxu1 }
 0x44b   : > { %v1193_v36 = vpop.xlane.xlu1 %1192 }
 0x44c   : > { %2031 = vmax.xlane.f32.xlu1 %v2030_v5  ;;  %6706 = vrcp.f32 %v1193_v36 }
 0x44d   : > { %v6693_v41 = vpop.eup %6692 }
 0x44e   : > { %v8846_v6 = vpop.eup %6694  ;;  %v1310_v29 = vmul.f32 %v6693_v41, %v8587_v24  ;;  %v1309_v19 = vmul.f32 %v6693_v41, %v8583_v62  ;;  %4110 = vrot.lane.b32.xlu0 %v11950_v55, %s7379_s11 }
 0x44f   : > { %v8851_v42 = vpop.eup %6696  ;;  %v1196_v11 = vpop.xlane.xlu1 %1195 }
 0x450   : > { %6708 = vrcp.f32 %v1196_v11  ;;  %2037 = vmax.xlane.f32.xlu1 %v2036_v32  ;;  %v1372_v50 = vpack.c.bf16 %v1310_v29, %v1308_v2  ;;  %v1371_v40 = vpack.c.bf16 %v1309_v19, %v1307_v25  ;;  %v8855_v18 = vpop.eup %6698  ;;  %v1245_v0 = vadd.f32 %v8851_v42, %v8846_v6  ;;  %v8871_v11 = vpop.f32.mrf.mxu1 }
 0x451   : > { %v8859_v1 = vpop.eup %6700 }
 0x452   : > { %1483 = vmatprep.mubr.bf16.mxu0 %v1372_v50  ;;  %v6703_v62 = vpop.eup %6702  ;;  %v1248_v5 = vadd.f32 %v8859_v1, %v8855_v18 }
 0x453   : > { %1484 = vmatmul.mubr.bf16.vlgmr.msra.gmra.mxu0 %v1371_v40  ;;  %v1199_v24 = vpop.xlane.xlu1 %1198  ;;  %v1312_v36 = vmul.f32 %v6703_v62, %v8599_v35  ;;  %v1311_v32 = vmul.f32 %v6703_v62, %v8593_v39  ;;  %v11951_v40 = vld [vmem:[#allocation70_spill] sm:$0xff]  ;;  %v8880_v62 = vpop.f32.mrf.mxu1 }
 0x454   : > { %1246 = vadd.xlane.f32.xlu1 %v1245_v0  ;;  %6710 = vrcp.f32 %v1199_v24  ;;  %v1035_v0 = vsub.f32 %v11951_v40, %v8795_v4  ;;  %v11955_v40 = vld [vmem:[#allocation71_spill] sm:$0xff] }
 0x455   : > { %v6705_v17 = vpop.eup %6704 }
 0x456   : > { %v1314_v41 = vmul.f32 %v6705_v17, %v8611_v12  ;;  %v1313_v2 = vmul.f32 %v6705_v17, %v8607_v7  ;;  %v11952_v12 = vld [vmem:[#allocation49_spill] sm:$0xff] }
 0x457   : > { %v1202_v29 = vpop.xlane.xlu1 %1201  ;;  %v1036_v24 = vsub.f32 %v11952_v12, %v8795_v4  ;;  %v1038_v12 = vsub.f32 %v11955_v40, %v8759_v13 }
 0x458   : > { %6712 = vrcp.f32 %v1202_v29  ;;  %1249 = vadd.xlane.f32.xlu1 %v1248_v5  ;;  %v1374_v25 = vpack.c.bf16 %v1314_v41, %v1312_v36  ;;  %v1373_v19 = vpack.c.bf16 %v1313_v2, %v1311_v32  ;;  %v1147_v5 = vmul.f32 1.442695, %v1035_v0  ;;  %v11953_v2 = vld [vmem:[#allocation47_spill] sm:$0xff]  ;;  %v11954_v29 = vld [vmem:[#allocation42_spill] sm:$0xff] }
 0x459   : > { %v8873_v50 = vpop.xlane.xlu0 %2010  ;;  %v6707_v35 = vpop.eup %6706  ;;  %v1149_v32 = vmul.f32 1.442695, %v1036_v24  ;;  %v1037_v4 = vsub.f32 %v11953_v2, %v8759_v13 }
 0x45a   : > { %1491 = vmatprep.mubr.bf16.mxu0 %v1374_v25  ;;  %v1316_v36 = vmul.f32 %v6707_v35, %v8623_v14  ;;  %v1315_v25 = vmul.f32 %v6707_v35, %v11954_v29  ;;  %6714 = vpow2.f32 %v1147_v5 }
 0x45b   : > { %1492 = vmatmul.mubr.bf16.gmra.mxu0 %v1373_v19  ;;  %v4105_v39 = vpop.permute.xlu1 %4104  ;;  %6716 = vpow2.f32 %v1149_v32  ;;  %v1151_v14 = vmul.f32 1.442695, %v1037_v4 }
 0x45c   : > { %6340 = vmatprep.mubr.msk.bf16.mxu1 %vm601_vm1, %v4105_v39 }
 0x45d   : > { %v6709_v7 = vpop.eup %6708  ;;  %6341 = vmatmul.mubr.msk.bf16.gmra.mxu1 %vm601_vm1, %v4105_v39  ;;  %v8883_v17 = vpop.xlane.xlu0 %2016 }
 0x45e   : > { %v1318_v41 = vmul.f32 %v6709_v7, %v8635_v20  ;;  %v1317_v19 = vmul.f32 %v6709_v7, %v8630_v48  ;;  %v1153_v20 = vmul.f32 1.442695, %v1038_v12  ;;  %v11956_v7 = vld [vmem:[#allocation46_spill] sm:$0xff] }
 0x460   : > { %v1376_v55 = vpack.c.bf16 %v1318_v41, %v1316_v36  ;;  %v1375_v59 = vpack.c.bf16 %v1317_v19, %v1315_v25  ;;  %v11957_v41 = vld [vmem:[#allocation15_spill] sm:$0xff] }
 0x461   : > { %v1205_v39 = vpop.xlane.xlu0 %1204  ;;  %v6711_v16 = vpop.eup %6710 }
 0x462   : > { %1499 = vmatprep.mubr.bf16.mxu0 %v1376_v55  ;;  %6718 = vrcp.f32 %v1205_v39  ;;  %v1320_v35 = vmul.f32 %v6711_v16, %v8647_v8  ;;  %v1319_v13 = vmul.f32 %v6711_v16, %v11956_v7  ;;  %v2033_v8 = vmax.f32 %v8790_v3, %v8797_v53 }
 0x463   : > { %1500 = vmatmul.mubr.bf16.gmra.mxu0 %v1375_v59  ;;  %v2039_v16 = vmax.f32 %v8857_v46, %v8863_v22 }
 0x465   : > { %v6713_v0 = vpop.eup %6712  ;;  %v1208_v24 = vpop.xlane.xlu0 %1207 }
 0x466   : > { %6720 = vrcp.f32 %v1208_v24  ;;  %v1322_v48 = vmul.f32 %v6713_v0, %v8659_v58  ;;  %v1321_v36 = vmul.f32 %v6713_v0, %v8654_v26 }
 0x467   : > { %6722 = vpow2.f32 %v1151_v14  ;;  %v8901_v58 = vpop.eup %6714 }
 0x468   : > { %6724 = vpow2.f32 %v1153_v20  ;;  %v1378_v5 = vpack.c.bf16 %v1322_v48, %v1320_v35  ;;  %v1377_v55 = vpack.c.bf16 %v1321_v36, %v1319_v13  ;;  %v8903_v26 = vpop.eup %6716  ;;  %v8921_v13 = vpop.f32.mrf.mxu1 }
 0x469   : > { %4112 = vrot.lane.b32.xlu1 %v11957_v41, %s7379_s11  ;;  %v1211_v59 = vpop.xlane.xlu0 %1210  ;;  %v1251_v25 = vadd.f32 %v8903_v26, %v8901_v58  ;;  %v11998_v41 = vld [vmem:[#allocation83_spill] sm:$0xff] }
 0x46a   : > { %1507 = vmatprep.mubr.bf16.mxu0 %v1378_v5  ;;  %6726 = vrcp.f32 %v1211_v59 }
 0x46b   : > { %1508 = vmatmul.mubr.bf16.gmra.mxu0 %v1377_v55 }
 0x46d   : > { %v1214_v32 = vpop.xlane.xlu0 %1213  ;;  %2034 = vmax.xlane.f32.xlu0 %v2033_v8 }
 0x46e   : > { %6728 = vrcp.f32 %v1214_v32 }
 0x46f   : > { %v6719_v2 = vpop.eup %6718 }
 0x470   : > { %v1324_v40 = vmul.f32 %v6719_v2, %v8681_v49  ;;  %v1323_v39 = vmul.f32 %v6719_v2, %v8674_v45  ;;  %v11958_v49 = vld [vmem:[#allocation29_spill] sm:$0xff]  ;;  %v11960_v2 = vld [vmem:[#allocation60_spill] sm:$0xff] }
 0x471   : > { %v1217_v4 = vpop.xlane.xlu0 %1216  ;;  %2040 = vmax.xlane.f32.xlu0 %v2039_v16 }
 0x472   : > { %6730 = vrcp.f32 %v1217_v4  ;;  %v1041_v4 = vsub.f32 %v11960_v2, %v8801_v43 }
 0x473   : > { %v6721_v29 = vpop.eup %6720 }
 0x474   : > { %v8909_v19 = vpop.eup %6722  ;;  %v1326_v12 = vmul.f32 %v6721_v29, %v8691_v54  ;;  %v1325_v14 = vmul.f32 %v6721_v29, %v8683_v27  ;;  %v1039_v54 = vsub.f32 %v11958_v49, %v8769_v21  ;;  %v11959_v27 = vld [vmem:[#allocation33_spill] sm:$0xff] }
 0x475   : > { %v8915_v20 = vpop.eup %6724  ;;  %v1220_v0 = vpop.xlane.xlu0 %1219  ;;  %1252 = vadd.xlane.f32.xlu0 %v1251_v25  ;;  %v1040_v36 = vsub.f32 %v11959_v27, %v8769_v21  ;;  %v11961_v21 = vld [vmem:[#allocation35_spill] sm:$0xff] }
 0x476   : > { %6732 = vrcp.f32 %v1220_v0  ;;  %v1380_v24 = vpack.c.bf16 %v1326_v12, %v1324_v40  ;;  %v1379_v35 = vpack.c.bf16 %v1325_v14, %v1323_v39  ;;  %v1254_v48 = vadd.f32 %v8915_v20, %v8909_v19  ;;  %v8931_v40 = vpop.f32.mrf.mxu1 }
 0x477   : > { %v6727_v7 = vpop.eup %6726  ;;  %v1155_v16 = vmul.f32 1.442695, %v1039_v54  ;;  %v1157_v12 = vmul.f32 1.442695, %v1040_v36  ;;  %v1042_v39 = vsub.f32 %v11961_v21, %v8801_v43  ;;  %v11964_v36 = vld [vmem:[#allocation66_spill] sm:$0xff] }
 0x478   : > { %1515 = vmatprep.mubr.bf16.mxu0 %v1380_v24  ;;  %v1328_v5 = vmul.f32 %v6727_v7, %v8697_v28  ;;  %v1327_v59 = vmul.f32 %v6727_v7, %v8693_v38  ;;  %v1159_v38 = vmul.f32 1.442695, %v1041_v4  ;;  %v8935_v14 = vpop.f32.mrf.mxu1 }
 0x479   : > { %1516 = vmatmul.mubr.bf16.gmra.mxu0 %v1379_v35  ;;  %1255 = vadd.xlane.f32.xlu0 %v1254_v48  ;;  %6734 = vpow2.f32 %v1155_v16  ;;  %11962 = vst [vmem:[#allocation36_spill] sm:$0xff] %v8935_v14  ;;  %v1161_v0 = vmul.f32 1.442695, %v1042_v39  ;;  %v11967_v39 = vld [vmem:[#allocation64_spill] sm:$0xff] }
 0x47a   : > { %6736 = vpow2.f32 %v1157_v12  ;;  %v11966_v12 = vld [vmem:[#allocation57_spill] sm:$0xff] }
 0x47b   : > { %v6729_v45 = vpop.eup %6728  ;;  %6738 = vpow2.f32 %v1159_v38  ;;  %v1043_v21 = vsub.f32 %v11966_v12, %v8812_v30 }
 0x47c   : > { %v1330_v55 = vmul.f32 %v6729_v45, %v8705_v47  ;;  %v1329_v8 = vmul.f32 %v6729_v45, %v8699_v52  ;;  %v1229_v32 = vpop.xlane.xlu0 %1228  ;;  %v8942_v45 = vpop.f32.mrf.mxu1  ;;  %6740 = vpow2.f32 %v1161_v0 }
 0x47d   : > { %11963 = vst [vmem:[#allocation26_spill] sm:$0xff] %v8942_v45 }
 0x47e   : > { %v1382_v29 = vpack.c.bf16 %v1330_v55, %v1328_v5  ;;  %v1381_v25 = vpack.c.bf16 %v1329_v8, %v1327_v59 }
 0x47f   : > { %v6731_v28 = vpop.eup %6730 }
 0x480   : > { %1523 = vmatprep.mubr.bf16.mxu0 %v1382_v29  ;;  %v1232_v47 = vpop.xlane.xlu0 %1231  ;;  %v1332_v24 = vmul.f32 %v6731_v28, %v8715_v51  ;;  %v1331_v48 = vmul.f32 %v6731_v28, %v8711_v31  ;;  %v2042_v51 = vmax.f32 %v8871_v11, %v8880_v62  ;;  %v8967_v29 = vpop.f32.mrf.mxu1  ;;  %v1044_v28 = vsub.f32 %v11967_v39, %v8812_v30  ;;  %v11969_v30 = vld [vmem:[#allocation22_spill] sm:$0xff]  ;;  %v11974_v39 = vld [vmem:[#allocation48_spill] sm:$0xff] }
 0x481   : > { %1524 = vmatmul.mubr.bf16.gmra.mxu0 %v1381_v25  ;;  %6742 = vrcp.f32 %v1232_v47  ;;  %11965 = vst [vmem:[#allocation70_spill] sm:$0xff] %v8967_v29 }
 0x482   : > { %v8973_v0 = vpop.f32.mrf.mxu1 }
 0x483   : > { %v6733_v52 = vpop.eup %6732  ;;  %11968 = vst [vmem:[#allocation49_spill] sm:$0xff] %v8973_v0 }
 0x484   : > { %v1334_v35 = vmul.f32 %v6733_v52, %v8721_v57  ;;  %v1333_v7 = vmul.f32 %v6733_v52, %v8717_v34  ;;  %v4107_v43 = vpop.permute.xlu0 %4106  ;;  %v2048_v34 = vmax.f32 %v8935_v14, %v8942_v45 }
 0x485   : > { %6342 = vmatprep.mubr.msk.bf16.mxu1 %vm601_vm1, %v4107_v43 }
 0x486   : > { %v1384_v49 = vpack.c.bf16 %v1334_v35, %v1332_v24  ;;  %v1383_v54 = vpack.c.bf16 %v1333_v7, %v1331_v48  ;;  %6343 = vmatmul.mubr.msk.bf16.gmra.mxu1 %vm601_vm1, %v4107_v43  ;;  %v8947_v31 = vpop.eup %6734 }
 0x487   : > { %v8951_v27 = vpop.eup %6736 }
 0x488   : > { %1531 = vmatprep.mubr.bf16.mxu0 %v1384_v49  ;;  %v8955_v55 = vpop.eup %6738  ;;  %v1257_v59 = vadd.f32 %v8951_v27, %v8947_v31  ;;  %v1163_v49 = vmul.f32 1.442695, %v1043_v21 }
 0x489   : > { %1532 = vmatmul.mubr.bf16.gmra.mxu0 %v1383_v54  ;;  %v8959_v8 = vpop.eup %6740  ;;  %v1165_v54 = vmul.f32 1.442695, %v1044_v28 }
 0x48a   : > { %v1260_v2 = vadd.f32 %v8959_v8, %v8955_v55 }
 0x48c   : > { %v1223_v57 = vpop.xlane.xlu1 %1222 }
 0x48d   : > { %2043 = vmax.xlane.f32.xlu1 %v2042_v51  ;;  %6744 = vrcp.f32 %v1223_v57  ;;  %v1045_v51 = vsub.f32 %v11969_v30, %v8779_v44  ;;  %v11970_v57 = vld [vmem:[#allocation43_spill] sm:$0xff] }
 0x48e   : > { %6746 = vrcp.f32 %v1229_v32  ;;  %v6743_v4 = vpop.eup %6742 }
 0x48f   : > { %4114 = vrot.lane.b32.xlu0 %v11964_v36, %s7379_s11  ;;  %v1342_v35 = vmul.f32 %v6743_v4, %v8737_v9  ;;  %v1341_v12 = vmul.f32 %v6743_v4, %v8733_v60  ;;  %v11976_v60 = vld [vmem:[#allocation74_spill] sm:$0xff] }
 0x490   : > { %v1226_v5 = vpop.xlane.xlu1 %1225 }
 0x491   : > { %6748 = vrcp.f32 %v1226_v5  ;;  %2049 = vmax.xlane.f32.xlu1 %v2048_v34  ;;  %v1046_v34 = vsub.f32 %v11970_v57, %v8779_v44 }
 0x494   : > { %v8961_v16 = vpop.xlane.xlu1 %2019 }
 0x495   : > { %1258 = vadd.xlane.f32.xlu1 %v1257_v59 }
 0x498   : > { %v8965_v32 = vpop.xlane.xlu1 %2025 }
 0x499   : > { %1261 = vadd.xlane.f32.xlu1 %v1260_v2  ;;  %v8985_v2 = vpop.f32.mrf.mxu1 }
 0x49a   : > { %v6745_v25 = vpop.eup %6744  ;;  %11971 = vst [vmem:[#allocation47_spill] sm:$0xff] %v8985_v2 }
 0x49b   : > { %v6747_v38 = vpop.eup %6746  ;;  %v1336_v24 = vmul.f32 %v6745_v25, %v8747_v23  ;;  %v1335_v7 = vmul.f32 %v6745_v25, %v8744_v15  ;;  %v1169_v25 = vmul.f32 1.442695, %v1046_v34  ;;  %v8988_v44 = vpop.f32.mrf.mxu1 }
 0x49c   : > { %v1235_v47 = vpop.xlane.xlu1 %1234  ;;  %v1340_v9 = vmul.f32 %v6747_v38, %v8731_v37  ;;  %11972 = vst [vmem:[#allocation42_spill] sm:$0xff] %v8988_v44  ;;  %v11973_v37 = vld [vmem:[#allocation72_spill] sm:$0xff] }
 0x49d   : > { %6750 = vrcp.f32 %v1235_v47  ;;  %v1339_v21 = vmul.f32 %v6747_v38, %v11973_v37 }
 0x49e   : > { %v6749_v52 = vpop.eup %6748  ;;  %v1388_v15 = vpack.c.bf16 %v1342_v35, %v1340_v9  ;;  %v11975_v35 = vld [vmem:[#allocation79_spill] sm:$0xff]  ;;  %v11978_v9 = vld [vmem:[#allocation81_spill] sm:$0xff] }
 0x49f   : > { %v1338_v48 = vmul.f32 %v6749_v52, %v8753_v63  ;;  %v1337_v43 = vmul.f32 %v6749_v52, %v8749_v33  ;;  %v1167_v33 = vmul.f32 1.442695, %v1045_v51  ;;  %v1387_v28 = vpack.c.bf16 %v1341_v12, %v1339_v21  ;;  %v11981_v12 = vld [vmem:[#allocation21_spill] sm:$0xff] }
 0x4a0   : > { %v1238_v5 = vpop.xlane.xlu1 %1237  ;;  %v2045_v52 = vmax.f32 %v8921_v13, %v8931_v40  ;;  %v1048_v37 = vsub.f32 %v11981_v12, %v11978_v9 }
 0x4a1   : > { %6752 = vrcp.f32 %v1238_v5  ;;  %v1386_v23 = vpack.c.bf16 %v1338_v48, %v1336_v24  ;;  %v1385_v59 = vpack.c.bf16 %v1337_v43, %v1335_v7  ;;  %v11977_v43 = vld [vmem:[#allocation80_spill] sm:$0xff] }
 0x4a2   : > { %6754 = vpow2.f32 %v1163_v49 }
 0x4a3   : > { %1539 = vmatprep.mubr.bf16.mxu0 %v1386_v23  ;;  %6756 = vpow2.f32 %v1165_v54  ;;  %v2051_v54 = vmax.f32 %v8967_v29, %v8973_v0  ;;  %v12026_v0 = vld [vmem:[#allocation28_spill] sm:$0xff] }
 0x4a4   : > { %v4109_v63 = vpop.permute.xlu1 %4108  ;;  %1540 = vmatmul.mubr.bf16.gmra.mxu0 %v1385_v59  ;;  %6758 = vpow2.f32 %v1167_v33 }
 0x4a5   : > { %1547 = vmatprep.mubr.bf16.mxu0 %v1388_v15  ;;  %6344 = vmatprep.mubr.msk.bf16.mxu1 %vm601_vm1, %v4109_v63  ;;  %6760 = vpow2.f32 %v1169_v25  ;;  %v11979_v15 = vld [vmem:[#allocation54_spill] sm:$0xff]  ;;  %v9021_v25 = vpop.f32.mrf.mxu1 }
 0x4a6   : > { %6345 = vmatmul.mubr.msk.bf16.gmra.mxu1 %vm601_vm1, %v4109_v63  ;;  %v1047_v33 = vsub.f32 %v11979_v15, %v11978_v9  ;;  %11980 = vst [vmem:[#allocation71_spill] sm:$0xff] %v9021_v25 }
 0x4a8   : > { %v1171_v21 = vmul.f32 1.442695, %v1047_v33 }
 0x4aa   : > { %4116 = vrot.lane.b32.xlu1 %v11974_v39, %s7379_s11  ;;  %v6751_v47 = vpop.eup %6750 }
 0x4ab   : > { %v1344_v48 = vmul.f32 %v6751_v47, %v11975_v35  ;;  %v1343_v4 = vmul.f32 %v6751_v47, %v11976_v60  ;;  %v11982_v47 = vld [vmem:[#allocation88_spill] sm:$0xff]  ;;  %v9027_v35 = vpop.f32.mrf.mxu1 }
 0x4ac   : > { %1548 = vmatmul.mubr.bf16.gmra.mxu0 %v1387_v28  ;;  %11984 = vst [vmem:[#allocation46_spill] sm:$0xff] %v9027_v35 }
 0x4ae   : > { %v6753_v24 = vpop.eup %6752  ;;  %2046 = vmax.xlane.f32.xlu0 %v2045_v52  ;;  %v11983_v52 = vld [vmem:[#allocation61_spill] sm:$0xff] }
 0x4af   : > { %v1346_v7 = vmul.f32 %v6753_v24, %v8777_v61  ;;  %v1345_v38 = vmul.f32 %v6753_v24, %v11977_v43  ;;  %v9001_v49 = vpop.eup %6754  ;;  %v1049_v24 = vsub.f32 %v11983_v52, %v11982_v47 }
 0x4b0   : > { %v9005_v57 = vpop.eup %6756 }
 0x4b1   : > { %v1390_v30 = vpack.c.bf16 %v1346_v7, %v1344_v48  ;;  %v1389_v51 = vpack.c.bf16 %v1345_v38, %v1343_v4  ;;  %v9007_v34 = vpop.eup %6758  ;;  %v1263_v61 = vadd.f32 %v9005_v57, %v9001_v49  ;;  %v1173_v48 = vmul.f32 1.442695, %v1048_v37  ;;  %v11985_v7 = vld [vmem:[#allocation58_spill] sm:$0xff]  ;;  %v9031_v38 = vpop.f32.mrf.mxu1  ;;  %v11988_v37 = vld [vmem:[#allocation56_spill] sm:$0xff] }
 0x4b2   : > { %2052 = vmax.xlane.f32.xlu0 %v2051_v54  ;;  %v9011_v5 = vpop.eup %6760  ;;  %v1050_v60 = vsub.f32 %v11985_v7, %v11982_v47  ;;  %v1175_v43 = vmul.f32 1.442695, %v1049_v24  ;;  %11986 = vst [vmem:[#allocation29_spill] sm:$0xff] %v9031_v38  ;;  %v11990_v47 = vld [vmem:[#allocation92_spill] sm:$0xff]  ;;  %v11991_v24 = vld [vmem:[#allocation87_spill] sm:$0xff]  ;;  %v11992_v7 = vld [vmem:[#allocation90_spill] sm:$0xff] }
 0x4b3   : > { %1555 = vmatprep.mubr.bf16.mxu0 %v1390_v30  ;;  %v1266_v59 = vadd.f32 %v9011_v5, %v9007_v34 }
 0x4b4   : > { %1556 = vmatmul.mubr.bf16.gmra.mxu0 %v1389_v51  ;;  %v1177_v54 = vmul.f32 1.442695, %v1050_v60  ;;  %v9034_v51 = vpop.f32.mrf.mxu1 }
 0x4b5   : > { %v9013_v23 = vpop.xlane.xlu0 %2022  ;;  %11987 = vst [vmem:[#allocation33_spill] sm:$0xff] %v9034_v51  ;;  %v2060_v33 = vmax.f32 %v9031_v38, %v9034_v51 }
 0x4b6   : > { %1264 = vadd.xlane.f32.xlu0 %v1263_v61  ;;  %v2054_v61 = vmax.f32 %v8985_v2, %v8988_v44 }
 0x4b9   : > { %v9019_v63 = vpop.xlane.xlu0 %2028 }
 0x4ba   : > { %1267 = vadd.xlane.f32.xlu0 %v1266_v59 }
 0x4bd   : > { %v1241_v28 = vpop.xlane.xlu0 %1240 }
 0x4be   : > { %6762 = vrcp.f32 %v1241_v28 }
 0x4bf   : > { %6764 = vpow2.f32 %v1171_v21  ;;  %v11989_v21 = vld [vmem:[#allocation89_spill] sm:$0xff] }
 0x4c1   : > { %v1244_v4 = vpop.xlane.xlu0 %1243 }
 0x4c2   : > { %6766 = vrcp.f32 %v1244_v4 }
 0x4c3   : > { %6768 = vpow2.f32 %v1173_v48 }
 0x4c4   : > { %6770 = vpow2.f32 %v1175_v43 }
 0x4c5   : > { %v4111_v30 = vpop.permute.xlu0 %4110  ;;  %6772 = vpow2.f32 %v1177_v54 }
 0x4c6   : > { %6346 = vmatprep.mubr.msk.bf16.mxu1 %vm601_vm1, %v4111_v30 }
 0x4c7   : > { %6347 = vmatmul.mubr.msk.bf16.gmra.mxu1 %vm601_vm1, %v4111_v30 }
 0x4cb   : > { %v6763_v59 = vpop.eup %6762 }
 0x4cc   : > { %v9039_v9 = vpop.eup %6764  ;;  %v1348_v28 = vmul.f32 %v6763_v59, %v11989_v21  ;;  %v1347_v48 = vmul.f32 %v6763_v59, %v11991_v24 }
 0x4ce   : > { %2055 = vmax.xlane.f32.xlu1 %v2054_v61 }
 0x4cf   : > { %v6767_v15 = vpop.eup %6766 }
 0x4d0   : > { %v9043_v12 = vpop.eup %6768  ;;  %4118 = vrot.lane.b32.xlu0 %v11988_v37, %s7379_s11  ;;  %v1350_v52 = vmul.f32 %v6767_v15, %v11990_v47  ;;  %v1349_v60 = vmul.f32 %v6767_v15, %v11992_v7  ;;  %v9063_v15 = vpop.f32.mrf.mxu1  ;;  %v11997_v7 = vld [vmem:[#allocation20_spill] sm:$0xff] }
 0x4d1   : > { %v9051_v54 = vpop.eup %6770  ;;  %v1269_v30 = vadd.f32 %v9043_v12, %v9039_v9  ;;  %11993 = vst [vmem:[#allocation60_spill] sm:$0xff] %v9063_v15 }
 0x4d2   : > { %2061 = vmax.xlane.f32.xlu1 %v2060_v33  ;;  %v1392_v4 = vpack.c.bf16 %v1350_v52, %v1348_v28  ;;  %v1391_v43 = vpack.c.bf16 %v1349_v60, %v1347_v48  ;;  %v9055_v61 = vpop.eup %6772  ;;  %v9065_v28 = vpop.f32.mrf.mxu1 }
 0x4d3   : > { %v1272_v59 = vadd.f32 %v9055_v61, %v9051_v54  ;;  %11994 = vst [vmem:[#allocation35_spill] sm:$0xff] %v9065_v28 }
 0x4d4   : > { %1563 = vmatprep.mubr.bf16.mxu0 %v1392_v4  ;;  %v9067_v52 = vpop.f32.mrf.mxu1  ;;  %v2057_v4 = vmax.f32 %v9021_v25, %v9027_v35 }
 0x4d5   : > { %v9057_v36 = vpop.xlane.xlu1 %2031  ;;  %1564 = vmatmul.mubr.bf16.gmra.mxu0 %v1391_v43  ;;  %11995 = vst [vmem:[#allocation57_spill] sm:$0xff] %v9067_v52 }
 0x4d6   : > { %1270 = vadd.xlane.f32.xlu1 %v1269_v30  ;;  %v9070_v48 = vpop.f32.mrf.mxu1 }
 0x4d7   : > { %11996 = vst [vmem:[#allocation64_spill] sm:$0xff] %v9070_v48 }
 0x4d9   : > { %v9061_v21 = vpop.xlane.xlu1 %2037 }
 0x4da   : > { %1273 = vadd.xlane.f32.xlu1 %v1272_v59 }
 0x4dd   : > { %v1247_v33 = vpop.xlane.xlu1 %1246 }
 0x4de   : > { %6774 = vrcp.f32 %v1247_v33 }
 0x4e1   : > { %v1250_v47 = vpop.xlane.xlu1 %1249 }
 0x4e2   : > { %6776 = vrcp.f32 %v1250_v47 }
 0x4e5   : > { %v4113_v24 = vpop.permute.xlu1 %4112 }
 0x4e6   : > { %6348 = vmatprep.mubr.msk.bf16.mxu1 %vm601_vm1, %v4113_v24 }
 0x4e7   : > { %6349 = vmatmul.mubr.msk.bf16.gmra.mxu1 %vm601_vm1, %v4113_v24  ;;  %v2063_v24 = vmax.f32 %v9063_v15, %v9065_v28 }
 0x4eb   : > { %4120 = vrot.lane.b32.xlu1 %v11997_v7, %s7379_s11  ;;  %v6775_v60 = vpop.eup %6774 }
 0x4ec   : > { %v1352_v30 = vmul.f32 %v6775_v60, %v8851_v42  ;;  %v1351_v33 = vmul.f32 %v6775_v60, %v8846_v6  ;;  %v12000_v42 = vld [vmem:[#allocation76_spill] sm:$0xff] }
 0x4ef   : > { %v6777_v43 = vpop.eup %6776  ;;  %2058 = vmax.xlane.f32.xlu0 %v2057_v4  ;;  %v11999_v4 = vld [vmem:[#allocation73_spill] sm:$0xff] }
 0x4f0   : > { %v1354_v59 = vmul.f32 %v6777_v43, %v8859_v1  ;;  %v1353_v47 = vmul.f32 %v6777_v43, %v8855_v18  ;;  %v2095_v51 = vsub.f32 %v11999_v4, %v11998_v41  ;;  %v2096_v1 = vsub.f32 %v12000_v42, %v11998_v41  ;;  %v9091_v18 = vpop.f32.mrf.mxu1  ;;  %v12005_v4 = vld [vmem:[#allocation68_spill] sm:$0xff] }
 0x4f2   : > { %v1394_v39 = vpack.c.bf16 %v1354_v59, %v1352_v30  ;;  %v1393_v37 = vpack.c.bf16 %v1353_v47, %v1351_v33  ;;  %v2161_v6 = vmul.f32 1.442695, %v2095_v51  ;;  %v2163_v60 = vmul.f32 1.442695, %v2096_v1  ;;  %v9093_v30 = vpop.f32.mrf.mxu1  ;;  %v12003_v51 = vld [vmem:[#allocation38_spill] sm:$0xff] }
 0x4f3   : > { %2064 = vmax.xlane.f32.xlu0 %v2063_v24  ;;  %v2066_v47 = vmax.f32 %v9067_v52, %v9070_v48  ;;  %v12004_v24 = vld [vmem:[#allocation82_spill] sm:$0xff] }
 0x4f4   : > { %1571 = vmatprep.mubr.bf16.mxu0 %v1394_v39  ;;  %6778 = vpow2.f32 %v2161_v6  ;;  %v2093_v42 = vsub.f32 %v12005_v4, %v12004_v24 }
 0x4f5   : > { %1572 = vmatmul.mubr.bf16.gmra.mxu0 %v1393_v37  ;;  %6780 = vpow2.f32 %v2163_v60  ;;  %v9095_v37 = vpop.f32.mrf.mxu1  ;;  %v12006_v60 = vld [vmem:[#allocation63_spill] sm:$0xff] }
 0x4f6   : > { %v9083_v7 = vpop.xlane.xlu0 %2034  ;;  %12001 = vst [vmem:[#allocation22_spill] sm:$0xff] %v9095_v37 }
 0x4f7   : > { %v9098_v41 = vpop.f32.mrf.mxu1 }
 0x4f8   : > { %12002 = vst [vmem:[#allocation43_spill] sm:$0xff] %v9098_v41 }
 0x4fa   : > { %v9089_v38 = vpop.xlane.xlu0 %2040 }
 0x4fe   : > { %v1253_v43 = vpop.xlane.xlu0 %1252 }
 0x4ff   : > { %6782 = vrcp.f32 %v1253_v43  ;;  %v2094_v43 = vsub.f32 %v12006_v60, %v12004_v24  ;;  %v9124_v60 = vpop.f32.mrf.mxu1 }
 0x500   : > { %12008 = vst [vmem:[#allocation79_spill] sm:$0xff] %v9124_v60 }
 0x501   : > { %v9103_v33 = vpop.eup %6778  ;;  %v2159_v52 = vmul.f32 1.442695, %v2094_v43 }
 0x502   : > { %v1256_v39 = vpop.xlane.xlu0 %1255  ;;  %v9109_v1 = vpop.eup %6780 }
 0x503   : > { %6784 = vrcp.f32 %v1256_v39 }
 0x506   : > { %v4115_v59 = vpop.permute.xlu0 %4114 }
 0x507   : > { %6350 = vmatprep.mubr.msk.bf16.mxu1 %vm601_vm1, %v4115_v59 }
 0x508   : > { %6351 = vmatmul.mubr.msk.bf16.gmra.mxu1 %vm601_vm1, %v4115_v59  ;;  %v2157_v59 = vmul.f32 1.442695, %v2093_v42 }
 0x509   : > { %2539 = vrot.lane.b32.xlu0 %v12003_v51, %s7385_s19  ;;  %v2288_v51 = vadd.f32 %v9109_v1, %v9103_v33 }
 0x50a   : > { %6786 = vpow2.f32 %v2157_v59 }
 0x50b   : > { %6788 = vpow2.f32 %v2159_v52 }
 0x50c   : > { %v6783_v6 = vpop.eup %6782 }
 0x50d   : > { %v1356_v28 = vmul.f32 %v6783_v6, %v8903_v26  ;;  %v1355_v48 = vmul.f32 %v6783_v6, %v8901_v58 }
 0x50f   : > { %2067 = vmax.xlane.f32.xlu1 %v2066_v47 }
 0x510   : > { %v6785_v39 = vpop.eup %6784 }
 0x511   : > { %v1358_v15 = vmul.f32 %v6785_v39, %v8915_v20  ;;  %v1357_v4 = vmul.f32 %v6785_v39, %v8909_v19 }
 0x513   : > { %v5902_v44 = vpop.f32.mrf.mxu0  ;;  %2289 = vadd.xlane.f32.xlu1 %v2288_v51  ;;  %v1396_v2 = vpack.c.bf16 %v1358_v15, %v1356_v28  ;;  %v1395_v35 = vpack.c.bf16 %v1357_v4, %v1355_v48  ;;  %v9127_v48 = vpop.f32.mrf.mxu1 }
 0x514   : > { %12009 = vst [vmem:[#allocation74_spill] sm:$0xff] %v9127_v48 }
 0x515   : > { %v5903_v24 = vpop.f32.mrf.mxu0  ;;  %1579 = vmatprep.mubr.bf16.mxu0 %v1396_v2  ;;  %v9134_v4 = vpop.f32.mrf.mxu1 }
 0x516   : > { %v5904_v47 = vadd.f32 %v5903_v24, %v5902_v44  ;;  %v9119_v42 = vpop.xlane.xlu1 %2043  ;;  %1580 = vmatmul.mubr.bf16.gmra.mxu0 %v1395_v35  ;;  %12010 = vst [vmem:[#allocation80_spill] sm:$0xff] %v9134_v4  ;;  %v12011_v24 = vld [vmem:[#allocation13_spill] sm:$0xff] }
 0x517   : > { %v5905_v26 = vpop.f32.mrf.mxu0  ;;  %v9130_v39 = vpop.eup %6786 }
 0x518   : > { %1612 = vst.msk [vmem:[#allocation2] sm:$0xff] %vm601_vm1, %v5904_v47  ;;  %v9132_v51 = vpop.eup %6788 }
 0x519   : > { %v5906_v20 = vpop.f32.mrf.mxu0 }
 0x51a   : > { %v5907_v58 = vadd.f32 %v5906_v20, %v5905_v26  ;;  %v9122_v6 = vpop.xlane.xlu1 %2049 }
 0x51b   : > { %12007 = vst [vmem:[#allocation72_spill] sm:$0xff] %v9122_v6  ;;  %v5908_v19 = vpop.f32.mrf.mxu0 }
 0x51c   : > { %1613 = vst.msk [vmem:[#allocation2 + $0x8] sm:$0xff] %vm601_vm1, %v5907_v58 }
 0x51d   : > { %v5909_v15 = vpop.f32.mrf.mxu0 }
 0x51e   : > { %v5910_v28 = vadd.f32 %v5909_v15, %v5908_v19  ;;  %v1259_v2 = vpop.xlane.xlu1 %1258  ;;  %v2285_v19 = vadd.f32 %v9132_v51, %v9130_v39  ;;  %v9142_v15 = vpop.f32.mrf.mxu1 }
 0x51f   : > { %v5911_v44 = vpop.f32.mrf.mxu0  ;;  %6790 = vrcp.f32 %v1259_v2  ;;  %12012 = vst [vmem:[#allocation81_spill] sm:$0xff] %v9142_v15 }
 0x520   : > { %1614 = vst.msk [vmem:[#allocation2 + $0x10] sm:$0xff] %vm601_vm1, %v5910_v28  ;;  %v12013_v28 = vld [vmem:[#allocation32_spill] sm:$0xff] }
 0x521   : > { %v5912_v35 = vpop.f32.mrf.mxu0 }
 0x522   : > { %v5913_v52 = vadd.f32 %v5912_v35, %v5911_v44  ;;  %v1262_v43 = vpop.xlane.xlu1 %1261 }
 0x523   : > { %6792 = vrcp.f32 %v1262_v43  ;;  %v5914_v59 = vpop.f32.mrf.mxu0 }
 0x524   : > { %1615 = vst.msk [vmem:[#allocation2 + $0x18] sm:$0xff] %vm601_vm1, %v5913_v52  ;;  %2523 = vrot.lane.b32.xlu1 %v12011_v24, %s7385_s19  ;;  %v12014_v52 = vld [vmem:[#allocation11_spill] sm:$0xff] }
 0x525   : > { %v5915_v47 = vpop.f32.mrf.mxu0 }
 0x526   : > { %v5916_v26 = vadd.f32 %v5915_v47, %v5914_v59  ;;  %v4117_v20 = vpop.permute.xlu1 %4116 }
 0x527   : > { %v5917_v58 = vpop.f32.mrf.mxu0  ;;  %6352 = vmatprep.mubr.msk.bf16.mxu1 %vm601_vm1, %v4117_v20 }
 0x528   : > { %1616 = vst.msk [vmem:[#allocation2 + $0x20] sm:$0xff] %vm601_vm1, %v5916_v26  ;;  %2537 = vrot.lane.b32.xlu1 %v12013_v28, %s7385_s19  ;;  %6353 = vmatmul.mubr.msk.bf16.gmra.mxu1 %vm601_vm1, %v4117_v20 }
 0x529   : > { %2286 = vadd.xlane.f32.xlu0 %v2285_v19  ;;  %v5918_v2 = vpop.f32.mrf.mxu0 }
 0x52a   : > { %v5919_v44 = vadd.f32 %v5918_v2, %v5917_v58 }
 0x52b   : > { %v5920_v35 = vpop.f32.mrf.mxu0 }
 0x52c   : > { %1617 = vst.msk [vmem:[#allocation2 + $0x28] sm:$0xff] %vm601_vm1, %v5919_v44  ;;  %2521 = vrot.lane.b32.xlu1 %v12014_v52, %s7385_s19  ;;  %v6791_v59 = vpop.eup %6790 }
 0x52d   : > { %v5921_v43 = vpop.f32.mrf.mxu0  ;;  %v1360_v28 = vmul.f32 %v6791_v59, %v8951_v27  ;;  %v1359_v58 = vmul.f32 %v6791_v59, %v8947_v31  ;;  %v12017_v31 = vld [vmem:[#allocation34_spill] sm:$0xff] }
 0x52e   : > { %v5922_v24 = vadd.f32 %v5921_v43, %v5920_v35 }
 0x52f   : > { %v5923_v47 = vpop.f32.mrf.mxu0 }
 0x530   : > { %v6793_v25 = vpop.eup %6792  ;;  %1618 = vst.msk [vmem:[#allocation2 + $0x30] sm:$0xff] %vm601_vm1, %v5922_v24 }
 0x531   : > { %v5924_v26 = vpop.f32.mrf.mxu0  ;;  %v1362_v20 = vmul.f32 %v6793_v25, %v8959_v8  ;;  %v1361_v19 = vmul.f32 %v6793_v25, %v8955_v55  ;;  %v9161_v8 = vpop.f32.mrf.mxu1 }
 0x532   : > { %v5925_v2 = vadd.f32 %v5924_v26, %v5923_v47  ;;  %12016 = vst [vmem:[#allocation21_spill] sm:$0xff] %v9161_v8 }
 0x533   : > { %v1398_v44 = vpack.c.bf16 %v1362_v20, %v1360_v28  ;;  %v1397_v45 = vpack.c.bf16 %v1361_v19, %v1359_v58 }
 0x534   : > { %1619 = vst.msk [vmem:[#allocation2 + $0x38] sm:$0xff] %vm601_vm1, %v5925_v2  ;;  %v12020_v2 = vld [vmem:[#allocation84_spill] sm:$0xff] }
 0x535   : > { %1587 = vmatprep.mubr.bf16.mxu0 %v1398_v44  ;;  %v12021_v44 = vld [vmem:[#allocation78_spill] sm:$0xff] }
 0x536   : > { %1588 = vmatmul.mubr.bf16.gmra.mxu0 %v1397_v45  ;;  %v9166_v45 = vpop.f32.mrf.mxu1 }
 0x537   : > { %v9157_v35 = vpop.xlane.xlu0 %2046  ;;  %12018 = vst [vmem:[#allocation88_spill] sm:$0xff] %v9166_v45 }
 0x538   : > { %v9169_v19 = vpop.f32.mrf.mxu1 }
 0x539   : > { %v5926_v52 = vpop.f32.mrf.mxu0  ;;  %12019 = vst [vmem:[#allocation61_spill] sm:$0xff] %v9169_v19 }
 0x53b   : > { %v5927_v43 = vpop.f32.mrf.mxu0  ;;  %v9159_v24 = vpop.xlane.xlu0 %2052 }
 0x53c   : > { %12015 = vst [vmem:[#allocation54_spill] sm:$0xff] %v9159_v24  ;;  %v5928_v27 = vadd.f32 %v5927_v43, %v5926_v52  ;;  %v2097_v52 = vsub.f32 %v12021_v44, %v12020_v2 }
 0x53d   : > { %v5929_v14 = vpop.f32.mrf.mxu0 }
 0x53e   : > { %1620 = vst.msk [vmem:[#allocation2 + $0x40] sm:$0xff] %vm601_vm1, %v5928_v27 }
 0x53f   : > { %4122 = vrot.lane.b32.xlu0 %v12017_v31, %s7379_s11  ;;  %v5930_v55 = vpop.f32.mrf.mxu0  ;;  %v1265_v25 = vpop.xlane.xlu0 %1264 }
 0x540   : > { %v5931_v59 = vadd.f32 %v5930_v55, %v5929_v14  ;;  %6794 = vrcp.f32 %v1265_v25  ;;  %v12022_v14 = vld [vmem:[#allocation24_spill] sm:$0xff] }
 0x541   : > { %v5932_v47 = vpop.f32.mrf.mxu0  ;;  %v2098_v27 = vsub.f32 %v12022_v14, %v12020_v2 }
 0x542   : > { %1621 = vst.msk [vmem:[#allocation2 + $0x48] sm:$0xff] %vm601_vm1, %v5931_v59  ;;  %v9177_v59 = vpop.f32.mrf.mxu1 }
 0x543   : > { %v5933_v26 = vpop.f32.mrf.mxu0  ;;  %v1268_v28 = vpop.xlane.xlu0 %1267  ;;  %12023 = vst [vmem:[#allocation58_spill] sm:$0xff] %v9177_v59  ;;  %v2167_v6 = vmul.f32 1.442695, %v2098_v27 }
 0x544   : > { %v5934_v20 = vadd.f32 %v5933_v26, %v5932_v47  ;;  %6796 = vrcp.f32 %v1268_v28  ;;  %v12024_v47 = vld [vmem:[#allocation91_spill] sm:$0xff]  ;;  %v12025_v26 = vld [vmem:[#allocation50_spill] sm:$0xff] }
 0x545   : > { %v5935_v58 = vpop.f32.mrf.mxu0  ;;  %v2099_v28 = vsub.f32 %v12025_v26, %v12024_v47  ;;  %v2100_v2 = vsub.f32 %v12026_v0, %v12024_v47 }
 0x546   : > { %1622 = vst.msk [vmem:[#allocation2 + $0x50] sm:$0xff] %vm601_vm1, %v5934_v20  ;;  %v2165_v20 = vmul.f32 1.442695, %v2097_v52 }
 0x547   : > { %v5936_v43 = vpop.f32.mrf.mxu0  ;;  %v4119_v55 = vpop.permute.xlu0 %4118  ;;  %v2169_v29 = vmul.f32 1.442695, %v2099_v28 }
 0x548   : > { %v5937_v31 = vadd.f32 %v5936_v43, %v5935_v58  ;;  %6354 = vmatprep.mubr.msk.bf16.mxu1 %vm601_vm1, %v4119_v55  ;;  %v2069_v43 = vmax.f32 %v9091_v18, %v9093_v30  ;;  %6798 = vpow2.f32 %v2165_v20 }
 0x549   : > { %v5938_v25 = vpop.f32.mrf.mxu0  ;;  %6355 = vmatmul.mubr.msk.bf16.gmra.mxu1 %vm601_vm1, %v4119_v55  ;;  %6800 = vpow2.f32 %v2167_v6 }
 0x54a   : > { %1623 = vst.msk [vmem:[#allocation2 + $0x58] sm:$0xff] %vm601_vm1, %v5937_v31  ;;  %v2171_v31 = vmul.f32 1.442695, %v2100_v2  ;;  %6802 = vpow2.f32 %v2169_v29 }
 0x54b   : > { %v5939_v44 = vpop.f32.mrf.mxu0 }
 0x54c   : > { %v5940_v14 = vadd.f32 %v5939_v44, %v5938_v25  ;;  %6804 = vpow2.f32 %v2171_v31 }
 0x54d   : > { %v5941_v58 = vpop.f32.mrf.mxu0  ;;  %v6795_v24 = vpop.eup %6794 }
 0x54e   : > { %1624 = vst.msk [vmem:[#allocation2 + $0x60] sm:$0xff] %vm601_vm1, %v5940_v14  ;;  %v1364_v0 = vmul.f32 %v6795_v24, %v9005_v57  ;;  %v1363_v25 = vmul.f32 %v6795_v24, %v9001_v49  ;;  %v2072_v57 = vmax.f32 %v9095_v37, %v9098_v41  ;;  %v12073_v37 = vld [vmem:[#allocation53_spill] sm:$0xff] }
 0x54f   : > { %v5942_v26 = vpop.f32.mrf.mxu0 }
 0x550   : > { %2070 = vmax.xlane.f32.xlu1 %v2069_v43  ;;  %v5943_v52 = vadd.f32 %v5942_v26, %v5941_v58  ;;  %v12031_v43 = vld [vmem:[#allocation27_spill] sm:$0xff] }
 0x551   : > { %v6797_v55 = vpop.eup %6796 }
 0x552   : > { %1625 = vst.msk [vmem:[#allocation2 + $0x68] sm:$0xff] %vm601_vm1, %v5943_v52  ;;  %v1366_v27 = vmul.f32 %v6797_v55, %v9011_v5  ;;  %v1365_v47 = vmul.f32 %v6797_v55, %v9007_v34  ;;  %v9203_v5 = vpop.f32.mrf.mxu1 }
 0x554   : > { %v1400_v28 = vpack.c.bf16 %v1366_v27, %v1364_v0  ;;  %v1399_v20 = vpack.c.bf16 %v1365_v47, %v1363_v25  ;;  %v9211_v58 = vpop.f32.mrf.mxu1  ;;  %v12032_v0 = vld [vmem:[#allocation39_spill] sm:$0xff] }
 0x555   : > { %v9197_v29 = vpop.eup %6798 }
 0x556   : > { %1595 = vmatprep.mubr.bf16.mxu0 %v1400_v28  ;;  %12027 = vst [vmem:[#allocation89_spill] sm:$0xff] %v9197_v29  ;;  %v9201_v2 = vpop.eup %6800  ;;  %v9217_v55 = vpop.f32.mrf.mxu1 }
 0x557   : > { %v9193_v6 = vpop.xlane.xlu1 %2055  ;;  %1596 = vmatmul.mubr.bf16.gmra.mxu0 %v1399_v20  ;;  %12028 = vst [vmem:[#allocation92_spill] sm:$0xff] %v9201_v2  ;;  %v9205_v49 = vpop.eup %6802  ;;  %v2291_v24 = vadd.f32 %v9201_v2, %v9197_v29 }
 0x558   : > { %12029 = vst [vmem:[#allocation87_spill] sm:$0xff] %v9205_v49  ;;  %v9222_v20 = vpop.f32.mrf.mxu1 }
 0x559   : > { %v9209_v14 = vpop.eup %6804 }
 0x55a   : > { %12030 = vst [vmem:[#allocation90_spill] sm:$0xff] %v9209_v14  ;;  %v2294_v31 = vadd.f32 %v9209_v14, %v9205_v49 }
 0x55b   : > { %v9195_v44 = vpop.xlane.xlu1 %2061 }
 0x55e   : > { %2073 = vmax.xlane.f32.xlu0 %v2072_v57  ;;  %v12033_v57 = vld [vmem:[#allocation23_spill] sm:$0xff] }
 0x55f   : > { %v1271_v34 = vpop.xlane.xlu1 %1270 }
 0x560   : > { %6806 = vrcp.f32 %v1271_v34 }
 0x561   : > { %2535 = vrot.lane.b32.xlu1 %v12031_v43, %s7385_s19 }
 0x562   : > { %2292 = vadd.xlane.f32.xlu0 %v2291_v24 }
 0x563   : > { %v1274_v26 = vpop.xlane.xlu1 %1273 }
 0x564   : > { %6808 = vrcp.f32 %v1274_v26  ;;  %v5944_v52 = vpop.f32.mrf.mxu0  ;;  %v12034_v26 = vld [vmem:[#allocation7_spill] sm:$0xff] }
 0x565   : > { %4124 = vrot.lane.b32.xlu1 %v12032_v0, %s7379_s11 }
 0x566   : > { %2295 = vadd.xlane.f32.xlu0 %v2294_v31  ;;  %v5945_v27 = vpop.f32.mrf.mxu0 }
 0x567   : > { %v5946_v25 = vadd.f32 %v5945_v27, %v5944_v52  ;;  %v4121_v47 = vpop.permute.xlu1 %4120 }
 0x568   : > { %v5947_v28 = vpop.f32.mrf.mxu0  ;;  %6356 = vmatprep.mubr.msk.bf16.mxu1 %vm601_vm1, %v4121_v47 }
 0x569   : > { %1626 = vst.msk [vmem:[#allocation2 + $0x70] sm:$0xff] %vm601_vm1, %v5946_v25  ;;  %2533 = vrot.lane.b32.xlu1 %v12033_v57, %s7385_s19  ;;  %6357 = vmatmul.mubr.msk.bf16.gmra.mxu1 %vm601_vm1, %v4121_v47 }
 0x56a   : > { %v5948_v34 = vpop.f32.mrf.mxu0 }
 0x56b   : > { %v5949_v24 = vadd.f32 %v5948_v34, %v5947_v28 }
 0x56c   : > { %v5950_v43 = vpop.f32.mrf.mxu0 }
 0x56d   : > { %1627 = vst.msk [vmem:[#allocation2 + $0x78] sm:$0xff] %vm601_vm1, %v5949_v24  ;;  %2517 = vrot.lane.b32.xlu1 %v12034_v26, %s7385_s19  ;;  %v6807_v52 = vpop.eup %6806 }
 0x56e   : > { %v5951_v31 = vpop.f32.mrf.mxu0  ;;  %v1368_v57 = vmul.f32 %v6807_v52, %v9043_v12  ;;  %v1367_v28 = vmul.f32 %v6807_v52, %v9039_v9  ;;  %v12035_v9 = vld [vmem:[#allocation9_spill] sm:$0xff] }
 0x56f   : > { %v5952_v27 = vadd.f32 %v5951_v31, %v5950_v43 }
 0x570   : > { %v5953_v0 = vpop.f32.mrf.mxu0 }
 0x571   : > { %v6809_v29 = vpop.eup %6808  ;;  %1628 = vst.msk [vmem:[#allocation2 + $0x80] sm:$0xff] %vm601_vm1, %v5952_v27 }
 0x572   : > { %v5954_v25 = vpop.f32.mrf.mxu0  ;;  %v1370_v47 = vmul.f32 %v6809_v29, %v9055_v61  ;;  %v1369_v34 = vmul.f32 %v6809_v29, %v9051_v54 }
 0x573   : > { %v5955_v24 = vadd.f32 %v5954_v25, %v5953_v0  ;;  %v12037_v0 = vld [vmem:[#allocation25_spill] sm:$0xff] }
 0x574   : > { %v5956_v49 = vpop.f32.mrf.mxu0  ;;  %v1402_v2 = vpack.c.bf16 %v1370_v47, %v1368_v57  ;;  %v1401_v26 = vpack.c.bf16 %v1369_v34, %v1367_v28  ;;  %v2102_v52 = vsub.f32 %v12037_v0, %v8873_v50  ;;  %v12038_v25 = vld [vmem:[#allocation93_spill] sm:$0xff] }
 0x575   : > { %1629 = vst.msk [vmem:[#allocation2 + $0x88] sm:$0xff] %vm601_vm1, %v5955_v24  ;;  %v12039_v57 = vld [vmem:[#allocation77_spill] sm:$0xff] }
 0x576   : > { %v5957_v43 = vpop.f32.mrf.mxu0  ;;  %1603 = vmatprep.mubr.bf16.mxu0 %v1402_v2  ;;  %v12036_v2 = vld [vmem:[#allocation41_spill] sm:$0xff]  ;;  %v2103_v47 = vsub.f32 %v12039_v57, %v12038_v25 }
 0x577   : > { %v5958_v31 = vadd.f32 %v5957_v43, %v5956_v49  ;;  %1604 = vmatmul.mubr.bf16.gmra.mxu0 %v1401_v26  ;;  %v2101_v49 = vsub.f32 %v12036_v2, %v8873_v50  ;;  %v12040_v34 = vld [vmem:[#allocation37_spill] sm:$0xff]  ;;  %v2175_v26 = vmul.f32 1.442695, %v2102_v52 }
 0x578   : > { %v5959_v27 = vpop.f32.mrf.mxu0  ;;  %v9238_v12 = vpop.xlane.xlu0 %2058  ;;  %v2104_v24 = vsub.f32 %v12040_v34, %v12038_v25  ;;  %v2177_v43 = vmul.f32 1.442695, %v2103_v47 }
 0x579   : > { %1630 = vst.msk [vmem:[#allocation2 + $0x90] sm:$0xff] %vm601_vm1, %v5958_v31  ;;  %v2173_v28 = vmul.f32 1.442695, %v2101_v49  ;;  %v2075_v31 = vmax.f32 %v9124_v60, %v9127_v48  ;;  %v12077_v48 = vld [vmem:[#allocation59_spill] sm:$0xff] }
 0x57a   : > { %v5960_v61 = vpop.f32.mrf.mxu0  ;;  %v2111_v60 = vsub.f32 %v12077_v48, %v8965_v32  ;;  %v2118_v48 = vsub.f32 %v8797_v53, %v9083_v7  ;;  %v2090_v53 = vmax.f32 %v9217_v55, %v9222_v20 }
 0x57b   : > { %v5961_v14 = vadd.f32 %v5960_v61, %v5959_v27  ;;  %6810 = vpow2.f32 %v2173_v28 }
 0x57c   : > { %2519 = vrot.lane.b32.xlu0 %v12035_v9, %s7385_s19  ;;  %v9243_v54 = vpop.xlane.xlu0 %2064  ;;  %6812 = vpow2.f32 %v2175_v26 }
 0x57d   : > { %1631 = vst.msk [vmem:[#allocation2 + $0x98] sm:$0xff] %vm601_vm1, %v5961_v14  ;;  %v2179_v14 = vmul.f32 1.442695, %v2104_v24  ;;  %6814 = vpow2.f32 %v2177_v43  ;;  %v12046_v43 = vld [vmem:[#allocation19_spill] sm:$0xff] }
 0x57f   : > { %6816 = vpow2.f32 %v2179_v14 }
 0x580   : > { %v2540_v29 = vpop.permute.xlu0 %2539 }
 0x581   : > { %6046 = vmatprep.subr.bf16.mxu0 %v2540_v29  ;;  %v2078_v29 = vmax.f32 %v9134_v4, %v9142_v15  ;;  %v12054_v15 = vld [vmem:[#allocation30_spill] sm:$0xff] }
 0x588   : > { %v9257_v9 = vpop.eup %6810 }
 0x589   : > { %12042 = vst [vmem:[#allocation73_spill] sm:$0xff] %v9257_v9  ;;  %v9261_v49 = vpop.eup %6812 }
 0x58a   : > { %12043 = vst [vmem:[#allocation76_spill] sm:$0xff] %v9261_v49  ;;  %v9264_v57 = vpop.eup %6814  ;;  %v2297_v28 = vadd.f32 %v9261_v49, %v9257_v9  ;;  %v12052_v9 = vld [vmem:[#allocation75_spill] sm:$0xff] }
 0x58b   : > { %12044 = vst [vmem:[#allocation38_spill] sm:$0xff] %v9264_v57 }
 0x58c   : > { %v9268_v34 = vpop.eup %6816 }
 0x58d   : > { %12045 = vst [vmem:[#allocation82_spill] sm:$0xff] %v9268_v34  ;;  %v2300_v26 = vadd.f32 %v9268_v34, %v9264_v57  ;;  %v2106_v57 = vsub.f32 %v12052_v9, %v8883_v17 }
 0x591   : > { %2076 = vmax.xlane.f32.xlu1 %v2075_v31  ;;  %v12047_v31 = vld [vmem:[#allocation45_spill] sm:$0xff] }
 0x595   : > { %v5962_v27 = vpop.f32.mrf.mxu0 }
 0x597   : > { %v5963_v50 = vpop.f32.mrf.mxu0 }
 0x598   : > { %v9255_v61 = vpop.xlane.xlu1 %2067  ;;  %v5964_v2 = vadd.f32 %v5963_v50, %v5962_v27  ;;  %v12048_v50 = vld [vmem:[#allocation18_spill] sm:$0xff] }
 0x599   : > { %12041 = vst [vmem:[#allocation83_spill] sm:$0xff] %v9255_v61  ;;  %v5965_v0 = vpop.f32.mrf.mxu0 }
 0x59a   : > { %1632 = vst.msk [vmem:[#allocation2 + $0xa0] sm:$0xff] %vm601_vm1, %v5964_v2  ;;  %v12049_v2 = vld [vmem:[#allocation5_spill] sm:$0xff] }
 0x59b   : > { %2079 = vmax.xlane.f32.xlu0 %v2078_v29  ;;  %v5966_v52 = vpop.f32.mrf.mxu0  ;;  %v9279_v29 = vpop.f32.mrf.mxu1 }
 0x59c   : > { %v2290_v25 = vpop.xlane.xlu1 %2289  ;;  %v5967_v47 = vadd.f32 %v5966_v52, %v5965_v0 }
 0x59d   : > { %v9283_v0 = vpop.f32.mrf.mxu1  ;;  %6818 = vrcp.f32 %v2290_v25  ;;  %v12051_v25 = vld [vmem:[#allocation40_spill] sm:$0xff] }
 0x59e   : > { %1633 = vst.msk [vmem:[#allocation2 + $0xa8] sm:$0xff] %vm601_vm1, %v5967_v47 }
 0x59f   : > { %2298 = vadd.xlane.f32.xlu0 %v2297_v28  ;;  %v9285_v47 = vpop.f32.mrf.mxu1 }
 0x5a0   : > { %v2524_v24 = vpop.permute.xlu1 %2523 }
 0x5a1   : > { %6047 = vmatpush3.bf16.msra.mxu0 %v2524_v24 }
 0x5a2   : > { %2531 = vrot.lane.b32.xlu1 %v12046_v43, %s7385_s19  ;;  %v9288_v43 = vpop.f32.mrf.mxu1 }
 0x5a3   : > { %2301 = vadd.xlane.f32.xlu0 %v2300_v26 }
 0x5a4   : > { %v2538_v14 = vpop.permute.xlu1 %2537 }
 0x5a5   : > { %6048 = vmatprep.subr.bf16.mxu0 %v2538_v14 }
 0x5a6   : > { %4126 = vrot.lane.b32.xlu1 %v12047_v31, %s7379_s11 }
 0x5a8   : > { %v2522_v27 = vpop.permute.xlu1 %2521 }
 0x5a9   : > { %6049 = vmatpush3.bf16.msra.mxu0 %v2522_v27  ;;  %v12050_v27 = vld [vmem:[#allocation6_spill] sm:$0xff] }
 0x5aa   : > { %2529 = vrot.lane.b32.xlu1 %v12048_v50, %s7385_s19  ;;  %v6819_v34 = vpop.eup %6818 }
 0x5ab   : > { %v9304_v4 = vmul.f32 %v6819_v34, %v9103_v33  ;;  %v2416_v9 = vmul.f32 %v6819_v34, %v9109_v1  ;;  %v2081_v1 = vmax.f32 %v9161_v8, %v9166_v45 }
 0x5ad   : > { %12055 = vst [vmem:[#allocation68_spill] sm:$0xff] %v9304_v4 }
 0x5ae   : > { %2513 = vrot.lane.b32.xlu1 %v12049_v2, %s7385_s19  ;;  %v2105_v2 = vsub.f32 %v12051_v25, %v8883_v17 }
 0x5b0   : > { %v2181_v31 = vmul.f32 1.442695, %v2105_v2 }
 0x5b2   : > { %v2287_v52 = vpop.xlane.xlu0 %2286 }
 0x5b3   : > { %6820 = vrcp.f32 %v2287_v52 }
 0x5b4   : > { %6822 = vpow2.f32 %v2181_v31 }
 0x5b5   : > { %v5968_v28 = vpop.f32.mrf.mxu0 }
 0x5b6   : > { %v4123_v24 = vpop.permute.xlu0 %4122 }
 0x5b7   : > { %6358 = vmatprep.mubr.msk.bf16.mxu1 %vm601_vm1, %v4123_v24  ;;  %v5969_v26 = vpop.f32.mrf.mxu0 }
 0x5b8   : > { %6359 = vmatmul.mubr.msk.bf16.gmra.mxu1 %vm601_vm1, %v4123_v24  ;;  %v5970_v14 = vadd.f32 %v5969_v26, %v5968_v28  ;;  %v12053_v28 = vld [vmem:[#allocation31_spill] sm:$0xff] }
 0x5b9   : > { %2515 = vrot.lane.b32.xlu0 %v12050_v27, %s7385_s19  ;;  %v5971_v50 = vpop.f32.mrf.mxu0  ;;  %v2107_v24 = vsub.f32 %v12053_v28, %v8961_v16  ;;  %v2183_v27 = vmul.f32 1.442695, %v2106_v57  ;;  %v9313_v57 = vpop.f32.mrf.mxu1 }
 0x5ba   : > { %1634 = vst.msk [vmem:[#allocation2 + $0xb0] sm:$0xff] %vm601_vm1, %v5970_v14  ;;  %v2108_v14 = vsub.f32 %v12054_v15, %v8961_v16 }
 0x5bb   : > { %v5972_v52 = vpop.f32.mrf.mxu0  ;;  %6824 = vpow2.f32 %v2183_v27  ;;  %v9315_v33 = vpop.f32.mrf.mxu1 }
 0x5bc   : > { %v5973_v49 = vadd.f32 %v5972_v52, %v5971_v50  ;;  %v2187_v16 = vmul.f32 1.442695, %v2108_v14 }
 0x5be   : > { %1635 = vst.msk [vmem:[#allocation2 + $0xb8] sm:$0xff] %vm601_vm1, %v5973_v49  ;;  %v2185_v49 = vmul.f32 1.442695, %v2107_v24 }
 0x5c0   : > { %v6821_v26 = vpop.eup %6820  ;;  %6826 = vpow2.f32 %v2185_v49 }
 0x5c1   : > { %v9307_v25 = vmul.f32 %v6821_v26, %v9130_v39  ;;  %v2414_v17 = vmul.f32 %v6821_v26, %v9132_v51  ;;  %6828 = vpow2.f32 %v2187_v16  ;;  %v9317_v39 = vpop.f32.mrf.mxu1  ;;  %v9319_v51 = vpop.eup %6822  ;;  %v2084_v26 = vmax.f32 %v9169_v19, %v9177_v59 }
 0x5c2   : > { %12057 = vst [vmem:[#allocation13_spill] sm:$0xff] %v9319_v51 }
 0x5c3   : > { %12056 = vst [vmem:[#allocation63_spill] sm:$0xff] %v9307_v25  ;;  %v2478_v50 = vpack.c.bf16 %v2416_v9, %v2414_v17  ;;  %v9323_v15 = vpop.f32.mrf.mxu1  ;;  %v12069_v25 = vld [vmem:[#allocation51_spill] sm:$0xff] }
 0x5c5   : > { %2589 = vmatprep.mubr.bf16.mxu0 %v2478_v50  ;;  %v9329_v52 = vpop.f32.mrf.mxu1 }
 0x5c7   : > { %v9337_v14 = vpop.f32.mrf.mxu1 }
 0x5c8   : > { %v9325_v34 = vpop.eup %6824 }
 0x5c9   : > { %12058 = vst [vmem:[#allocation32_spill] sm:$0xff] %v9325_v34  ;;  %v2303_v28 = vadd.f32 %v9325_v34, %v9319_v51 }
 0x5cd   : > { %v9327_v31 = vpop.eup %6826 }
 0x5ce   : > { %12059 = vst [vmem:[#allocation11_spill] sm:$0xff] %v9327_v31  ;;  %v9333_v24 = vpop.eup %6828 }
 0x5cf   : > { %12060 = vst [vmem:[#allocation84_spill] sm:$0xff] %v9333_v24  ;;  %v2306_v17 = vadd.f32 %v9333_v24, %v9327_v31 }
 0x5d2   : > { %2082 = vmax.xlane.f32.xlu1 %v2081_v1  ;;  %v9343_v1 = vpop.f32.mrf.mxu1 }
 0x5d3   : > { %12061 = vst [vmem:[#allocation78_spill] sm:$0xff] %v9343_v1 }
 0x5d4   : > { %v9346_v34 = vpop.f32.mrf.mxu1 }
 0x5d5   : > { %12062 = vst [vmem:[#allocation24_spill] sm:$0xff] %v9346_v34 }
 0x5d6   : > { %2304 = vadd.xlane.f32.xlu1 %v2303_v28  ;;  %v5974_v27 = vpop.f32.mrf.mxu0 }
 0x5d8   : > { %2085 = vmax.xlane.f32.xlu0 %v2084_v26  ;;  %v5975_v9 = vpop.f32.mrf.mxu0 }
 0x5d9   : > { %v9341_v49 = vpop.xlane.xlu1 %2070  ;;  %v5976_v50 = vadd.f32 %v5975_v9, %v5974_v27  ;;  %v9351_v27 = vpop.f32.mrf.mxu1 }
 0x5da   : > { %2307 = vadd.xlane.f32.xlu1 %v2306_v17  ;;  %v5977_v16 = vpop.f32.mrf.mxu0 }
 0x5db   : > { %1636 = vst.msk [vmem:[#allocation2 + $0xc0] sm:$0xff] %vm601_vm1, %v5976_v50  ;;  %v9355_v9 = vpop.f32.mrf.mxu1 }
 0x5dc   : > { %v5978_v2 = vpop.f32.mrf.mxu0 }
 0x5dd   : > { %v2536_v51 = vpop.permute.xlu1 %2535  ;;  %v5979_v28 = vadd.f32 %v5978_v2, %v5977_v16  ;;  %v12065_v2 = vld [vmem:[#allocation4_spill] sm:$0xff]  ;;  %v12066_v16 = vld [vmem:[#allocation17_spill] sm:$0xff] }
 0x5de   : > { %6050 = vmatprep.subr.bf16.mxu0 %v2536_v51  ;;  %v9361_v51 = vpop.f32.mrf.mxu1 }
 0x5df   : > { %1637 = vst.msk [vmem:[#allocation2 + $0xc8] sm:$0xff] %vm601_vm1, %v5979_v28 }
 0x5e0   : > { %v9369_v31 = vpop.f32.mrf.mxu1 }
 0x5e1   : > { %v4125_v26 = vpop.permute.xlu1 %4124 }
 0x5e2   : > { %6360 = vmatprep.mubr.msk.bf16.mxu1 %vm601_vm1, %v4125_v26  ;;  %v9373_v59 = vpop.f32.mrf.mxu1 }
 0x5e3   : > { %6361 = vmatmul.mubr.msk.bf16.gmra.mxu1 %vm601_vm1, %v4125_v26  ;;  %v12068_v26 = vld [vmem:[#allocation3_spill] sm:$0xff] }
 0x5e5   : > { %v2534_v24 = vpop.permute.xlu1 %2533 }
 0x5e7   : > { %v9353_v17 = vpop.xlane.xlu0 %2073 }
 0x5e8   : > { %12063 = vst [vmem:[#allocation91_spill] sm:$0xff] %v9353_v17 }
 0x5e9   : > { %v2518_v19 = vpop.permute.xlu1 %2517 }
 0x5eb   : > { %v9357_v50 = vpop.xlane.xlu0 %2292  ;;  %2511 = vrot.lane.b32.xlu1 %v12065_v2, %s7385_s19  ;;  %v12070_v2 = vld [vmem:[#allocation16_spill] sm:$0xff] }
 0x5ec   : > { %12064 = vst [vmem:[#allocation50_spill] sm:$0xff] %v9357_v50  ;;  %v9377_v50 = vpop.f32.mrf.mxu1 }
 0x5ee   : > { %2527 = vrot.lane.b32.xlu0 %v12066_v16, %s7385_s19  ;;  %v9380_v8 = vpop.f32.mrf.mxu1 }
 0x5ef   : > { %v9365_v28 = vpop.xlane.xlu0 %2295  ;;  %2509 = vrot.lane.b32.xlu1 %v12068_v26, %s7385_s19  ;;  %12071 = vst [vmem:[#allocation27_spill] sm:$0xff] %v9380_v8 }
 0x5f0   : > { %12067 = vst [vmem:[#allocation28_spill] sm:$0xff] %v9365_v28  ;;  %v9387_v17 = vpop.f32.mrf.mxu1 }
 0x5f1   : > { %12074 = vst [vmem:[#allocation23_spill] sm:$0xff] %v9387_v17 }
 0x5f2   : > { %4128 = vrot.lane.b32.xlu0 %v12069_v25, %s7379_s11  ;;  %v9397_v61 = vpop.f32.mrf.mxu1 }
 0x5f3   : > { %v2520_v4 = vpop.permute.xlu0 %2519 }
 0x5f4   : > { %6051 = vmatpush3.bf16.msra.mxu0 %v2520_v4  ;;  %v12072_v4 = vld [vmem:[#allocation65_spill] sm:$0xff] }
 0x5f5   : > { %6052 = vmatprep.subr.bf16.mxu0 %v2534_v24  ;;  %v2109_v24 = vsub.f32 %v12072_v4, %v9013_v23 }
 0x5f6   : > { %2525 = vrot.lane.b32.xlu0 %v12070_v2, %s7385_s19  ;;  %v5980_v16 = vpop.f32.mrf.mxu0  ;;  %v2110_v2 = vsub.f32 %v12073_v37, %v9013_v23 }
 0x5f8   : > { %6053 = vmatpush3.bf16.msra.mxu0 %v2518_v19  ;;  %v5981_v26 = vpop.f32.mrf.mxu0  ;;  %v12075_v19 = vld [vmem:[#allocation67_spill] sm:$0xff]  ;;  %v2191_v8 = vmul.f32 1.442695, %v2110_v2  ;;  %v2207_v2 = vmul.f32 1.442695, %v2118_v48 }
 0x5f9   : > { %v5982_v28 = vadd.f32 %v5981_v26, %v5980_v16  ;;  %v2113_v16 = vsub.f32 %v12075_v19, %v9019_v63  ;;  %v12076_v26 = vld [vmem:[#allocation69_spill] sm:$0xff]  ;;  %v9399_v19 = vpop.f32.mrf.mxu1 }
 0x5fa   : > { %v5983_v45 = vpop.f32.mrf.mxu0 }
 0x5fb   : > { %1638 = vst.msk [vmem:[#allocation2 + $0xd0] sm:$0xff] %vm601_vm1, %v5982_v28  ;;  %v2114_v28 = vsub.f32 %v12076_v26, %v9019_v63  ;;  %v2197_v23 = vmul.f32 1.442695, %v2113_v16  ;;  %v2117_v63 = vsub.f32 %v8790_v3, %v9083_v7  ;;  %v2121_v3 = vsub.f32 %v8857_v46, %v9089_v38 }
 0x5fc   : > { %v5984_v25 = vpop.f32.mrf.mxu0 }
 0x5fd   : > { %v5985_v41 = vadd.f32 %v5984_v25, %v5983_v45  ;;  %v2189_v45 = vmul.f32 1.442695, %v2109_v24  ;;  %v12078_v25 = vld [vmem:[#allocation62_spill] sm:$0xff]  ;;  %v2199_v37 = vmul.f32 1.442695, %v2114_v28  ;;  %v9409_v24 = vpop.f32.mrf.mxu1 }
 0x5fe   : > { %v2112_v4 = vsub.f32 %v12078_v25, %v8965_v32  ;;  %v2115_v32 = vsub.f32 %v8678_v56, %v9057_v36  ;;  %v2122_v56 = vsub.f32 %v8863_v22, %v9089_v38  ;;  %v3248_v38 = vmax.f32 %v9279_v29, %v9283_v0 }
 0x5ff   : > { %1639 = vst.msk [vmem:[#allocation2 + $0xd8] sm:$0xff] %vm601_vm1, %v5985_v41  ;;  %v2193_v41 = vmul.f32 1.442695, %v2111_v60  ;;  %6830 = vpow2.f32 %v2189_v45  ;;  %v2116_v60 = vsub.f32 %v8685_v10, %v9057_v36  ;;  %v9411_v28 = vpop.f32.mrf.mxu1  ;;  %v12079_v10 = vld [vmem:[#allocation85_spill] sm:$0xff]  ;;  %v12080_v45 = vld [vmem:[#allocation86_spill] sm:$0xff] }
 0x600   : > { %v2195_v17 = vmul.f32 1.442695, %v2112_v4  ;;  %6832 = vpow2.f32 %v2191_v8  ;;  %v2205_v8 = vmul.f32 1.442695, %v2117_v63  ;;  %v2201_v16 = vmul.f32 1.442695, %v2115_v32 }
 0x601   : > { %6834 = vpow2.f32 %v2197_v23  ;;  %v2203_v26 = vmul.f32 1.442695, %v2116_v60  ;;  %v2119_v36 = vsub.f32 %v12079_v10, %v9061_v21  ;;  %v2120_v46 = vsub.f32 %v12080_v45, %v9061_v21  ;;  %v9429_v4 = vpop.f32.mrf.mxu1 }
 0x602   : > { %6836 = vpow2.f32 %v2199_v37  ;;  %v2213_v23 = vmul.f32 1.442695, %v2121_v3  ;;  %v2215_v37 = vmul.f32 1.442695, %v2122_v56 }
 0x603   : > { %6838 = vpow2.f32 %v2193_v41  ;;  %v2209_v63 = vmul.f32 1.442695, %v2119_v36  ;;  %v2211_v32 = vmul.f32 1.442695, %v2120_v46 }
 0x604   : > { %6840 = vpow2.f32 %v2195_v17  ;;  %v2087_v17 = vmax.f32 %v9203_v5, %v9211_v58 }
 0x605   : > { %6842 = vpow2.f32 %v2205_v8  ;;  %v9443_v8 = vpop.f32.mrf.mxu1 }
 0x606   : > { %6844 = vpow2.f32 %v2207_v2  ;;  %v2125_v2 = vsub.f32 %v8921_v13, %v9157_v35  ;;  %v2124_v13 = vsub.f32 %v8880_v62, %v9119_v42 }
 0x607   : > { %6846 = vpow2.f32 %v2201_v16 }
 0x608   : > { %6848 = vpow2.f32 %v2203_v26  ;;  %v2126_v26 = vsub.f32 %v8931_v40, %v9157_v35  ;;  %v9459_v40 = vpop.f32.mrf.mxu1  ;;  %v2221_v35 = vmul.f32 1.442695, %v2125_v2 }
 0x609   : > { %6850 = vpow2.f32 %v2213_v23 }
 0x60a   : > { %6852 = vpow2.f32 %v2215_v37  ;;  %v2223_v23 = vmul.f32 1.442695, %v2126_v26  ;;  %v9474_v26 = vpop.f32.mrf.mxu1 }
 0x60b   : > { %6854 = vpow2.f32 %v2209_v63 }
 0x60c   : > { %v9421_v7 = vpop.eup %6830  ;;  %6856 = vpow2.f32 %v2211_v32  ;;  %v3251_v32 = vmax.f32 %v9285_v47, %v9288_v43 }
 0x60d   : > { %v9427_v25 = vpop.eup %6832  ;;  %6858 = vpow2.f32 %v2221_v35  ;;  %v12092_v35 = vld [vmem:[#allocation26_spill] sm:$0xff] }
 0x60e   : > { %v9431_v22 = vpop.eup %6834  ;;  %v2309_v21 = vadd.f32 %v9427_v25, %v9421_v7  ;;  %6860 = vpow2.f32 %v2223_v23 }
 0x60f   : > { %12081 = vst [vmem:[#allocation7_spill] sm:$0xff] %v9431_v22  ;;  %v9435_v41 = vpop.eup %6836 }
 0x610   : > { %12082 = vst [vmem:[#allocation9_spill] sm:$0xff] %v9435_v41  ;;  %v9437_v48 = vpop.eup %6838  ;;  %v2315_v3 = vadd.f32 %v9435_v41, %v9431_v22 }
 0x611   : > { %v9441_v60 = vpop.eup %6840 }
 0x612   : > { %v9461_v46 = vpop.eup %6842 }
 0x613   : > { %2091 = vmax.xlane.f32.xlu1 %v2090_v53  ;;  %v2123_v53 = vsub.f32 %v8871_v11, %v9119_v42  ;;  %12083 = vst [vmem:[#allocation41_spill] sm:$0xff] %v9461_v46  ;;  %v3254_v11 = vmax.f32 %v9313_v57, %v9315_v33 }
 0x615   : > { %2088 = vmax.xlane.f32.xlu0 %v2087_v17  ;;  %v2312_v17 = vadd.f32 %v9441_v60, %v9437_v48  ;;  %v2217_v62 = vmul.f32 1.442695, %v2123_v53  ;;  %v12089_v53 = vld [vmem:[#allocation49_spill] sm:$0xff] }
 0x617   : > { %3249 = vmax.xlane.f32.xlu1 %v3248_v38  ;;  %v5986_v16 = vpop.f32.mrf.mxu0  ;;  %v9466_v38 = vpop.eup %6844  ;;  %6862 = vpow2.f32 %v2217_v62 }
 0x618   : > { %12084 = vst [vmem:[#allocation25_spill] sm:$0xff] %v9466_v38  ;;  %v9468_v63 = vpop.eup %6846 }
 0x619   : > { %2310 = vadd.xlane.f32.xlu0 %v2309_v21  ;;  %v5987_v56 = vpop.f32.mrf.mxu0  ;;  %12085 = vst [vmem:[#allocation93_spill] sm:$0xff] %v9468_v63  ;;  %v2219_v21 = vmul.f32 1.442695, %v2124_v13  ;;  %v2321_v13 = vadd.f32 %v9466_v38, %v9461_v46  ;;  %v12097_v46 = vld [vmem:[#allocation71_spill] sm:$0xff] }
 0x61a   : > { %v9453_v10 = vpop.xlane.xlu1 %2076  ;;  %v5988_v36 = vadd.f32 %v5987_v56, %v5986_v16  ;;  %v9472_v16 = vpop.eup %6848  ;;  %v12088_v56 = vld [vmem:[#allocation70_spill] sm:$0xff]  ;;  %v2133_v38 = vsub.f32 %v12097_v46, %v9238_v12 }
 0x61b   : > { %2316 = vadd.xlane.f32.xlu1 %v2315_v3  ;;  %v5989_v45 = vpop.f32.mrf.mxu0  ;;  %12086 = vst [vmem:[#allocation77_spill] sm:$0xff] %v9472_v16  ;;  %v12087_v3 = vld [vmem:[#allocation54_spill] sm:$0xff]  ;;  %6864 = vpow2.f32 %v2219_v21  ;;  %v2318_v23 = vadd.f32 %v9472_v16, %v9468_v63  ;;  %v9495_v62 = vpop.eup %6850  ;;  %v3260_v21 = vmax.f32 %v9329_v52, %v9337_v14 }
 0x61c   : > { %1640 = vst.msk [vmem:[#allocation2 + $0xe0] sm:$0xff] %vm601_vm1, %v5988_v36  ;;  %v2129_v36 = vsub.f32 %v12088_v56, %v12087_v3  ;;  %12093 = vst [vmem:[#allocation37_spill] sm:$0xff] %v9495_v62  ;;  %v2237_v41 = vmul.f32 1.442695, %v2133_v38 }
 0x61d   : > { %2313 = vadd.xlane.f32.xlu0 %v2312_v17  ;;  %v5990_v42 = vpop.f32.mrf.mxu0  ;;  %v2130_v17 = vsub.f32 %v12089_v53, %v12087_v3  ;;  %v9499_v53 = vpop.eup %6852 }
 0x61e   : > { %v2532_v37 = vpop.permute.xlu1 %2531  ;;  %v5991_v2 = vadd.f32 %v5990_v42, %v5989_v45  ;;  %v12090_v45 = vld [vmem:[#allocation72_spill] sm:$0xff]  ;;  %12094 = vst [vmem:[#allocation19_spill] sm:$0xff] %v9499_v53  ;;  %v2327_v63 = vadd.f32 %v9499_v53, %v9495_v62 }
 0x61f   : > { %3255 = vmax.xlane.f32.xlu1 %v3254_v11  ;;  %6054 = vmatprep.subr.bf16.mxu0 %v2532_v37  ;;  %v12091_v11 = vld [vmem:[#allocation36_spill] sm:$0xff]  ;;  %v2128_v22 = vsub.f32 %v12092_v35, %v12090_v45  ;;  %v2231_v56 = vmul.f32 1.442695, %v2130_v17 }
 0x620   : > { %1641 = vst.msk [vmem:[#allocation2 + $0xe8] sm:$0xff] %vm601_vm1, %v5991_v2  ;;  %v2127_v42 = vsub.f32 %v12091_v11, %v12090_v45  ;;  %v9490_v2 = vpop.f32.mrf.mxu1  ;;  %v3257_v11 = vmax.f32 %v9317_v39, %v9323_v15 }
 0x621   : > { %3252 = vmax.xlane.f32.xlu0 %v3251_v32  ;;  %v2229_v32 = vmul.f32 1.442695, %v2129_v36  ;;  %v2227_v36 = vmul.f32 1.442695, %v2128_v22  ;;  %v12099_v22 = vld [vmem:[#allocation47_spill] sm:$0xff] }
 0x622   : > { %v4127_v37 = vpop.permute.xlu1 %4126  ;;  %v2225_v45 = vmul.f32 1.442695, %v2127_v42  ;;  %v12098_v42 = vld [vmem:[#allocation46_spill] sm:$0xff] }
 0x623   : > { %2322 = vadd.xlane.f32.xlu1 %v2321_v13  ;;  %6362 = vmatprep.mubr.msk.bf16.mxu1 %vm601_vm1, %v4127_v37  ;;  %v9501_v13 = vpop.eup %6854  ;;  %6866 = vpow2.f32 %v2229_v32  ;;  %v12100_v32 = vld [vmem:[#allocation42_spill] sm:$0xff] }
 0x624   : > { %v9492_v3 = vpop.xlane.xlu0 %2079  ;;  %6363 = vmatmul.mubr.msk.bf16.gmra.mxu1 %vm601_vm1, %v4127_v37  ;;  %12095 = vst [vmem:[#allocation18_spill] sm:$0xff] %v9501_v13  ;;  %v9505_v35 = vpop.eup %6856  ;;  %6868 = vpow2.f32 %v2231_v56  ;;  %v2132_v16 = vsub.f32 %v12100_v32, %v9193_v6 }
 0x625   : > { %2319 = vadd.xlane.f32.xlu0 %v2318_v23  ;;  %12096 = vst [vmem:[#allocation5_spill] sm:$0xff] %v9505_v35  ;;  %v9507_v37 = vpop.f32.mrf.mxu1  ;;  %v2134_v23 = vsub.f32 %v12098_v42, %v9238_v12  ;;  %6870 = vpow2.f32 %v2225_v45  ;;  %v2324_v46 = vadd.f32 %v9505_v35, %v9501_v13  ;;  %v3266_v45 = vmax.f32 %v9351_v27, %v9355_v9  ;;  %v12107_v13 = vld [vmem:[#allocation60_spill] sm:$0xff] }
 0x626   : > { %6872 = vpow2.f32 %v2227_v36  ;;  %v2235_v62 = vmul.f32 1.442695, %v2132_v16  ;;  %v12109_v16 = vld [vmem:[#allocation29_spill] sm:$0xff] }
 0x627   : > { %3261 = vmax.xlane.f32.xlu1 %v3260_v21  ;;  %v2131_v21 = vsub.f32 %v12099_v22, %v9193_v6  ;;  %v9523_v56 = vpop.f32.mrf.mxu1  ;;  %v2239_v42 = vmul.f32 1.442695, %v2134_v23  ;;  %v2530_v6 = vpop.permute.xlu1 %2529  ;;  %6874 = vpow2.f32 %v2237_v41  ;;  %v2137_v23 = vsub.f32 %v12107_v13, %v9243_v54  ;;  %v12110_v41 = vld [vmem:[#allocation33_spill] sm:$0xff] }
 0x628   : > { %v9511_v17 = vpop.xlane.xlu0 %2298  ;;  %12101 = vst [vmem:[#allocation6_spill] sm:$0xff] %v9523_v56 }
 0x629   : > { %3258 = vmax.xlane.f32.xlu0 %v3257_v11  ;;  %v9527_v11 = vpop.eup %6858  ;;  %v2233_v22 = vmul.f32 1.442695, %v2131_v21  ;;  %v9539_v53 = vpop.f32.mrf.mxu1  ;;  %6876 = vpow2.f32 %v2239_v42  ;;  %v12108_v21 = vld [vmem:[#allocation35_spill] sm:$0xff] }
 0x62a   : > { %12102 = vst [vmem:[#allocation40_spill] sm:$0xff] %v9527_v11  ;;  %v9531_v36 = vpop.eup %6860  ;;  %12106 = vst [vmem:[#allocation4_spill] sm:$0xff] %v9539_v53  ;;  %v2138_v35 = vsub.f32 %v12108_v21, %v9243_v54  ;;  %v2245_v54 = vmul.f32 1.442695, %v2137_v23 }
 0x62b   : > { %2328 = vadd.xlane.f32.xlu1 %v2327_v63  ;;  %12103 = vst [vmem:[#allocation75_spill] sm:$0xff] %v9531_v36  ;;  %v9533_v32 = vpop.eup %6862  ;;  %v3263_v63 = vmax.f32 %v9343_v1, %v9346_v34  ;;  %v2333_v34 = vadd.f32 %v9531_v36, %v9527_v11  ;;  %6878 = vpow2.f32 %v2233_v22  ;;  %v2136_v1 = vsub.f32 %v12110_v41, %v9195_v44  ;;  %v9553_v42 = vpop.f32.mrf.mxu1 }
 0x62c   : > { %v9525_v12 = vpop.xlane.xlu0 %2301  ;;  %12104 = vst [vmem:[#allocation31_spill] sm:$0xff] %v9533_v32  ;;  %v9537_v38 = vpop.eup %6864  ;;  %6880 = vpow2.f32 %v2235_v62  ;;  %12111 = vst [vmem:[#allocation17_spill] sm:$0xff] %v9553_v42  ;;  %v3272_v22 = vmax.f32 %v9373_v59, %v9377_v50  ;;  %v2247_v21 = vmul.f32 1.442695, %v2138_v35  ;;  %v2141_v35 = vsub.f32 %v9091_v18, %v9341_v49 }
 0x62d   : > { %2325 = vadd.xlane.f32.xlu0 %v2324_v46  ;;  %12105 = vst [vmem:[#allocation30_spill] sm:$0xff] %v9537_v38  ;;  %v2330_v13 = vadd.f32 %v9537_v38, %v9533_v32  ;;  %v9567_v11 = vpop.f32.mrf.mxu1  ;;  %6882 = vpow2.f32 %v2245_v54  ;;  %v12119_v54 = vld [vmem:[#allocation64_spill] sm:$0xff] }
 0x62e   : > { %12116 = vst [vmem:[#allocation67_spill] sm:$0xff] %v9567_v11  ;;  %6884 = vpow2.f32 %v2247_v21 }
 0x62f   : > { %3267 = vmax.xlane.f32.xlu1 %v3266_v45  ;;  %v2135_v45 = vsub.f32 %v12109_v16, %v9195_v44  ;;  %v2243_v16 = vmul.f32 1.442695, %v2136_v1  ;;  %v12117_v1 = vld [vmem:[#allocation83_spill] sm:$0xff] }
 0x630   : > { %v2516_v46 = vpop.permute.xlu0 %2515  ;;  %v2140_v38 = vsub.f32 %v12119_v54, %v12117_v1 }
 0x631   : > { %3264 = vmax.xlane.f32.xlu0 %v3263_v63  ;;  %6055 = vmatpush3.bf16.msra.mxu0 %v2516_v46  ;;  %v2514_v63 = vpop.permute.xlu1 %2513  ;;  %v9555_v46 = vpop.eup %6866 }
 0x632   : > { %6056 = vmatprep.subr.bf16.mxu0 %v2530_v6  ;;  %12112 = vst [vmem:[#allocation3_spill] sm:$0xff] %v9555_v46  ;;  %v9559_v62 = vpop.eup %6868  ;;  %v2241_v6 = vmul.f32 1.442695, %v2135_v45  ;;  %v2142_v45 = vsub.f32 %v9093_v30, %v9341_v49  ;;  %v9581_v30 = vpop.f32.mrf.mxu1  ;;  %v2253_v49 = vmul.f32 1.442695, %v2141_v35 }
 0x633   : > { %2334 = vadd.xlane.f32.xlu1 %v2333_v34  ;;  %12113 = vst [vmem:[#allocation16_spill] sm:$0xff] %v9559_v62  ;;  %v9561_v44 = vpop.eup %6870  ;;  %v3269_v34 = vmax.f32 %v9361_v51, %v9369_v31  ;;  %12120 = vst [vmem:[#allocation69_spill] sm:$0xff] %v9581_v30  ;;  %v2251_v35 = vmul.f32 1.442695, %v2140_v38  ;;  %v12130_v38 = vld [vmem:[#allocation91_spill] sm:$0xff] }
 0x634   : > { %12114 = vst [vmem:[#allocation65_spill] sm:$0xff] %v9561_v44  ;;  %v9565_v41 = vpop.eup %6872  ;;  %6886 = vpow2.f32 %v2241_v6  ;;  %v3278_v6 = vmax.f32 %v9397_v61, %v9399_v19 }
 0x635   : > { %2331 = vadd.xlane.f32.xlu0 %v2330_v13  ;;  %6057 = vmatpush3.bf16.msra.mxu0 %v2514_v63  ;;  %12115 = vst [vmem:[#allocation53_spill] sm:$0xff] %v9565_v41  ;;  %v2339_v63 = vadd.f32 %v9559_v62, %v9555_v46  ;;  %6888 = vpow2.f32 %v2243_v16  ;;  %v2336_v18 = vadd.f32 %v9565_v41, %v9561_v44  ;;  %v12125_v46 = vld [vmem:[#allocation27_spill] sm:$0xff]  ;;  %v9596_v44 = vpop.f32.mrf.mxu1 }
 0x636   : > { %12127 = vst [vmem:[#allocation54_spill] sm:$0xff] %v9596_v44  ;;  %6890 = vpow2.f32 %v2253_v49  ;;  %v12132_v49 = vld [vmem:[#allocation43_spill] sm:$0xff] }
 0x637   : > { %3273 = vmax.xlane.f32.xlu1 %v3272_v22  ;;  %v5992_v23 = vpop.f32.mrf.mxu0  ;;  %v12118_v22 = vld [vmem:[#allocation57_spill] sm:$0xff] }
 0x638   : > { %v2139_v36 = vsub.f32 %v12118_v22, %v12117_v1 }
 0x639   : > { %3270 = vmax.xlane.f32.xlu0 %v3269_v34  ;;  %v5993_v13 = vpop.f32.mrf.mxu0  ;;  %v9584_v34 = vpop.eup %6874 }
 0x63a   : > { %v5994_v32 = vadd.f32 %v5993_v13, %v5992_v23  ;;  %12121 = vst [vmem:[#allocation59_spill] sm:$0xff] %v9584_v34  ;;  %v2255_v23 = vmul.f32 1.442695, %v2142_v45  ;;  %v9588_v13 = vpop.eup %6876  ;;  %v2249_v1 = vmul.f32 1.442695, %v2139_v36  ;;  %v12128_v45 = vld [vmem:[#allocation79_spill] sm:$0xff] }
 0x63b   : > { %2340 = vadd.xlane.f32.xlu1 %v2339_v63  ;;  %v5995_v21 = vpop.f32.mrf.mxu0  ;;  %12122 = vst [vmem:[#allocation62_spill] sm:$0xff] %v9588_v13  ;;  %v9590_v54 = vpop.eup %6878  ;;  %v12124_v63 = vld [vmem:[#allocation23_spill] sm:$0xff]  ;;  %v12129_v36 = vld [vmem:[#allocation74_spill] sm:$0xff] }
 0x63c   : > { %1642 = vst.msk [vmem:[#allocation2 + $0xf0] sm:$0xff] %vm601_vm1, %v5994_v32  ;;  %12123 = vst [vmem:[#allocation85_spill] sm:$0xff] %v9590_v54  ;;  %v3275_v62 = vmax.f32 %v12125_v46, %v12124_v63  ;;  %v9594_v32 = vpop.eup %6880  ;;  %6892 = vpow2.f32 %v2255_v23  ;;  %v2144_v63 = vsub.f32 %v12132_v49, %v12130_v38  ;;  %v9611_v23 = vpop.f32.mrf.mxu1 }
 0x63d   : > { %2337 = vadd.xlane.f32.xlu0 %v2336_v18  ;;  %v5996_v16 = vpop.f32.mrf.mxu0  ;;  %12126 = vst [vmem:[#allocation86_spill] sm:$0xff] %v9594_v32  ;;  %v2145_v18 = vsub.f32 %v12128_v45, %v9453_v10  ;;  %6894 = vpow2.f32 %v2249_v1  ;;  %v2342_v45 = vadd.f32 %v9594_v32, %v9590_v54  ;;  %12133 = vst [vmem:[#allocation70_spill] sm:$0xff] %v9611_v23 }
 0x63e   : > { %v5997_v22 = vadd.f32 %v5996_v16, %v5995_v21  ;;  %v2146_v21 = vsub.f32 %v12129_v36, %v9453_v10  ;;  %v2345_v16 = vadd.f32 %v9588_v13, %v9584_v34  ;;  %6896 = vpow2.f32 %v2251_v35  ;;  %v9613_v10 = vpop.eup %6882  ;;  %v12140_v34 = vld [vmem:[#allocation81_spill] sm:$0xff] }
 0x63f   : > { %3279 = vmax.xlane.f32.xlu1 %v3278_v6  ;;  %v12131_v6 = vld [vmem:[#allocation22_spill] sm:$0xff]  ;;  %12134 = vst [vmem:[#allocation49_spill] sm:$0xff] %v9613_v10  ;;  %v9617_v36 = vpop.eup %6884  ;;  %v2259_v49 = vmul.f32 1.442695, %v2144_v63  ;;  %v2148_v13 = vsub.f32 %v12140_v34, %v9492_v3 }
 0x640   : > { %1643 = vst.msk [vmem:[#allocation2 + $0xf8] sm:$0xff] %vm601_vm1, %v5997_v22  ;;  %v2143_v41 = vsub.f32 %v12131_v6, %v12130_v38  ;;  %v2261_v22 = vmul.f32 1.442695, %v2145_v18  ;;  %v2263_v1 = vmul.f32 1.442695, %v2146_v21  ;;  %12135 = vst [vmem:[#allocation72_spill] sm:$0xff] %v9617_v36  ;;  %v3281_v38 = vmax.f32 %v9409_v24, %v9411_v28  ;;  %v9625_v18 = vpop.f32.mrf.mxu1 }
 0x641   : > { %3276 = vmax.xlane.f32.xlu0 %v3275_v62  ;;  %v3284_v62 = vmax.f32 %v9429_v4, %v9443_v8  ;;  %v9619_v6 = vpop.eup %6886  ;;  %12138 = vst [vmem:[#allocation71_spill] sm:$0xff] %v9625_v18  ;;  %v2351_v21 = vadd.f32 %v9617_v36, %v9613_v10  ;;  %v2267_v34 = vmul.f32 1.442695, %v2148_v13  ;;  %v3296_v13 = vmax.f32 %v9553_v42, %v9567_v11  ;;  %v12180_v42 = vld [vmem:[#allocation39_spill] sm:$0xff] }
 0x642   : > { %v2257_v35 = vmul.f32 1.442695, %v2143_v41  ;;  %12136 = vst [vmem:[#allocation36_spill] sm:$0xff] %v9619_v6  ;;  %6898 = vpow2.f32 %v2261_v22  ;;  %v12139_v41 = vld [vmem:[#allocation80_spill] sm:$0xff] }
 0x643   : > { %2346 = vadd.xlane.f32.xlu1 %v2345_v16  ;;  %v9623_v16 = vpop.eup %6888  ;;  %6900 = vpow2.f32 %v2263_v1  ;;  %v3290_v1 = vmax.f32 %v9490_v2, %v9507_v37 }
 0x644   : > { %12137 = vst [vmem:[#allocation26_spill] sm:$0xff] %v9623_v16  ;;  %6902 = vpow2.f32 %v2257_v35  ;;  %v2348_v63 = vadd.f32 %v9623_v16, %v9619_v6  ;;  %v9637_v22 = vpop.eup %6890  ;;  %v12155_v16 = vld [vmem:[#allocation88_spill] sm:$0xff] }
 0x645   : > { %2343 = vadd.xlane.f32.xlu0 %v2342_v45  ;;  %v2147_v45 = vsub.f32 %v12139_v41, %v9492_v3  ;;  %6904 = vpow2.f32 %v2259_v49  ;;  %12142 = vst [vmem:[#allocation47_spill] sm:$0xff] %v9637_v22  ;;  %v3287_v3 = vmax.f32 %v9459_v40, %v9474_v26 }
 0x647   : > { %3285 = vmax.xlane.f32.xlu1 %v3284_v62  ;;  %v9635_v62 = vpop.f32.mrf.mxu1 }
 0x648   : > { %12141 = vst [vmem:[#allocation46_spill] sm:$0xff] %v9635_v62 }
 0x649   : > { %3282 = vmax.xlane.f32.xlu0 %v3281_v38  ;;  %v9641_v35 = vpop.eup %6892  ;;  %v2265_v38 = vmul.f32 1.442695, %v2147_v45 }
 0x64a   : > { %12143 = vst [vmem:[#allocation42_spill] sm:$0xff] %v9641_v35  ;;  %v9643_v41 = vpop.eup %6894  ;;  %v2357_v10 = vadd.f32 %v9641_v35, %v9637_v22 }
 0x64b   : > { %2352 = vadd.xlane.f32.xlu1 %v2351_v21  ;;  %12144 = vst [vmem:[#allocation60_spill] sm:$0xff] %v9643_v41  ;;  %v9647_v49 = vpop.eup %6896  ;;  %v9649_v21 = vpop.f32.mrf.mxu1  ;;  %6906 = vpow2.f32 %v2265_v38  ;;  %v3293_v38 = vmax.f32 %v9523_v56, %v9539_v53  ;;  %v12156_v56 = vld [vmem:[#allocation28_spill] sm:$0xff] }
 0x64c   : > { %12145 = vst [vmem:[#allocation35_spill] sm:$0xff] %v9647_v49  ;;  %12146 = vst [vmem:[#allocation29_spill] sm:$0xff] %v9649_v21  ;;  %6908 = vpow2.f32 %v2267_v34  ;;  %v2354_v45 = vadd.f32 %v9647_v49, %v9643_v41  ;;  %v12154_v49 = vld [vmem:[#allocation21_spill] sm:$0xff] }
 0x64d   : > { %2349 = vadd.xlane.f32.xlu0 %v2348_v63  ;;  %v9655_v63 = vpop.f32.mrf.mxu1  ;;  %6910 = vrcp.f32 %v12156_v56 }
 0x64e   : > { %12147 = vst [vmem:[#allocation33_spill] sm:$0xff] %v9655_v63 }
 0x64f   : > { %3291 = vmax.xlane.f32.xlu1 %v3290_v1  ;;  %v9657_v36 = vpop.eup %6898  ;;  %v9669_v22 = vpop.f32.mrf.mxu1 }
 0x650   : > { %12148 = vst [vmem:[#allocation83_spill] sm:$0xff] %v9657_v36  ;;  %v9661_v1 = vpop.eup %6900  ;;  %12152 = vst [vmem:[#allocation79_spill] sm:$0xff] %v9669_v22 }
 0x651   : > { %3288 = vmax.xlane.f32.xlu0 %v3287_v3  ;;  %12149 = vst [vmem:[#allocation57_spill] sm:$0xff] %v9661_v1  ;;  %v9663_v3 = vpop.eup %6902  ;;  %v9675_v41 = vpop.f32.mrf.mxu1 }
 0x652   : > { %12150 = vst [vmem:[#allocation64_spill] sm:$0xff] %v9663_v3  ;;  %v9667_v34 = vpop.eup %6904  ;;  %12153 = vst [vmem:[#allocation74_spill] sm:$0xff] %v9675_v41 }
 0x653   : > { %2358 = vadd.xlane.f32.xlu1 %v2357_v10  ;;  %12151 = vst [vmem:[#allocation27_spill] sm:$0xff] %v9667_v34  ;;  %v2363_v10 = vadd.f32 %v9661_v1, %v9657_v36  ;;  %v12158_v1 = vld [vmem:[#allocation50_spill] sm:$0xff] }
 0x654   : > { %6912 = vrcp.f32 %v12158_v1 }
 0x655   : > { %2355 = vadd.xlane.f32.xlu0 %v2354_v45  ;;  %v2360_v45 = vadd.f32 %v9667_v34, %v9663_v3 }
 0x657   : > { %3297 = vmax.xlane.f32.xlu1 %v3296_v13  ;;  %v3302_v13 = vmax.f32 %v9611_v23, %v9625_v18  ;;  %v12168_v18 = vld [vmem:[#allocation68_spill] sm:$0xff] }
 0x658   : > { %v9682_v36 = vpop.eup %6906 }
 0x659   : > { %3294 = vmax.xlane.f32.xlu0 %v3293_v38  ;;  %12157 = vst [vmem:[#allocation91_spill] sm:$0xff] %v9682_v36 }
 0x65b   : > { %v2083_v35 = vpop.xlane.xlu1 %2082  ;;  %2364 = vadd.xlane.f32.xlu1 %v2363_v10  ;;  %v3299_v10 = vmax.f32 %v9581_v30, %v9596_v44 }
 0x65c   : > { %v2149_v6 = vsub.f32 %v12154_v49, %v2083_v35  ;;  %v2150_v53 = vsub.f32 %v12155_v16, %v2083_v35  ;;  %v9687_v49 = vpop.eup %6908  ;;  %v9689_v16 = vpop.f32.mrf.mxu1  ;;  %v12161_v35 = vld [vmem:[#allocation61_spill] sm:$0xff] }
 0x65d   : > { %2361 = vadd.xlane.f32.xlu0 %v2360_v45  ;;  %12159 = vst [vmem:[#allocation22_spill] sm:$0xff] %v9687_v49  ;;  %12160 = vst [vmem:[#allocation43_spill] sm:$0xff] %v9689_v16  ;;  %v2366_v44 = vadd.f32 %v9687_v49, %v9682_v36  ;;  %v12167_v49 = vld [vmem:[#allocation51_spill] sm:$0xff] }
 0x65e   : > { %v2269_v38 = vmul.f32 1.442695, %v2149_v6  ;;  %v2271_v11 = vmul.f32 1.442695, %v2150_v53  ;;  %v12162_v53 = vld [vmem:[#allocation58_spill] sm:$0xff]  ;;  %v9695_v30 = vpop.f32.mrf.mxu1 }
 0x65f   : > { %v2305_v3 = vpop.xlane.xlu1 %2304  ;;  %3303 = vmax.xlane.f32.xlu1 %v3302_v13 }
 0x660   : > { %6914 = vpow2.f32 %v2269_v38  ;;  %v3305_v38 = vmax.f32 %v9635_v62, %v9649_v21 }
 0x661   : > { %6916 = vpow2.f32 %v2271_v11  ;;  %3300 = vmax.xlane.f32.xlu0 %v3299_v10  ;;  %v2086_v56 = vpop.xlane.xlu0 %2085 }
 0x662   : > { %v2151_v6 = vsub.f32 %v12161_v35, %v2086_v56  ;;  %v2152_v45 = vsub.f32 %v12162_v53, %v2086_v56  ;;  %6918 = vrcp.f32 %v9511_v17  ;;  %v9701_v56 = vpop.f32.mrf.mxu1  ;;  %v6911_v53 = vpop.eup %6910 }
 0x663   : > { %v2308_v34 = vpop.xlane.xlu1 %2307  ;;  %6920 = vrcp.f32 %v9525_v12  ;;  %v6913_v17 = vpop.eup %6912 }
 0x664   : > { %v2273_v1 = vmul.f32 1.442695, %v2151_v6  ;;  %v2275_v13 = vmul.f32 1.442695, %v2152_v45  ;;  %v9705_v12 = vpop.f32.mrf.mxu1 }
 0x665   : > { %2367 = vadd.xlane.f32.xlu0 %v2366_v44  ;;  %v2528_v11 = vpop.permute.xlu0 %2527 }
 0x666   : > { %6922 = vpow2.f32 %v2273_v1  ;;  %6058 = vmatprep.subr.bf16.mxu0 %v2528_v11  ;;  %v12164_v1 = vld [vmem:[#allocation90_spill] sm:$0xff]  ;;  %v9715_v36 = vpop.f32.mrf.mxu1 }
 0x667   : > { %6924 = vpow2.f32 %v2275_v13  ;;  %v2512_v10 = vpop.permute.xlu1 %2511  ;;  %v2420_v13 = vmul.f32 %v6911_v53, %v12164_v1  ;;  %v12169_v1 = vld [vmem:[#allocation63_spill] sm:$0xff] }
 0x668   : > { %6059 = vmatpush3.bf16.msra.mxu0 %v2512_v10  ;;  %6926 = vrcp.f32 %v2308_v34  ;;  %v12166_v10 = vld [vmem:[#allocation92_spill] sm:$0xff]  ;;  %v12170_v23 = vpack.c.bf16 %v12168_v18, %v12169_v1  ;;  %v12176_v18 = vld [vmem:[#allocation82_spill] sm:$0xff]  ;;  %v12177_v1 = vld [vmem:[#allocation89_spill] sm:$0xff] }
 0x669   : > { %3306 = vmax.xlane.f32.xlu0 %v3305_v38  ;;  %v4129_v35 = vpop.permute.xlu0 %4128  ;;  %6928 = vrcp.f32 %v2305_v3  ;;  %v3308_v3 = vmax.f32 %v9655_v63, %v9669_v22 }
 0x66a   : > { %6364 = vmatprep.mubr.msk.bf16.mxu1 %vm601_vm1, %v4129_v35 }
 0x66b   : > { %6365 = vmatmul.mubr.msk.bf16.gmra.mxu1 %vm601_vm1, %v4129_v35  ;;  %v2510_v44 = vpop.permute.xlu1 %2509  ;;  %v2418_v35 = vmul.f32 %v6913_v17, %v12166_v10 }
 0x66d   : > { %v9707_v6 = vpop.eup %6914  ;;  %v2526_v45 = vpop.permute.xlu0 %2525  ;;  %v2480_v34 = vpack.c.bf16 %v2420_v13, %v2418_v35  ;;  %v12175_v13 = vld [vmem:[#allocation87_spill] sm:$0xff] }
 0x66e   : > { %12163 = vst [vmem:[#allocation80_spill] sm:$0xff] %v9707_v6  ;;  %v9710_v11 = vpop.eup %6916  ;;  %6060 = vmatprep.subr.bf16.mxu0 %v2526_v45 }
 0x66f   : > { %12165 = vst [vmem:[#allocation81_spill] sm:$0xff] %v9710_v11  ;;  %6061 = vmatpush3.bf16.msra.mxu0 %v2510_v44  ;;  %v2369_v38 = vadd.f32 %v9710_v11, %v9707_v6  ;;  %v6919_v21 = vpop.eup %6918  ;;  %v12172_v44 = vld [vmem:[#allocation15_spill] sm:$0xff]  ;;  %v9728_v6 = vpop.f32.mrf.mxu1  ;;  %v2417_v11 = vmul.f32 %v6913_v17, %v12177_v1  ;;  %v12182_v1 = vld [vmem:[#allocation38_spill] sm:$0xff] }
 0x670   : > { %6206 = vmatprep.subr.bf16.mxu0 %v12167_v49  ;;  %v6921_v62 = vpop.eup %6920  ;;  %v12174_v49 = vld [vmem:[#allocation45_spill] sm:$0xff] }
 0x671   : > { %2370 = vadd.xlane.f32.xlu1 %v2369_v38  ;;  %v2419_v38 = vmul.f32 %v6911_v53, %v12175_v13  ;;  %v2424_v35 = vmul.f32 %v6921_v62, %v12176_v18  ;;  %v9738_v63 = vpop.f32.mrf.mxu1  ;;  %v3311_v53 = vmax.f32 %v9675_v41, %v9689_v16  ;;  %v12193_v41 = vld [vmem:[#allocation44_spill] sm:$0xff] }
 0x672   : > { %2590 = vmatmul.mubr.bf16.vlgmr.msra.gmra.mxu0 %v12170_v23 }
 0x673   : > { %v9721_v45 = vpop.eup %6922  ;;  %2597 = vmatprep.mubr.bf16.mxu0 %v2480_v34  ;;  %6207 = vmatpush3.bf16.msra.mxu0 %v12172_v44  ;;  %v12178_v34 = vld [vmem:[#allocation12_spill] sm:$0xff]  ;;  %v9743_v17 = vpop.f32.mrf.mxu1 }
 0x674   : > { %12171 = vst [vmem:[#allocation21_spill] sm:$0xff] %v9721_v45  ;;  %v9726_v10 = vpop.eup %6924  ;;  %6208 = vmatprep.subr.bf16.mxu0 %v12174_v49  ;;  %v12179_v44 = vld [vmem:[#allocation76_spill] sm:$0xff]  ;;  %v2479_v49 = vpack.c.bf16 %v2419_v38, %v2417_v11  ;;  %v12185_v11 = vld [vmem:[#allocation73_spill] sm:$0xff] }
 0x675   : > { %12173 = vst [vmem:[#allocation88_spill] sm:$0xff] %v9726_v10  ;;  %3309 = vmax.xlane.f32.xlu1 %v3308_v3  ;;  %v2372_v23 = vadd.f32 %v9726_v10, %v9721_v45  ;;  %v2422_v22 = vmul.f32 %v6919_v21, %v12179_v44  ;;  %v6927_v13 = vpop.eup %6926  ;;  %v2423_v44 = vmul.f32 %v6921_v62, %v12182_v1  ;;  %v12184_v45 = vld [vmem:[#allocation84_spill] sm:$0xff]  ;;  %v12189_v62 = vld [vmem:[#allocation14_spill] sm:$0xff]  ;;  %v12190_v1 = vld [vmem:[#allocation11_spill] sm:$0xff] }
 0x676   : > { %v6929_v18 = vpop.eup %6928  ;;  %v2421_v38 = vmul.f32 %v6919_v21, %v12185_v11  ;;  %v12186_v10 = vld [vmem:[#allocation32_spill] sm:$0xff]  ;;  %v12192_v21 = vld [vmem:[#allocation13_spill] sm:$0xff] }
 0x677   : > { %2373 = vadd.xlane.f32.xlu0 %v2372_v23  ;;  %6209 = vmatpush3.bf16.msra.mxu0 %v12178_v34  ;;  %v2482_v3 = vpack.c.bf16 %v2424_v35, %v2422_v22  ;;  %v12181_v23 = vld [vmem:[#allocation10_spill] sm:$0xff]  ;;  %v2426_v16 = vmul.f32 %v6929_v18, %v12186_v10  ;;  %v9751_v22 = vpop.f32.mrf.mxu1  ;;  %v2425_v10 = vmul.f32 %v6929_v18, %v12192_v21 }
 0x678   : > { %6210 = vmatprep.subr.bf16.mxu0 %v12180_v42  ;;  %v12183_v34 = vld [vmem:[#allocation34_spill] sm:$0xff]  ;;  %v2428_v42 = vmul.f32 %v6927_v13, %v12184_v45  ;;  %v2481_v35 = vpack.c.bf16 %v2423_v44, %v2421_v38  ;;  %v2427_v45 = vmul.f32 %v6927_v13, %v12190_v1  ;;  %v12194_v38 = vld [vmem:[#allocation48_spill] sm:$0xff] }
 0x679   : > { %v12197_v13 = vld [vmem:[#allocation52_spill] sm:$0xff] }
 0x67a   : > { %2598 = vmatmul.mubr.bf16.gmra.mxu0 %v2479_v49  ;;  %v12187_v49 = vld [vmem:[#allocation8_spill] sm:$0xff]  ;;  %v2483_v44 = vpack.c.bf16 %v2427_v45, %v2425_v10 }
 0x67b   : > { %3312 = vmax.xlane.f32.xlu0 %v3311_v53  ;;  %2605 = vmatprep.mubr.bf16.mxu0 %v2482_v3  ;;  %v12188_v53 = vld [vmem:[#allocation20_spill] sm:$0xff]  ;;  %v2484_v3 = vpack.c.bf16 %v2428_v42, %v2426_v16  ;;  %v12195_v16 = vld [vmem:[#allocation55_spill] sm:$0xff] }
 0x67c   : > { %6211 = vmatpush3.bf16.msra.mxu0 %v12181_v23  ;;  %v9755_v23 = vpop.f32.mrf.mxu1 }
 0x67d   : > { %6212 = vmatprep.subr.bf16.mxu0 %v12183_v34  ;;  %v12191_v34 = vld [vmem:[#allocation56_spill] sm:$0xff] }
 0x67e   : > { %v9761_v11 = vpop.f32.mrf.mxu1 }
 0x680   : > { %6213 = vmatpush3.bf16.msra.mxu0 %v12187_v49  ;;  %v9765_v42 = vpop.f32.mrf.mxu1 }
 0x681   : > { %6214 = vmatprep.subr.bf16.mxu0 %v12188_v53 }
 0x682   : > { %2606 = vmatmul.mubr.bf16.gmra.mxu0 %v2481_v35  ;;  %v12196_v35 = vld [vmem:[#allocation66_spill] sm:$0xff] }
 0x683   : > { %2613 = vmatprep.mubr.bf16.mxu0 %v2484_v3  ;;  %v9769_v3 = vpop.f32.mrf.mxu1 }
 0x684   : > { %6215 = vmatpush3.bf16.msra.mxu0 %v12189_v62 }
 0x685   : > { %6216 = vmatprep.subr.bf16.mxu0 %v12191_v34  ;;  %v9772_v1 = vpop.f32.mrf.mxu1 }
 0x687   : > { %v9774_v18 = vpop.f32.mrf.mxu1 }
 0x688   : > { %6217 = vmatpush3.bf16.msra.mxu0 %v12193_v41 }
 0x689   : > { %6218 = vmatprep.subr.bf16.mxu0 %v12194_v38  ;;  %v9776_v21 = vpop.f32.mrf.mxu1 }
 0x68a   : > { %2614 = vmatmul.mubr.bf16.gmra.mxu0 %v2483_v44 }
 0x68b   : > { %v9782_v34 = vpop.f32.mrf.mxu1 }
 0x68c   : > { %6219 = vmatpush3.bf16.msra.mxu0 %v12195_v16 }
 0x68d   : > { %6220 = vmatprep.subr.bf16.mxu0 %v12196_v35 }
 0x690   : > { %6221 = vmatpush3.bf16.msra.mxu0 %v12197_v13 }
 0x69c   : > { %v2092_v45 = vpop.xlane.xlu1 %2091 }
 0x69d   : > { %v2155_v10 = vsub.f32 %v9217_v55, %v2092_v45  ;;  %v2156_v44 = vsub.f32 %v9222_v20, %v2092_v45  ;;  %v9786_v20 = vpop.f32.mrf.mxu1 }
 0x69e   : > { %v2089_v38 = vpop.xlane.xlu0 %2088 }
 0x69f   : > { %v2281_v62 = vmul.f32 1.442695, %v2155_v10  ;;  %v2283_v16 = vmul.f32 1.442695, %v2156_v44  ;;  %v2153_v35 = vsub.f32 %v9203_v5, %v2089_v38  ;;  %v2154_v41 = vsub.f32 %v9211_v58, %v2089_v38  ;;  %v9788_v38 = vpop.f32.mrf.mxu1 }
 0x6a0   : > { %v3250_v13 = vpop.xlane.xlu1 %3249 }
 0x6a1   : > { %6930 = vpow2.f32 %v2281_v62  ;;  %v2277_v53 = vmul.f32 1.442695, %v2153_v35  ;;  %v2279_v49 = vmul.f32 1.442695, %v2154_v41  ;;  %v3344_v54 = vsub.f32 %v9279_v29, %v3250_v13 }
 0x6a2   : > { %6932 = vpow2.f32 %v2283_v16  ;;  %v3345_v55 = vsub.f32 %v9283_v0, %v3250_v13  ;;  %v2311_v32 = vpop.xlane.xlu0 %2310 }
 0x6a3   : > { %6934 = vpow2.f32 %v2277_v53  ;;  %v3408_v45 = vmul.f32 1.442695, %v3344_v54 }
 0x6a4   : > { %6936 = vpow2.f32 %v2279_v49  ;;  %v2317_v5 = vpop.xlane.xlu1 %2316  ;;  %v3410_v10 = vmul.f32 1.442695, %v3345_v55  ;;  %v9794_v49 = vpop.f32.mrf.mxu1 }
 0x6a5   : > { %6938 = vrcp.f32 %v2311_v32 }
 0x6a6   : > { %v2314_v58 = vpop.xlane.xlu0 %2313  ;;  %6940 = vpow2.f32 %v3408_v45 }
 0x6a7   : > { %6942 = vrcp.f32 %v2314_v58 }
 0x6a8   : > { %v3256_v62 = vpop.xlane.xlu1 %3255  ;;  %6944 = vpow2.f32 %v3410_v10  ;;  %v9802_v10 = vpop.f32.mrf.mxu1 }
 0x6a9   : > { %v3348_v29 = vsub.f32 %v9313_v57, %v3256_v62  ;;  %v3349_v41 = vsub.f32 %v9315_v33, %v3256_v62  ;;  %6946 = vrcp.f32 %v2317_v5 }
 0x6aa   : > { %v3253_v0 = vpop.xlane.xlu0 %3252 }
 0x6ab   : > { %v3416_v53 = vmul.f32 1.442695, %v3348_v29  ;;  %v3346_v16 = vsub.f32 %v9285_v47, %v3253_v0  ;;  %v3347_v54 = vsub.f32 %v9288_v43, %v3253_v0  ;;  %v3418_v32 = vmul.f32 1.442695, %v3349_v41 }
 0x6ac   : > { %v2323_v35 = vpop.xlane.xlu1 %2322 }
 0x6ad   : > { %v3412_v13 = vmul.f32 1.442695, %v3346_v16  ;;  %v3414_v44 = vmul.f32 1.442695, %v3347_v54  ;;  %6948 = vpow2.f32 %v3416_v53 }
 0x6ae   : > { %v9796_v55 = vpop.eup %6930  ;;  %v2320_v57 = vpop.xlane.xlu0 %2319 }
 0x6af   : > { %12198 = vst [vmem:[#allocation28_spill] sm:$0xff] %v9796_v55  ;;  %v9798_v45 = vpop.eup %6932  ;;  %6950 = vpow2.f32 %v3412_v13  ;;  %v3317_v13 = vmax.f32 %v9705_v12, %v9715_v36 }
 0x6b0   : > { %v9800_v33 = vpop.eup %6934  ;;  %6952 = vpow2.f32 %v3414_v44  ;;  %v3262_v47 = vpop.xlane.xlu1 %3261  ;;  %v2378_v43 = vadd.f32 %v9798_v45, %v9796_v55 }
 0x6b1   : > { %12199 = vst [vmem:[#allocation50_spill] sm:$0xff] %v9800_v33  ;;  %v9806_v5 = vpop.eup %6936  ;;  %6954 = vpow2.f32 %v3418_v32  ;;  %v3352_v58 = vsub.f32 %v9329_v52, %v3262_v47  ;;  %v3353_v62 = vsub.f32 %v9337_v14, %v3262_v47  ;;  %v9816_v32 = vpop.f32.mrf.mxu1 }
 0x6b2   : > { %12200 = vst [vmem:[#allocation61_spill] sm:$0xff] %v9806_v5  ;;  %6956 = vrcp.f32 %v2320_v57  ;;  %v3259_v29 = vpop.xlane.xlu0 %3258  ;;  %2379 = vadd.xlane.f32.xlu0 %v2378_v43  ;;  %v2375_v41 = vadd.f32 %v9806_v5, %v9800_v33  ;;  %v6939_v54 = vpop.eup %6938 }
 0x6b3   : > { %v3424_v0 = vmul.f32 1.442695, %v3352_v58  ;;  %v3350_v53 = vsub.f32 %v9317_v39, %v3259_v29  ;;  %v3351_v16 = vsub.f32 %v9323_v15, %v3259_v29  ;;  %v9818_v14 = vpop.eup %6940  ;;  %6958 = vrcp.f32 %v2323_v35  ;;  %v9827_v35 = vpop.f32.mrf.mxu1 }
 0x6b4   : > { %2376 = vadd.xlane.f32.xlu1 %v2375_v41  ;;  %v2329_v52 = vpop.xlane.xlu1 %2328  ;;  %12201 = vst [vmem:[#allocation58_spill] sm:$0xff] %v9818_v14  ;;  %v3426_v44 = vmul.f32 1.442695, %v3353_v62  ;;  %v6943_v43 = vpop.eup %6942  ;;  %v3314_v39 = vmax.f32 %v9695_v30, %v9701_v56  ;;  %v2430_v29 = vmul.f32 %v6939_v54, %v9427_v25 }
 0x6b5   : > { %v3420_v57 = vmul.f32 1.442695, %v3350_v53  ;;  %v3422_v47 = vmul.f32 1.442695, %v3351_v16  ;;  %6960 = vpow2.f32 %v3424_v0  ;;  %v9822_v58 = vpop.eup %6944  ;;  %v2432_v41 = vmul.f32 %v6943_v43, %v9441_v60 }
 0x6b6   : > { %v2326_v15 = vpop.xlane.xlu0 %2325  ;;  %3318 = vmax.xlane.f32.xlu0 %v3317_v13  ;;  %12202 = vst [vmem:[#allocation90_spill] sm:$0xff] %v9822_v58  ;;  %v2431_v33 = vmul.f32 %v6943_v43, %v9437_v48  ;;  %v2429_v53 = vmul.f32 %v6939_v54, %v9421_v7  ;;  %v3536_v48 = vadd.f32 %v9822_v58, %v9818_v14  ;;  %v12204_v43 = vld [vmem:[#allocation78_spill] sm:$0xff]  ;;  %v12205_v7 = vld [vmem:[#allocation24_spill] sm:$0xff]  ;;  %v12211_v58 = vld [vmem:[#allocation93_spill] sm:$0xff] }
 0x6b7   : > { %6962 = vpow2.f32 %v3420_v57  ;;  %v2486_v0 = vpack.c.bf16 %v2432_v41, %v2430_v29  ;;  %v6947_v57 = vpop.eup %6946 }
 0x6b8   : > { %6964 = vpow2.f32 %v3422_v47  ;;  %3315 = vmax.xlane.f32.xlu1 %v3314_v39  ;;  %v3268_v62 = vpop.xlane.xlu1 %3267  ;;  %v2485_v25 = vpack.c.bf16 %v2431_v33, %v2429_v53  ;;  %v3320_v53 = vmax.f32 %v9728_v6, %v9738_v63 }
 0x6b9   : > { %6966 = vpow2.f32 %v3426_v44  ;;  %v3356_v16 = vsub.f32 %v9351_v27, %v3268_v62  ;;  %v3357_v13 = vsub.f32 %v9355_v9, %v3268_v62  ;;  %2621 = vmatprep.mubr.bf16.mxu0 %v2486_v0  ;;  %v9840_v27 = vpop.f32.mrf.mxu1 }
 0x6ba   : > { %6968 = vrcp.f32 %v2326_v15  ;;  %v3265_v5 = vpop.xlane.xlu0 %3264  ;;  %v9834_v60 = vpop.eup %6948  ;;  %2622 = vmatmul.mubr.bf16.gmra.mxu0 %v2485_v25  ;;  %v12208_v25 = vld [vmem:[#allocation9_spill] sm:$0xff] }
 0x6bb   : > { %12203 = vst [vmem:[#allocation92_spill] sm:$0xff] %v9834_v60  ;;  %v3432_v47 = vmul.f32 1.442695, %v3356_v16  ;;  %v3354_v39 = vsub.f32 %v12204_v43, %v3265_v5  ;;  %v3355_v54 = vsub.f32 %v12205_v7, %v3265_v5  ;;  %6970 = vrcp.f32 %v2329_v52  ;;  %v9851_v43 = vpop.f32.mrf.mxu1  ;;  %v12209_v52 = vld [vmem:[#allocation77_spill] sm:$0xff]  ;;  %v12210_v7 = vld [vmem:[#allocation7_spill] sm:$0xff] }
 0x6bc   : > { %v9838_v44 = vpop.eup %6950  ;;  %3537 = vadd.xlane.f32.xlu1 %v3536_v48  ;;  %v2335_v9 = vpop.xlane.xlu1 %2334  ;;  %v3434_v15 = vmul.f32 1.442695, %v3357_v13  ;;  %v2434_v48 = vmul.f32 %v6947_v57, %v12208_v25 }
 0x6bd   : > { %12206 = vst [vmem:[#allocation68_spill] sm:$0xff] %v9838_v44  ;;  %v9842_v33 = vpop.eup %6952  ;;  %v3428_v29 = vmul.f32 1.442695, %v3354_v39  ;;  %v3430_v41 = vmul.f32 1.442695, %v3355_v54  ;;  %6972 = vpow2.f32 %v3432_v47  ;;  %v2433_v54 = vmul.f32 %v6947_v57, %v12210_v7  ;;  %v12215_v7 = vld [vmem:[#allocation25_spill] sm:$0xff] }
 0x6be   : > { %12207 = vst [vmem:[#allocation63_spill] sm:$0xff] %v9842_v33  ;;  %v9844_v62 = vpop.eup %6954  ;;  %v2332_v5 = vpop.xlane.xlu0 %2331  ;;  %v3539_v0 = vadd.f32 %v9842_v33, %v9838_v44  ;;  %v3323_v57 = vmax.f32 %v9743_v17, %v9751_v22 }
 0x6bf   : > { %v6957_v16 = vpop.eup %6956  ;;  %6974 = vpow2.f32 %v3428_v29 }
 0x6c0   : > { %6976 = vpow2.f32 %v3430_v41  ;;  %3321 = vmax.xlane.f32.xlu1 %v3320_v53  ;;  %3540 = vadd.xlane.f32.xlu0 %v3539_v0  ;;  %v2436_v13 = vmul.f32 %v6957_v16, %v12209_v52  ;;  %v3274_v39 = vpop.xlane.xlu1 %3273  ;;  %v2435_v47 = vmul.f32 %v6957_v16, %v12211_v58  ;;  %v6959_v29 = vpop.eup %6958  ;;  %v3542_v41 = vadd.f32 %v9844_v62, %v9834_v60 }
 0x6c1   : > { %6978 = vpow2.f32 %v3434_v15  ;;  %v3360_v14 = vsub.f32 %v9373_v59, %v3274_v39  ;;  %v3361_v33 = vsub.f32 %v9377_v50, %v3274_v39  ;;  %v9868_v50 = vpop.f32.mrf.mxu1 }
 0x6c2   : > { %6980 = vrcp.f32 %v2332_v5  ;;  %v2488_v25 = vpack.c.bf16 %v2436_v13, %v2434_v48  ;;  %v2487_v44 = vpack.c.bf16 %v2435_v47, %v2433_v54  ;;  %v3271_v55 = vpop.xlane.xlu0 %3270  ;;  %v9860_v53 = vpop.eup %6960  ;;  %12214 = vst [vmem:[#allocation89_spill] sm:$0xff] %v9868_v50  ;;  %v2438_v54 = vmul.f32 %v6959_v29, %v12215_v7 }
 0x6c3   : > { %12212 = vst [vmem:[#allocation87_spill] sm:$0xff] %v9860_v53  ;;  %v3440_v0 = vmul.f32 1.442695, %v3360_v14  ;;  %v3358_v58 = vsub.f32 %v9361_v51, %v3271_v55  ;;  %v3359_v59 = vsub.f32 %v9369_v31, %v3271_v55  ;;  %6982 = vrcp.f32 %v2335_v9  ;;  %v9879_v9 = vpop.f32.mrf.mxu1 }
 0x6c4   : > { %v9866_v15 = vpop.eup %6962  ;;  %2629 = vmatprep.mubr.bf16.mxu0 %v2488_v25  ;;  %3543 = vadd.xlane.f32.xlu1 %v3542_v41  ;;  %v2341_v5 = vpop.xlane.xlu1 %2340  ;;  %v3442_v48 = vmul.f32 1.442695, %v3361_v33  ;;  %v3326_v31 = vmax.f32 %v9755_v23, %v9761_v11  ;;  %12216 = vst [vmem:[#allocation76_spill] sm:$0xff] %v9879_v9  ;;  %v12218_v25 = vld [vmem:[#allocation41_spill] sm:$0xff] }
 0x6c5   : > { %12213 = vst [vmem:[#allocation82_spill] sm:$0xff] %v9866_v15  ;;  %v9870_v16 = vpop.eup %6964  ;;  %2630 = vmatmul.mubr.bf16.gmra.mxu0 %v2487_v44  ;;  %v3436_v52 = vmul.f32 1.442695, %v3358_v58  ;;  %v3438_v13 = vmul.f32 1.442695, %v3359_v59  ;;  %3324 = vmax.xlane.f32.xlu0 %v3323_v57  ;;  %6984 = vpow2.f32 %v3440_v0  ;;  %v12217_v44 = vld [vmem:[#allocation5_spill] sm:$0xff]  ;;  %v2437_v41 = vmul.f32 %v6959_v29, %v12218_v25 }
 0x6c6   : > { %v9872_v14 = vpop.eup %6966  ;;  %v2338_v51 = vpop.xlane.xlu0 %2337  ;;  %v3545_v55 = vadd.f32 %v9870_v16, %v9866_v15  ;;  %v12219_v57 = vld [vmem:[#allocation18_spill] sm:$0xff]  ;;  %v3329_v29 = vmax.f32 %v9765_v42, %v9769_v3 }
 0x6c7   : > { %v6969_v39 = vpop.eup %6968  ;;  %6986 = vpow2.f32 %v3436_v52 }
 0x6c8   : > { %6988 = vpow2.f32 %v3438_v13  ;;  %3327 = vmax.xlane.f32.xlu1 %v3326_v31  ;;  %v2440_v33 = vmul.f32 %v6969_v39, %v12217_v44  ;;  %v3280_v47 = vpop.xlane.xlu1 %3279  ;;  %v2439_v58 = vmul.f32 %v6969_v39, %v12219_v57  ;;  %v6971_v52 = vpop.eup %6970  ;;  %v3548_v13 = vadd.f32 %v9872_v14, %v9860_v53 }
 0x6c9   : > { %6990 = vpow2.f32 %v3442_v48  ;;  %3546 = vadd.xlane.f32.xlu0 %v3545_v55  ;;  %v3364_v0 = vsub.f32 %v9397_v61, %v3280_v47  ;;  %v3365_v59 = vsub.f32 %v9399_v19, %v3280_v47  ;;  %v12221_v55 = vld [vmem:[#allocation23_spill] sm:$0xff]  ;;  %v9896_v19 = vpop.f32.mrf.mxu1 }
 0x6ca   : > { %6992 = vrcp.f32 %v2338_v51  ;;  %v2490_v7 = vpack.c.bf16 %v2440_v33, %v2438_v54  ;;  %v2489_v15 = vpack.c.bf16 %v2439_v58, %v2437_v41  ;;  %v3277_v60 = vpop.xlane.xlu0 %3276  ;;  %v9888_v31 = vpop.eup %6972  ;;  %12223 = vst [vmem:[#allocation73_spill] sm:$0xff] %v9896_v19 }
 0x6cb   : > { %12220 = vst [vmem:[#allocation38_spill] sm:$0xff] %v9888_v31  ;;  %v3448_v39 = vmul.f32 1.442695, %v3364_v0  ;;  %v3362_v48 = vsub.f32 %v12125_v46, %v3277_v60  ;;  %v3363_v61 = vsub.f32 %v12221_v55, %v3277_v60  ;;  %6994 = vrcp.f32 %v2341_v5  ;;  %v12225_v0 = vld [vmem:[#allocation19_spill] sm:$0xff]  ;;  %v9907_v5 = vpop.f32.mrf.mxu1 }
 0x6cc   : > { %v9894_v44 = vpop.eup %6974  ;;  %2637 = vmatprep.mubr.bf16.mxu0 %v2490_v7  ;;  %3549 = vadd.xlane.f32.xlu1 %v3548_v13  ;;  %v2347_v51 = vpop.xlane.xlu1 %2346  ;;  %v3450_v33 = vmul.f32 1.442695, %v3365_v59  ;;  %v3332_v46 = vmax.f32 %v9772_v1, %v9774_v18  ;;  %v2442_v7 = vmul.f32 %v6971_v52, %v12225_v0  ;;  %12226 = vst [vmem:[#allocation11_spill] sm:$0xff] %v9907_v5  ;;  %v12229_v55 = vld [vmem:[#allocation31_spill] sm:$0xff] }
 0x6cd   : > { %12222 = vst [vmem:[#allocation84_spill] sm:$0xff] %v9894_v44  ;;  %v9898_v54 = vpop.eup %6976  ;;  %2638 = vmatmul.mubr.bf16.gmra.mxu0 %v2489_v15  ;;  %v3444_v47 = vmul.f32 1.442695, %v3362_v48  ;;  %v3446_v25 = vmul.f32 1.442695, %v3363_v61  ;;  %3330 = vmax.xlane.f32.xlu0 %v3329_v29  ;;  %6996 = vpow2.f32 %v3448_v39  ;;  %v12227_v15 = vld [vmem:[#allocation30_spill] sm:$0xff]  ;;  %v9914_v53 = vpop.f32.mrf.mxu1 }
 0x6ce   : > { %12224 = vst [vmem:[#allocation32_spill] sm:$0xff] %v9898_v54  ;;  %v9900_v41 = vpop.eup %6978  ;;  %v2344_v60 = vpop.xlane.xlu0 %2343  ;;  %v3551_v57 = vadd.f32 %v9898_v54, %v9894_v44  ;;  %v12228_v29 = vld [vmem:[#allocation37_spill] sm:$0xff]  ;;  %12230 = vst [vmem:[#allocation13_spill] sm:$0xff] %v9914_v53 }
 0x6cf   : > { %v6981_v58 = vpop.eup %6980  ;;  %6998 = vpow2.f32 %v3444_v47  ;;  %v2441_v48 = vmul.f32 %v6971_v52, %v12228_v29  ;;  %v3335_v52 = vmax.f32 %v9776_v21, %v9782_v34 }
 0x6d0   : > { %7000 = vpow2.f32 %v3446_v25  ;;  %3333 = vmax.xlane.f32.xlu1 %v3332_v46  ;;  %v2444_v59 = vmul.f32 %v6981_v58, %v12227_v15  ;;  %v3286_v13 = vpop.xlane.xlu1 %3285  ;;  %v2443_v61 = vmul.f32 %v6981_v58, %v12229_v55  ;;  %v6983_v47 = vpop.eup %6982  ;;  %v3554_v15 = vadd.f32 %v9900_v41, %v9888_v31 }
 0x6d1   : > { %7002 = vpow2.f32 %v3450_v33  ;;  %3552 = vadd.xlane.f32.xlu0 %v3551_v57  ;;  %v3368_v39 = vsub.f32 %v9429_v4, %v3286_v13  ;;  %v3369_v44 = vsub.f32 %v9443_v8, %v3286_v13 }
 0x6d2   : > { %7004 = vrcp.f32 %v2344_v60  ;;  %v2492_v0 = vpack.c.bf16 %v2444_v59, %v2442_v7  ;;  %v2491_v25 = vpack.c.bf16 %v2443_v61, %v2441_v48  ;;  %v3283_v46 = vpop.xlane.xlu0 %3282  ;;  %v9918_v54 = vpop.eup %6984 }
 0x6d3   : > { %12231 = vst [vmem:[#allocation78_spill] sm:$0xff] %v9918_v54  ;;  %v3456_v33 = vmul.f32 1.442695, %v3368_v39  ;;  %v3366_v4 = vsub.f32 %v9409_v24, %v3283_v46  ;;  %v3367_v8 = vsub.f32 %v9411_v28, %v3283_v46  ;;  %7006 = vrcp.f32 %v2347_v51  ;;  %v9932_v48 = vpop.f32.mrf.mxu1  ;;  %v12236_v51 = vld [vmem:[#allocation75_spill] sm:$0xff]  ;;  %v12237_v39 = vld [vmem:[#allocation53_spill] sm:$0xff]  ;;  %v12238_v46 = vld [vmem:[#allocation40_spill] sm:$0xff] }
 0x6d4   : > { %v9924_v57 = vpop.eup %6986  ;;  %2645 = vmatprep.mubr.bf16.mxu0 %v2492_v0  ;;  %3555 = vadd.xlane.f32.xlu1 %v3554_v15  ;;  %v2353_v60 = vpop.xlane.xlu1 %2352  ;;  %v3458_v7 = vmul.f32 1.442695, %v3369_v44  ;;  %v3338_v24 = vmax.f32 %v9786_v20, %v9788_v38  ;;  %12235 = vst [vmem:[#allocation7_spill] sm:$0xff] %v9932_v48  ;;  %v2446_v44 = vmul.f32 %v6983_v47, %v12236_v51 }
 0x6d5   : > { %12232 = vst [vmem:[#allocation24_spill] sm:$0xff] %v9924_v57  ;;  %v9926_v58 = vpop.eup %6988  ;;  %2646 = vmatmul.mubr.bf16.gmra.mxu0 %v2491_v25  ;;  %v3452_v59 = vmul.f32 1.442695, %v3366_v4  ;;  %v3454_v13 = vmul.f32 1.442695, %v3367_v8  ;;  %3336 = vmax.xlane.f32.xlu0 %v3335_v52  ;;  %7008 = vpow2.f32 %v3456_v33  ;;  %v2445_v15 = vmul.f32 %v6983_v47, %v12238_v46  ;;  %v12239_v52 = vld [vmem:[#allocation65_spill] sm:$0xff]  ;;  %v9942_v31 = vpop.f32.mrf.mxu1 }
 0x6d6   : > { %12233 = vst [vmem:[#allocation9_spill] sm:$0xff] %v9926_v58  ;;  %v9928_v29 = vpop.eup %6990  ;;  %v2350_v28 = vpop.xlane.xlu0 %2349  ;;  %v3557_v55 = vadd.f32 %v9926_v58, %v9924_v57  ;;  %12240 = vst [vmem:[#allocation93_spill] sm:$0xff] %v9942_v31  ;;  %v3341_v47 = vmax.f32 %v9794_v49, %v9802_v10 }
 0x6d7   : > { %12234 = vst [vmem:[#allocation77_spill] sm:$0xff] %v9928_v29  ;;  %v6993_v61 = vpop.eup %6992  ;;  %7010 = vpow2.f32 %v3452_v59  ;;  %v3560_v51 = vadd.f32 %v9928_v29, %v9918_v54 }
 0x6d8   : > { %7012 = vpow2.f32 %v3454_v13  ;;  %3339 = vmax.xlane.f32.xlu1 %v3338_v24  ;;  %v2448_v0 = vmul.f32 %v6993_v61, %v12237_v39  ;;  %v3292_v25 = vpop.xlane.xlu1 %3291  ;;  %v2447_v4 = vmul.f32 %v6993_v61, %v12239_v52  ;;  %v6995_v57 = vpop.eup %6994 }
 0x6d9   : > { %7014 = vpow2.f32 %v3458_v7  ;;  %3558 = vadd.xlane.f32.xlu0 %v3557_v55  ;;  %v3372_v33 = vsub.f32 %v9490_v2, %v3292_v25  ;;  %v3373_v8 = vsub.f32 %v9507_v37, %v3292_v25 }
 0x6da   : > { %7016 = vrcp.f32 %v2350_v28  ;;  %v2494_v59 = vpack.c.bf16 %v2448_v0, %v2446_v44  ;;  %v2493_v13 = vpack.c.bf16 %v2447_v4, %v2445_v15  ;;  %v3289_v24 = vpop.xlane.xlu0 %3288  ;;  %v9946_v39 = vpop.eup %6996 }
 0x6db   : > { %12241 = vst [vmem:[#allocation25_spill] sm:$0xff] %v9946_v39  ;;  %v3464_v7 = vmul.f32 1.442695, %v3372_v33  ;;  %v3370_v2 = vsub.f32 %v9459_v40, %v3289_v24  ;;  %v3371_v37 = vsub.f32 %v9474_v26, %v3289_v24  ;;  %7018 = vrcp.f32 %v2353_v60  ;;  %v9960_v15 = vpop.f32.mrf.mxu1  ;;  %v12245_v60 = vld [vmem:[#allocation16_spill] sm:$0xff] }
 0x6dc   : > { %v9952_v55 = vpop.eup %6998  ;;  %2653 = vmatprep.mubr.bf16.mxu0 %v2494_v59  ;;  %3561 = vadd.xlane.f32.xlu1 %v3560_v51  ;;  %v2359_v28 = vpop.xlane.xlu1 %2358  ;;  %v3466_v44 = vmul.f32 1.442695, %v3373_v8  ;;  %v4451_v40 = vmax.f32 %v9816_v32, %v9827_v35  ;;  %12244 = vst [vmem:[#allocation18_spill] sm:$0xff] %v9960_v15  ;;  %v2450_v33 = vmul.f32 %v6995_v57, %v12245_v60  ;;  %v12247_v59 = vld [vmem:[#allocation86_spill] sm:$0xff]  ;;  %v12248_v51 = vld [vmem:[#allocation3_spill] sm:$0xff] }
 0x6dd   : > { %12242 = vst [vmem:[#allocation5_spill] sm:$0xff] %v9952_v55  ;;  %v9954_v61 = vpop.eup %7000  ;;  %2654 = vmatmul.mubr.bf16.gmra.mxu0 %v2493_v13  ;;  %v3460_v0 = vmul.f32 1.442695, %v3370_v2  ;;  %v3462_v25 = vmul.f32 1.442695, %v3371_v37  ;;  %3342 = vmax.xlane.f32.xlu0 %v3341_v47  ;;  %7020 = vpow2.f32 %v3464_v7  ;;  %v9965_v8 = vpop.f32.mrf.mxu1  ;;  %v2449_v47 = vmul.f32 %v6995_v57, %v12248_v51  ;;  %v12249_v2 = vld [vmem:[#allocation85_spill] sm:$0xff] }
 0x6de   : > { %12243 = vst [vmem:[#allocation41_spill] sm:$0xff] %v9954_v61  ;;  %v9956_v46 = vpop.eup %7002  ;;  %v2356_v26 = vpop.xlane.xlu0 %2355  ;;  %v3563_v52 = vadd.f32 %v9954_v61, %v9952_v55  ;;  %12246 = vst [vmem:[#allocation23_spill] sm:$0xff] %v9965_v8  ;;  %v12250_v7 = vld [vmem:[#allocation17_spill] sm:$0xff]  ;;  %v12251_v55 = vld [vmem:[#allocation67_spill] sm:$0xff]  ;;  %v4454_v57 = vmax.f32 %v9840_v27, %v9851_v43 }
 0x6df   : > { %v7005_v4 = vpop.eup %7004  ;;  %7022 = vpow2.f32 %v3460_v0 }
 0x6e0   : > { %7024 = vpow2.f32 %v3462_v25  ;;  %4452 = vmax.xlane.f32.xlu1 %v4451_v40  ;;  %v2452_v13 = vmul.f32 %v7005_v4, %v12247_v59  ;;  %v3298_v24 = vpop.xlane.xlu1 %3297  ;;  %v2451_v37 = vmul.f32 %v7005_v4, %v12249_v2  ;;  %v7007_v0 = vpop.eup %7006  ;;  %v3566_v25 = vadd.f32 %v9956_v46, %v9946_v39  ;;  %v12254_v59 = vld [vmem:[#allocation4_spill] sm:$0xff]  ;;  %v12264_v39 = vld [vmem:[#allocation71_spill] sm:$0xff] }
 0x6e1   : > { %7026 = vpow2.f32 %v3466_v44  ;;  %3564 = vadd.xlane.f32.xlu0 %v3563_v52  ;;  %v3376_v54 = vsub.f32 %v12250_v7, %v3298_v24  ;;  %v3377_v61 = vsub.f32 %v12251_v55, %v3298_v24  ;;  %v12253_v44 = vld [vmem:[#allocation6_spill] sm:$0xff]  ;;  %v9982_v55 = vpop.f32.mrf.mxu1 }
 0x6e2   : > { %7028 = vrcp.f32 %v2356_v26  ;;  %v2496_v60 = vpack.c.bf16 %v2452_v13, %v2450_v33  ;;  %v2495_v29 = vpack.c.bf16 %v2451_v37, %v2449_v47  ;;  %v3295_v58 = vpop.xlane.xlu0 %3294  ;;  %v9974_v40 = vpop.eup %7008  ;;  %12256 = vst [vmem:[#allocation37_spill] sm:$0xff] %v9982_v55 }
 0x6e3   : > { %12252 = vst [vmem:[#allocation19_spill] sm:$0xff] %v9974_v40  ;;  %v3472_v4 = vmul.f32 1.442695, %v3376_v54  ;;  %v3374_v52 = vsub.f32 %v12253_v44, %v3295_v58  ;;  %v3375_v51 = vsub.f32 %v12254_v59, %v3295_v58  ;;  %7030 = vrcp.f32 %v2359_v28  ;;  %v9993_v28 = vpop.f32.mrf.mxu1 }
 0x6e4   : > { %v9980_v2 = vpop.eup %7010  ;;  %2661 = vmatprep.mubr.bf16.mxu0 %v2496_v60  ;;  %3567 = vadd.xlane.f32.xlu1 %v3566_v25  ;;  %v2365_v26 = vpop.xlane.xlu1 %2364  ;;  %v3474_v13 = vmul.f32 1.442695, %v3377_v61  ;;  %v4457_v58 = vmax.f32 %v9868_v50, %v9879_v9  ;;  %v12258_v25 = vld [vmem:[#allocation62_spill] sm:$0xff]  ;;  %12259 = vst [vmem:[#allocation75_spill] sm:$0xff] %v9993_v28 }
 0x6e5   : > { %12255 = vst [vmem:[#allocation30_spill] sm:$0xff] %v9980_v2  ;;  %v9984_v33 = vpop.eup %7012  ;;  %2662 = vmatmul.mubr.bf16.gmra.mxu0 %v2495_v29  ;;  %v3468_v24 = vmul.f32 1.442695, %v3374_v52  ;;  %v3470_v47 = vmul.f32 1.442695, %v3375_v51  ;;  %4455 = vmax.xlane.f32.xlu0 %v4454_v57  ;;  %7032 = vpow2.f32 %v3472_v4  ;;  %v2454_v44 = vmul.f32 %v7007_v0, %v12258_v25  ;;  %v12260_v29 = vld [vmem:[#allocation26_spill] sm:$0xff] }
 0x6e6   : > { %12257 = vst [vmem:[#allocation31_spill] sm:$0xff] %v9984_v33  ;;  %v9986_v54 = vpop.eup %7014  ;;  %v2362_v37 = vpop.xlane.xlu0 %2361  ;;  %v3569_v7 = vadd.f32 %v9984_v33, %v9980_v2  ;;  %v12261_v52 = vld [vmem:[#allocation59_spill] sm:$0xff]  ;;  %v12262_v51 = vld [vmem:[#allocation36_spill] sm:$0xff]  ;;  %v12263_v4 = vld [vmem:[#allocation70_spill] sm:$0xff] }
 0x6e7   : > { %v7017_v60 = vpop.eup %7016  ;;  %7034 = vpow2.f32 %v3468_v24  ;;  %v2453_v59 = vmul.f32 %v7007_v0, %v12261_v52  ;;  %v3572_v24 = vadd.f32 %v9986_v54, %v9974_v40  ;;  %v4460_v0 = vmax.f32 %v9896_v19, %v9907_v5  ;;  %v12266_v52 = vld [vmem:[#allocation54_spill] sm:$0xff]  ;;  %v10010_v40 = vpop.f32.mrf.mxu1 }
 0x6e8   : > { %7036 = vpow2.f32 %v3470_v47  ;;  %4458 = vmax.xlane.f32.xlu1 %v4457_v58  ;;  %v2456_v61 = vmul.f32 %v7017_v60, %v12260_v29  ;;  %v3304_v57 = vpop.xlane.xlu1 %3303  ;;  %v2455_v9 = vmul.f32 %v7017_v60, %v12262_v51  ;;  %v7019_v2 = vpop.eup %7018  ;;  %12267 = vst [vmem:[#allocation53_spill] sm:$0xff] %v10010_v40 }
 0x6e9   : > { %7038 = vpow2.f32 %v3474_v13  ;;  %3570 = vadd.xlane.f32.xlu0 %v3569_v7  ;;  %v3380_v50 = vsub.f32 %v12263_v4, %v3304_v57  ;;  %v3381_v47 = vsub.f32 %v12264_v39, %v3304_v57  ;;  %v12265_v13 = vld [vmem:[#allocation69_spill] sm:$0xff] }
 0x6ea   : > { %7040 = vrcp.f32 %v2362_v37  ;;  %v2498_v25 = vpack.c.bf16 %v2456_v61, %v2454_v44  ;;  %v2497_v58 = vpack.c.bf16 %v2455_v9, %v2453_v59  ;;  %v3301_v33 = vpop.xlane.xlu0 %3300  ;;  %v10002_v29 = vpop.eup %7020 }
 0x6eb   : > { %v3480_v60 = vmul.f32 1.442695, %v3380_v50  ;;  %v3378_v7 = vsub.f32 %v12265_v13, %v3301_v33  ;;  %v3379_v51 = vsub.f32 %v12266_v52, %v3301_v33  ;;  %7042 = vrcp.f32 %v2365_v26  ;;  %v10018_v61 = vpop.f32.mrf.mxu1  ;;  %v12269_v26 = vld [vmem:[#allocation72_spill] sm:$0xff]  ;;  %v12271_v13 = vld [vmem:[#allocation49_spill] sm:$0xff] }
 0x6ec   : > { %v10008_v4 = vpop.eup %7022  ;;  %2669 = vmatprep.mubr.bf16.mxu0 %v2498_v25  ;;  %3573 = vadd.xlane.f32.xlu1 %v3572_v24  ;;  %v4463_v50 = vmax.f32 %v9914_v53, %v9932_v48  ;;  %12268 = vst [vmem:[#allocation40_spill] sm:$0xff] %v10018_v61  ;;  %v3482_v33 = vmul.f32 1.442695, %v3381_v47  ;;  %v2458_v25 = vmul.f32 %v7019_v2, %v12269_v26  ;;  %v12272_v52 = vld [vmem:[#allocation60_spill] sm:$0xff] }
 0x6ed   : > { %v10012_v37 = vpop.eup %7024  ;;  %2670 = vmatmul.mubr.bf16.gmra.mxu0 %v2497_v58  ;;  %v3476_v9 = vmul.f32 1.442695, %v3378_v7  ;;  %v3478_v39 = vmul.f32 1.442695, %v3379_v51  ;;  %4461 = vmax.xlane.f32.xlu0 %v4460_v0  ;;  %7044 = vpow2.f32 %v3480_v60  ;;  %v12270_v58 = vld [vmem:[#allocation35_spill] sm:$0xff]  ;;  %v2457_v7 = vmul.f32 %v7019_v2, %v12271_v13  ;;  %v10026_v47 = vpop.f32.mrf.mxu1  ;;  %v12275_v2 = vld [vmem:[#allocation46_spill] sm:$0xff] }
 0x6ee   : > { %v10014_v44 = vpop.eup %7026  ;;  %v2368_v57 = vpop.xlane.xlu0 %2367  ;;  %v3575_v59 = vadd.f32 %v10012_v37, %v10008_v4  ;;  %12273 = vst [vmem:[#allocation65_spill] sm:$0xff] %v10026_v47  ;;  %v4469_v13 = vmax.f32 %v9965_v8, %v9982_v55 }
 0x6ef   : > { %v7029_v24 = vpop.eup %7028  ;;  %7046 = vpow2.f32 %v3476_v9  ;;  %v3578_v9 = vadd.f32 %v10014_v44, %v10002_v29 }
 0x6f0   : > { %7048 = vpow2.f32 %v3478_v39  ;;  %4464 = vmax.xlane.f32.xlu1 %v4463_v50  ;;  %v2460_v0 = vmul.f32 %v7029_v24, %v12270_v58  ;;  %v2459_v51 = vmul.f32 %v7029_v24, %v12272_v52  ;;  %v7031_v60 = vpop.eup %7030  ;;  %v4466_v50 = vmax.f32 %v9942_v31, %v9960_v15  ;;  %v12276_v24 = vld [vmem:[#allocation29_spill] sm:$0xff] }
 0x6f1   : > { %7050 = vrcp.f32 %v2368_v57  ;;  %3576 = vadd.xlane.f32.xlu0 %v3575_v59 }
 0x6f2   : > { %7052 = vpow2.f32 %v3482_v33  ;;  %v2500_v48 = vpack.c.bf16 %v2460_v0, %v2458_v25  ;;  %v2499_v53 = vpack.c.bf16 %v2459_v51, %v2457_v7  ;;  %v3307_v5 = vpop.xlane.xlu0 %3306  ;;  %v10030_v39 = vpop.eup %7032 }
 0x6f3   : > { %12274 = vst [vmem:[#allocation16_spill] sm:$0xff] %v10030_v39  ;;  %v3382_v26 = vsub.f32 %v12275_v2, %v3307_v5  ;;  %v3383_v57 = vsub.f32 %v12276_v24, %v3307_v5  ;;  %v10044_v7 = vpop.f32.mrf.mxu1  ;;  %v12281_v2 = vld [vmem:[#allocation47_spill] sm:$0xff] }
 0x6f4   : > { %v10036_v59 = vpop.eup %7034  ;;  %2677 = vmatprep.mubr.bf16.mxu0 %v2500_v48  ;;  %3579 = vadd.xlane.f32.xlu1 %v3578_v9  ;;  %12278 = vst [vmem:[#allocation3_spill] sm:$0xff] %v10044_v7  ;;  %v12279_v48 = vld [vmem:[#allocation42_spill] sm:$0xff] }
 0x6f5   : > { %v10038_v33 = vpop.eup %7036  ;;  %2678 = vmatmul.mubr.bf16.gmra.mxu0 %v2499_v53  ;;  %v3484_v25 = vmul.f32 1.442695, %v3382_v26  ;;  %v3486_v58 = vmul.f32 1.442695, %v3383_v57  ;;  %4467 = vmax.xlane.f32.xlu0 %v4466_v50  ;;  %v2462_v51 = vmul.f32 %v7031_v60, %v12279_v48  ;;  %v12280_v53 = vld [vmem:[#allocation27_spill] sm:$0xff]  ;;  %v2461_v50 = vmul.f32 %v7031_v60, %v12281_v2  ;;  %v12282_v26 = vld [vmem:[#allocation64_spill] sm:$0xff]  ;;  %v10052_v55 = vpop.f32.mrf.mxu1 }
 0x6f6   : > { %v10040_v0 = vpop.eup %7038  ;;  %v3581_v5 = vadd.f32 %v10038_v33, %v10036_v59  ;;  %12283 = vst [vmem:[#allocation85_spill] sm:$0xff] %v10052_v55  ;;  %v4475_v48 = vmax.f32 %v10018_v61, %v10026_v47  ;;  %v12293_v47 = vld [vmem:[#allocation83_spill] sm:$0xff] }
 0x6f7   : > { %12277 = vst [vmem:[#allocation86_spill] sm:$0xff] %v10040_v0  ;;  %v7041_v52 = vpop.eup %7040  ;;  %7054 = vpow2.f32 %v3484_v25  ;;  %v3584_v25 = vadd.f32 %v10040_v0, %v10030_v39  ;;  %v10062_v60 = vpop.f32.mrf.mxu1 }
 0x6f8   : > { %7056 = vpow2.f32 %v3486_v58  ;;  %4470 = vmax.xlane.f32.xlu1 %v4469_v13  ;;  %v2464_v9 = vmul.f32 %v7041_v52, %v12280_v53  ;;  %v2463_v24 = vmul.f32 %v7041_v52, %v12282_v26  ;;  %v7043_v57 = vpop.eup %7042  ;;  %v4472_v58 = vmax.f32 %v9993_v28, %v10010_v40  ;;  %12285 = vst [vmem:[#allocation67_spill] sm:$0xff] %v10062_v60  ;;  %v12288_v26 = vld [vmem:[#allocation33_spill] sm:$0xff]  ;;  %v12290_v40 = vld [vmem:[#allocation22_spill] sm:$0xff] }
 0x6f9   : > { %3582 = vadd.xlane.f32.xlu0 %v3581_v5  ;;  %v10077_v39 = vpop.f32.mrf.mxu1  ;;  %v2465_v61 = vmul.f32 %v7043_v57, %v12293_v47 }
 0x6fa   : > { %v2502_v8 = vpack.c.bf16 %v2464_v9, %v2462_v51  ;;  %v2501_v15 = vpack.c.bf16 %v2463_v24, %v2461_v50  ;;  %v2371_v31 = vpop.xlane.xlu1 %2370  ;;  %v10056_v19 = vpop.eup %7044  ;;  %v12287_v9 = vld [vmem:[#allocation57_spill] sm:$0xff]  ;;  %v12289_v24 = vld [vmem:[#allocation79_spill] sm:$0xff]  ;;  %12292 = vst [vmem:[#allocation4_spill] sm:$0xff] %v10077_v39 }
 0x6fb   : > { %7058 = vrcp.f32 %v2371_v31  ;;  %v2466_v2 = vmul.f32 %v7043_v57, %v12287_v9 }
 0x6fc   : > { %v10060_v13 = vpop.eup %7046  ;;  %2685 = vmatprep.mubr.bf16.mxu0 %v2502_v8  ;;  %3585 = vadd.xlane.f32.xlu1 %v3584_v25 }
 0x6fd   : > { %12284 = vst [vmem:[#allocation17_spill] sm:$0xff] %v10060_v13  ;;  %v10064_v5 = vpop.eup %7048  ;;  %2686 = vmatmul.mubr.bf16.gmra.mxu0 %v2501_v15  ;;  %4473 = vmax.xlane.f32.xlu0 %v4472_v58  ;;  %v12291_v58 = vld [vmem:[#allocation91_spill] sm:$0xff] }
 0x6fe   : > { %12286 = vst [vmem:[#allocation6_spill] sm:$0xff] %v10064_v5  ;;  %v7051_v52 = vpop.eup %7050  ;;  %v3310_v51 = vpop.xlane.xlu1 %3309  ;;  %v3587_v53 = vadd.f32 %v10064_v5, %v10060_v13 }
 0x6ff   : > { %v10071_v50 = vpop.eup %7052  ;;  %v3384_v8 = vsub.f32 %v12288_v26, %v3310_v51  ;;  %v3385_v25 = vsub.f32 %v12289_v24, %v3310_v51  ;;  %v2468_v15 = vmul.f32 %v7051_v52, %v12290_v40  ;;  %v2467_v28 = vmul.f32 %v7051_v52, %v12291_v58  ;;  %v12296_v51 = vld [vmem:[#allocation43_spill] sm:$0xff] }
 0x700   : > { %4476 = vmax.xlane.f32.xlu1 %v4475_v48  ;;  %v2374_v31 = vpop.xlane.xlu0 %2373  ;;  %v3590_v26 = vadd.f32 %v10071_v50, %v10056_v19  ;;  %v4478_v40 = vmax.f32 %v10044_v7, %v10052_v55  ;;  %v10086_v48 = vpop.f32.mrf.mxu1 }
 0x701   : > { %v3488_v0 = vmul.f32 1.442695, %v3384_v8  ;;  %v3490_v13 = vmul.f32 1.442695, %v3385_v25  ;;  %3588 = vadd.xlane.f32.xlu0 %v3587_v53  ;;  %7060 = vrcp.f32 %v2374_v31  ;;  %v2504_v9 = vpack.c.bf16 %v2468_v15, %v2466_v2  ;;  %12294 = vst [vmem:[#allocation62_spill] sm:$0xff] %v10086_v48  ;;  %v12299_v31 = vld [vmem:[#allocation81_spill] sm:$0xff] }
 0x702   : > { %v2503_v5 = vpack.c.bf16 %v2467_v28, %v2465_v61  ;;  %v12295_v28 = vld [vmem:[#allocation74_spill] sm:$0xff]  ;;  %v4481_v2 = vmax.f32 %v10062_v60, %v10077_v39  ;;  %v10096_v25 = vpop.f32.mrf.mxu1 }
 0x703   : > { %7062 = vpow2.f32 %v3488_v0  ;;  %2693 = vmatprep.mubr.bf16.mxu0 %v2504_v9  ;;  %12297 = vst [vmem:[#allocation26_spill] sm:$0xff] %v10096_v25 }
 0x704   : > { %v10084_v52 = vpop.eup %7054  ;;  %7064 = vpow2.f32 %v3490_v13  ;;  %3591 = vadd.xlane.f32.xlu1 %v3590_v26  ;;  %v3313_v47 = vpop.xlane.xlu0 %3312  ;;  %v12300_v26 = vld [vmem:[#allocation88_spill] sm:$0xff] }
 0x705   : > { %v10088_v57 = vpop.eup %7056  ;;  %2694 = vmatmul.mubr.bf16.gmra.mxu0 %v2503_v5  ;;  %4479 = vmax.xlane.f32.xlu0 %v4478_v40  ;;  %v3386_v61 = vsub.f32 %v12295_v28, %v3313_v47  ;;  %v3387_v53 = vsub.f32 %v12296_v51, %v3313_v47  ;;  %v4484_v5 = vmax.f32 %v10086_v48, %v10096_v25  ;;  %v10100_v15 = vpop.f32.mrf.mxu1  ;;  %v12301_v47 = vld [vmem:[#allocation80_spill] sm:$0xff] }
 0x706   : > { %v3593_v0 = vadd.f32 %v10088_v57, %v10084_v52  ;;  %12298 = vst [vmem:[#allocation59_spill] sm:$0xff] %v10100_v15 }
 0x707   : > { %v3492_v8 = vmul.f32 1.442695, %v3386_v61  ;;  %v3494_v24 = vmul.f32 1.442695, %v3387_v53  ;;  %v12302_v61 = vld [vmem:[#allocation21_spill] sm:$0xff] }
 0x708   : > { %4482 = vmax.xlane.f32.xlu1 %v4481_v2  ;;  %v7059_v13 = vpop.eup %7058 }
 0x709   : > { %7066 = vpow2.f32 %v3492_v8  ;;  %3594 = vadd.xlane.f32.xlu0 %v3593_v0  ;;  %v2470_v9 = vmul.f32 %v7059_v13, %v12299_v31  ;;  %v2469_v28 = vmul.f32 %v7059_v13, %v12301_v47  ;;  %v10110_v0 = vpop.f32.mrf.mxu1 }
 0x70a   : > { %7068 = vpow2.f32 %v3494_v24  ;;  %12304 = vst [vmem:[#allocation70_spill] sm:$0xff] %v10110_v0  ;;  %v4487_v13 = vmax.f32 %v10100_v15, %v10110_v0 }
 0x70b   : > { %v10114_v31 = vpop.f32.mrf.mxu1 }
 0x70c   : > { %12305 = vst [vmem:[#allocation71_spill] sm:$0xff] %v10114_v31 }
 0x70d   : > { %4485 = vmax.xlane.f32.xlu0 %v4484_v5 }
 0x70e   : > { %v7061_v58 = vpop.eup %7060 }
 0x70f   : > { %v2472_v40 = vmul.f32 %v7061_v58, %v12300_v26  ;;  %v2471_v51 = vmul.f32 %v7061_v58, %v12302_v61 }
 0x710   : > { %v10106_v53 = vpop.eup %7062 }
 0x711   : > { %12303 = vst [vmem:[#allocation36_spill] sm:$0xff] %v10106_v53  ;;  %v10108_v2 = vpop.eup %7064  ;;  %v2506_v8 = vpack.c.bf16 %v2472_v40, %v2470_v9  ;;  %v2505_v24 = vpack.c.bf16 %v2471_v51, %v2469_v28  ;;  %v10124_v40 = vpop.f32.mrf.mxu1 }
 0x712   : > { %v3596_v5 = vadd.f32 %v10108_v2, %v10106_v53  ;;  %12307 = vst [vmem:[#allocation54_spill] sm:$0xff] %v10124_v40  ;;  %v4490_v47 = vmax.f32 %v10114_v31, %v10124_v40 }
 0x713   : > { %2701 = vmatprep.mubr.bf16.mxu0 %v2506_v8  ;;  %v10130_v8 = vpop.f32.mrf.mxu1 }
 0x714   : > { %2702 = vmatmul.mubr.bf16.gmra.mxu0 %v2505_v24  ;;  %3597 = vadd.xlane.f32.xlu1 %v3596_v5 }
 0x716   : > { %v10116_v26 = vpop.eup %7066 }
 0x717   : > { %12306 = vst [vmem:[#allocation69_spill] sm:$0xff] %v10116_v26  ;;  %v10120_v58 = vpop.eup %7068 }
 0x718   : > { %4488 = vmax.xlane.f32.xlu1 %v4487_v13  ;;  %v3599_v9 = vadd.f32 %v10120_v58, %v10116_v26  ;;  %v10136_v13 = vpop.f32.mrf.mxu1 }
 0x71a   : > { %3600 = vadd.xlane.f32.xlu0 %v3599_v9 }
 0x71e   : > { %4491 = vmax.xlane.f32.xlu0 %v4490_v47  ;;  %v10140_v47 = vpop.f32.mrf.mxu1 }
 0x71f   : > { %12312 = vst [vmem:[#allocation46_spill] sm:$0xff] %v10140_v47 }
 0x720   : > { %v10148_v48 = vpop.f32.mrf.mxu1 }
 0x721   : > { %12315 = vst [vmem:[#allocation27_spill] sm:$0xff] %v10148_v48 }
 0x732   : > { %v6062_v28 = vpop.f32.mrf.mxu0 }
 0x734   : > { %v6063_v61 = vpop.f32.mrf.mxu0 }
 0x735   : > { %v10128_v51 = vadd.f32 %v6063_v61, %v6062_v28 }
 0x736   : > { %v10132_v24 = vpop.f32.mrf.mxu0 }
 0x737   : > { %12308 = vst [vmem:[#allocation72_spill] sm:$0xff] %v10128_v51  ;;  %12309 = vst [vmem:[#allocation35_spill] sm:$0xff] %v10132_v24 }
 0x738   : > { %v10134_v5 = vpop.f32.mrf.mxu0 }
 0x739   : > { %12310 = vst [vmem:[#allocation49_spill] sm:$0xff] %v10134_v5 }
 0x73a   : > { %v6068_v0 = vpop.f32.mrf.mxu0 }
 0x73b   : > { %v2380_v15 = vpop.xlane.xlu0 %2379 }
 0x73c   : > { %v6069_v25 = vpop.f32.mrf.mxu0  ;;  %7070 = vrcp.f32 %v2380_v15 }
 0x73d   : > { %v10138_v9 = vadd.f32 %v6069_v25, %v6068_v0  ;;  %v2377_v40 = vpop.xlane.xlu1 %2376 }
 0x73e   : > { %7072 = vrcp.f32 %v2377_v40  ;;  %v10142_v28 = vpop.f32.mrf.mxu0  ;;  %v10152_v40 = vpop.f32.mrf.mxu1 }
 0x73f   : > { %12311 = vst [vmem:[#allocation60_spill] sm:$0xff] %v10138_v9  ;;  %12313 = vst [vmem:[#allocation29_spill] sm:$0xff] %v10142_v28  ;;  %v3319_v61 = vpop.xlane.xlu0 %3318 }
 0x740   : > { %v10144_v51 = vpop.f32.mrf.mxu0  ;;  %v3390_v24 = vsub.f32 %v9705_v12, %v3319_v61  ;;  %v3391_v5 = vsub.f32 %v9715_v36, %v3319_v61  ;;  %12316 = vst [vmem:[#allocation47_spill] sm:$0xff] %v10152_v40 }
 0x741   : > { %12314 = vst [vmem:[#allocation42_spill] sm:$0xff] %v10144_v51  ;;  %v3316_v31 = vpop.xlane.xlu1 %3315 }
 0x742   : > { %v3388_v15 = vsub.f32 %v9695_v30, %v3316_v31  ;;  %v3389_v25 = vsub.f32 %v9701_v56, %v3316_v31  ;;  %v3500_v0 = vmul.f32 1.442695, %v3390_v24  ;;  %v3502_v9 = vmul.f32 1.442695, %v3391_v5  ;;  %v6074_v39 = vpop.f32.mrf.mxu0  ;;  %v10158_v30 = vpop.f32.mrf.mxu1 }
 0x743   : > { %12319 = vst [vmem:[#allocation33_spill] sm:$0xff] %v10158_v30 }
 0x744   : > { %v3496_v28 = vmul.f32 1.442695, %v3388_v15  ;;  %v3498_v60 = vmul.f32 1.442695, %v3389_v25  ;;  %7074 = vpow2.f32 %v3500_v0  ;;  %v6075_v51 = vpop.f32.mrf.mxu0  ;;  %v10168_v26 = vpop.f32.mrf.mxu1 }
 0x745   : > { %7076 = vpow2.f32 %v3502_v9  ;;  %v10154_v12 = vadd.f32 %v6075_v51, %v6074_v39  ;;  %v3538_v36 = vpop.xlane.xlu1 %3537  ;;  %12324 = vst [vmem:[#allocation22_spill] sm:$0xff] %v10168_v26 }
 0x746   : > { %7078 = vpow2.f32 %v3496_v28  ;;  %v10156_v61 = vpop.f32.mrf.mxu0  ;;  %v12321_v28 = vld [vmem:[#allocation28_spill] sm:$0xff] }
 0x747   : > { %12317 = vst [vmem:[#allocation64_spill] sm:$0xff] %v10154_v12  ;;  %12318 = vst [vmem:[#allocation57_spill] sm:$0xff] %v10156_v61  ;;  %7080 = vpow2.f32 %v3498_v60 }
 0x748   : > { %7082 = vrcp.f32 %v3538_v36  ;;  %v10160_v56 = vpop.f32.mrf.mxu0  ;;  %v12322_v36 = vld [vmem:[#allocation61_spill] sm:$0xff] }
 0x749   : > { %12320 = vst [vmem:[#allocation79_spill] sm:$0xff] %v10160_v56  ;;  %v7071_v31 = vpop.eup %7070  ;;  %v3322_v24 = vpop.xlane.xlu1 %3321  ;;  %v12323_v56 = vld [vmem:[#allocation50_spill] sm:$0xff] }
 0x74a   : > { %v3541_v5 = vpop.xlane.xlu0 %3540  ;;  %v3392_v15 = vsub.f32 %v9728_v6, %v3322_v24  ;;  %v3393_v25 = vsub.f32 %v9738_v63, %v3322_v24  ;;  %v6080_v39 = vpop.f32.mrf.mxu0  ;;  %v2476_v51 = vmul.f32 %v7071_v31, %v9798_v45  ;;  %v2475_v0 = vmul.f32 %v7071_v31, %v12321_v28 }
 0x74b   : > { %7084 = vrcp.f32 %v3541_v5  ;;  %v7073_v9 = vpop.eup %7072 }
 0x74c   : > { %v3504_v60 = vmul.f32 1.442695, %v3392_v15  ;;  %v3506_v61 = vmul.f32 1.442695, %v3393_v25  ;;  %v6081_v12 = vpop.f32.mrf.mxu0  ;;  %v2474_v55 = vmul.f32 %v7073_v9, %v12322_v36  ;;  %v2473_v7 = vmul.f32 %v7073_v9, %v12323_v56  ;;  %v10176_v25 = vpop.f32.mrf.mxu1 }
 0x74d   : > { %v10170_v53 = vadd.f32 %v6081_v12, %v6080_v39  ;;  %v3544_v6 = vpop.xlane.xlu1 %3543  ;;  %12326 = vst [vmem:[#allocation83_spill] sm:$0xff] %v10176_v25 }
 0x74e   : > { %7086 = vpow2.f32 %v3504_v60  ;;  %v3325_v63 = vpop.xlane.xlu0 %3324  ;;  %v2508_v24 = vpack.c.bf16 %v2476_v51, %v2474_v55  ;;  %v2507_v5 = vpack.c.bf16 %v2475_v0, %v2473_v7 }
 0x74f   : > { %12325 = vst [vmem:[#allocation91_spill] sm:$0xff] %v10170_v53  ;;  %7088 = vpow2.f32 %v3506_v61  ;;  %v3394_v45 = vsub.f32 %v9743_v17, %v3325_v63  ;;  %v3395_v31 = vsub.f32 %v9751_v22, %v3325_v63  ;;  %v10184_v22 = vpop.f32.mrf.mxu1  ;;  %v4493_v53 = vmax.f32 %v10130_v8, %v10136_v13 }
 0x750   : > { %2709 = vmatprep.mubr.bf16.mxu0 %v2508_v24  ;;  %7090 = vrcp.f32 %v3544_v6  ;;  %12327 = vst [vmem:[#allocation74_spill] sm:$0xff] %v10184_v22  ;;  %v4496_v24 = vmax.f32 %v10140_v47, %v10148_v48 }
 0x751   : > { %v10174_v15 = vpop.eup %7074  ;;  %v3508_v56 = vmul.f32 1.442695, %v3394_v45  ;;  %v3510_v9 = vmul.f32 1.442695, %v3395_v31  ;;  %v3328_v12 = vpop.xlane.xlu1 %3327  ;;  %2710 = vmatmul.mubr.bf16.gmra.mxu0 %v2507_v5 }
 0x752   : > { %v10178_v39 = vpop.eup %7076  ;;  %v3396_v55 = vsub.f32 %v9755_v23, %v3328_v12  ;;  %v3397_v7 = vsub.f32 %v9761_v11, %v3328_v12  ;;  %v3547_v61 = vpop.xlane.xlu0 %3546  ;;  %v12330_v12 = vld [vmem:[#allocation68_spill] sm:$0xff] }
 0x753   : > { %v10182_v17 = vpop.eup %7078  ;;  %7092 = vpow2.f32 %v3508_v56  ;;  %v3605_v51 = vadd.f32 %v10178_v39, %v10174_v15  ;;  %v10194_v5 = vpop.f32.mrf.mxu1  ;;  %v12329_v56 = vld [vmem:[#allocation58_spill] sm:$0xff] }
 0x754   : > { %v10188_v28 = vpop.eup %7080  ;;  %7094 = vpow2.f32 %v3510_v9  ;;  %v3512_v0 = vmul.f32 1.442695, %v3396_v55  ;;  %v3514_v60 = vmul.f32 1.442695, %v3397_v7  ;;  %12328 = vst [vmem:[#allocation43_spill] sm:$0xff] %v10194_v5  ;;  %v12331_v7 = vld [vmem:[#allocation90_spill] sm:$0xff] }
 0x755   : > { %v7083_v36 = vpop.eup %7082  ;;  %7096 = vrcp.f32 %v3547_v61  ;;  %v3550_v6 = vpop.xlane.xlu1 %3549  ;;  %v3602_v23 = vadd.f32 %v10188_v28, %v10182_v17  ;;  %3606 = vadd.xlane.f32.xlu0 %v3605_v51  ;;  %v12332_v51 = vld [vmem:[#allocation63_spill] sm:$0xff] }
 0x756   : > { %7098 = vpow2.f32 %v3512_v0  ;;  %v3331_v11 = vpop.xlane.xlu0 %3330  ;;  %v3664_v9 = vmul.f32 %v7083_v36, %v12329_v56  ;;  %v3665_v61 = vmul.f32 %v7083_v36, %v12331_v7  ;;  %v10208_v36 = vpop.f32.mrf.mxu1  ;;  %v4499_v7 = vmax.f32 %v10152_v40, %v10158_v30 }
 0x757   : > { %7100 = vpow2.f32 %v3514_v60  ;;  %v3398_v45 = vsub.f32 %v9765_v42, %v3331_v11  ;;  %v3399_v31 = vsub.f32 %v9769_v3, %v3331_v11  ;;  %3603 = vadd.xlane.f32.xlu1 %v3602_v23  ;;  %12333 = vst [vmem:[#allocation81_spill] sm:$0xff] %v10208_v36 }
 0x758   : > { %v7085_v63 = vpop.eup %7084  ;;  %7102 = vrcp.f32 %v3550_v6 }
 0x759   : > { %v3666_v55 = vmul.f32 %v7085_v63, %v12330_v12  ;;  %v3667_v0 = vmul.f32 %v7085_v63, %v12332_v51  ;;  %v3516_v48 = vmul.f32 1.442695, %v3398_v45  ;;  %v3518_v47 = vmul.f32 1.442695, %v3399_v31  ;;  %v3334_v60 = vpop.xlane.xlu1 %3333  ;;  %4497 = vmax.xlane.f32.xlu0 %v4496_v24 }
 0x75a   : > { %v3400_v42 = vsub.f32 %v9772_v1, %v3334_v60  ;;  %v3401_v3 = vsub.f32 %v9774_v18, %v3334_v60  ;;  %v3553_v23 = vpop.xlane.xlu0 %3552 }
 0x75b   : > { %v3729_v11 = vpack.c.bf16 %v3667_v0, %v3665_v61  ;;  %v3728_v56 = vpack.c.bf16 %v3666_v55, %v3664_v9  ;;  %v10206_v12 = vpop.eup %7086  ;;  %7104 = vpow2.f32 %v3516_v48  ;;  %4494 = vmax.xlane.f32.xlu1 %v4493_v53  ;;  %v10214_v9 = vpop.f32.mrf.mxu1 }
 0x75c   : > { %v10210_v63 = vpop.eup %7088  ;;  %7106 = vpow2.f32 %v3518_v47  ;;  %v3520_v6 = vmul.f32 1.442695, %v3400_v42  ;;  %v3522_v45 = vmul.f32 1.442695, %v3401_v3  ;;  %12334 = vst [vmem:[#allocation88_spill] sm:$0xff] %v10214_v9 }
 0x75d   : > { %3792 = vmatprep.mubr.bf16.mxu0 %v3729_v11  ;;  %7108 = vrcp.f32 %v3553_v23  ;;  %v3556_v24 = vpop.xlane.xlu1 %3555  ;;  %v3608_v1 = vadd.f32 %v10210_v63, %v10206_v12  ;;  %v7091_v18 = vpop.eup %7090 }
 0x75e   : > { %3793 = vmatmul.mubr.bf16.vlgmr.msra.gmra.mxu0 %v3728_v56  ;;  %7110 = vpow2.f32 %v3520_v6  ;;  %v3337_v31 = vpop.xlane.xlu0 %3336  ;;  %v10224_v61 = vpop.f32.mrf.mxu1  ;;  %v3669_v42 = vmul.f32 %v7091_v18, %v9844_v62 }
 0x75f   : > { %7112 = vpow2.f32 %v3522_v45  ;;  %v3402_v48 = vsub.f32 %v9776_v21, %v3337_v31  ;;  %v3403_v53 = vsub.f32 %v9782_v34, %v3337_v31  ;;  %3609 = vadd.xlane.f32.xlu1 %v3608_v1  ;;  %12335 = vst [vmem:[#allocation80_spill] sm:$0xff] %v10224_v61  ;;  %v12336_v45 = vld [vmem:[#allocation92_spill] sm:$0xff]  ;;  %v12337_v31 = vld [vmem:[#allocation82_spill] sm:$0xff] }
 0x760   : > { %v10218_v47 = vpop.eup %7092  ;;  %7114 = vrcp.f32 %v3556_v24  ;;  %v3668_v1 = vmul.f32 %v7091_v18, %v12336_v45  ;;  %v4502_v18 = vmax.f32 %v10168_v26, %v10176_v25 }
 0x761   : > { %v10220_v55 = vpop.eup %7094  ;;  %v3524_v51 = vmul.f32 1.442695, %v3402_v48  ;;  %v3526_v0 = vmul.f32 1.442695, %v3403_v53  ;;  %v3340_v60 = vpop.xlane.xlu1 %3339 }
 0x762   : > { %v7097_v3 = vpop.eup %7096  ;;  %v3404_v21 = vsub.f32 %v9786_v20, %v3340_v60  ;;  %v3405_v34 = vsub.f32 %v9788_v38, %v3340_v60  ;;  %v3559_v23 = vpop.xlane.xlu0 %3558  ;;  %v3611_v11 = vadd.f32 %v10220_v55, %v10218_v47 }
 0x763   : > { %v10231_v56 = vpop.eup %7098  ;;  %7116 = vpow2.f32 %v3524_v51  ;;  %4500 = vmax.xlane.f32.xlu1 %v4499_v7  ;;  %v3671_v6 = vmul.f32 %v7097_v3, %v9870_v16  ;;  %v3670_v62 = vmul.f32 %v7097_v3, %v12337_v31  ;;  %v10238_v38 = vpop.f32.mrf.mxu1 }
 0x764   : > { %v10236_v48 = vpop.eup %7100  ;;  %7118 = vpow2.f32 %v3526_v0  ;;  %v3528_v20 = vmul.f32 1.442695, %v3404_v21  ;;  %v3530_v24 = vmul.f32 1.442695, %v3405_v34  ;;  %3612 = vadd.xlane.f32.xlu0 %v3611_v11  ;;  %12338 = vst [vmem:[#allocation21_spill] sm:$0xff] %v10238_v38  ;;  %v4505_v34 = vmax.f32 %v10184_v22, %v10194_v5 }
 0x765   : > { %7120 = vrcp.f32 %v3559_v23  ;;  %v3731_v53 = vpack.c.bf16 %v3671_v6, %v3669_v42  ;;  %v3562_v60 = vpop.xlane.xlu1 %3561  ;;  %v3730_v30 = vpack.c.bf16 %v3670_v62, %v3668_v1  ;;  %v3614_v7 = vadd.f32 %v10236_v48, %v10231_v56  ;;  %v7103_v16 = vpop.eup %7102 }
 0x766   : > { %7122 = vpow2.f32 %v3528_v20  ;;  %v3343_v51 = vpop.xlane.xlu0 %3342  ;;  %v10252_v23 = vpop.f32.mrf.mxu1  ;;  %v3673_v1 = vmul.f32 %v7103_v16, %v9872_v14 }
 0x767   : > { %7124 = vpow2.f32 %v3530_v24  ;;  %3800 = vmatprep.mubr.bf16.mxu0 %v3731_v53  ;;  %v3406_v0 = vsub.f32 %v9794_v49, %v3343_v51  ;;  %v3407_v3 = vsub.f32 %v9802_v10, %v3343_v51  ;;  %3615 = vadd.xlane.f32.xlu1 %v3614_v7  ;;  %12339 = vst [vmem:[#allocation28_spill] sm:$0xff] %v10252_v23  ;;  %v12340_v24 = vld [vmem:[#allocation32_spill] sm:$0xff]  ;;  %v12341_v7 = vld [vmem:[#allocation87_spill] sm:$0xff] }
 0x768   : > { %v10246_v21 = vpop.eup %7104  ;;  %3801 = vmatmul.mubr.bf16.gmra.mxu0 %v3730_v30  ;;  %4503 = vmax.xlane.f32.xlu0 %v4502_v18  ;;  %7126 = vrcp.f32 %v3562_v60  ;;  %v3672_v18 = vmul.f32 %v7103_v16, %v12341_v7  ;;  %v12342_v51 = vld [vmem:[#allocation84_spill] sm:$0xff] }
 0x769   : > { %v10248_v42 = vpop.eup %7106  ;;  %v3532_v11 = vmul.f32 1.442695, %v3406_v0  ;;  %v3534_v6 = vmul.f32 1.442695, %v3407_v3  ;;  %v4453_v45 = vpop.xlane.xlu1 %4452 }
 0x76a   : > { %v7109_v49 = vpop.eup %7108  ;;  %v4547_v10 = vsub.f32 %v9816_v32, %v4453_v45  ;;  %v4548_v31 = vsub.f32 %v9827_v35, %v4453_v45  ;;  %v3565_v30 = vpop.xlane.xlu0 %3564  ;;  %v3617_v62 = vadd.f32 %v10248_v42, %v10246_v21 }
 0x76b   : > { %v10259_v20 = vpop.eup %7110  ;;  %7128 = vpow2.f32 %v3532_v11  ;;  %4506 = vmax.xlane.f32.xlu1 %v4505_v34  ;;  %v3675_v53 = vmul.f32 %v7109_v49, %v12340_v24  ;;  %v3674_v14 = vmul.f32 %v7109_v49, %v12342_v51  ;;  %v10266_v35 = vpop.f32.mrf.mxu1  ;;  %v4508_v11 = vmax.f32 %v10208_v36, %v10214_v9 }
 0x76c   : > { %v10264_v0 = vpop.eup %7112  ;;  %7130 = vpow2.f32 %v3534_v6  ;;  %v4611_v32 = vmul.f32 1.442695, %v4547_v10  ;;  %3618 = vadd.xlane.f32.xlu0 %v3617_v62  ;;  %12343 = vst [vmem:[#allocation61_spill] sm:$0xff] %v10266_v35  ;;  %v4613_v16 = vmul.f32 1.442695, %v4548_v31  ;;  %v4511_v62 = vmax.f32 %v10224_v61, %v10238_v38 }
 0x76d   : > { %7132 = vrcp.f32 %v3565_v30  ;;  %v3733_v60 = vpack.c.bf16 %v3675_v53, %v3673_v1  ;;  %v3568_v3 = vpop.xlane.xlu1 %3567  ;;  %v3732_v45 = vpack.c.bf16 %v3674_v14, %v3672_v18  ;;  %v3620_v34 = vadd.f32 %v10264_v0, %v10259_v20  ;;  %v7115_v49 = vpop.eup %7114 }
 0x76e   : > { %v4456_v24 = vpop.xlane.xlu0 %4455  ;;  %v10272_v7 = vpop.f32.mrf.mxu1  ;;  %7134 = vpow2.f32 %v4611_v32  ;;  %v3677_v14 = vmul.f32 %v7115_v49, %v9900_v41 }
 0x76f   : > { %12344 = vst [vmem:[#allocation50_spill] sm:$0xff] %v10272_v7  ;;  %3808 = vmatprep.mubr.bf16.mxu0 %v3733_v60  ;;  %v4549_v6 = vsub.f32 %v9840_v27, %v4456_v24  ;;  %v4550_v10 = vsub.f32 %v9851_v43, %v4456_v24  ;;  %3621 = vadd.xlane.f32.xlu1 %v3620_v34  ;;  %7136 = vpow2.f32 %v4613_v16  ;;  %v12346_v34 = vld [vmem:[#allocation9_spill] sm:$0xff] }
 0x770   : > { %v10276_v1 = vpop.eup %7116  ;;  %3809 = vmatmul.mubr.bf16.gmra.mxu0 %v3732_v45  ;;  %4509 = vmax.xlane.f32.xlu0 %v4508_v11  ;;  %v10289_v45 = vpop.f32.mrf.mxu1  ;;  %7138 = vrcp.f32 %v3568_v3  ;;  %v12347_v11 = vld [vmem:[#allocation38_spill] sm:$0xff]  ;;  %v4514_v3 = vmax.f32 %v10252_v23, %v10266_v35  ;;  %v12356_v35 = vld [vmem:[#allocation5_spill] sm:$0xff] }
 0x771   : > { %v10278_v30 = vpop.eup %7118  ;;  %v4615_v31 = vmul.f32 1.442695, %v4549_v6  ;;  %v10282_v53 = vpop.xlane.xlu1 %4458  ;;  %v4617_v51 = vmul.f32 1.442695, %v4550_v10  ;;  %12345 = vst [vmem:[#allocation58_spill] sm:$0xff] %v10289_v45  ;;  %v3676_v24 = vmul.f32 %v7115_v49, %v12347_v11  ;;  %v12348_v6 = vld [vmem:[#allocation24_spill] sm:$0xff] }
 0x772   : > { %v7121_v18 = vpop.eup %7120  ;;  %v3571_v27 = vpop.xlane.xlu0 %3570  ;;  %v3623_v43 = vadd.f32 %v10278_v30, %v10276_v1 }
 0x773   : > { %v10287_v60 = vpop.eup %7122  ;;  %4512 = vmax.xlane.f32.xlu1 %v4511_v62  ;;  %v3679_v32 = vmul.f32 %v7121_v18, %v12346_v34  ;;  %v3678_v9 = vmul.f32 %v7121_v18, %v12348_v6  ;;  %7140 = vpow2.f32 %v4615_v31  ;;  %v10300_v62 = vpop.f32.mrf.mxu0 }
 0x774   : > { %v10294_v16 = vpop.eup %7124  ;;  %3624 = vadd.xlane.f32.xlu0 %v3623_v43  ;;  %7142 = vrcp.f32 %v3571_v27  ;;  %12349 = vst [vmem:[#allocation68_spill] sm:$0xff] %v10300_v62  ;;  %v10304_v34 = vpop.f32.mrf.mxu1  ;;  %v4517_v27 = vmax.f32 %v10272_v7, %v10289_v45 }
 0x775   : > { %v3735_v10 = vpack.c.bf16 %v3679_v32, %v3677_v14  ;;  %v3574_v38 = vpop.xlane.xlu1 %3573  ;;  %v3734_v41 = vpack.c.bf16 %v3678_v9, %v3676_v24  ;;  %v3626_v61 = vadd.f32 %v10294_v16, %v10287_v60  ;;  %7144 = vpow2.f32 %v4617_v51  ;;  %v7127_v18 = vpop.eup %7126  ;;  %12350 = vst [vmem:[#allocation90_spill] sm:$0xff] %v10304_v34  ;;  %v12353_v24 = vld [vmem:[#allocation77_spill] sm:$0xff] }
 0x776   : > { %v10302_v49 = vpop.xlane.xlu0 %4461  ;;  %v10314_v51 = vpop.f32.mrf.mxu0  ;;  %7146 = vrcp.f32 %v3574_v38  ;;  %v3681_v6 = vmul.f32 %v7127_v18, %v12353_v24 }
 0x777   : > { %3816 = vmatprep.mubr.bf16.mxu0 %v3735_v10  ;;  %3627 = vadd.xlane.f32.xlu1 %v3626_v61  ;;  %12351 = vst [vmem:[#allocation63_spill] sm:$0xff] %v10314_v51  ;;  %v10318_v61 = vpop.f32.mrf.mxu1  ;;  %v12354_v10 = vld [vmem:[#allocation41_spill] sm:$0xff] }
 0x778   : > { %v10306_v31 = vpop.eup %7128  ;;  %3817 = vmatmul.mubr.bf16.gmra.mxu0 %v3734_v41  ;;  %4515 = vmax.xlane.f32.xlu0 %v4514_v3  ;;  %12352 = vst [vmem:[#allocation92_spill] sm:$0xff] %v10318_v61  ;;  %v12355_v3 = vld [vmem:[#allocation78_spill] sm:$0xff]  ;;  %v4520_v25 = vmax.f32 %v10304_v34, %v10318_v61 }
 0x779   : > { %v10308_v9 = vpop.eup %7130  ;;  %v10312_v43 = vpop.xlane.xlu1 %4464  ;;  %v3680_v62 = vmul.f32 %v7127_v18, %v12355_v3 }
 0x77a   : > { %v7133_v14 = vpop.eup %7132  ;;  %v3577_v32 = vpop.xlane.xlu0 %3576  ;;  %v3629_v11 = vadd.f32 %v10308_v9, %v10306_v31 }
 0x77b   : > { %4518 = vmax.xlane.f32.xlu1 %v4517_v27  ;;  %v3683_v41 = vmul.f32 %v7133_v14, %v12354_v10  ;;  %v3682_v45 = vmul.f32 %v7133_v14, %v12356_v35  ;;  %v6086_v7 = vpop.f32.mrf.mxu0  ;;  %7148 = vrcp.f32 %v3577_v32  ;;  %v10324_v36 = vpop.eup %7134 }
 0x77c   : > { %3630 = vadd.xlane.f32.xlu0 %v3629_v11  ;;  %v10330_v24 = vpop.eup %7136 }
 0x77d   : > { %v3737_v51 = vpack.c.bf16 %v3683_v41, %v3681_v6  ;;  %v3580_v38 = vpop.xlane.xlu1 %3579  ;;  %v3736_v23 = vpack.c.bf16 %v3682_v45, %v3680_v62  ;;  %v6087_v27 = vpop.f32.mrf.mxu0  ;;  %v4739_v10 = vadd.f32 %v10330_v24, %v10324_v36  ;;  %v12361_v41 = vld [vmem:[#allocation25_spill] sm:$0xff] }
 0x77e   : > { %v10328_v5 = vpop.xlane.xlu0 %4467  ;;  %v10332_v18 = vadd.f32 %v6087_v27, %v6086_v7  ;;  %v7139_v35 = vpop.eup %7138  ;;  %7150 = vrcp.f32 %v3580_v38  ;;  %v12362_v27 = vld [vmem:[#allocation30_spill] sm:$0xff] }
 0x77f   : > { %3824 = vmatprep.mubr.bf16.mxu0 %v3737_v51  ;;  %v10334_v14 = vpop.f32.mrf.mxu0  ;;  %v3685_v7 = vmul.f32 %v7139_v35, %v9956_v46  ;;  %v3684_v3 = vmul.f32 %v7139_v35, %v12361_v41 }
 0x780   : > { %12357 = vst [vmem:[#allocation82_spill] sm:$0xff] %v10332_v18  ;;  %3825 = vmatmul.mubr.bf16.gmra.mxu0 %v3736_v23  ;;  %4521 = vmax.xlane.f32.xlu0 %v4520_v25  ;;  %12358 = vst [vmem:[#allocation32_spill] sm:$0xff] %v10334_v14  ;;  %v10336_v32 = vpop.eup %7140  ;;  %v12360_v23 = vld [vmem:[#allocation31_spill] sm:$0xff] }
 0x781   : > { %v10338_v45 = vpop.xlane.xlu1 %4470  ;;  %v7143_v62 = vpop.eup %7142 }
 0x782   : > { %v10340_v11 = vpop.f32.mrf.mxu0  ;;  %v3583_v6 = vpop.xlane.xlu0 %3582  ;;  %v3687_v25 = vmul.f32 %v7143_v62, %v12360_v23  ;;  %v3686_v14 = vmul.f32 %v7143_v62, %v12362_v27 }
 0x783   : > { %12359 = vst [vmem:[#allocation87_spill] sm:$0xff] %v10340_v11  ;;  %v10344_v51 = vpop.eup %7144  ;;  %7152 = vrcp.f32 %v3583_v6 }
 0x784   : > { %4740 = vadd.xlane.f32.xlu0 %v4739_v10  ;;  %v3739_v38 = vpack.c.bf16 %v3687_v25, %v3685_v7  ;;  %v3738_v11 = vpack.c.bf16 %v3686_v14, %v3684_v3  ;;  %v4742_v22 = vadd.f32 %v10344_v51, %v10336_v32  ;;  %v7147_v26 = vpop.eup %7146  ;;  %v12366_v25 = vld [vmem:[#allocation19_spill] sm:$0xff] }
 0x785   : > { %v6092_v18 = vpop.f32.mrf.mxu0  ;;  %v3586_v61 = vpop.xlane.xlu1 %3585  ;;  %v3689_v14 = vmul.f32 %v7147_v26, %v9986_v54  ;;  %v3688_v41 = vmul.f32 %v7147_v26, %v12366_v25 }
 0x786   : > { %v10350_v34 = vpop.xlane.xlu0 %4473  ;;  %3832 = vmatprep.mubr.bf16.mxu0 %v3739_v38  ;;  %7154 = vrcp.f32 %v3586_v61 }
 0x787   : > { %v6093_v46 = vpop.f32.mrf.mxu0 }
 0x788   : > { %v10354_v40 = vadd.f32 %v6093_v46, %v6092_v18  ;;  %3833 = vmatmul.mubr.bf16.gmra.mxu0 %v3738_v11  ;;  %4743 = vadd.xlane.f32.xlu0 %v4742_v22  ;;  %v7149_v62 = vpop.eup %7148  ;;  %v12367_v11 = vld [vmem:[#allocation51_spill] sm:$0xff] }
 0x789   : > { %v10356_v35 = vpop.f32.mrf.mxu0  ;;  %v10358_v6 = vpop.xlane.xlu1 %4476  ;;  %v3691_v23 = vmul.f32 %v7149_v62, %v10012_v37  ;;  %v3690_v18 = vmul.f32 %v7149_v62, %v10008_v4  ;;  %v12369_v37 = vld [vmem:[#allocation45_spill] sm:$0xff] }
 0x78a   : > { %12363 = vst [vmem:[#allocation84_spill] sm:$0xff] %v10354_v40  ;;  %12364 = vst [vmem:[#allocation9_spill] sm:$0xff] %v10356_v35  ;;  %v3589_v10 = vpop.xlane.xlu0 %3588 }
 0x78b   : > { %v10361_v7 = vpop.f32.mrf.mxu0  ;;  %7156 = vrcp.f32 %v3589_v10  ;;  %v3741_v3 = vpack.c.bf16 %v3691_v23, %v3689_v14  ;;  %v3740_v27 = vpack.c.bf16 %v3690_v18, %v3688_v41  ;;  %v7151_v46 = vpop.eup %7150  ;;  %v12372_v18 = vld [vmem:[#allocation12_spill] sm:$0xff] }
 0x78c   : > { %12365 = vst [vmem:[#allocation38_spill] sm:$0xff] %v10361_v7  ;;  %4993 = vrot.lane.b32.xlu1 %v12367_v11, %s7381_s13  ;;  %v3693_v10 = vmul.f32 %v7151_v46, %v10014_v44  ;;  %v3692_v25 = vmul.f32 %v7151_v46, %v10002_v29 }
 0x78d   : > { %v6098_v22 = vpop.f32.mrf.mxu0  ;;  %3840 = vmatprep.mubr.bf16.mxu0 %v3741_v3  ;;  %v3592_v61 = vpop.xlane.xlu1 %3591 }
 0x78e   : > { %v10368_v38 = vpop.xlane.xlu0 %4479  ;;  %7158 = vrcp.f32 %v3592_v61 }
 0x78f   : > { %v6099_v54 = vpop.f32.mrf.mxu0 }
 0x790   : > { %v10370_v7 = vadd.f32 %v6099_v54, %v6098_v22  ;;  %3841 = vmatmul.mubr.bf16.gmra.mxu0 %v3740_v27  ;;  %4991 = vrot.lane.b32.xlu1 %v12369_v37, %s7381_s13  ;;  %v7153_v26 = vpop.eup %7152 }
 0x791   : > { %v10374_v4 = vpop.f32.mrf.mxu0  ;;  %v3695_v23 = vmul.f32 %v7153_v26, %v10038_v33  ;;  %v3694_v41 = vmul.f32 %v7153_v26, %v10036_v59  ;;  %v10388_v37 = vpop.xlane.xlu1 %4482  ;;  %v12376_v59 = vld [vmem:[#allocation86_spill] sm:$0xff] }
 0x792   : > { %12368 = vst [vmem:[#allocation24_spill] sm:$0xff] %v10370_v7  ;;  %12370 = vst [vmem:[#allocation77_spill] sm:$0xff] %v10374_v4  ;;  %v3595_v62 = vpop.xlane.xlu0 %3594  ;;  %v12377_v26 = vld [vmem:[#allocation6_spill] sm:$0xff] }
 0x793   : > { %v10377_v14 = vpop.f32.mrf.mxu0  ;;  %7160 = vrcp.f32 %v3595_v62  ;;  %v3743_v22 = vpack.c.bf16 %v3695_v23, %v3693_v10  ;;  %v3742_v3 = vpack.c.bf16 %v3694_v41, %v3692_v25  ;;  %v7155_v54 = vpop.eup %7154  ;;  %v12379_v23 = vld [vmem:[#allocation17_spill] sm:$0xff] }
 0x794   : > { %12371 = vst [vmem:[#allocation41_spill] sm:$0xff] %v10377_v14  ;;  %4975 = vrot.lane.b32.xlu1 %v12372_v18, %s7381_s13  ;;  %v3697_v46 = vmul.f32 %v7155_v54, %v12376_v59  ;;  %v12378_v18 = vld [vmem:[#allocation16_spill] sm:$0xff] }
 0x795   : > { %v6104_v11 = vpop.f32.mrf.mxu0  ;;  %3848 = vmatprep.mubr.bf16.mxu0 %v3743_v22  ;;  %v3696_v10 = vmul.f32 %v7155_v54, %v12378_v18 }
 0x797   : > { %v6105_v27 = vpop.f32.mrf.mxu0 }
 0x798   : > { %v10384_v44 = vadd.f32 %v6105_v27, %v6104_v11  ;;  %3849 = vmatmul.mubr.bf16.gmra.mxu0 %v3742_v3  ;;  %v7157_v33 = vpop.eup %7156  ;;  %v10396_v27 = vpop.xlane.xlu0 %4485  ;;  %v12380_v3 = vld [vmem:[#allocation15_spill] sm:$0xff] }
 0x799   : > { %v10386_v61 = vpop.f32.mrf.mxu0  ;;  %v3699_v62 = vmul.f32 %v7157_v33, %v12377_v26  ;;  %v3698_v25 = vmul.f32 %v7157_v33, %v12379_v23 }
 0x79a   : > { %12373 = vst [vmem:[#allocation78_spill] sm:$0xff] %v10384_v44  ;;  %12374 = vst [vmem:[#allocation5_spill] sm:$0xff] %v10386_v61 }
 0x79b   : > { %v10390_v29 = vpop.f32.mrf.mxu0  ;;  %v3745_v22 = vpack.c.bf16 %v3699_v62, %v3697_v46  ;;  %v3744_v11 = vpack.c.bf16 %v3698_v25, %v3696_v10 }
 0x79c   : > { %12375 = vst [vmem:[#allocation31_spill] sm:$0xff] %v10390_v29  ;;  %v7159_v29 = vpop.eup %7158 }
 0x79d   : > { %v6110_v41 = vpop.f32.mrf.mxu0  ;;  %3856 = vmatprep.mubr.bf16.mxu0 %v3745_v22  ;;  %v3598_v44 = vpop.xlane.xlu1 %3597  ;;  %v3701_v26 = vmul.f32 %v7159_v29, %v10071_v50  ;;  %v3700_v18 = vmul.f32 %v7159_v29, %v10056_v19  ;;  %v12387_v50 = vld [vmem:[#allocation73_spill] sm:$0xff] }
 0x79e   : > { %4977 = vrot.lane.b32.xlu0 %v12380_v3, %s7381_s13  ;;  %7162 = vrcp.f32 %v3598_v44  ;;  %v12385_v44 = vld [vmem:[#allocation76_spill] sm:$0xff]  ;;  %v4553_v19 = vsub.f32 %v12387_v50, %v10302_v49 }
 0x79f   : > { %v6111_v61 = vpop.f32.mrf.mxu0 }
 0x7a0   : > { %v10400_v14 = vadd.f32 %v6111_v61, %v6110_v41  ;;  %3857 = vmatmul.mubr.bf16.gmra.mxu0 %v3744_v11  ;;  %v7161_v54 = vpop.eup %7160  ;;  %v12384_v41 = vld [vmem:[#allocation89_spill] sm:$0xff]  ;;  %v4552_v11 = vsub.f32 %v12385_v44, %v10282_v53 }
 0x7a1   : > { %v10402_v59 = vpop.f32.mrf.mxu0  ;;  %v3703_v62 = vmul.f32 %v7161_v54, %v10088_v57  ;;  %v3702_v10 = vmul.f32 %v7161_v54, %v10084_v52  ;;  %v4551_v22 = vsub.f32 %v12384_v41, %v10282_v53  ;;  %v12389_v54 = vld [vmem:[#allocation11_spill] sm:$0xff]  ;;  %v4623_v53 = vmul.f32 1.442695, %v4553_v19  ;;  %v12394_v19 = vld [vmem:[#allocation69_spill] sm:$0xff] }
 0x7a2   : > { %12381 = vst [vmem:[#allocation25_spill] sm:$0xff] %v10400_v14  ;;  %12382 = vst [vmem:[#allocation30_spill] sm:$0xff] %v10402_v59  ;;  %v4621_v29 = vmul.f32 1.442695, %v4552_v11 }
 0x7a3   : > { %v10404_v33 = vpop.f32.mrf.mxu0  ;;  %v3601_v46 = vpop.xlane.xlu0 %3600  ;;  %v3747_v61 = vpack.c.bf16 %v3703_v62, %v3701_v26  ;;  %v3746_v25 = vpack.c.bf16 %v3702_v10, %v3700_v18  ;;  %v4619_v52 = vmul.f32 1.442695, %v4551_v22 }
 0x7a4   : > { %12383 = vst [vmem:[#allocation19_spill] sm:$0xff] %v10404_v33  ;;  %7164 = vrcp.f32 %v3601_v46  ;;  %v4554_v46 = vsub.f32 %v12389_v54, %v10302_v49  ;;  %v10424_v62 = vpop.f32.mrf.mxu1 }
 0x7a5   : > { %v6116_v23 = vpop.f32.mrf.mxu0  ;;  %3864 = vmatprep.mubr.bf16.mxu0 %v3747_v61  ;;  %7166 = vpow2.f32 %v4619_v52 }
 0x7a6   : > { %7168 = vpow2.f32 %v4621_v29 }
 0x7a7   : > { %v6117_v3 = vpop.f32.mrf.mxu0  ;;  %7170 = vpow2.f32 %v4623_v53 }
 0x7a8   : > { %v10414_v33 = vadd.f32 %v6117_v3, %v6116_v23  ;;  %3865 = vmatmul.mubr.bf16.gmra.mxu0 %v3746_v25  ;;  %v4625_v23 = vmul.f32 1.442695, %v4554_v46  ;;  %v10426_v25 = vpop.f32.mrf.mxu1  ;;  %v12393_v3 = vld [vmem:[#allocation36_spill] sm:$0xff] }
 0x7a9   : > { %v10418_v57 = vpop.f32.mrf.mxu0  ;;  %v4523_v53 = vmax.f32 %v10424_v62, %v10426_v25 }
 0x7aa   : > { %12386 = vst [vmem:[#allocation51_spill] sm:$0xff] %v10414_v33  ;;  %12388 = vst [vmem:[#allocation45_spill] sm:$0xff] %v10418_v57  ;;  %7172 = vpow2.f32 %v4625_v23  ;;  %v10438_v54 = vpop.f32.mrf.mxu1 }
 0x7ab   : > { %v10422_v26 = vpop.f32.mrf.mxu0  ;;  %v7163_v10 = vpop.eup %7162 }
 0x7ac   : > { %12390 = vst [vmem:[#allocation12_spill] sm:$0xff] %v10422_v26  ;;  %v3705_v49 = vmul.f32 %v7163_v10, %v10108_v2  ;;  %v3704_v50 = vmul.f32 %v7163_v10, %v12393_v3  ;;  %v10442_v2 = vpop.f32.mrf.mxu1 }
 0x7ad   : > { %v6122_v18 = vpop.f32.mrf.mxu0 }
 0x7af   : > { %v6123_v61 = vpop.f32.mrf.mxu0 }
 0x7b0   : > { %v10428_v41 = vadd.f32 %v6123_v61, %v6122_v18 }
 0x7b1   : > { %v7165_v22 = vpop.eup %7164  ;;  %v10430_v44 = vpop.f32.mrf.mxu0 }
 0x7b2   : > { %12391 = vst [vmem:[#allocation86_spill] sm:$0xff] %v10428_v41  ;;  %12392 = vst [vmem:[#allocation6_spill] sm:$0xff] %v10430_v44  ;;  %v3707_v11 = vmul.f32 %v7165_v22, %v10120_v58  ;;  %v3706_v52 = vmul.f32 %v7165_v22, %v12394_v19  ;;  %v10448_v23 = vpop.eup %7166  ;;  %v4526_v22 = vmax.f32 %v10438_v54, %v10442_v2 }
 0x7b3   : > { %v10436_v29 = vpop.f32.mrf.mxu0 }
 0x7b4   : > { %12395 = vst [vmem:[#allocation16_spill] sm:$0xff] %v10436_v29  ;;  %v3749_v46 = vpack.c.bf16 %v3707_v11, %v3705_v49  ;;  %v3748_v18 = vpack.c.bf16 %v3706_v52, %v3704_v50  ;;  %v10454_v11 = vpop.eup %7168  ;;  %v12404_v29 = vld [vmem:[#allocation34_spill] sm:$0xff] }
 0x7b5   : > { %v6128_v61 = vpop.f32.mrf.mxu0  ;;  %v10456_v50 = vpop.eup %7170 }
 0x7b6   : > { %3872 = vmatprep.mubr.bf16.mxu0 %v3749_v46 }
 0x7b7   : > { %v6129_v44 = vpop.f32.mrf.mxu0  ;;  %3873 = vmatmul.mubr.bf16.gmra.mxu0 %v3748_v18  ;;  %v10460_v52 = vpop.eup %7172 }
 0x7b8   : > { %v10444_v58 = vadd.f32 %v6129_v44, %v6128_v61  ;;  %4524 = vmax.xlane.f32.xlu1 %v4523_v53  ;;  %v4745_v44 = vadd.f32 %v10454_v11, %v10448_v23  ;;  %v4748_v53 = vadd.f32 %v10460_v52, %v10456_v50 }
 0x7b9   : > { %v10446_v10 = vpop.f32.mrf.mxu0 }
 0x7ba   : > { %12396 = vst [vmem:[#allocation17_spill] sm:$0xff] %v10444_v58  ;;  %12397 = vst [vmem:[#allocation15_spill] sm:$0xff] %v10446_v10  ;;  %v12403_v58 = vld [vmem:[#allocation39_spill] sm:$0xff] }
 0x7bb   : > { %v10452_v49 = vpop.f32.mrf.mxu0 }
 0x7bc   : > { %12398 = vst [vmem:[#allocation89_spill] sm:$0xff] %v10452_v49 }
 0x7bd   : > { %v6134_v3 = vpop.f32.mrf.mxu0  ;;  %4527 = vmax.xlane.f32.xlu0 %v4526_v22 }
 0x7bf   : > { %v6135_v19 = vpop.f32.mrf.mxu0 }
 0x7c0   : > { %v10462_v46 = vadd.f32 %v6135_v19, %v6134_v3  ;;  %v12406_v19 = vld [vmem:[#allocation8_spill] sm:$0xff] }
 0x7c1   : > { %v10464_v18 = vpop.f32.mrf.mxu0  ;;  %4746 = vadd.xlane.f32.xlu0 %v4745_v44 }
 0x7c2   : > { %12399 = vst [vmem:[#allocation76_spill] sm:$0xff] %v10462_v46  ;;  %12400 = vst [vmem:[#allocation73_spill] sm:$0xff] %v10464_v18 }
 0x7c3   : > { %v10466_v61 = vpop.f32.mrf.mxu0 }
 0x7c4   : > { %12401 = vst [vmem:[#allocation11_spill] sm:$0xff] %v10466_v61 }
 0x7c5   : > { %v6140_v49 = vpop.f32.mrf.mxu0  ;;  %4749 = vadd.xlane.f32.xlu0 %v4748_v53  ;;  %v10484_v53 = vpop.xlane.xlu0 %4491 }
 0x7c7   : > { %v6141_v22 = vpop.f32.mrf.mxu0 }
 0x7c8   : > { %v10470_v10 = vadd.f32 %v6141_v22, %v6140_v49  ;;  %v12409_v49 = vld [vmem:[#allocation10_spill] sm:$0xff] }
 0x7c9   : > { %4989 = vrot.lane.b32.xlu1 %v12403_v58, %s7381_s13  ;;  %v10476_v3 = vpop.f32.mrf.mxu0  ;;  %v10488_v58 = vpop.xlane.xlu1 %4488 }
 0x7ca   : > { %12402 = vst [vmem:[#allocation36_spill] sm:$0xff] %v10470_v10  ;;  %12405 = vst [vmem:[#allocation69_spill] sm:$0xff] %v10476_v3  ;;  %v12410_v3 = vld [vmem:[#allocation13_spill] sm:$0xff] }
 0x7cb   : > { %v10480_v44 = vpop.f32.mrf.mxu0 }
 0x7cc   : > { %12407 = vst [vmem:[#allocation39_spill] sm:$0xff] %v10480_v44  ;;  %v12411_v44 = vld [vmem:[#allocation7_spill] sm:$0xff] }
 0x7cd   : > { %4987 = vrot.lane.b32.xlu1 %v12404_v29, %s7381_s13  ;;  %v4556_v10 = vsub.f32 %v12411_v44, %v10312_v43 }
 0x7d1   : > { %4971 = vrot.lane.b32.xlu1 %v12406_v19, %s7381_s13  ;;  %v4555_v19 = vsub.f32 %v12410_v3, %v10312_v43 }
 0x7d4   : > { %v6146_v61 = vpop.f32.mrf.mxu0 }
 0x7d6   : > { %v6147_v18 = vpop.f32.mrf.mxu0 }
 0x7d7   : > { %v10482_v46 = vadd.f32 %v6147_v18, %v6146_v61  ;;  %v4627_v18 = vmul.f32 1.442695, %v4555_v19  ;;  %v4629_v61 = vmul.f32 1.442695, %v4556_v10 }
 0x7d9   : > { %12408 = vst [vmem:[#allocation34_spill] sm:$0xff] %v10482_v46  ;;  %v12412_v46 = vld [vmem:[#allocation93_spill] sm:$0xff] }
 0x7da   : > { %v4557_v26 = vsub.f32 %v12412_v46, %v10328_v5 }
 0x7db   : > { %4973 = vrot.lane.b32.xlu0 %v12409_v49, %s7381_s13  ;;  %v12413_v49 = vld [vmem:[#allocation18_spill] sm:$0xff] }
 0x7dc   : > { %v4558_v57 = vsub.f32 %v12413_v49, %v10328_v5  ;;  %v4631_v3 = vmul.f32 1.442695, %v4557_v26 }
 0x7de   : > { %v3607_v22 = vpop.xlane.xlu0 %3606  ;;  %v4633_v43 = vmul.f32 1.442695, %v4558_v57 }
 0x7df   : > { %7174 = vrcp.f32 %v3607_v22  ;;  %v10500_v22 = vpop.f32.mrf.mxu1 }
 0x7e0   : > { %v3604_v29 = vpop.xlane.xlu1 %3603 }
 0x7e1   : > { %7176 = vrcp.f32 %v3604_v29  ;;  %v10506_v10 = vpop.f32.mrf.mxu1 }
 0x7e2   : > { %v10502_v29 = vpop.xlane.xlu0 %4497  ;;  %7178 = vpow2.f32 %v4627_v18 }
 0x7e3   : > { %7180 = vpow2.f32 %v4629_v61  ;;  %v10512_v57 = vpop.f32.mrf.mxu1 }
 0x7e4   : > { %v10494_v41 = vpop.xlane.xlu1 %4494 }
 0x7e8   : > { %v3610_v33 = vpop.xlane.xlu1 %3609 }
 0x7e9   : > { %7182 = vrcp.f32 %v3610_v33 }
 0x7ec   : > { %v7175_v59 = vpop.eup %7174  ;;  %v10504_v44 = vpop.xlane.xlu1 %4500 }
 0x7ed   : > { %v3613_v19 = vpop.xlane.xlu0 %3612  ;;  %v3711_v46 = vmul.f32 %v7175_v59, %v10178_v39  ;;  %v3710_v5 = vmul.f32 %v7175_v59, %v10174_v15  ;;  %v4529_v39 = vmax.f32 %v10500_v22, %v10506_v10  ;;  %v10520_v59 = vpop.f32.mrf.mxu1 }
 0x7ee   : > { %v7177_v49 = vpop.eup %7176  ;;  %7184 = vrcp.f32 %v3613_v19 }
 0x7ef   : > { %7186 = vpow2.f32 %v4631_v3  ;;  %v3709_v14 = vmul.f32 %v7177_v49, %v10188_v28  ;;  %v3708_v18 = vmul.f32 %v7177_v49, %v10182_v17  ;;  %v10522_v17 = vpop.eup %7178 }
 0x7f0   : > { %7188 = vpow2.f32 %v4633_v43  ;;  %v3616_v26 = vpop.xlane.xlu1 %3615  ;;  %12414 = vst [vmem:[#allocation8_spill] sm:$0xff] %v10522_v17  ;;  %v10524_v3 = vpop.eup %7180 }
 0x7f1   : > { %v10514_v33 = vpop.xlane.xlu0 %4503  ;;  %v3751_v61 = vpack.c.bf16 %v3711_v46, %v3709_v14  ;;  %v3750_v4 = vpack.c.bf16 %v3710_v5, %v3708_v18  ;;  %7190 = vrcp.f32 %v3616_v26  ;;  %12415 = vst [vmem:[#allocation10_spill] sm:$0xff] %v10524_v3  ;;  %v4532_v14 = vmax.f32 %v10512_v57, %v10520_v59 }
 0x7f3   : > { %3880 = vmatprep.mubr.bf16.mxu0 %v3751_v61 }
 0x7f4   : > { %v10518_v15 = vpop.xlane.xlu1 %4506  ;;  %3881 = vmatmul.mubr.bf16.gmra.mxu0 %v3750_v4  ;;  %v4751_v4 = vadd.f32 %v10524_v3, %v10522_v17 }
 0x7f5   : > { %v3619_v28 = vpop.xlane.xlu0 %3618  ;;  %4530 = vmax.xlane.f32.xlu1 %v4529_v39 }
 0x7f6   : > { %7192 = vrcp.f32 %v3619_v28  ;;  %v7183_v19 = vpop.eup %7182 }
 0x7f7   : > { %v3713_v26 = vmul.f32 %v7183_v19, %v10210_v63  ;;  %v3712_v39 = vmul.f32 %v7183_v19, %v10206_v12 }
 0x7f8   : > { %v3622_v43 = vpop.xlane.xlu1 %3621 }
 0x7f9   : > { %v10528_v46 = vpop.xlane.xlu0 %4509  ;;  %7194 = vrcp.f32 %v3622_v43 }
 0x7fa   : > { %4533 = vmax.xlane.f32.xlu0 %v4532_v14 }
 0x7fb   : > { %v7185_v5 = vpop.eup %7184 }
 0x7fc   : > { %v10532_v49 = vpop.eup %7186  ;;  %v10534_v18 = vpop.xlane.xlu1 %4512  ;;  %v3715_v61 = vmul.f32 %v7185_v5, %v10220_v55  ;;  %v3714_v28 = vmul.f32 %v7185_v5, %v10218_v47  ;;  %v12416_v5 = vld [vmem:[#allocation20_spill] sm:$0xff] }
 0x7fd   : > { %v10540_v7 = vpop.eup %7188  ;;  %v3625_v35 = vpop.xlane.xlu0 %3624 }
 0x7fe   : > { %4752 = vadd.xlane.f32.xlu0 %v4751_v4  ;;  %v3753_v14 = vpack.c.bf16 %v3715_v61, %v3713_v26  ;;  %v3752_v40 = vpack.c.bf16 %v3714_v28, %v3712_v39  ;;  %7196 = vrcp.f32 %v3625_v35  ;;  %v4754_v3 = vadd.f32 %v10540_v7, %v10532_v49  ;;  %v7191_v55 = vpop.eup %7190  ;;  %v10558_v28 = vpop.f32.mrf.mxu0 }
 0x7ff   : > { %v3717_v43 = vmul.f32 %v7191_v55, %v10236_v48  ;;  %v3716_v4 = vmul.f32 %v7191_v55, %v10231_v56  ;;  %v12417_v48 = vld [vmem:[#allocation56_spill] sm:$0xff]  ;;  %12418 = vst [vmem:[#allocation13_spill] sm:$0xff] %v10558_v28 }
 0x800   : > { %3888 = vmatprep.mubr.bf16.mxu0 %v3753_v14  ;;  %v3628_v17 = vpop.xlane.xlu1 %3627  ;;  %v12419_v56 = vld [vmem:[#allocation44_spill] sm:$0xff] }
 0x801   : > { %3889 = vmatmul.mubr.bf16.gmra.mxu0 %v3752_v40  ;;  %v10544_v63 = vpop.xlane.xlu0 %4515  ;;  %7198 = vrcp.f32 %v3628_v17 }
 0x802   : > { %4755 = vadd.xlane.f32.xlu0 %v4754_v3 }
 0x803   : > { %v7193_v47 = vpop.eup %7192 }
 0x804   : > { %v10546_v12 = vpop.xlane.xlu1 %4518  ;;  %v3719_v35 = vmul.f32 %v7193_v47, %v10248_v42  ;;  %v3718_v40 = vmul.f32 %v7193_v47, %v10246_v21 }
 0x805   : > { %v3631_v19 = vpop.xlane.xlu0 %3630 }
 0x806   : > { %4985 = vrot.lane.b32.xlu1 %v12416_v5, %s7381_s13  ;;  %7200 = vrcp.f32 %v3631_v19  ;;  %v3755_v26 = vpack.c.bf16 %v3719_v35, %v3717_v43  ;;  %v3754_v3 = vpack.c.bf16 %v3718_v40, %v3716_v4  ;;  %v7195_v17 = vpop.eup %7194  ;;  %v10566_v43 = vpop.f32.mrf.mxu0 }
 0x807   : > { %v3721_v21 = vmul.f32 %v7195_v17, %v10264_v0  ;;  %v3720_v47 = vmul.f32 %v7195_v17, %v10259_v20  ;;  %12420 = vst [vmem:[#allocation7_spill] sm:$0xff] %v10566_v43 }
 0x808   : > { %v4994_v61 = vpop.permute.xlu1 %4993  ;;  %3896 = vmatprep.mubr.bf16.mxu0 %v3755_v26 }
 0x809   : > { %v10554_v39 = vpop.xlane.xlu0 %4521  ;;  %6366 = vmatprep.subr.bf16.mxu0 %v4994_v61  ;;  %3897 = vmatmul.mubr.bf16.gmra.mxu0 %v3754_v3 }
 0x80a   : > { %4983 = vrot.lane.b32.xlu1 %v12417_v48, %s7381_s13 }
 0x80b   : > { %v7197_v42 = vpop.eup %7196 }
 0x80c   : > { %v3723_v55 = vmul.f32 %v7197_v42, %v10278_v30  ;;  %v3722_v19 = vmul.f32 %v7197_v42, %v10276_v1  ;;  %v4992_v61 = vpop.permute.xlu1 %4991 }
 0x80d   : > { %v4741_v14 = vpop.xlane.xlu0 %4740 }
 0x80e   : > { %4967 = vrot.lane.b32.xlu1 %v12419_v56, %s7381_s13  ;;  %7202 = vrcp.f32 %v4741_v14  ;;  %v3757_v5 = vpack.c.bf16 %v3723_v55, %v3721_v21  ;;  %v3756_v35 = vpack.c.bf16 %v3722_v19, %v3720_v47  ;;  %v7199_v26 = vpop.eup %7198  ;;  %v12423_v56 = vld [vmem:[#allocation14_spill] sm:$0xff] }
 0x80f   : > { %v3725_v20 = vmul.f32 %v7199_v26, %v10294_v16  ;;  %v3724_v17 = vmul.f32 %v7199_v26, %v10287_v60 }
 0x810   : > { %3904 = vmatprep.mubr.bf16.mxu0 %v3757_v5  ;;  %v4976_v47 = vpop.permute.xlu1 %4975 }
 0x811   : > { %v4744_v4 = vpop.xlane.xlu0 %4743  ;;  %v6152_v40 = vpop.f32.mrf.mxu0  ;;  %3905 = vmatmul.mubr.bf16.gmra.mxu0 %v3756_v35 }
 0x812   : > { %7204 = vrcp.f32 %v4744_v4 }
 0x813   : > { %v6153_v3 = vpop.f32.mrf.mxu0  ;;  %v7201_v30 = vpop.eup %7200 }
 0x814   : > { %v10568_v0 = vadd.f32 %v6153_v3, %v6152_v40  ;;  %v3727_v1 = vmul.f32 %v7201_v30, %v10308_v9  ;;  %v3726_v42 = vmul.f32 %v7201_v30, %v10306_v31  ;;  %v12426_v31 = vld [vmem:[#allocation23_spill] sm:$0xff]  ;;  %v12428_v3 = vld [vmem:[#allocation37_spill] sm:$0xff] }
 0x815   : > { %v4978_v48 = vpop.permute.xlu0 %4977  ;;  %v10574_v14 = vpop.f32.mrf.mxu0  ;;  %v4559_v5 = vsub.f32 %v12426_v31, %v10338_v45  ;;  %v4560_v30 = vsub.f32 %v12428_v3, %v10338_v45 }
 0x816   : > { %12421 = vst [vmem:[#allocation93_spill] sm:$0xff] %v10568_v0  ;;  %6367 = vmatpush3.bf16.msra.mxu0 %v4978_v48  ;;  %12422 = vst [vmem:[#allocation18_spill] sm:$0xff] %v10574_v14  ;;  %v3759_v21 = vpack.c.bf16 %v3727_v1, %v3725_v20  ;;  %v3758_v55 = vpack.c.bf16 %v3726_v42, %v3724_v17 }
 0x817   : > { %6368 = vmatprep.subr.bf16.mxu0 %v4992_v61  ;;  %v10578_v19 = vpop.f32.mrf.mxu0  ;;  %v4635_v17 = vmul.f32 1.442695, %v4559_v5 }
 0x818   : > { %4969 = vrot.lane.b32.xlu0 %v12423_v56, %s7381_s13  ;;  %3912 = vmatprep.mubr.bf16.mxu0 %v3759_v21  ;;  %12424 = vst [vmem:[#allocation20_spill] sm:$0xff] %v10578_v19  ;;  %v4637_v56 = vmul.f32 1.442695, %v4560_v30  ;;  %v10606_v21 = vpop.f32.mrf.mxu1 }
 0x819   : > { %3913 = vmatmul.mubr.bf16.gmra.mxu0 %v3758_v55  ;;  %7206 = vpow2.f32 %v4635_v17 }
 0x81a   : > { %6369 = vmatpush3.bf16.msra.mxu0 %v4976_v47  ;;  %7208 = vpow2.f32 %v4637_v56 }
 0x81b   : > { %v7203_v16 = vpop.eup %7202 }
 0x81c   : > { %v10587_v4 = vmul.f32 %v7203_v16, %v10324_v36  ;;  %v4868_v26 = vmul.f32 %v7203_v16, %v10330_v24  ;;  %v12430_v36 = vld [vmem:[#allocation75_spill] sm:$0xff]  ;;  %v12432_v24 = vld [vmem:[#allocation53_spill] sm:$0xff]  ;;  %v10610_v16 = vpop.f32.mrf.mxu1 }
 0x81d   : > { %v4561_v42 = vsub.f32 %v12430_v36, %v10350_v34 }
 0x81e   : > { %v10580_v9 = vpop.f32.mrf.mxu0  ;;  %v10616_v5 = vpop.f32.mrf.mxu1 }
 0x81f   : > { %12425 = vst [vmem:[#allocation56_spill] sm:$0xff] %v10580_v9  ;;  %v7205_v60 = vpop.eup %7204  ;;  %v4639_v45 = vmul.f32 1.442695, %v4561_v42 }
 0x820   : > { %v10584_v35 = vpop.f32.mrf.mxu0  ;;  %v10590_v40 = vmul.f32 %v7205_v60, %v10336_v32  ;;  %v4870_v61 = vmul.f32 %v7205_v60, %v10344_v51  ;;  %v4562_v51 = vsub.f32 %v12432_v24, %v10350_v34  ;;  %v4535_v34 = vmax.f32 %v10606_v21, %v10610_v16  ;;  %v10622_v3 = vpop.f32.mrf.mxu1 }
 0x821   : > { %12427 = vst [vmem:[#allocation44_spill] sm:$0xff] %v10584_v35  ;;  %7210 = vpow2.f32 %v4639_v45  ;;  %v4538_v42 = vmax.f32 %v10616_v5, %v10622_v3 }
 0x822   : > { %v10596_v48 = vpop.f32.mrf.mxu0  ;;  %v4932_v20 = vpack.c.bf16 %v4870_v61, %v4868_v26  ;;  %v4641_v47 = vmul.f32 1.442695, %v4562_v51 }
 0x823   : > { %12429 = vst [vmem:[#allocation14_spill] sm:$0xff] %v10596_v48 }
 0x824   : > { %5043 = vmatprep.mubr.bf16.mxu0 %v4932_v20  ;;  %v10602_v32 = vpop.f32.mrf.mxu0  ;;  %7212 = vpow2.f32 %v4641_v47 }
 0x825   : > { %12431 = vst [vmem:[#allocation23_spill] sm:$0xff] %v10602_v32 }
 0x826   : > { %v10628_v36 = vpop.eup %7206 }
 0x827   : > { %12439 = vst [vmem:[#allocation97_spill] sm:$0xff] %v10628_v36  ;;  %v10632_v56 = vpop.eup %7208 }
 0x828   : > { %v10608_v55 = vpop.f32.mrf.mxu0  ;;  %v4757_v47 = vadd.f32 %v10632_v56, %v10628_v36 }
 0x829   : > { %12433 = vst [vmem:[#allocation37_spill] sm:$0xff] %v10608_v55 }
 0x82a   : > { %v10612_v60 = vpop.f32.mrf.mxu0 }
 0x82b   : > { %12434 = vst [vmem:[#allocation75_spill] sm:$0xff] %v10612_v60 }
 0x82c   : > { %v10614_v31 = vpop.f32.mrf.mxu0 }
 0x82d   : > { %12435 = vst [vmem:[#allocation53_spill] sm:$0xff] %v10614_v31  ;;  %v12456_v31 = vld [vmem:[#allocation65_spill] sm:$0xff] }
 0x82e   : > { %v10618_v26 = vpop.f32.mrf.mxu0  ;;  %v10636_v45 = vpop.eup %7210  ;;  %v4564_v35 = vsub.f32 %v12456_v31, %v10358_v6 }
 0x82f   : > { %12436 = vst [vmem:[#allocation94_spill] sm:$0xff] %v10618_v26  ;;  %12441 = vst [vmem:[#allocation99_spill] sm:$0xff] %v10636_v45 }
 0x830   : > { %v6234_v61 = vpop.f32.mrf.mxu0 }
 0x832   : > { %v6235_v30 = vpop.f32.mrf.mxu0  ;;  %4536 = vmax.xlane.f32.xlu1 %v4535_v34  ;;  %v10640_v34 = vpop.eup %7212 }
 0x833   : > { %v10624_v20 = vadd.f32 %v6235_v30, %v6234_v61  ;;  %v4760_v19 = vadd.f32 %v10640_v34, %v10636_v45  ;;  %v12463_v45 = vld [vmem:[#allocation26_spill] sm:$0xff] }
 0x834   : > { %v10626_v17 = vpop.f32.mrf.mxu0 }
 0x835   : > { %12437 = vst [vmem:[#allocation95_spill] sm:$0xff] %v10624_v20  ;;  %12438 = vst [vmem:[#allocation96_spill] sm:$0xff] %v10626_v17 }
 0x836   : > { %v10634_v24 = vpop.f32.mrf.mxu0 }
 0x837   : > { %12440 = vst [vmem:[#allocation98_spill] sm:$0xff] %v10634_v24  ;;  %4539 = vmax.xlane.f32.xlu0 %v4538_v42  ;;  %v12446_v24 = vld [vmem:[#allocation48_spill] sm:$0xff] }
 0x838   : > { %v6240_v51 = vpop.f32.mrf.mxu0 }
 0x83a   : > { %v6241_v61 = vpop.f32.mrf.mxu0 }
 0x83b   : > { %v10642_v30 = vadd.f32 %v6241_v61, %v6240_v51  ;;  %4758 = vadd.xlane.f32.xlu0 %v4757_v47 }
 0x83c   : > { %v10644_v1 = vpop.f32.mrf.mxu0 }
 0x83d   : > { %12442 = vst [vmem:[#allocation100_spill] sm:$0xff] %v10642_v30  ;;  %12443 = vst [vmem:[#allocation101_spill] sm:$0xff] %v10644_v1 }
 0x83e   : > { %v10648_v14 = vpop.f32.mrf.mxu0 }
 0x83f   : > { %12444 = vst [vmem:[#allocation102_spill] sm:$0xff] %v10648_v14  ;;  %4761 = vadd.xlane.f32.xlu0 %v4760_v19  ;;  %v12448_v14 = vld [vmem:[#allocation66_spill] sm:$0xff] }
 0x840   : > { %v6246_v42 = vpop.f32.mrf.mxu0 }
 0x841   : > { %v10650_v0 = vpop.xlane.xlu1 %4524 }
 0x842   : > { %v6247_v43 = vpop.f32.mrf.mxu0 }
 0x843   : > { %v10652_v28 = vadd.f32 %v6247_v43, %v6246_v42  ;;  %4981 = vrot.lane.b32.xlu1 %v12446_v24, %s7381_s13  ;;  %v12450_v42 = vld [vmem:[#allocation52_spill] sm:$0xff] }
 0x844   : > { %v6249_v51 = vpop.f32.mrf.mxu0 }
 0x845   : > { %12445 = vst [vmem:[#allocation103_spill] sm:$0xff] %v10652_v28  ;;  %v4990_v61 = vpop.permute.xlu1 %4989 }
 0x846   : > { %v6250_v47 = vpop.f32.mrf.mxu0  ;;  %v10656_v30 = vpop.xlane.xlu0 %4527  ;;  %6370 = vmatprep.subr.bf16.mxu0 %v4990_v61 }
 0x847   : > { %v10658_v1 = vadd.f32 %v6250_v47, %v6249_v51  ;;  %4979 = vrot.lane.b32.xlu1 %v12448_v14, %s7381_s13 }
 0x848   : > { %v6252_v19 = vpop.f32.mrf.mxu0 }
 0x849   : > { %12447 = vst [vmem:[#allocation48_spill] sm:$0xff] %v10658_v1  ;;  %v4988_v51 = vpop.permute.xlu1 %4987 }
 0x84a   : > { %v6253_v17 = vpop.f32.mrf.mxu0  ;;  %v10662_v20 = vpop.xlane.xlu0 %4746 }
 0x84b   : > { %v10664_v43 = vadd.f32 %v6253_v17, %v6252_v19  ;;  %4963 = vrot.lane.b32.xlu1 %v12450_v42, %s7381_s13  ;;  %v12453_v17 = vld [vmem:[#allocation55_spill] sm:$0xff] }
 0x84c   : > { %v6255_v24 = vpop.f32.mrf.mxu0 }
 0x84d   : > { %12449 = vst [vmem:[#allocation66_spill] sm:$0xff] %v10664_v43  ;;  %v4972_v19 = vpop.permute.xlu1 %4971 }
 0x84e   : > { %v6256_v28 = vpop.f32.mrf.mxu0  ;;  %v10668_v60 = vpop.xlane.xlu0 %4749 }
 0x84f   : > { %v10670_v55 = vadd.f32 %v6256_v28, %v6255_v24  ;;  %v12455_v28 = vld [vmem:[#allocation40_spill] sm:$0xff] }
 0x850   : > { %v6258_v61 = vpop.f32.mrf.mxu0  ;;  %v4563_v24 = vsub.f32 %v12455_v28, %v10358_v6  ;;  %v12461_v28 = vld [vmem:[#allocation4_spill] sm:$0xff]  ;;  %v12462_v6 = vld [vmem:[#allocation62_spill] sm:$0xff] }
 0x851   : > { %12451 = vst [vmem:[#allocation52_spill] sm:$0xff] %v10670_v55  ;;  %v4568_v32 = vsub.f32 %v12461_v28, %v10388_v37  ;;  %v4569_v31 = vsub.f32 %v12462_v6, %v10396_v27 }
 0x852   : > { %v6259_v47 = vpop.f32.mrf.mxu0  ;;  %v4974_v1 = vpop.permute.xlu0 %4973  ;;  %v4643_v9 = vmul.f32 1.442695, %v4563_v24 }
 0x853   : > { %v10672_v14 = vadd.f32 %v6259_v47, %v6258_v61  ;;  %6371 = vmatpush3.bf16.msra.mxu0 %v4974_v1  ;;  %v12457_v61 = vld [vmem:[#allocation3_spill] sm:$0xff]  ;;  %v4655_v28 = vmul.f32 1.442695, %v4569_v31  ;;  %v4576_v31 = vsub.f32 %v10136_v13, %v10494_v41 }
 0x854   : > { %v6261_v26 = vpop.f32.mrf.mxu0  ;;  %6372 = vmatprep.subr.bf16.mxu0 %v4988_v51  ;;  %v4565_v1 = vsub.f32 %v12457_v61, %v10368_v38  ;;  %v12458_v51 = vld [vmem:[#allocation85_spill] sm:$0xff]  ;;  %7214 = vpow2.f32 %v4643_v9 }
 0x855   : > { %12452 = vst [vmem:[#allocation104_spill] sm:$0xff] %v10672_v14  ;;  %4965 = vrot.lane.b32.xlu0 %v12453_v17, %s7381_s13  ;;  %v4566_v14 = vsub.f32 %v12458_v51, %v10368_v38  ;;  %v4570_v38 = vsub.f32 %v12463_v45, %v10396_v27  ;;  %v10704_v27 = vpop.f32.mrf.mxu1  ;;  %v12468_v45 = vld [vmem:[#allocation54_spill] sm:$0xff]  ;;  %v4669_v13 = vmul.f32 1.442695, %v4576_v31 }
 0x856   : > { %v6262_v42 = vpop.f32.mrf.mxu0  ;;  %v4647_v48 = vmul.f32 1.442695, %v4565_v1 }
 0x857   : > { %v10676_v43 = vadd.f32 %v6262_v42, %v6261_v26  ;;  %6373 = vmatpush3.bf16.msra.mxu0 %v4972_v19  ;;  %v12460_v26 = vld [vmem:[#allocation67_spill] sm:$0xff]  ;;  %v4649_v36 = vmul.f32 1.442695, %v4566_v14  ;;  %v4657_v9 = vmul.f32 1.442695, %v4570_v38  ;;  %v10714_v38 = vpop.f32.mrf.mxu1 }
 0x858   : > { %v6264_v55 = vpop.f32.mrf.mxu0  ;;  %v4567_v19 = vsub.f32 %v12460_v26, %v10388_v37  ;;  %v4653_v26 = vmul.f32 1.442695, %v4568_v32  ;;  %v12466_v37 = vld [vmem:[#allocation70_spill] sm:$0xff]  ;;  %v12467_v14 = vld [vmem:[#allocation71_spill] sm:$0xff] }
 0x859   : > { %12454 = vst [vmem:[#allocation55_spill] sm:$0xff] %v10676_v43  ;;  %v4645_v43 = vmul.f32 1.442695, %v4564_v35  ;;  %v4572_v1 = vsub.f32 %v12466_v37, %v10488_v58  ;;  %v4573_v6 = vsub.f32 %v12467_v14, %v10484_v53 }
 0x85a   : > { %v6265_v47 = vpop.f32.mrf.mxu0  ;;  %v4651_v24 = vmul.f32 1.442695, %v4567_v19  ;;  %v4574_v19 = vsub.f32 %v12468_v45, %v10484_v53  ;;  %v12475_v45 = vld [vmem:[#allocation22_spill] sm:$0xff] }
 0x85b   : > { %v10686_v17 = vadd.f32 %v6265_v47, %v6264_v55  ;;  %v12465_v47 = vld [vmem:[#allocation59_spill] sm:$0xff]  ;;  %7216 = vpow2.f32 %v4645_v43  ;;  %v4661_v43 = vmul.f32 1.442695, %v4572_v1 }
 0x85c   : > { %v6267_v42 = vpop.f32.mrf.mxu0  ;;  %v4571_v51 = vsub.f32 %v12465_v47, %v10488_v58  ;;  %7218 = vpow2.f32 %v4647_v48  ;;  %v4575_v58 = vsub.f32 %v10130_v8, %v10494_v41  ;;  %v4665_v53 = vmul.f32 1.442695, %v4574_v19  ;;  %v12473_v41 = vld [vmem:[#allocation33_spill] sm:$0xff]  ;;  %v12474_v1 = vld [vmem:[#allocation27_spill] sm:$0xff] }
 0x85d   : > { %12459 = vst [vmem:[#allocation40_spill] sm:$0xff] %v10686_v17  ;;  %7220 = vpow2.f32 %v4649_v36  ;;  %v4580_v37 = vsub.f32 %v12473_v41, %v10504_v44  ;;  %v4581_v19 = vsub.f32 %v12475_v45, %v10514_v33  ;;  %v12482_v45 = vld [vmem:[#allocation80_spill] sm:$0xff] }
 0x85e   : > { %v6268_v61 = vpop.f32.mrf.mxu0  ;;  %7222 = vpow2.f32 %v4651_v24  ;;  %v4659_v32 = vmul.f32 1.442695, %v4571_v51  ;;  %v4667_v8 = vmul.f32 1.442695, %v4575_v58  ;;  %v12472_v51 = vld [vmem:[#allocation47_spill] sm:$0xff] }
 0x85f   : > { %v10696_v55 = vadd.f32 %v6268_v61, %v6267_v42  ;;  %7224 = vpow2.f32 %v4653_v26  ;;  %v4663_v61 = vmul.f32 1.442695, %v4573_v6  ;;  %v10726_v6 = vpop.f32.mrf.mxu1 }
 0x860   : > { %v6270_v35 = vpop.f32.mrf.mxu0  ;;  %7226 = vpow2.f32 %v4655_v28  ;;  %v4578_v28 = vsub.f32 %v12474_v1, %v10502_v29  ;;  %v4679_v1 = vmul.f32 1.442695, %v4581_v19 }
 0x861   : > { %12464 = vst [vmem:[#allocation65_spill] sm:$0xff] %v10696_v55  ;;  %7228 = vpow2.f32 %v4657_v9  ;;  %v10734_v31 = vpop.eup %7214  ;;  %v10746_v41 = vpop.f32.mrf.mxu1 }
 0x862   : > { %v6271_v17 = vpop.f32.mrf.mxu0  ;;  %7230 = vpow2.f32 %v4659_v32 }
 0x863   : > { %v10708_v42 = vadd.f32 %v6271_v17, %v6270_v35  ;;  %v12470_v17 = vld [vmem:[#allocation46_spill] sm:$0xff]  ;;  %v4579_v35 = vsub.f32 %v12472_v51, %v10504_v44  ;;  %7232 = vpow2.f32 %v4661_v43 }
 0x864   : > { %v6273_v48 = vpop.f32.mrf.mxu0  ;;  %v4577_v24 = vsub.f32 %v12470_v17, %v10502_v29  ;;  %7234 = vpow2.f32 %v4663_v61  ;;  %v4541_v29 = vmax.f32 %v10704_v27, %v10714_v38  ;;  %v4677_v61 = vmul.f32 1.442695, %v4580_v37 }
 0x865   : > { %12469 = vst [vmem:[#allocation3_spill] sm:$0xff] %v10708_v42  ;;  %7236 = vpow2.f32 %v4665_v53  ;;  %v4675_v58 = vmul.f32 1.442695, %v4579_v35 }
 0x866   : > { %v6274_v36 = vpop.f32.mrf.mxu0  ;;  %v4671_v9 = vmul.f32 1.442695, %v4577_v24  ;;  %7238 = vpow2.f32 %v4667_v8  ;;  %v4673_v24 = vmul.f32 1.442695, %v4578_v28  ;;  %v12479_v8 = vld [vmem:[#allocation83_spill] sm:$0xff] }
 0x867   : > { %v10718_v47 = vadd.f32 %v6274_v36, %v6273_v48  ;;  %v12477_v48 = vld [vmem:[#allocation74_spill] sm:$0xff]  ;;  %7240 = vpow2.f32 %v4669_v13  ;;  %v12478_v36 = vld [vmem:[#allocation43_spill] sm:$0xff]  ;;  %v4582_v51 = vsub.f32 %v12479_v8, %v10514_v33  ;;  %v4587_v33 = vsub.f32 %v12482_v45, %v10534_v18 }
 0x868   : > { %v6276_v26 = vpop.f32.mrf.mxu0  ;;  %v4583_v43 = vsub.f32 %v12477_v48, %v10518_v15  ;;  %v4584_v53 = vsub.f32 %v12478_v36, %v10518_v15  ;;  %v10740_v17 = vpop.eup %7216  ;;  %7242 = vpow2.f32 %v4671_v9  ;;  %v12483_v9 = vld [vmem:[#allocation21_spill] sm:$0xff] }
 0x869   : > { %12471 = vst [vmem:[#allocation85_spill] sm:$0xff] %v10718_v47  ;;  %7244 = vpow2.f32 %v4675_v58  ;;  %v4588_v19 = vsub.f32 %v12483_v9, %v10534_v18  ;;  %v4763_v8 = vadd.f32 %v10740_v17, %v10734_v31  ;;  %v4681_v58 = vmul.f32 1.442695, %v4582_v51  ;;  %v12487_v51 = vld [vmem:[#allocation58_spill] sm:$0xff] }
 0x86a   : > { %v6277_v14 = vpop.f32.mrf.mxu0  ;;  %v4683_v28 = vmul.f32 1.442695, %v4583_v43  ;;  %7246 = vpow2.f32 %v4677_v61  ;;  %v4685_v36 = vmul.f32 1.442695, %v4584_v53  ;;  %v12484_v43 = vld [vmem:[#allocation88_spill] sm:$0xff] }
 0x86b   : > { %v10730_v32 = vadd.f32 %v6277_v14, %v6276_v26  ;;  %v10744_v26 = vpop.eup %7218  ;;  %v12480_v14 = vld [vmem:[#allocation81_spill] sm:$0xff]  ;;  %7248 = vpow2.f32 %v4673_v24  ;;  %v12485_v53 = vld [vmem:[#allocation28_spill] sm:$0xff]  ;;  %v4691_v9 = vmul.f32 1.442695, %v4587_v33 }
 0x86c   : > { %v6279_v44 = vpop.f32.mrf.mxu0  ;;  %v4585_v13 = vsub.f32 %v12480_v14, %v10528_v46  ;;  %v10752_v15 = vpop.eup %7220  ;;  %7250 = vpow2.f32 %v4679_v1  ;;  %v4589_v18 = vsub.f32 %v12485_v53, %v10544_v63  ;;  %v4592_v1 = vsub.f32 %v12487_v51, %v10546_v12 }
 0x86d   : > { %12476 = vst [vmem:[#allocation67_spill] sm:$0xff] %v10730_v32  ;;  %v10756_v48 = vpop.eup %7222  ;;  %7252 = vpow2.f32 %v4683_v28  ;;  %v12488_v28 = vld [vmem:[#allocation61_spill] sm:$0xff] }
 0x86e   : > { %v6280_v35 = vpop.f32.mrf.mxu0  ;;  %v4687_v61 = vmul.f32 1.442695, %v4585_v13  ;;  %7254 = vpow2.f32 %v4685_v36  ;;  %v4590_v33 = vsub.f32 %v12488_v28, %v10544_v63  ;;  %v4695_v36 = vmul.f32 1.442695, %v4589_v18 }
 0x86f   : > { %v10750_v37 = vadd.f32 %v6280_v35, %v6279_v44  ;;  %4542 = vmax.xlane.f32.xlu1 %v4541_v29  ;;  %v10762_v44 = vpop.eup %7224  ;;  %v4544_v29 = vmax.f32 %v10726_v6, %v10746_v41  ;;  %v4586_v35 = vsub.f32 %v12484_v43, %v10528_v46  ;;  %v4693_v46 = vmul.f32 1.442695, %v4588_v19  ;;  %v12489_v19 = vld [vmem:[#allocation90_spill] sm:$0xff] }
 0x870   : > { %v10768_v14 = vpop.eup %7226  ;;  %v4769_v13 = vadd.f32 %v10762_v44, %v10756_v48  ;;  %7256 = vpow2.f32 %v4681_v58  ;;  %v4596_v18 = vsub.f32 %v10426_v25, %v10650_v0 }
 0x871   : > { %12481 = vst [vmem:[#allocation4_spill] sm:$0xff] %v10750_v37  ;;  %v10772_v45 = vpop.eup %7228  ;;  %v12486_v37 = vld [vmem:[#allocation50_spill] sm:$0xff]  ;;  %7258 = vpow2.f32 %v4687_v61  ;;  %v4701_v61 = vmul.f32 1.442695, %v4592_v1 }
 0x872   : > { %v4591_v32 = vsub.f32 %v12486_v37, %v10546_v12  ;;  %v10776_v24 = vpop.eup %7230  ;;  %v4766_v37 = vadd.f32 %v10752_v15, %v10744_v26  ;;  %v4593_v12 = vsub.f32 %v12489_v19, %v10554_v39  ;;  %7260 = vpow2.f32 %v4691_v9 }
 0x873   : > { %4764 = vadd.xlane.f32.xlu1 %v4763_v8  ;;  %v10782_v43 = vpop.eup %7232  ;;  %v4689_v8 = vmul.f32 1.442695, %v4586_v35  ;;  %v4595_v35 = vsub.f32 %v10424_v62, %v10650_v0  ;;  %v4772_v63 = vadd.f32 %v10772_v45, %v10768_v14  ;;  %7262 = vpow2.f32 %v4693_v46  ;;  %v12490_v62 = vld [vmem:[#allocation92_spill] sm:$0xff] }
 0x874   : > { %4545 = vmax.xlane.f32.xlu0 %v4544_v29  ;;  %v10788_v29 = vpop.eup %7234  ;;  %v4699_v58 = vmul.f32 1.442695, %v4591_v32  ;;  %v4775_v19 = vadd.f32 %v10782_v43, %v10776_v24  ;;  %v4697_v32 = vmul.f32 1.442695, %v4590_v33  ;;  %v4703_v42 = vmul.f32 1.442695, %v4593_v12 }
 0x875   : > { %v10792_v51 = vpop.eup %7236  ;;  %7264 = vpow2.f32 %v4689_v8  ;;  %v4597_v46 = vsub.f32 %v10438_v54, %v10656_v30  ;;  %v4707_v1 = vmul.f32 1.442695, %v4595_v35  ;;  %v4709_v8 = vmul.f32 1.442695, %v4596_v18 }
 0x876   : > { %v10798_v28 = vpop.eup %7238  ;;  %7266 = vpow2.f32 %v4695_v36  ;;  %v4778_v36 = vadd.f32 %v10792_v51, %v10788_v29 }
 0x877   : > { %4770 = vadd.xlane.f32.xlu1 %v4769_v13  ;;  %v6282_v53 = vpop.f32.mrf.mxu0  ;;  %v10804_v9 = vpop.eup %7240  ;;  %7268 = vpow2.f32 %v4699_v58 }
 0x878   : > { %4767 = vadd.xlane.f32.xlu0 %v4766_v37  ;;  %v4594_v37 = vsub.f32 %v12490_v62, %v10554_v39  ;;  %v10812_v0 = vpop.eup %7242  ;;  %7270 = vpow2.f32 %v4701_v61  ;;  %v4781_v39 = vadd.f32 %v10804_v9, %v10798_v28  ;;  %v4711_v61 = vmul.f32 1.442695, %v4597_v46 }
 0x879   : > { %v6283_v13 = vpop.f32.mrf.mxu0  ;;  %v10814_v55 = vpop.eup %7244  ;;  %7272 = vpow2.f32 %v4697_v32 }
 0x87a   : > { %v10808_v47 = vadd.f32 %v6283_v13, %v6282_v53  ;;  %v10820_v12 = vpop.eup %7246  ;;  %v4705_v54 = vmul.f32 1.442695, %v4594_v37  ;;  %v4598_v53 = vsub.f32 %v10442_v2, %v10656_v30  ;;  %7274 = vpow2.f32 %v4703_v42 }
 0x87b   : > { %4776 = vadd.xlane.f32.xlu1 %v4775_v19  ;;  %v6285_v25 = vpop.f32.mrf.mxu0  ;;  %7276 = vpow2.f32 %v4707_v1  ;;  %v4787_v62 = vadd.f32 %v10820_v12, %v10814_v55 }
 0x87c   : > { %12491 = vst [vmem:[#allocation62_spill] sm:$0xff] %v10808_v47  ;;  %4773 = vadd.xlane.f32.xlu0 %v4772_v63  ;;  %v10826_v63 = vpop.eup %7248  ;;  %7278 = vpow2.f32 %v4709_v8  ;;  %v4713_v42 = vmul.f32 1.442695, %v4598_v53 }
 0x87d   : > { %v6286_v33 = vpop.f32.mrf.mxu0  ;;  %v10830_v19 = vpop.eup %7250  ;;  %7280 = vpow2.f32 %v4705_v54 }
 0x87e   : > { %v10824_v58 = vadd.f32 %v6286_v33, %v6285_v25  ;;  %v4531_v35 = vpop.xlane.xlu1 %4530  ;;  %v10832_v32 = vpop.eup %7252  ;;  %7282 = vpow2.f32 %v4711_v61 }
 0x87f   : > { %v4599_v18 = vsub.f32 %v10500_v22, %v4531_v35  ;;  %v4600_v13 = vsub.f32 %v10506_v10, %v4531_v35  ;;  %4782 = vadd.xlane.f32.xlu1 %v4781_v39  ;;  %v10836_v37 = vpop.eup %7254  ;;  %v4784_v10 = vadd.f32 %v10826_v63, %v10812_v0 }
 0x880   : > { %12492 = vst [vmem:[#allocation26_spill] sm:$0xff] %v10824_v58  ;;  %4779 = vadd.xlane.f32.xlu0 %v4778_v36  ;;  %v10840_v46 = vpop.eup %7256  ;;  %v4793_v36 = vadd.f32 %v10836_v37, %v10832_v32 }
 0x881   : > { %v4715_v2 = vmul.f32 1.442695, %v4599_v18  ;;  %v4717_v30 = vmul.f32 1.442695, %v4600_v13  ;;  %v10842_v1 = vpop.eup %7258  ;;  %v4790_v61 = vadd.f32 %v10840_v46, %v10830_v19 }
 0x882   : > { %v4986_v22 = vpop.permute.xlu1 %4985  ;;  %v10846_v39 = vpop.eup %7260 }
 0x883   : > { %v4534_v25 = vpop.xlane.xlu0 %4533  ;;  %4788 = vadd.xlane.f32.xlu1 %v4787_v62  ;;  %6374 = vmatprep.subr.bf16.mxu0 %v4986_v22  ;;  %7284 = vpow2.f32 %v4715_v2  ;;  %12493 = vst [vmem:[#allocation59_spill] sm:$0xff] %v10846_v39  ;;  %v10850_v54 = vpop.eup %7262 }
 0x884   : > { %v4601_v8 = vsub.f32 %v10512_v57, %v4534_v25  ;;  %v4602_v33 = vsub.f32 %v10520_v59, %v4534_v25  ;;  %4785 = vadd.xlane.f32.xlu0 %v4784_v10  ;;  %7286 = vpow2.f32 %v4717_v30  ;;  %v10854_v18 = vpop.eup %7264  ;;  %v4799_v2 = vadd.f32 %v10850_v54, %v10846_v39 }
 0x885   : > { %7288 = vpow2.f32 %v4713_v42  ;;  %v10858_v59 = vpop.eup %7266  ;;  %v4796_v62 = vadd.f32 %v10854_v18, %v10842_v1 }
 0x886   : > { %v4719_v53 = vmul.f32 1.442695, %v4601_v8  ;;  %v4721_v35 = vmul.f32 1.442695, %v4602_v33  ;;  %v10860_v13 = vpop.eup %7268  ;;  %v4984_v8 = vpop.permute.xlu1 %4983 }
 0x887   : > { %v10856_v57 = vpop.xlane.xlu0 %4752  ;;  %4794 = vadd.xlane.f32.xlu1 %v4793_v36  ;;  %12494 = vst [vmem:[#allocation70_spill] sm:$0xff] %v10860_v13  ;;  %v10864_v30 = vpop.eup %7270 }
 0x888   : > { %4791 = vadd.xlane.f32.xlu0 %v4790_v61  ;;  %7290 = vpow2.f32 %v4719_v53  ;;  %12495 = vst [vmem:[#allocation71_spill] sm:$0xff] %v10864_v30  ;;  %v10868_v42 = vpop.eup %7272  ;;  %v4805_v33 = vadd.f32 %v10864_v30, %v10860_v13 }
 0x889   : > { %7292 = vpow2.f32 %v4721_v35  ;;  %v10870_v10 = vpop.eup %7274  ;;  %v4802_v53 = vadd.f32 %v10868_v42, %v10858_v59 }
 0x88a   : > { %12496 = vst [vmem:[#allocation54_spill] sm:$0xff] %v10870_v10  ;;  %v10872_v25 = vpop.eup %7276  ;;  %v4968_v39 = vpop.permute.xlu1 %4967  ;;  %7294 = vrcp.f32 %v10662_v20 }
 0x88b   : > { %v4756_v22 = vpop.xlane.xlu0 %4755  ;;  %4800 = vadd.xlane.f32.xlu1 %v4799_v2  ;;  %12497 = vst [vmem:[#allocation46_spill] sm:$0xff] %v10872_v25  ;;  %v10876_v36 = vpop.eup %7278  ;;  %7296 = vrcp.f32 %v10668_v60 }
 0x88c   : > { %4797 = vadd.xlane.f32.xlu0 %v4796_v62  ;;  %12498 = vst [vmem:[#allocation47_spill] sm:$0xff] %v10876_v36  ;;  %v10880_v35 = vpop.eup %7280  ;;  %v4811_v62 = vadd.f32 %v10876_v36, %v10872_v25 }
 0x88d   : > { %12499 = vst [vmem:[#allocation33_spill] sm:$0xff] %v10880_v35  ;;  %v10882_v58 = vpop.eup %7282  ;;  %v4808_v13 = vadd.f32 %v10880_v35, %v10870_v10 }
 0x88e   : > { %12500 = vst [vmem:[#allocation27_spill] sm:$0xff] %v10882_v58 }
 0x88f   : > { %v4970_v61 = vpop.permute.xlu0 %4969  ;;  %4806 = vadd.xlane.f32.xlu1 %v4805_v33 }
 0x890   : > { %4803 = vadd.xlane.f32.xlu0 %v4802_v53  ;;  %6375 = vmatpush3.bf16.msra.mxu0 %v4970_v61  ;;  %v10884_v2 = vpop.eup %7284 }
 0x891   : > { %12501 = vst [vmem:[#allocation22_spill] sm:$0xff] %v10884_v2  ;;  %6376 = vmatprep.subr.bf16.mxu0 %v4984_v8  ;;  %v10888_v47 = vpop.eup %7286 }
 0x892   : > { %12502 = vst [vmem:[#allocation74_spill] sm:$0xff] %v10888_v47  ;;  %v10892_v30 = vpop.eup %7288  ;;  %v4817_v33 = vadd.f32 %v10888_v47, %v10884_v2 }
 0x893   : > { %4812 = vadd.xlane.f32.xlu1 %v4811_v62  ;;  %v4814_v8 = vadd.f32 %v10892_v30, %v10882_v58 }
 0x894   : > { %4809 = vadd.xlane.f32.xlu0 %v4808_v13  ;;  %6377 = vmatpush3.bf16.msra.mxu0 %v4968_v39 }
 0x895   : > { %v10896_v53 = vpop.eup %7290 }
 0x896   : > { %12503 = vst [vmem:[#allocation43_spill] sm:$0xff] %v10896_v53  ;;  %v10900_v61 = vpop.eup %7292 }
 0x897   : > { %4818 = vadd.xlane.f32.xlu1 %v4817_v33  ;;  %v4820_v25 = vadd.f32 %v10900_v61, %v10896_v53 }
 0x898   : > { %4815 = vadd.xlane.f32.xlu0 %v4814_v8 }
 0x89c   : > { %4821 = vadd.xlane.f32.xlu0 %v4820_v25 }
 0x8b4   : > { %v6288_v36 = vpop.f32.mrf.mxu0 }
 0x8b6   : > { %v6289_v62 = vpop.f32.mrf.mxu0 }
 0x8b7   : > { %v10904_v13 = vadd.f32 %v6289_v62, %v6288_v36 }
 0x8b8   : > { %v6291_v39 = vpop.f32.mrf.mxu0 }
 0x8ba   : > { %v6292_v10 = vpop.f32.mrf.mxu0 }
 0x8bb   : > { %v10906_v2 = vadd.f32 %v6292_v10, %v6291_v39  ;;  %v4537_v47 = vpop.xlane.xlu1 %4536 }
 0x8bc   : > { %v4603_v35 = vsub.f32 %v10606_v21, %v4537_v47  ;;  %v4604_v58 = vsub.f32 %v10610_v16, %v4537_v47 }
 0x8bd   : > { %12504 = vst [vmem:[#allocation83_spill] sm:$0xff] %v10906_v2 }
 0x8be   : > { %v4723_v33 = vmul.f32 1.442695, %v4603_v35  ;;  %v4725_v8 = vmul.f32 1.442695, %v4604_v58 }
 0x8bf   : > { %v4982_v25 = vpop.permute.xlu1 %4981 }
 0x8c0   : > { %7298 = vpow2.f32 %v4723_v33  ;;  %v4540_v53 = vpop.xlane.xlu0 %4539  ;;  %6378 = vmatprep.subr.bf16.mxu0 %v4982_v25  ;;  %v7295_v33 = vpop.eup %7294 }
 0x8c1   : > { %7300 = vpow2.f32 %v4725_v8  ;;  %v4605_v36 = vsub.f32 %v10616_v5, %v4540_v53  ;;  %v4606_v10 = vsub.f32 %v10622_v3, %v4540_v53  ;;  %v6294_v62 = vpop.f32.mrf.mxu0  ;;  %v7297_v53 = vpop.eup %7296 }
 0x8c3   : > { %v4727_v39 = vmul.f32 1.442695, %v4605_v36  ;;  %v4729_v21 = vmul.f32 1.442695, %v4606_v10  ;;  %v6295_v2 = vpop.f32.mrf.mxu0  ;;  %v4980_v5 = vpop.permute.xlu1 %4979 }
 0x8c4   : > { %v10914_v16 = vadd.f32 %v6295_v2, %v6294_v62  ;;  %v4759_v20 = vpop.xlane.xlu0 %4758 }
 0x8c5   : > { %7302 = vpow2.f32 %v4727_v39  ;;  %v6297_v47 = vpop.f32.mrf.mxu0 }
 0x8c6   : > { %12505 = vst [vmem:[#allocation81_spill] sm:$0xff] %v10914_v16  ;;  %7304 = vpow2.f32 %v4729_v21 }
 0x8c7   : > { %7306 = vrcp.f32 %v4756_v22  ;;  %v6298_v60 = vpop.f32.mrf.mxu0  ;;  %v4964_v39 = vpop.permute.xlu1 %4963 }
 0x8c8   : > { %v10916_v58 = vadd.f32 %v6298_v60, %v6297_v47  ;;  %v4762_v35 = vpop.xlane.xlu0 %4761  ;;  %7308 = vrcp.f32 %v10856_v57  ;;  %v4874_v57 = vmul.f32 %v7297_v53, %v10460_v52  ;;  %v4872_v47 = vmul.f32 %v7295_v33, %v10454_v11 }
 0x8c9   : > { %v6300_v3 = vpop.f32.mrf.mxu0  ;;  %7310 = vrcp.f32 %v4762_v35 }
 0x8ca   : > { %12506 = vst [vmem:[#allocation80_spill] sm:$0xff] %v10916_v58  ;;  %7312 = vrcp.f32 %v4759_v20 }
 0x8cb   : > { %v6301_v2 = vpop.f32.mrf.mxu0 }
 0x8cc   : > { %v4966_v8 = vpop.permute.xlu0 %4965  ;;  %v10923_v10 = vadd.f32 %v6301_v2, %v6300_v3 }
 0x8cd   : > { %v10919_v25 = vpop.eup %7298  ;;  %6379 = vmatpush3.bf16.msra.mxu0 %v4966_v8  ;;  %v6303_v22 = vpop.f32.mrf.mxu0 }
 0x8ce   : > { %v10921_v36 = vpop.eup %7300  ;;  %12507 = vst [vmem:[#allocation21_spill] sm:$0xff] %v10923_v10  ;;  %6380 = vmatprep.subr.bf16.mxu0 %v4980_v5  ;;  %v4934_v5 = vpack.c.bf16 %v4874_v57, %v4872_v47  ;;  %v12509_v10 = vpack.c.bf16 %v10590_v40, %v10587_v4  ;;  %v4871_v57 = vmul.f32 %v7295_v33, %v10448_v23  ;;  %v12511_v23 = vld [vmem:[#allocation8_spill] sm:$0xff] }
 0x8cf   : > { %v4823_v62 = vadd.f32 %v10921_v36, %v10919_v25  ;;  %v6304_v21 = vpop.f32.mrf.mxu0 }
 0x8d0   : > { %v10931_v8 = vadd.f32 %v6304_v21, %v6303_v22  ;;  %v4873_v22 = vmul.f32 %v7297_v53, %v10456_v50 }
 0x8d1   : > { %4824 = vadd.xlane.f32.xlu1 %v4823_v62  ;;  %6381 = vmatpush3.bf16.msra.mxu0 %v4964_v39  ;;  %v6306_v35 = vpop.f32.mrf.mxu0 }
 0x8d2   : > { %v10929_v60 = vpop.eup %7302  ;;  %12508 = vst [vmem:[#allocation88_spill] sm:$0xff] %v10931_v8  ;;  %v12510_v8 = vld [vmem:[#allocation10_spill] sm:$0xff] }
 0x8d3   : > { %v10933_v3 = vpop.eup %7304  ;;  %v6307_v20 = vpop.f32.mrf.mxu0 }
 0x8d4   : > { %v7307_v2 = vpop.eup %7306  ;;  %5044 = vmatmul.mubr.bf16.vlgmr.msra.gmra.mxu0 %v12509_v10  ;;  %v4826_v52 = vadd.f32 %v10933_v3, %v10929_v60  ;;  %v10940_v11 = vadd.f32 %v6307_v20, %v6306_v35  ;;  %v4933_v10 = vpack.c.bf16 %v4873_v22, %v4871_v57  ;;  %v12512_v22 = vld [vmem:[#allocation99_spill] sm:$0xff]  ;;  %v12513_v57 = vld [vmem:[#allocation97_spill] sm:$0xff] }
 0x8d5   : > { %5051 = vmatprep.mubr.bf16.mxu0 %v4934_v5  ;;  %v7309_v62 = vpop.eup %7308  ;;  %v6309_v39 = vpop.f32.mrf.mxu0  ;;  %v4878_v21 = vmul.f32 %v7307_v2, %v10540_v7  ;;  %v4877_v50 = vmul.f32 %v7307_v2, %v10532_v49 }
 0x8d6   : > { %4827 = vadd.xlane.f32.xlu0 %v4826_v52  ;;  %v4876_v4 = vmul.f32 %v7309_v62, %v12510_v8  ;;  %v7311_v5 = vpop.eup %7310  ;;  %v4875_v33 = vmul.f32 %v7309_v62, %v12511_v23 }
 0x8d7   : > { %v6310_v47 = vpop.f32.mrf.mxu0  ;;  %v7313_v52 = vpop.eup %7312  ;;  %v4882_v7 = vmul.f32 %v7311_v5, %v10640_v34 }
 0x8d8   : > { %v10946_v40 = vadd.f32 %v6310_v47, %v6309_v39  ;;  %v4936_v16 = vpack.c.bf16 %v4878_v21, %v4876_v4  ;;  %v4880_v53 = vmul.f32 %v7313_v52, %v10632_v56  ;;  %v4935_v8 = vpack.c.bf16 %v4877_v50, %v4875_v33 }
 0x8d9   : > { %v6312_v58 = vpop.f32.mrf.mxu0  ;;  %v4881_v21 = vmul.f32 %v7311_v5, %v12512_v22  ;;  %v4879_v47 = vmul.f32 %v7313_v52, %v12513_v57 }
 0x8da   : > { %v4938_v39 = vpack.c.bf16 %v4882_v7, %v4880_v53 }
 0x8db   : > { %v6313_v35 = vpop.f32.mrf.mxu0 }
 0x8dc   : > { %5052 = vmatmul.mubr.bf16.gmra.mxu0 %v4933_v10  ;;  %v10948_v20 = vadd.f32 %v6313_v35, %v6312_v58 }
 0x8dd   : > { %5059 = vmatprep.mubr.bf16.mxu0 %v4936_v16  ;;  %v4937_v16 = vpack.c.bf16 %v4881_v21, %v4879_v47 }
 0x8e4   : > { %5060 = vmatmul.mubr.bf16.gmra.mxu0 %v4935_v8 }
 0x8e5   : > { %5067 = vmatprep.mubr.bf16.mxu0 %v4938_v39 }
 0x8ec   : > { %5068 = vmatmul.mubr.bf16.gmra.mxu0 %v4937_v16 }
 0x8f8   : > { %v4543_v58 = vpop.xlane.xlu1 %4542 }
 0x8f9   : > { %v4607_v4 = vsub.f32 %v10704_v27, %v4543_v58  ;;  %v4608_v49 = vsub.f32 %v10714_v38, %v4543_v58 }
 0x8fb   : > { %v4731_v34 = vmul.f32 1.442695, %v4607_v4  ;;  %v4733_v2 = vmul.f32 1.442695, %v4608_v49 }
 0x8fc   : > { %v4765_v62 = vpop.xlane.xlu1 %4764 }
 0x8fd   : > { %7314 = vpow2.f32 %v4731_v34  ;;  %v4546_v56 = vpop.xlane.xlu0 %4545 }
 0x8fe   : > { %7316 = vpow2.f32 %v4733_v2  ;;  %v4609_v10 = vsub.f32 %v10726_v6, %v4546_v56  ;;  %v4610_v35 = vsub.f32 %v10746_v41, %v4546_v56 }
 0x8ff   : > { %7318 = vrcp.f32 %v4765_v62 }
 0x900   : > { %v4735_v5 = vmul.f32 1.442695, %v4609_v10  ;;  %v4737_v52 = vmul.f32 1.442695, %v4610_v35  ;;  %v4771_v50 = vpop.xlane.xlu1 %4770 }
 0x901   : > { %7320 = vrcp.f32 %v4771_v50  ;;  %v4768_v7 = vpop.xlane.xlu0 %4767 }
 0x902   : > { %7322 = vpow2.f32 %v4735_v5 }
 0x903   : > { %7324 = vpow2.f32 %v4737_v52 }
 0x904   : > { %7326 = vrcp.f32 %v4768_v7  ;;  %v4777_v38 = vpop.xlane.xlu1 %4776 }
 0x905   : > { %v4774_v27 = vpop.xlane.xlu0 %4773 }
 0x906   : > { %7328 = vrcp.f32 %v4774_v27 }
 0x908   : > { %v4783_v57 = vpop.xlane.xlu1 %4782 }
 0x909   : > { %v4780_v23 = vpop.xlane.xlu0 %4779 }
 0x90a   : > { %v10960_v33 = vpop.eup %7314  ;;  %7330 = vrcp.f32 %v4780_v23 }
 0x90b   : > { %v10962_v53 = vpop.eup %7316  ;;  %7332 = vrcp.f32 %v4777_v38 }
 0x90c   : > { %v4829_v6 = vadd.f32 %v10962_v53, %v10960_v33  ;;  %v7319_v41 = vpop.eup %7318  ;;  %v4789_v50 = vpop.xlane.xlu1 %4788 }
 0x90d   : > { %v4786_v22 = vpop.xlane.xlu0 %4785  ;;  %v4884_v58 = vmul.f32 %v7319_v41, %v10740_v17  ;;  %v4883_v49 = vmul.f32 %v7319_v41, %v10734_v31 }
 0x90e   : > { %v7321_v8 = vpop.eup %7320  ;;  %4830 = vadd.xlane.f32.xlu1 %v4829_v6  ;;  %7334 = vrcp.f32 %v4786_v22  ;;  %v12514_v6 = vld [vmem:[#allocation72_spill] sm:$0xff] }
 0x90f   : > { %v10966_v39 = vpop.eup %7322  ;;  %7336 = vrcp.f32 %v4783_v57  ;;  %v4888_v10 = vmul.f32 %v7321_v8, %v10762_v44  ;;  %v4887_v7 = vmul.f32 %v7321_v8, %v10756_v48  ;;  %v12515_v48 = vld [vmem:[#allocation60_spill] sm:$0xff]  ;;  %v12516_v57 = vld [vmem:[#allocation29_spill] sm:$0xff] }
 0x910   : > { %v10968_v21 = vpop.eup %7324  ;;  %v4795_v22 = vpop.xlane.xlu1 %4794 }
 0x911   : > { %v7327_v47 = vpop.eup %7326  ;;  %v4832_v16 = vadd.f32 %v10968_v21, %v10966_v39  ;;  %v4792_v17 = vpop.xlane.xlu0 %4791 }
 0x912   : > { %v4886_v4 = vmul.f32 %v7327_v47, %v10752_v15  ;;  %v4885_v34 = vmul.f32 %v7327_v47, %v10744_v26  ;;  %7338 = vrcp.f32 %v4792_v17  ;;  %v12517_v47 = vld [vmem:[#allocation42_spill] sm:$0xff]  ;;  %v12523_v17 = vld [vmem:[#allocation44_spill] sm:$0xff] }
 0x913   : > { %v7329_v2 = vpop.eup %7328  ;;  %4833 = vadd.xlane.f32.xlu0 %v4832_v16  ;;  %7340 = vrcp.f32 %v4789_v50  ;;  %v6073_v16 = vadd.f32 %v12517_v47, %v12516_v57 }
 0x914   : > { %v4940_v62 = vpack.c.bf16 %v4886_v4, %v4884_v58  ;;  %v4939_v56 = vpack.c.bf16 %v4885_v34, %v4883_v49  ;;  %v4890_v35 = vmul.f32 %v7329_v2, %v10772_v45  ;;  %v4889_v31 = vmul.f32 %v7329_v2, %v10768_v14  ;;  %v12518_v34 = vld [vmem:[#allocation35_spill] sm:$0xff]  ;;  %v12519_v2 = vld [vmem:[#allocation49_spill] sm:$0xff] }
 0x915   : > { %v4798_v23 = vpop.xlane.xlu0 %4797 }
 0x916   : > { %5075 = vmatprep.mubr.bf16.mxu0 %v4940_v62  ;;  %v4942_v5 = vpack.c.bf16 %v4890_v35, %v4888_v10  ;;  %v4941_v27 = vpack.c.bf16 %v4889_v31, %v4887_v7  ;;  %7342 = vrcp.f32 %v4798_v23  ;;  %v4801_v35 = vpop.xlane.xlu1 %4800  ;;  %v12525_v7 = vld [vmem:[#allocation94_spill] sm:$0xff] }
 0x917   : > { %v7331_v52 = vpop.eup %7330  ;;  %5076 = vmatmul.mubr.bf16.gmra.mxu0 %v4939_v56  ;;  %7344 = vrcp.f32 %v4795_v22  ;;  %v12520_v56 = vld [vmem:[#allocation14_spill] sm:$0xff] }
 0x918   : > { %5083 = vmatprep.mubr.bf16.mxu0 %v4942_v5  ;;  %v7333_v15 = vpop.eup %7332  ;;  %v4894_v26 = vmul.f32 %v7331_v52, %v10792_v51  ;;  %v4893_v14 = vmul.f32 %v7331_v52, %v10788_v29  ;;  %v6067_v29 = vadd.f32 %v12519_v2, %v12518_v34  ;;  %v12522_v52 = vld [vmem:[#allocation56_spill] sm:$0xff] }
 0x919   : > { %v4892_v44 = vmul.f32 %v7333_v15, %v10782_v43  ;;  %v4891_v43 = vmul.f32 %v7333_v15, %v10776_v24  ;;  %v4804_v62 = vpop.xlane.xlu0 %4803  ;;  %v12521_v24 = vld [vmem:[#allocation23_spill] sm:$0xff]  ;;  %v6224_v15 = vadd.f32 %v12523_v17, %v12522_v52 }
 0x91a   : > { %v6227_v10 = vadd.f32 %v12521_v24, %v12520_v56  ;;  %7346 = vrcp.f32 %v4804_v62  ;;  %v12529_v56 = vld [vmem:[#allocation59_spill] sm:$0xff] }
 0x91b   : > { %v4944_v45 = vpack.c.bf16 %v4894_v26, %v4892_v44  ;;  %v7335_v38 = vpop.eup %7334  ;;  %v4943_v58 = vpack.c.bf16 %v4893_v14, %v4891_v43  ;;  %7348 = vrcp.f32 %v4801_v35  ;;  %v12524_v26 = vld [vmem:[#allocation53_spill] sm:$0xff] }
 0x91c   : > { %v7337_v41 = vpop.eup %7336  ;;  %v4898_v51 = vmul.f32 %v7335_v38, %v10826_v63  ;;  %v6233_v44 = vadd.f32 %v12525_v7, %v12524_v26 }
 0x91d   : > { %v4896_v8 = vmul.f32 %v7337_v41, %v10804_v9  ;;  %v4897_v9 = vmul.f32 %v7335_v38, %v10812_v0  ;;  %v4895_v50 = vmul.f32 %v7337_v41, %v10798_v28  ;;  %v12526_v38 = vld [vmem:[#allocation37_spill] sm:$0xff]  ;;  %v4807_v41 = vpop.xlane.xlu1 %4806 }
 0x91f   : > { %5084 = vmatmul.mubr.bf16.gmra.mxu0 %v4941_v27  ;;  %2750 = vrot.lane.b32.xlu1 %v12514_v6, %s7382_s14  ;;  %v4946_v4 = vpack.c.bf16 %v4898_v51, %v4896_v8  ;;  %v7339_v49 = vpop.eup %7338  ;;  %v4945_v27 = vpack.c.bf16 %v4897_v9, %v4895_v50  ;;  %v4810_v6 = vpop.xlane.xlu0 %4809  ;;  %v12533_v50 = vld [vmem:[#allocation47_spill] sm:$0xff] }
 0x920   : > { %5091 = vmatprep.mubr.bf16.mxu0 %v4944_v45  ;;  %v7341_v63 = vpop.eup %7340  ;;  %v4902_v5 = vmul.f32 %v7339_v49, %v10840_v46  ;;  %v12527_v46 = vld [vmem:[#allocation75_spill] sm:$0xff]  ;;  %7350 = vrcp.f32 %v4810_v6  ;;  %v12536_v6 = vld [vmem:[#allocation74_spill] sm:$0xff] }
 0x921   : > { %v4900_v31 = vmul.f32 %v7341_v63, %v10820_v12  ;;  %v6230_v23 = vadd.f32 %v12527_v46, %v12526_v38  ;;  %v4901_v12 = vmul.f32 %v7339_v49, %v10830_v19  ;;  %v4899_v14 = vmul.f32 %v7341_v63, %v10814_v55  ;;  %v12535_v46 = vld [vmem:[#allocation46_spill] sm:$0xff] }
 0x922   : > { %7352 = vrcp.f32 %v4807_v41 }
 0x923   : > { %2754 = vrot.lane.b32.xlu1 %v12515_v48, %s7382_s14  ;;  %v4948_v0 = vpack.c.bf16 %v4902_v5, %v4900_v31  ;;  %v7343_v45 = vpop.eup %7342  ;;  %v4947_v48 = vpack.c.bf16 %v4901_v12, %v4899_v14  ;;  %v4816_v57 = vpop.xlane.xlu0 %4815  ;;  %v12531_v5 = vld [vmem:[#allocation54_spill] sm:$0xff]  ;;  %v12537_v12 = vld [vmem:[#allocation43_spill] sm:$0xff] }
 0x924   : > { %v7345_v28 = vpop.eup %7344  ;;  %v4906_v22 = vmul.f32 %v7343_v45, %v10854_v18  ;;  %7354 = vrcp.f32 %v4816_v57 }
 0x925   : > { %v4904_v51 = vmul.f32 %v7345_v28, %v10836_v37  ;;  %v4903_v18 = vmul.f32 %v7345_v28, %v10832_v32  ;;  %v12530_v32 = vld [vmem:[#allocation71_spill] sm:$0xff] }
 0x927   : > { %5092 = vmatmul.mubr.bf16.gmra.mxu0 %v4943_v58  ;;  %2756 = vrot.lane.b32.xlu1 %v6073_v16, %s7382_s14  ;;  %v4950_v43 = vpack.c.bf16 %v4906_v22, %v4904_v51  ;;  %v7347_v8 = vpop.eup %7346  ;;  %v4813_v16 = vpop.xlane.xlu1 %4812  ;;  %v4905_v58 = vmul.f32 %v7343_v45, %v10842_v1  ;;  %v12528_v1 = vld [vmem:[#allocation33_spill] sm:$0xff]  ;;  %v12538_v51 = vld [vmem:[#allocation22_spill] sm:$0xff] }
 0x928   : > { %5099 = vmatprep.mubr.bf16.mxu0 %v4946_v4  ;;  %v7349_v47 = vpop.eup %7348  ;;  %v4910_v19 = vmul.f32 %v7347_v8, %v10868_v42  ;;  %7356 = vrcp.f32 %v4813_v16  ;;  %v4822_v34 = vpop.xlane.xlu0 %4821  ;;  %v4909_v62 = vmul.f32 %v7347_v8, %v10858_v59 }
 0x929   : > { %2752 = vrot.lane.b32.xlu0 %v6067_v29, %s7382_s14  ;;  %v4908_v55 = vmul.f32 %v7349_v47, %v10850_v54  ;;  %v4949_v4 = vpack.c.bf16 %v4905_v58, %v4903_v18  ;;  %7358 = vrcp.f32 %v4822_v34  ;;  %v4907_v42 = vmul.f32 %v7349_v47, %v12529_v56 }
 0x92b   : > { %3955 = vrot.lane.b32.xlu1 %v6227_v10, %s7383_s17  ;;  %v4952_v37 = vpack.c.bf16 %v4910_v19, %v4908_v55  ;;  %v4819_v29 = vpop.xlane.xlu1 %4818  ;;  %v4951_v10 = vpack.c.bf16 %v4909_v62, %v4907_v42  ;;  %v6600_v62 = vld [vmem:[%s11444_s2 + $0x8] sm:$0xff]  }
 0x92c   : > { %7360 = vrcp.f32 %v4819_v29 }
 0x92d   : > { %3953 = vrot.lane.b32.xlu0 %v6224_v15, %s7383_s17  ;;  %v7351_v49 = vpop.eup %7350  ;;  %v12532_v15 = vld [vmem:[#allocation70_spill] sm:$0xff] }
 0x92e   : > { %v4914_v63 = vmul.f32 %v7351_v49, %v12528_v1  ;;  %v4913_v52 = vmul.f32 %v7351_v49, %v12531_v5  ;;  %v6598_v49 = vld [vmem:[%s11444_s2 + $0x18] sm:$0xff]  }
 0x92f   : > { %5100 = vmatmul.mubr.bf16.gmra.mxu0 %v4945_v27  ;;  %3959 = vrot.lane.b32.xlu1 %v6233_v44, %s7383_s17  ;;  %v7353_v2 = vpop.eup %7352 }
 0x930   : > { %5107 = vmatprep.mubr.bf16.mxu0 %v4948_v0  ;;  %v4912_v24 = vmul.f32 %v7353_v2, %v12530_v32  ;;  %v4911_v59 = vmul.f32 %v7353_v2, %v12532_v15  ;;  %v12534_v0 = vld [vmem:[#allocation27_spill] sm:$0xff]  ;;  %6498 = vmatprep.subr.bf16.mxu1 %v6598_v49 }
 0x931   : > { %3957 = vrot.lane.b32.xlu0 %v6230_v23, %s7383_s17  ;;  %v7355_v35 = vpop.eup %7354  ;;  %6499 = vmatpush3.bf16.msra.mxu1 %v6598_v49 }
 0x932   : > { %v4954_v54 = vpack.c.bf16 %v4914_v63, %v4912_v24  ;;  %v4918_v17 = vmul.f32 %v7355_v35, %v10892_v30  ;;  %v4953_v26 = vpack.c.bf16 %v4913_v52, %v4911_v59  ;;  %v4917_v45 = vmul.f32 %v7355_v35, %v12534_v0  ;;  %v6601_v24 = vld [vmem:[%s11444_s2] sm:$0xff]  }
 0x935   : > { %v7357_v9 = vpop.eup %7356 }
 0x936   : > { %v4916_v31 = vmul.f32 %v7357_v9, %v12533_v50  ;;  %v7359_v44 = vpop.eup %7358  ;;  %v4915_v23 = vmul.f32 %v7357_v9, %v12535_v46  ;;  %v12539_v50 = vld [vmem:[#allocation64_spill] sm:$0xff]  ;;  %v12542_v46 = vld [vmem:[#allocation91_spill] sm:$0xff] }
 0x937   : > { %5108 = vmatmul.mubr.bf16.gmra.mxu0 %v4947_v48  ;;  %v4922_v38 = vmul.f32 %v7359_v44, %v10900_v61  ;;  %v4921_v22 = vmul.f32 %v7359_v44, %v12537_v12 }
 0x938   : > { %5115 = vmatprep.mubr.bf16.mxu0 %v4950_v43  ;;  %v4956_v7 = vpack.c.bf16 %v4918_v17, %v4916_v31  ;;  %v4955_v41 = vpack.c.bf16 %v4917_v45, %v4915_v23 }
 0x939   : > { %v7361_v27 = vpop.eup %7360 }
 0x93a   : > { %v4920_v28 = vmul.f32 %v7361_v27, %v12536_v6  ;;  %v4919_v48 = vmul.f32 %v7361_v27, %v12538_v51  ;;  %v12543_v6 = vld [vmem:[#allocation68_spill] sm:$0xff] }
 0x93c   : > { %v4958_v30 = vpack.c.bf16 %v4922_v38, %v4920_v28  ;;  %v4957_v43 = vpack.c.bf16 %v4921_v22, %v4919_v48  ;;  %v12544_v28 = vld [vmem:[#allocation63_spill] sm:$0xff] }
 0x93f   : > { %5116 = vmatmul.mubr.bf16.gmra.mxu0 %v4949_v4  ;;  %v11038_v4 = vpop.f32.mrf.mxu0 }
 0x940   : > { %5123 = vmatprep.mubr.bf16.mxu0 %v4952_v37 }
 0x941   : > { %v11040_v37 = vpop.f32.mrf.mxu0 }
 0x947   : > { %5124 = vmatmul.mubr.bf16.gmra.mxu0 %v4951_v10 }
 0x948   : > { %5131 = vmatprep.mubr.bf16.mxu0 %v4954_v54 }
 0x94f   : > { %5132 = vmatmul.mubr.bf16.gmra.mxu0 %v4953_v26  ;;  %v12540_v26 = vld [vmem:[#allocation57_spill] sm:$0xff] }
 0x950   : > { %5139 = vmatprep.mubr.bf16.mxu0 %v4956_v7  ;;  %v12541_v7 = vld [vmem:[#allocation79_spill] sm:$0xff] }
 0x951   : > { %v6079_v44 = vadd.f32 %v12541_v7, %v12540_v26 }
 0x957   : > { %5140 = vmatmul.mubr.bf16.gmra.mxu0 %v4955_v41  ;;  %v6085_v41 = vadd.f32 %v12544_v28, %v12543_v6  ;;  %v12564_v6 = vld [vmem:[#allocation78_spill] sm:$0xff] }
 0x958   : > { %5147 = vmatprep.mubr.bf16.mxu0 %v4958_v30 }
 0x95a   : > { %v4825_v14 = vpop.xlane.xlu1 %4824 }
 0x95b   : > { %7362 = vrcp.f32 %v4825_v14 }
 0x95f   : > { %5148 = vmatmul.mubr.bf16.gmra.mxu0 %v4957_v43  ;;  %v4828_v8 = vpop.xlane.xlu0 %4827 }
 0x960   : > { %7364 = vrcp.f32 %v4828_v8  ;;  %v12545_v8 = vld [vmem:[#allocation95_spill] sm:$0xff] }
 0x968   : > { %v7363_v57 = vpop.eup %7362 }
 0x969   : > { %v4924_v47 = vmul.f32 %v7363_v57, %v10921_v36  ;;  %v4923_v58 = vmul.f32 %v7363_v57, %v10919_v25  ;;  %v6599_v25 = vld [vmem:[%s11444_s2 + $0x10] sm:$0xff]  }
 0x96a   : > { %6500 = vmatprep.subr.bf16.mxu1 %v6599_v25 }
 0x96b   : > { %6501 = vmatpush3.bf16.msra.mxu1 %v6599_v25 }
 0x96c   : > { %6502 = vmatprep.subr.bf16.mxu1 %v6600_v62 }
 0x96d   : > { %v7365_v61 = vpop.eup %7364 }
 0x96e   : > { %v4926_v16 = vmul.f32 %v7365_v61, %v10933_v3  ;;  %v4925_v19 = vmul.f32 %v7365_v61, %v10929_v60 }
 0x96f   : > { %6503 = vmatpush3.bf16.msra.mxu1 %v6600_v62  ;;  %v12554_v62 = vld [vmem:[#allocation84_spill] sm:$0xff] }
 0x970   : > { %v4960_v18 = vpack.c.bf16 %v4926_v16, %v4924_v47  ;;  %v4959_v55 = vpack.c.bf16 %v4925_v19, %v4923_v58  ;;  %6504 = vmatprep.subr.bf16.mxu1 %v6601_v24  ;;  %v12546_v47 = vld [vmem:[#allocation96_spill] sm:$0xff]  ;;  %v12547_v16 = vld [vmem:[#allocation98_spill] sm:$0xff] }
 0x971   : > { %v6239_v58 = vadd.f32 %v12547_v16, %v12546_v47  ;;  %v12570_v16 = vld [vmem:[#allocation65_spill] sm:$0xff] }
 0x972   : > { %5155 = vmatprep.mubr.bf16.mxu0 %v4960_v18 }
 0x973   : > { %5156 = vmatmul.mubr.bf16.gmra.mxu0 %v4959_v55  ;;  %6505 = vmatpush3.bf16.msra.mxu1 %v6601_v24  ;;  %v12559_v24 = vld [vmem:[#allocation66_spill] sm:$0xff] }
 0x994   : > { %v6382_v34 = vpop.f32.mrf.mxu0 }
 0x996   : > { %v6383_v36 = vpop.f32.mrf.mxu0 }
 0x997   : > { %v6384_v60 = vadd.f32 %v6383_v36, %v6382_v34  ;;  %v4831_v3 = vpop.xlane.xlu1 %4830 }
 0x998   : > { %v6385_v2 = vpop.f32.mrf.mxu0  ;;  %7366 = vrcp.f32 %v4831_v3  ;;  %v12552_v3 = vld [vmem:[#allocation32_spill] sm:$0xff] }
 0x999   : > { %5204 = vrot.lane.b32.xlu0 %v6384_v60, %s7385_s19  ;;  %v12551_v60 = vld [vmem:[#allocation82_spill] sm:$0xff] }
 0x99a   : > { %v6386_v29 = vpop.f32.mrf.mxu0 }
 0x99b   : > { %v6387_v1 = vadd.f32 %v6386_v29, %v6385_v2  ;;  %v2751_v63 = vpop.permute.xlu1 %2750  ;;  %v12553_v2 = vld [vmem:[#allocation87_spill] sm:$0xff] }
 0x99c   : > { %2847 = vst.msk [vmem:[#allocation2] sm:$0xff] %vm2846_vm2, %v2751_v63  ;;  %v4834_v56 = vpop.xlane.xlu0 %4833  ;;  %v6388_v42 = vpop.f32.mrf.mxu0  ;;  %v6091_v29 = vadd.f32 %v12553_v2, %v12552_v3  ;;  %v12556_v63 = vld [vmem:[#allocation38_spill] sm:$0xff]  ;;  %v12574_v3 = vld [vmem:[#allocation51_spill] sm:$0xff] }
 0x99d   : > { %7368 = vrcp.f32 %v4834_v56  ;;  %5206 = vrot.lane.b32.xlu1 %v6387_v1, %s7385_s19  ;;  %v12555_v1 = vld [vmem:[#allocation9_spill] sm:$0xff] }
 0x99e   : > { %v6389_v32 = vpop.f32.mrf.mxu0  ;;  %v6097_v56 = vadd.f32 %v12556_v63, %v12555_v1 }
 0x99f   : > { %v6390_v10 = vadd.f32 %v6389_v32, %v6388_v42  ;;  %v2755_v54 = vpop.permute.xlu1 %2754  ;;  %v12557_v42 = vld [vmem:[#allocation103_spill] sm:$0xff]  ;;  %v12558_v32 = vld [vmem:[#allocation48_spill] sm:$0xff] }
 0x9a0   : > { %2849 = vst.msk [vmem:[#allocation2 + $0x10] sm:$0xff] %vm2846_vm2, %v2755_v54  ;;  %v2753_v35 = vpop.permute.xlu0 %2752  ;;  %v6391_v9 = vpop.f32.mrf.mxu0 }
 0x9a1   : > { %2848 = vst.msk [vmem:[#allocation2 + $0x8] sm:$0xff] %vm2846_vm2, %v2753_v35  ;;  %5208 = vrot.lane.b32.xlu0 %v6390_v10, %s7385_s19  ;;  %v12560_v10 = vld [vmem:[#allocation52_spill] sm:$0xff] }
 0x9a2   : > { %v6392_v5 = vpop.f32.mrf.mxu0 }
 0x9a3   : > { %v6393_v52 = vadd.f32 %v6392_v5, %v6391_v9  ;;  %v2757_v17 = vpop.permute.xlu1 %2756 }
 0x9a4   : > { %2850 = vst.msk [vmem:[#allocation2 + $0x18] sm:$0xff] %vm2846_vm2, %v2757_v17  ;;  %v3954_v15 = vpop.permute.xlu0 %3953  ;;  %v6394_v59 = vpop.f32.mrf.mxu0 }
 0x9a5   : > { %4050 = vst.msk [vmem:[#allocation2] sm:$0xff] %vm4049_vm3, %v3954_v15  ;;  %5210 = vrot.lane.b32.xlu1 %v6393_v52, %s7385_s19  ;;  %2758 = vrot.lane.b32.xlu0 %v12539_v50, %s7382_s14  ;;  %v7367_v0 = vpop.eup %7366 }
 0x9a6   : > { %v6395_v31 = vpop.f32.mrf.mxu0  ;;  %v4928_v22 = vmul.f32 %v7367_v0, %v10962_v53  ;;  %v4927_v51 = vmul.f32 %v7367_v0, %v10960_v33  ;;  %v12548_v33 = vld [vmem:[#allocation100_spill] sm:$0xff] }
 0x9a7   : > { %v3956_v27 = vpop.permute.xlu1 %3955  ;;  %v6396_v18 = vadd.f32 %v6395_v31, %v6394_v59 }
 0x9a8   : > { %4051 = vst.msk [vmem:[#allocation2 + $0x8] sm:$0xff] %vm4049_vm3, %v3956_v27  ;;  %v3958_v45 = vpop.permute.xlu0 %3957  ;;  %v6397_v38 = vpop.f32.mrf.mxu0  ;;  %v12561_v27 = vld [vmem:[#allocation24_spill] sm:$0xff] }
 0x9a9   : > { %4052 = vst.msk [vmem:[#allocation2 + $0x10] sm:$0xff] %vm4049_vm3, %v3958_v45  ;;  %2760 = vrot.lane.b32.xlu1 %v6079_v44, %s7382_s14  ;;  %2762 = vrot.lane.b32.xlu0 %v12542_v46, %s7382_s14  ;;  %v12562_v45 = vld [vmem:[#allocation77_spill] sm:$0xff] }
 0x9aa   : > { %v7369_v23 = vpop.eup %7368  ;;  %v6398_v30 = vpop.f32.mrf.mxu0 }
 0x9ab   : > { %v3960_v12 = vpop.permute.xlu1 %3959  ;;  %v4930_v14 = vmul.f32 %v7369_v23, %v10968_v21  ;;  %v4929_v48 = vmul.f32 %v7369_v23, %v10966_v39  ;;  %v12549_v39 = vld [vmem:[#allocation101_spill] sm:$0xff]  ;;  %v12550_v21 = vld [vmem:[#allocation102_spill] sm:$0xff]  ;;  %v6399_v49 = vadd.f32 %v6398_v30, %v6397_v38  ;;  %v12566_v30 = vld [vmem:[#allocation31_spill] sm:$0xff] }
 0x9ac   : > { %4053 = vst.msk [vmem:[#allocation2 + $0x18] sm:$0xff] %vm4049_vm3, %v3960_v12  ;;  %v6400_v43 = vpop.f32.mrf.mxu0  ;;  %v6245_v19 = vadd.f32 %v12550_v21, %v12549_v39  ;;  %v12563_v38 = vld [vmem:[#allocation41_spill] sm:$0xff] }
 0x9ad   : > { %2764 = vrot.lane.b32.xlu1 %v6085_v41, %s7382_s14  ;;  %3961 = vrot.lane.b32.xlu0 %v12545_v8, %s7383_s17  ;;  %v4962_v57 = vpack.c.bf16 %v4930_v14, %v4928_v22  ;;  %v4961_v61 = vpack.c.bf16 %v4929_v48, %v4927_v51  ;;  %v6103_v46 = vadd.f32 %v12563_v38, %v12562_v45  ;;  %v12565_v41 = vld [vmem:[#allocation5_spill] sm:$0xff]  ;;  %v12567_v14 = vld [vmem:[#allocation104_spill] sm:$0xff]  ;;  %v12582_v38 = vld [vmem:[#allocation6_spill] sm:$0xff] }
 0x9ae   : > { %v6401_v53 = vpop.f32.mrf.mxu0  ;;  %v6109_v12 = vadd.f32 %v12566_v30, %v12565_v41  ;;  %v12569_v8 = vld [vmem:[#allocation40_spill] sm:$0xff]  ;;  %v12584_v41 = vld [vmem:[#allocation17_spill] sm:$0xff] }
 0x9af   : > { %5163 = vmatprep.mubr.bf16.mxu0 %v4962_v57  ;;  %v6402_v34 = vadd.f32 %v6401_v53, %v6400_v43  ;;  %v12568_v43 = vld [vmem:[#allocation55_spill] sm:$0xff] }
 0x9b0   : > { %5164 = vmatmul.mubr.bf16.gmra.mxu0 %v4961_v61  ;;  %v6403_v55 = vpop.f32.mrf.mxu0 }
 0x9b1   : > { %3963 = vrot.lane.b32.xlu1 %v6239_v58, %s7383_s17  ;;  %3965 = vrot.lane.b32.xlu0 %v12548_v33, %s7383_s17 }
 0x9b2   : > { %v6404_v36 = vpop.f32.mrf.mxu0 }
 0x9b3   : > { %v6405_v25 = vadd.f32 %v6404_v36, %v6403_v55  ;;  %v12571_v55 = vld [vmem:[#allocation25_spill] sm:$0xff]  ;;  %v12573_v36 = vld [vmem:[#allocation19_spill] sm:$0xff] }
 0x9b5   : > { %3967 = vrot.lane.b32.xlu1 %v6245_v19, %s7383_s17  ;;  %5212 = vrot.lane.b32.xlu0 %v6396_v18, %s7385_s19 }
 0x9b9   : > { %5214 = vrot.lane.b32.xlu1 %v6399_v49, %s7385_s19  ;;  %5216 = vrot.lane.b32.xlu0 %v6402_v34, %s7385_s19  ;;  %v12572_v34 = vld [vmem:[#allocation30_spill] sm:$0xff] }
 0x9bd   : > { %5218 = vrot.lane.b32.xlu1 %v6405_v25, %s7385_s19  ;;  %2766 = vrot.lane.b32.xlu0 %v12551_v60, %s7382_s14  ;;  %v6115_v25 = vadd.f32 %v12573_v36, %v12572_v34 }
 0x9c1   : > { %2768 = vrot.lane.b32.xlu1 %v6091_v29, %s7382_s14  ;;  %2770 = vrot.lane.b32.xlu0 %v12554_v62, %s7382_s14  ;;  %v12575_v29 = vld [vmem:[#allocation45_spill] sm:$0xff]  ;;  %v12576_v62 = vld [vmem:[#allocation12_spill] sm:$0xff] }
 0x9c2   : > { %v6121_v1 = vadd.f32 %v12576_v62, %v12575_v29  ;;  %v12590_v29 = vld [vmem:[#allocation76_spill] sm:$0xff] }
 0x9c5   : > { %2772 = vrot.lane.b32.xlu1 %v6097_v56, %s7382_s14  ;;  %3969 = vrot.lane.b32.xlu0 %v12557_v42, %s7383_s17  ;;  %v12577_v56 = vld [vmem:[#allocation3_spill] sm:$0xff] }
 0x9c9   : > { %3971 = vrot.lane.b32.xlu1 %v12558_v32, %s7383_s17  ;;  %3973 = vrot.lane.b32.xlu0 %v12559_v24, %s7383_s17  ;;  %v12578_v24 = vld [vmem:[#allocation85_spill] sm:$0xff] }
 0x9cd   : > { %3975 = vrot.lane.b32.xlu1 %v12560_v10, %s7383_s17  ;;  %v12579_v10 = vld [vmem:[#allocation67_spill] sm:$0xff] }
 0x9d7   : > { %v6406_v54 = vpop.f32.mrf.mxu0 }
 0x9d9   : > { %v6407_v35 = vpop.f32.mrf.mxu0 }
 0x9da   : > { %v6408_v9 = vadd.f32 %v6407_v35, %v6406_v54 }
 0x9db   : > { %v6409_v5 = vpop.f32.mrf.mxu0 }
 0x9dc   : > { %5220 = vrot.lane.b32.xlu0 %v6408_v9, %s7385_s19 }
 0x9dd   : > { %v6410_v52 = vpop.f32.mrf.mxu0 }
 0x9de   : > { %v6411_v17 = vadd.f32 %v6410_v52, %v6409_v5  ;;  %v12580_v5 = vld [vmem:[#allocation4_spill] sm:$0xff] }
 0x9df   : > { %v6412_v15 = vpop.f32.mrf.mxu0 }
 0x9e0   : > { %5222 = vrot.lane.b32.xlu1 %v6411_v17, %s7385_s19 }
 0x9e1   : > { %v6413_v59 = vpop.f32.mrf.mxu0 }
 0x9e2   : > { %v6414_v50 = vadd.f32 %v6413_v59, %v6412_v15 }
 0x9e3   : > { %v6415_v31 = vpop.f32.mrf.mxu0 }
 0x9e4   : > { %5224 = vrot.lane.b32.xlu0 %v6414_v50, %s7385_s19 }
 0x9e5   : > { %v6416_v26 = vpop.f32.mrf.mxu0 }
 0x9e6   : > { %v6417_v7 = vadd.f32 %v6416_v26, %v6415_v31 }
 0x9e7   : > { %v6418_v44 = vpop.f32.mrf.mxu0 }
 0x9e8   : > { %5226 = vrot.lane.b32.xlu1 %v6417_v7, %s7385_s19  ;;  %2774 = vrot.lane.b32.xlu0 %v12561_v27, %s7382_s14  ;;  %v12581_v27 = vld [vmem:[#allocation86_spill] sm:$0xff] }
 0x9e9   : > { %v6419_v0 = vpop.f32.mrf.mxu0 }
 0x9ea   : > { %v6420_v61 = vadd.f32 %v6419_v0, %v6418_v44 }
 0x9eb   : > { %v6421_v23 = vpop.f32.mrf.mxu0 }
 0x9ec   : > { %2776 = vrot.lane.b32.xlu1 %v6103_v46, %s7382_s14  ;;  %2778 = vrot.lane.b32.xlu0 %v12564_v6, %s7382_s14  ;;  %v12583_v46 = vld [vmem:[#allocation16_spill] sm:$0xff] }
 0x9ed   : > { %v6422_v28 = vpop.f32.mrf.mxu0 }
 0x9ee   : > { %v6423_v53 = vadd.f32 %v6422_v28, %v6421_v23  ;;  %v6127_v23 = vadd.f32 %v12583_v46, %v12582_v38  ;;  %v12598_v38 = vld [vmem:[#allocation21_spill] sm:$0xff] }
 0x9ef   : > { %v6424_v22 = vpop.f32.mrf.mxu0 }
 0x9f0   : > { %2780 = vrot.lane.b32.xlu1 %v6109_v12, %s7382_s14  ;;  %3977 = vrot.lane.b32.xlu0 %v12567_v14, %s7383_s17  ;;  %v12585_v12 = vld [vmem:[#allocation15_spill] sm:$0xff] }
 0x9f1   : > { %v6425_v51 = vpop.f32.mrf.mxu0 }
 0x9f2   : > { %v6426_v33 = vadd.f32 %v6425_v51, %v6424_v22  ;;  %v12586_v22 = vld [vmem:[#allocation89_spill] sm:$0xff] }
 0x9f3   : > { %v6427_v48 = vpop.f32.mrf.mxu0  ;;  %v6133_v14 = vadd.f32 %v12586_v22, %v12585_v12 }
 0x9f4   : > { %3979 = vrot.lane.b32.xlu1 %v12568_v43, %s7383_s17  ;;  %3981 = vrot.lane.b32.xlu0 %v12569_v8, %s7383_s17 }
 0x9f5   : > { %v6428_v57 = vpop.f32.mrf.mxu0 }
 0x9f6   : > { %v6429_v19 = vadd.f32 %v6428_v57, %v6427_v48  ;;  %v12587_v57 = vld [vmem:[#allocation62_spill] sm:$0xff] }
 0x9f7   : > { %v6430_v47 = vpop.f32.mrf.mxu0 }
 0x9f8   : > { %3983 = vrot.lane.b32.xlu1 %v12570_v16, %s7383_s17  ;;  %5228 = vrot.lane.b32.xlu0 %v6420_v61, %s7385_s19 }
 0x9f9   : > { %v6431_v58 = vpop.f32.mrf.mxu0 }
 0x9fa   : > { %v6432_v54 = vadd.f32 %v6431_v58, %v6430_v47 }
 0x9fb   : > { %v6433_v39 = vpop.f32.mrf.mxu0 }
 0x9fc   : > { %5230 = vrot.lane.b32.xlu1 %v6423_v53, %s7385_s19  ;;  %5232 = vrot.lane.b32.xlu0 %v6426_v33, %s7385_s19  ;;  %v12588_v53 = vld [vmem:[#allocation26_spill] sm:$0xff] }
 0x9fd   : > { %v6434_v21 = vpop.f32.mrf.mxu0 }
 0x9fe   : > { %v6435_v52 = vadd.f32 %v6434_v21, %v6433_v39 }
 0x9ff   : > { %v6436_v18 = vpop.f32.mrf.mxu0 }
 0xa00   : > { %5234 = vrot.lane.b32.xlu1 %v6429_v19, %s7385_s19  ;;  %2782 = vrot.lane.b32.xlu0 %v12571_v55, %s7382_s14 }
 0xa01   : > { %v6437_v49 = vpop.f32.mrf.mxu0 }
 0xa02   : > { %v6438_v17 = vadd.f32 %v6437_v49, %v6436_v18  ;;  %v12589_v18 = vld [vmem:[#allocation83_spill] sm:$0xff] }
 0xa03   : > { %v6439_v60 = vpop.f32.mrf.mxu0 }
 0xa04   : > { %2784 = vrot.lane.b32.xlu1 %v6115_v25, %s7382_s14  ;;  %2786 = vrot.lane.b32.xlu0 %v12574_v3, %s7382_s14 }
 0xa05   : > { %v6440_v2 = vpop.f32.mrf.mxu0 }
 0xa06   : > { %v6441_v50 = vadd.f32 %v6440_v2, %v6439_v60 }
 0xa07   : > { %v6442_v63 = vpop.f32.mrf.mxu0 }
 0xa08   : > { %2788 = vrot.lane.b32.xlu1 %v6121_v1, %s7382_s14  ;;  %3985 = vrot.lane.b32.xlu0 %v12577_v56, %s7383_s17  ;;  %v12591_v1 = vld [vmem:[#allocation73_spill] sm:$0xff] }
 0xa09   : > { %v6443_v42 = vpop.f32.mrf.mxu0 }
 0xa0a   : > { %v6444_v39 = vadd.f32 %v6443_v42, %v6442_v63  ;;  %v12592_v63 = vld [vmem:[#allocation11_spill] sm:$0xff] }
 0xa0b   : > { %v5205_v32 = vpop.permute.xlu0 %5204  ;;  %v6445_v35 = vpop.f32.mrf.mxu0  ;;  %v6139_v56 = vadd.f32 %v12592_v63, %v12591_v1 }
 0xa0c   : > { %3987 = vrot.lane.b32.xlu1 %v12578_v24, %s7383_s17  ;;  %3989 = vrot.lane.b32.xlu0 %v12579_v10, %s7383_s17  ;;  %5301 = vst.msk [vmem:[#allocation2] sm:$0xff] %vm5300_vm4, %v5205_v32 }
 0xa0d   : > { %v6446_v15 = vpop.f32.mrf.mxu0 }
 0xa0e   : > { %v6447_v49 = vadd.f32 %v6446_v15, %v6445_v35 }
 0xa0f   : > { %v5207_v9 = vpop.permute.xlu1 %5206  ;;  %v6448_v31 = vpop.f32.mrf.mxu0 }
 0xa10   : > { %3991 = vrot.lane.b32.xlu1 %v12580_v5, %s7383_s17  ;;  %5236 = vrot.lane.b32.xlu0 %v6432_v54, %s7385_s19  ;;  %5302 = vst.msk [vmem:[#allocation2 + $0x8] sm:$0xff] %vm5300_vm4, %v5207_v9  ;;  %v12593_v54 = vld [vmem:[#allocation36_spill] sm:$0xff]  ;;  %v12594_v5 = vld [vmem:[#allocation69_spill] sm:$0xff] }
 0xa11   : > { %v6449_v6 = vpop.f32.mrf.mxu0 }
 0xa13   : > { %v5209_v59 = vpop.permute.xlu0 %5208  ;;  %v5333_v7 = vld [vmem:[#allocation2] sm:$0xff]  ;;  %v6451_v51 = vpop.f32.mrf.mxu0 }
 0xa14   : > { %5238 = vrot.lane.b32.xlu1 %v6435_v52, %s7385_s19  ;;  %5240 = vrot.lane.b32.xlu0 %v6438_v17, %s7385_s19  ;;  %5303 = vst.msk [vmem:[#allocation2 + $0x10] sm:$0xff] %vm5300_vm4, %v5209_v59  ;;  %v12595_v52 = vld [vmem:[#allocation39_spill] sm:$0xff] }
 0xa15   : > { %v6452_v16 = vpop.f32.mrf.mxu0  ;;  %v6145_v17 = vadd.f32 %v12595_v52, %v12594_v5 }
 0xa16   : > { %v6453_v60 = vadd.f32 %v6452_v16, %v6451_v51  ;;  %v12600_v51 = vld [vmem:[#allocation34_spill] sm:$0xff]  ;;  %v12605_v16 = vld [vmem:[#allocation20_spill] sm:$0xff] }
 0xa17   : > { %v5211_v26 = vpop.permute.xlu1 %5210  ;;  %v5334_v44 = vld [vmem:[#allocation2 + $0x8] sm:$0xff]  ;;  %v2759_v0 = vpop.permute.xlu0 %2758 }
 0xa18   : > { %5242 = vrot.lane.b32.xlu1 %v6441_v50, %s7385_s19  ;;  %2790 = vrot.lane.b32.xlu0 %v12581_v27, %s7382_s14  ;;  %5304 = vst.msk [vmem:[#allocation2 + $0x18] sm:$0xff] %vm5300_vm4, %v5211_v26  ;;  %v5365_v45 = vpack.c.bf16 %v5334_v44, %v5333_v7  ;;  %v6454_v21 = vpop.f32.mrf.mxu0  ;;  %v12596_v26 = vld [vmem:[#allocation81_spill] sm:$0xff] }
 0xa19   : > { %2851 = vst.msk [vmem:[#allocation2 + $0x20] sm:$0xff] %vm2846_vm2, %v2759_v0 }
 0xa1a   : > { %6506 = vmatprep.mubr.msk.bf16.mxu1 %vm295_vm0, %v5365_v45  ;;  %v6455_v34 = vpop.f32.mrf.mxu0  ;;  %v12597_v45 = vld [vmem:[#allocation80_spill] sm:$0xff] }
 0xa1b   : > { %v2761_v28 = vpop.permute.xlu1 %2760  ;;  %v2763_v30 = vpop.permute.xlu0 %2762  ;;  %v5335_v43 = vld [vmem:[#allocation2 + $0x10] sm:$0xff] }
 0xa1c   : > { %2792 = vrot.lane.b32.xlu1 %v6127_v23, %s7382_s14  ;;  %2794 = vrot.lane.b32.xlu0 %v12584_v41, %s7382_s14  ;;  %2852 = vst.msk [vmem:[#allocation2 + $0x28] sm:$0xff] %vm2846_vm2, %v2761_v28  ;;  %2853 = vst.msk [vmem:[#allocation2 + $0x30] sm:$0xff] %vm2846_vm2, %v2763_v30  ;;  %v6457_v3 = vpop.f32.mrf.mxu0  ;;  %v6456_v23 = vadd.f32 %v6455_v34, %v6454_v21  ;;  %v12599_v41 = vld [vmem:[#allocation88_spill] sm:$0xff] }
 0xa1e   : > { %v6458_v42 = vpop.f32.mrf.mxu0 }
 0xa1f   : > { %v2765_v48 = vpop.permute.xlu1 %2764  ;;  %v5336_v8 = vld [vmem:[#allocation2 + $0x18] sm:$0xff]  ;;  %v3962_v61 = vpop.permute.xlu0 %3961  ;;  %v6459_v30 = vadd.f32 %v6458_v42, %v6457_v3 }
 0xa20   : > { %2796 = vrot.lane.b32.xlu1 %v6133_v14, %s7382_s14  ;;  %3993 = vrot.lane.b32.xlu0 %v12587_v57, %s7383_s17  ;;  %2854 = vst.msk [vmem:[#allocation2 + $0x38] sm:$0xff] %vm2846_vm2, %v2765_v48  ;;  %v5366_v47 = vpack.c.bf16 %v5336_v8, %v5335_v43  ;;  %v6460_v15 = vpop.f32.mrf.mxu0  ;;  %v12601_v48 = vld [vmem:[#allocation13_spill] sm:$0xff]  ;;  %v12602_v43 = vld [vmem:[#allocation7_spill] sm:$0xff] }
 0xa21   : > { %4054 = vst.msk [vmem:[#allocation2 + $0x20] sm:$0xff] %vm4049_vm3, %v3962_v61  ;;  %v6151_v8 = vadd.f32 %v12602_v43, %v12601_v48  ;;  %v12603_v61 = vld [vmem:[#allocation93_spill] sm:$0xff] }
 0xa22   : > { %6507 = vmatmul.mubr.msk.bf16.vlgmr.msra.gmra.mxu1 %vm295_vm0, %v5366_v47  ;;  %v6461_v27 = vpop.f32.mrf.mxu0  ;;  %v12604_v47 = vld [vmem:[#allocation18_spill] sm:$0xff] }
 0xa23   : > { %v3964_v58 = vpop.permute.xlu1 %3963  ;;  %v3966_v33 = vpop.permute.xlu0 %3965  ;;  %v6462_v12 = vadd.f32 %v6461_v27, %v6460_v15 }
 0xa24   : > { %3995 = vrot.lane.b32.xlu1 %v12588_v53, %s7383_s17  ;;  %3997 = vrot.lane.b32.xlu0 %v10904_v13, %s7383_s17  ;;  %4055 = vst.msk [vmem:[#allocation2 + $0x28] sm:$0xff] %vm4049_vm3, %v3964_v58  ;;  %4056 = vst.msk [vmem:[#allocation2 + $0x30] sm:$0xff] %vm4049_vm3, %v3966_v33  ;;  %v6450_v13 = vadd.f32 %v6449_v6, %v6448_v31  ;;  %v6463_v6 = vpop.f32.mrf.mxu0  ;;  %v6157_v58 = vadd.f32 %v12605_v16, %v12604_v47 }
 0xa26   : > { %v6464_v22 = vpop.f32.mrf.mxu0 }
 0xa27   : > { %v3968_v19 = vpop.permute.xlu1 %3967  ;;  %v5213_v55 = vpop.permute.xlu0 %5212  ;;  %v6465_v14 = vadd.f32 %v6464_v22, %v6463_v6 }
 0xa28   : > { %3999 = vrot.lane.b32.xlu1 %v12589_v18, %s7383_s17  ;;  %5244 = vrot.lane.b32.xlu0 %v6444_v39, %s7385_s19  ;;  %4057 = vst.msk [vmem:[#allocation2 + $0x38] sm:$0xff] %vm4049_vm3, %v3968_v19  ;;  %v6317_v19 = vadd.f32 %v11040_v37, %v11038_v4 }
 0xa29   : > { %5305 = vst.msk [vmem:[#allocation2 + $0x20] sm:$0xff] %vm5300_vm4, %v5213_v55 }
 0xa2b   : > { %v5215_v36 = vpop.permute.xlu1 %5214  ;;  %v5217_v25 = vpop.permute.xlu0 %5216 }
 0xa2c   : > { %5246 = vrot.lane.b32.xlu1 %v6447_v49, %s7385_s19  ;;  %5248 = vrot.lane.b32.xlu0 %v6450_v13, %s7385_s19  ;;  %5306 = vst.msk [vmem:[#allocation2 + $0x28] sm:$0xff] %vm5300_vm4, %v5215_v36  ;;  %5307 = vst.msk [vmem:[#allocation2 + $0x30] sm:$0xff] %vm5300_vm4, %v5217_v25 }
 0xa2f   : > { %v5219_v2 = vpop.permute.xlu1 %5218  ;;  %v2767_v62 = vpop.permute.xlu0 %2766 }
 0xa30   : > { %5250 = vrot.lane.b32.xlu1 %v6453_v60, %s7385_s19  ;;  %2798 = vrot.lane.b32.xlu0 %v12590_v29, %s7382_s14  ;;  %5308 = vst.msk [vmem:[#allocation2 + $0x38] sm:$0xff] %vm5300_vm4, %v5219_v2  ;;  %v5337_v24 = vld [vmem:[#allocation2 + $0x20] sm:$0xff] }
 0xa31   : > { %2855 = vst.msk [vmem:[#allocation2 + $0x40] sm:$0xff] %vm2846_vm2, %v2767_v62 }
 0xa33   : > { %v2769_v32 = vpop.permute.xlu1 %2768  ;;  %v5338_v10 = vld [vmem:[#allocation2 + $0x28] sm:$0xff]  ;;  %v2771_v35 = vpop.permute.xlu0 %2770  ;;  %v5339_v50 = vld [vmem:[#allocation2 + $0x30] sm:$0xff] }
 0xa34   : > { %2800 = vrot.lane.b32.xlu1 %v6139_v56, %s7382_s14  ;;  %2802 = vrot.lane.b32.xlu0 %v12593_v54, %s7382_s14  ;;  %2856 = vst.msk [vmem:[#allocation2 + $0x48] sm:$0xff] %vm2846_vm2, %v2769_v32  ;;  %v5367_v9 = vpack.c.bf16 %v5338_v10, %v5337_v24  ;;  %2857 = vst.msk [vmem:[#allocation2 + $0x50] sm:$0xff] %vm2846_vm2, %v2771_v35  ;;  %v6466_v57 = vpop.f32.mrf.mxu0 }
 0xa36   : > { %6510 = vmatprep.mubr.msk.bf16.mxu1 %vm295_vm0, %v5367_v9  ;;  %v6467_v33 = vpop.f32.mrf.mxu0 }
 0xa37   : > { %v2773_v59 = vpop.permute.xlu1 %2772  ;;  %v5340_v31 = vld [vmem:[#allocation2 + $0x38] sm:$0xff]  ;;  %v3970_v7 = vpop.permute.xlu0 %3969  ;;  %v6468_v18 = vadd.f32 %v6467_v33, %v6466_v57 }
 0xa38   : > { %2804 = vrot.lane.b32.xlu1 %v6145_v17, %s7382_s14  ;;  %4001 = vrot.lane.b32.xlu0 %v12596_v26, %s7383_s17  ;;  %2858 = vst.msk [vmem:[#allocation2 + $0x58] sm:$0xff] %vm2846_vm2, %v2773_v59  ;;  %v5368_v44 = vpack.c.bf16 %v5340_v31, %v5339_v50  ;;  %v6469_v21 = vpop.f32.mrf.mxu0 }
 0xa39   : > { %4058 = vst.msk [vmem:[#allocation2 + $0x40] sm:$0xff] %vm4049_vm3, %v3970_v7 }
 0xa3a   : > { %6511 = vmatmul.mubr.msk.bf16.gmra.mxu1 %vm295_vm0, %v5368_v44  ;;  %v6470_v49 = vpop.f32.mrf.mxu0 }
 0xa3b   : > { %v3972_v0 = vpop.permute.xlu1 %3971  ;;  %v3974_v46 = vpop.permute.xlu0 %3973 }
 0xa3c   : > { %4003 = vrot.lane.b32.xlu1 %v12597_v45, %s7383_s17  ;;  %4005 = vrot.lane.b32.xlu0 %v12598_v38, %s7383_s17  ;;  %4059 = vst.msk [vmem:[#allocation2 + $0x48] sm:$0xff] %vm4049_vm3, %v3972_v0  ;;  %4060 = vst.msk [vmem:[#allocation2 + $0x50] sm:$0xff] %vm4049_vm3, %v3974_v46 }
 0xa3f   : > { %v3976_v28 = vpop.permute.xlu1 %3975 }
 0xa40   : > { %4007 = vrot.lane.b32.xlu1 %v12599_v41, %s7383_s17  ;;  %5252 = vrot.lane.b32.xlu0 %v6456_v23, %s7385_s19  ;;  %4061 = vst.msk [vmem:[#allocation2 + $0x58] sm:$0xff] %vm4049_vm3, %v3976_v28 }
 0xa44   : > { %5254 = vrot.lane.b32.xlu1 %v6459_v30, %s7385_s19  ;;  %5256 = vrot.lane.b32.xlu0 %v6462_v12, %s7385_s19 }
 0xa48   : > { %5258 = vrot.lane.b32.xlu1 %v6465_v14, %s7385_s19  ;;  %2806 = vrot.lane.b32.xlu0 %v12600_v51, %s7382_s14 }
 0xa4c   : > { %2808 = vrot.lane.b32.xlu1 %v6151_v8, %s7382_s14  ;;  %2810 = vrot.lane.b32.xlu0 %v12603_v61, %s7382_s14 }
 0xa4e   : > { %v5221_v53 = vpop.permute.xlu0 %5220 }
 0xa4f   : > { %5309 = vst.msk [vmem:[#allocation2 + $0x40] sm:$0xff] %vm5300_vm4, %v5221_v53 }
 0xa50   : > { %2812 = vrot.lane.b32.xlu1 %v6157_v58, %s7382_s14  ;;  %4009 = vrot.lane.b32.xlu0 %v10940_v11, %s7383_s17  ;;  %v6471_v11 = vadd.f32 %v6470_v49, %v6469_v21 }
 0xa52   : > { %v5223_v39 = vpop.permute.xlu1 %5222 }
 0xa53   : > { %5310 = vst.msk [vmem:[#allocation2 + $0x48] sm:$0xff] %vm5300_vm4, %v5223_v39 }
 0xa54   : > { %4011 = vrot.lane.b32.xlu1 %v10946_v40, %s7383_s17  ;;  %4013 = vrot.lane.b32.xlu0 %v10948_v20, %s7383_s17 }
 0xa56   : > { %v5225_v55 = vpop.permute.xlu0 %5224  ;;  %v5341_v36 = vld [vmem:[#allocation2 + $0x40] sm:$0xff] }
 0xa57   : > { %5311 = vst.msk [vmem:[#allocation2 + $0x50] sm:$0xff] %vm5300_vm4, %v5225_v55 }
 0xa58   : > { %4015 = vrot.lane.b32.xlu1 %v6317_v19, %s7383_s17  ;;  %5260 = vrot.lane.b32.xlu0 %v6468_v18, %s7385_s19 }
 0xa5a   : > { %v5227_v13 = vpop.permute.xlu1 %5226  ;;  %v2775_v34 = vpop.permute.xlu0 %2774  ;;  %v5342_v40 = vld [vmem:[#allocation2 + $0x48] sm:$0xff] }
 0xa5b   : > { %5312 = vst.msk [vmem:[#allocation2 + $0x58] sm:$0xff] %vm5300_vm4, %v5227_v13  ;;  %v5369_v20 = vpack.c.bf16 %v5342_v40, %v5341_v36 }
 0xa5c   : > { %2859 = vst.msk [vmem:[#allocation2 + $0x60] sm:$0xff] %vm2846_vm2, %v2775_v34  ;;  %5262 = vrot.lane.b32.xlu1 %v6471_v11, %s7385_s19 }
 0xa5d   : > { %6514 = vmatprep.mubr.msk.bf16.mxu1 %vm295_vm0, %v5369_v20 }
 0xa5e   : > { %v2777_v4 = vpop.permute.xlu1 %2776  ;;  %v2779_v37 = vpop.permute.xlu0 %2778  ;;  %v5343_v3 = vld [vmem:[#allocation2 + $0x50] sm:$0xff] }
 0xa5f   : > { %2860 = vst.msk [vmem:[#allocation2 + $0x68] sm:$0xff] %vm2846_vm2, %v2777_v4  ;;  %2861 = vst.msk [vmem:[#allocation2 + $0x70] sm:$0xff] %vm2846_vm2, %v2779_v37 }
 0xa62   : > { %v2781_v25 = vpop.permute.xlu1 %2780  ;;  %v3978_v60 = vpop.permute.xlu0 %3977  ;;  %v5344_v2 = vld [vmem:[#allocation2 + $0x58] sm:$0xff] }
 0xa63   : > { %2862 = vst.msk [vmem:[#allocation2 + $0x78] sm:$0xff] %vm2846_vm2, %v2781_v25  ;;  %v5370_v29 = vpack.c.bf16 %v5344_v2, %v5343_v3 }
 0xa64   : > { %4062 = vst.msk [vmem:[#allocation2 + $0x60] sm:$0xff] %vm4049_vm3, %v3978_v60 }
 0xa65   : > { %6515 = vmatmul.mubr.msk.bf16.gmra.mxu1 %vm295_vm0, %v5370_v29 }
 0xa66   : > { %v3980_v62 = vpop.permute.xlu1 %3979  ;;  %v3982_v1 = vpop.permute.xlu0 %3981 }
 0xa67   : > { %4063 = vst.msk [vmem:[#allocation2 + $0x68] sm:$0xff] %vm4049_vm3, %v3980_v62  ;;  %4064 = vst.msk [vmem:[#allocation2 + $0x70] sm:$0xff] %vm4049_vm3, %v3982_v1 }
 0xa6a   : > { %v3984_v63 = vpop.permute.xlu1 %3983  ;;  %v5229_v56 = vpop.permute.xlu0 %5228 }
 0xa6b   : > { %4065 = vst.msk [vmem:[#allocation2 + $0x78] sm:$0xff] %vm4049_vm3, %v3984_v63 }
 0xa6c   : > { %5313 = vst.msk [vmem:[#allocation2 + $0x60] sm:$0xff] %vm5300_vm4, %v5229_v56 }
 0xa6e   : > { %v5231_v42 = vpop.permute.xlu1 %5230  ;;  %v5233_v32 = vpop.permute.xlu0 %5232 }
 0xa6f   : > { %5314 = vst.msk [vmem:[#allocation2 + $0x68] sm:$0xff] %vm5300_vm4, %v5231_v42  ;;  %5315 = vst.msk [vmem:[#allocation2 + $0x70] sm:$0xff] %vm5300_vm4, %v5233_v32 }
 0xa70   : > { %v6472_v24 = vpop.f32.mrf.mxu0 }
 0xa72   : > { %v5235_v10 = vpop.permute.xlu1 %5234  ;;  %v2783_v54 = vpop.permute.xlu0 %2782 }
 0xa73   : > { %5316 = vst.msk [vmem:[#allocation2 + $0x78] sm:$0xff] %vm5300_vm4, %v5235_v10  ;;  %v6473_v35 = vpop.f32.mrf.mxu0  ;;  %v5345_v15 = vld [vmem:[#allocation2 + $0x60] sm:$0xff] }
 0xa74   : > { %2863 = vst.msk [vmem:[#allocation2 + $0x80] sm:$0xff] %vm2846_vm2, %v2783_v54  ;;  %v6474_v9 = vadd.f32 %v6473_v35, %v6472_v24 }
 0xa75   : > { %v6475_v5 = vpop.f32.mrf.mxu0 }
 0xa76   : > { %v2785_v52 = vpop.permute.xlu1 %2784  ;;  %5264 = vrot.lane.b32.xlu0 %v6474_v9, %s7385_s19  ;;  %v2787_v17 = vpop.permute.xlu0 %2786  ;;  %v5346_v59 = vld [vmem:[#allocation2 + $0x68] sm:$0xff]  ;;  %v5347_v27 = vld [vmem:[#allocation2 + $0x70] sm:$0xff] }
 0xa77   : > { %2864 = vst.msk [vmem:[#allocation2 + $0x88] sm:$0xff] %vm2846_vm2, %v2785_v52  ;;  %2865 = vst.msk [vmem:[#allocation2 + $0x90] sm:$0xff] %vm2846_vm2, %v2787_v17  ;;  %v6476_v50 = vpop.f32.mrf.mxu0  ;;  %v5371_v31 = vpack.c.bf16 %v5346_v59, %v5345_v15 }
 0xa78   : > { %v6477_v26 = vadd.f32 %v6476_v50, %v6475_v5 }
 0xa79   : > { %6518 = vmatprep.mubr.msk.bf16.mxu1 %vm295_vm0, %v5371_v31 }
 0xa7a   : > { %v2789_v7 = vpop.permute.xlu1 %2788  ;;  %5266 = vrot.lane.b32.xlu1 %v6477_v26, %s7385_s19  ;;  %v3986_v44 = vpop.permute.xlu0 %3985  ;;  %v5348_v0 = vld [vmem:[#allocation2 + $0x78] sm:$0xff] }
 0xa7b   : > { %2866 = vst.msk [vmem:[#allocation2 + $0x98] sm:$0xff] %vm2846_vm2, %v2789_v7  ;;  %v5372_v45 = vpack.c.bf16 %v5348_v0, %v5347_v27  ;;  %v11331_v0 = vld [vmem:[%s11445_s3] ss:$0 sm:$0xff] }
 0xa7c   : > { %4066 = vst.msk [vmem:[#allocation2 + $0x80] sm:$0xff] %vm4049_vm3, %v3986_v44 }
 0xa7d   : > { %6519 = vmatmul.mubr.msk.bf16.gmra.mxu1 %vm295_vm0, %v5372_v45 }
 0xa7e   : > { %v3988_v38 = vpop.permute.xlu1 %3987  ;;  %v3990_v46 = vpop.permute.xlu0 %3989 }
 0xa7f   : > { %4067 = vst.msk [vmem:[#allocation2 + $0x88] sm:$0xff] %vm4049_vm3, %v3988_v38  ;;  %4068 = vst.msk [vmem:[#allocation2 + $0x90] sm:$0xff] %vm4049_vm3, %v3990_v46 }
 0xa82   : > { %v3992_v23 = vpop.permute.xlu1 %3991  ;;  %v5237_v6 = vpop.permute.xlu0 %5236 }
 0xa83   : > { %4069 = vst.msk [vmem:[#allocation2 + $0x98] sm:$0xff] %vm4049_vm3, %v3992_v23 }
 0xa84   : > { %5317 = vst.msk [vmem:[#allocation2 + $0x80] sm:$0xff] %vm5300_vm4, %v5237_v6 }
 0xa86   : > { %v5239_v28 = vpop.permute.xlu1 %5238  ;;  %v5241_v41 = vpop.permute.xlu0 %5240 }
 0xa87   : > { %5318 = vst.msk [vmem:[#allocation2 + $0x88] sm:$0xff] %vm5300_vm4, %v5239_v28  ;;  %5319 = vst.msk [vmem:[#allocation2 + $0x90] sm:$0xff] %vm5300_vm4, %v5241_v41 }
 0xa8a   : > { %v5243_v30 = vpop.permute.xlu1 %5242  ;;  %v2791_v12 = vpop.permute.xlu0 %2790 }
 0xa8b   : > { %5320 = vst.msk [vmem:[#allocation2 + $0x98] sm:$0xff] %vm5300_vm4, %v5243_v30  ;;  %v5349_v51 = vld [vmem:[#allocation2 + $0x80] sm:$0xff] }
 0xa8c   : > { %2867 = vst.msk [vmem:[#allocation2 + $0xa0] sm:$0xff] %vm2846_vm2, %v2791_v12 }
 0xa8e   : > { %v2793_v22 = vpop.permute.xlu1 %2792  ;;  %v2795_v14 = vpop.permute.xlu0 %2794  ;;  %v5350_v48 = vld [vmem:[#allocation2 + $0x88] sm:$0xff]  ;;  %v5351_v61 = vld [vmem:[#allocation2 + $0x90] sm:$0xff] }
 0xa8f   : > { %2868 = vst.msk [vmem:[#allocation2 + $0xa8] sm:$0xff] %vm2846_vm2, %v2793_v22  ;;  %2869 = vst.msk [vmem:[#allocation2 + $0xb0] sm:$0xff] %vm2846_vm2, %v2795_v14  ;;  %v5373_v43 = vpack.c.bf16 %v5350_v48, %v5349_v51 }
 0xa91   : > { %6522 = vmatprep.mubr.msk.bf16.mxu1 %vm295_vm0, %v5373_v43 }
 0xa92   : > { %v2797_v8 = vpop.permute.xlu1 %2796  ;;  %v3994_v57 = vpop.permute.xlu0 %3993  ;;  %v5352_v47 = vld [vmem:[#allocation2 + $0x98] sm:$0xff] }
 0xa93   : > { %2870 = vst.msk [vmem:[#allocation2 + $0xb8] sm:$0xff] %vm2846_vm2, %v2797_v8  ;;  %v5374_v16 = vpack.c.bf16 %v5352_v47, %v5351_v61 }
 0xa94   : > { %4070 = vst.msk [vmem:[#allocation2 + $0xa0] sm:$0xff] %vm4049_vm3, %v3994_v57 }
 0xa95   : > { %6523 = vmatmul.mubr.msk.bf16.gmra.mxu1 %vm295_vm0, %v5374_v16 }
 0xa96   : > { %v3996_v58 = vpop.permute.xlu1 %3995  ;;  %v3998_v53 = vpop.permute.xlu0 %3997 }
 0xa97   : > { %4071 = vst.msk [vmem:[#allocation2 + $0xa8] sm:$0xff] %vm4049_vm3, %v3996_v58  ;;  %4072 = vst.msk [vmem:[#allocation2 + $0xb0] sm:$0xff] %vm4049_vm3, %v3998_v53 }
 0xa9a   : > { %v4000_v33 = vpop.permute.xlu1 %3999  ;;  %v5245_v39 = vpop.permute.xlu0 %5244 }
 0xa9b   : > { %4073 = vst.msk [vmem:[#allocation2 + $0xb8] sm:$0xff] %vm4049_vm3, %v4000_v33 }
 0xa9c   : > { %5321 = vst.msk [vmem:[#allocation2 + $0xa0] sm:$0xff] %vm5300_vm4, %v5245_v39 }
 0xa9e   : > { %v5247_v21 = vpop.permute.xlu1 %5246  ;;  %v5249_v19 = vpop.permute.xlu0 %5248 }
 0xa9f   : > { %5322 = vst.msk [vmem:[#allocation2 + $0xa8] sm:$0xff] %vm5300_vm4, %v5247_v21  ;;  %5323 = vst.msk [vmem:[#allocation2 + $0xb0] sm:$0xff] %vm5300_vm4, %v5249_v19 }
 0xaa2   : > { %v5251_v18 = vpop.permute.xlu1 %5250  ;;  %v2799_v55 = vpop.permute.xlu0 %2798 }
 0xaa3   : > { %5324 = vst.msk [vmem:[#allocation2 + $0xb8] sm:$0xff] %vm5300_vm4, %v5251_v18  ;;  %v5353_v13 = vld [vmem:[#allocation2 + $0xa0] sm:$0xff] }
 0xaa4   : > { %2871 = vst.msk [vmem:[#allocation2 + $0xc0] sm:$0xff] %vm2846_vm2, %v2799_v55 }
 0xaa6   : > { %v2801_v49 = vpop.permute.xlu1 %2800  ;;  %v2803_v11 = vpop.permute.xlu0 %2802  ;;  %v5354_v34 = vld [vmem:[#allocation2 + $0xa8] sm:$0xff]  ;;  %v5355_v4 = vld [vmem:[#allocation2 + $0xb0] sm:$0xff] }
 0xaa7   : > { %2872 = vst.msk [vmem:[#allocation2 + $0xc8] sm:$0xff] %vm2846_vm2, %v2801_v49  ;;  %2873 = vst.msk [vmem:[#allocation2 + $0xd0] sm:$0xff] %vm2846_vm2, %v2803_v11  ;;  %v5375_v36 = vpack.c.bf16 %v5354_v34, %v5353_v13 }
 0xaa9   : > { %6526 = vmatprep.mubr.msk.bf16.mxu1 %vm295_vm0, %v5375_v36 }
 0xaaa   : > { %v2805_v40 = vpop.permute.xlu1 %2804  ;;  %v4002_v20 = vpop.permute.xlu0 %4001  ;;  %v5356_v37 = vld [vmem:[#allocation2 + $0xb8] sm:$0xff] }
 0xaab   : > { %2874 = vst.msk [vmem:[#allocation2 + $0xd8] sm:$0xff] %vm2846_vm2, %v2805_v40  ;;  %v5376_v25 = vpack.c.bf16 %v5356_v37, %v5355_v4 }
 0xaac   : > { %4074 = vst.msk [vmem:[#allocation2 + $0xc0] sm:$0xff] %vm4049_vm3, %v4002_v20 }
 0xaad   : > { %6527 = vmatmul.mubr.msk.bf16.gmra.mxu1 %vm295_vm0, %v5376_v25 }
 0xaae   : > { %v4004_v60 = vpop.permute.xlu1 %4003  ;;  %v4006_v3 = vpop.permute.xlu0 %4005 }
 0xaaf   : > { %4075 = vst.msk [vmem:[#allocation2 + $0xc8] sm:$0xff] %vm4049_vm3, %v4004_v60  ;;  %4076 = vst.msk [vmem:[#allocation2 + $0xd0] sm:$0xff] %vm4049_vm3, %v4006_v3 }
 0xab2   : > { %v4008_v2 = vpop.permute.xlu1 %4007  ;;  %v5253_v29 = vpop.permute.xlu0 %5252 }
 0xab3   : > { %4077 = vst.msk [vmem:[#allocation2 + $0xd8] sm:$0xff] %vm4049_vm3, %v4008_v2 }
 0xab4   : > { %5325 = vst.msk [vmem:[#allocation2 + $0xc0] sm:$0xff] %vm5300_vm4, %v5253_v29 }
 0xab6   : > { %v5255_v62 = vpop.permute.xlu1 %5254  ;;  %v5257_v1 = vpop.permute.xlu0 %5256 }
 0xab7   : > { %5326 = vst.msk [vmem:[#allocation2 + $0xc8] sm:$0xff] %vm5300_vm4, %v5255_v62  ;;  %5327 = vst.msk [vmem:[#allocation2 + $0xd0] sm:$0xff] %vm5300_vm4, %v5257_v1 }
 0xaba   : > { %v5259_v63 = vpop.permute.xlu1 %5258  ;;  %v2807_v56 = vpop.permute.xlu0 %2806 }
 0xabb   : > { %5328 = vst.msk [vmem:[#allocation2 + $0xd8] sm:$0xff] %vm5300_vm4, %v5259_v63  ;;  %v5357_v24 = vld [vmem:[#allocation2 + $0xc0] sm:$0xff] }
 0xabc   : > { %2875 = vst.msk [vmem:[#allocation2 + $0xe0] sm:$0xff] %vm2846_vm2, %v2807_v56 }
 0xabe   : > { %v2809_v42 = vpop.permute.xlu1 %2808  ;;  %v2811_v32 = vpop.permute.xlu0 %2810  ;;  %v5358_v10 = vld [vmem:[#allocation2 + $0xc8] sm:$0xff]  ;;  %v5359_v5 = vld [vmem:[#allocation2 + $0xd0] sm:$0xff] }
 0xabf   : > { %2876 = vst.msk [vmem:[#allocation2 + $0xe8] sm:$0xff] %vm2846_vm2, %v2809_v42  ;;  %2877 = vst.msk [vmem:[#allocation2 + $0xf0] sm:$0xff] %vm2846_vm2, %v2811_v32  ;;  %v5377_v54 = vpack.c.bf16 %v5358_v10, %v5357_v24 }
 0xac1   : > { %6530 = vmatprep.mubr.msk.bf16.mxu1 %vm295_vm0, %v5377_v54 }
 0xac2   : > { %v2813_v35 = vpop.permute.xlu1 %2812  ;;  %v4010_v9 = vpop.permute.xlu0 %4009  ;;  %v5360_v52 = vld [vmem:[#allocation2 + $0xd8] sm:$0xff] }
 0xac3   : > { %2878 = vst.msk [vmem:[#allocation2 + $0xf8] sm:$0xff] %vm2846_vm2, %v2813_v35  ;;  %v5378_v17 = vpack.c.bf16 %v5360_v52, %v5359_v5 }
 0xac4   : > { %4078 = vst.msk [vmem:[#allocation2 + $0xe0] sm:$0xff] %vm4049_vm3, %v4010_v9 }
 0xac5   : > { %6531 = vmatmul.mubr.msk.bf16.gmra.mxu1 %vm295_vm0, %v5378_v17 }
 0xac6   : > { %v4012_v15 = vpop.permute.xlu1 %4011  ;;  %v4014_v59 = vpop.permute.xlu0 %4013 }
 0xac7   : > { %4079 = vst.msk [vmem:[#allocation2 + $0xe8] sm:$0xff] %vm4049_vm3, %v4012_v15  ;;  %4080 = vst.msk [vmem:[#allocation2 + $0xf0] sm:$0xff] %vm4049_vm3, %v4014_v59 }
 0xaca   : > { %v4016_v50 = vpop.permute.xlu1 %4015  ;;  %v5261_v31 = vpop.permute.xlu0 %5260 }
 0xacb   : > { %4081 = vst.msk [vmem:[#allocation2 + $0xf8] sm:$0xff] %vm4049_vm3, %v4016_v50 }
 0xacc   : > { %5329 = vst.msk [vmem:[#allocation2 + $0xe0] sm:$0xff] %vm5300_vm4, %v5261_v31 }
 0xace   : > { %v5263_v26 = vpop.permute.xlu1 %5262 }
 0xacf   : > { %5330 = vst.msk [vmem:[#allocation2 + $0xe8] sm:$0xff] %vm5300_vm4, %v5263_v26 }
 0xad3   : > { %v5361_v7 = vld [vmem:[#allocation2 + $0xe0] sm:$0xff] }
 0xad6   : > { %v5362_v44 = vld [vmem:[#allocation2 + $0xe8] sm:$0xff] }
 0xad7   : > { %v5379_v27 = vpack.c.bf16 %v5362_v44, %v5361_v7 }
 0xad9   : > { %6534 = vmatprep.mubr.msk.bf16.mxu1 %vm295_vm0, %v5379_v27 }
 0xae2   : > { %v6508_v45 = vpop.f32.mrf.mxu1 }
 0xae3   : > { %v5511_v38 = vadd.f32 %v6508_v45, %v11331_v0 }
 0xae4   : > { %v5502_v46 = vpop.f32.mrf.mxu1 }
 0xae5   : > { %5631 = vst.msk [vmem:[%s11338_s7 + $0x10] sm:$0xff] %vm295_vm0, %v5511_v38  ;;  %v5503_v23 = vadd.f32 %v11331_v0, %v5502_v46 }
 0xae6   : > { %v6509_v6 = vpop.f32.mrf.mxu1 }
 0xae7   : > { %5629 = vst.msk [vmem:[%s11338_s7] sm:$0xff] %vm295_vm0, %v5503_v23  ;;  %v5514_v28 = vadd.f32 %v6509_v6, %v11331_v0 }
 0xae8   : > { %v5265_v41 = vpop.permute.xlu0 %5264  ;;  %v5505_v30 = vpop.f32.mrf.mxu1 }
 0xae9   : > { %5632 = vst.msk [vmem:[%s11338_s7 + $0x18] sm:$0xff] %vm295_vm0, %v5514_v28  ;;  %v5506_v12 = vadd.f32 %v11331_v0, %v5505_v30 }
 0xaea   : > { %5331 = vst.msk [vmem:[#allocation2 + $0xf0] sm:$0xff] %vm5300_vm4, %v5265_v41 }
 0xaeb   : > { %5630 = vst.msk [vmem:[%s11338_s7 + $0x8] sm:$0xff] %vm295_vm0, %v5506_v12 }
 0xaec   : > { %v5267_v22 = vpop.permute.xlu1 %5266 }
 0xaed   : > { %5332 = vst.msk [vmem:[#allocation2 + $0xf8] sm:$0xff] %vm5300_vm4, %v5267_v22 }
 0xaf1   : > { %v5363_v14 = vld [vmem:[#allocation2 + $0xf0] sm:$0xff] }
 0xaf4   : > { %v5364_v51 = vld [vmem:[#allocation2 + $0xf8] sm:$0xff] }
 0xaf5   : > { %v5380_v48 = vpack.c.bf16 %v5364_v51, %v5363_v14 }
 0xaf7   : > { %6535 = vmatmul.mubr.msk.bf16.gmra.mxu1 %vm295_vm0, %v5380_v48 }
 0xafa   : > { %v6512_v43 = vpop.f32.mrf.mxu1 }
 0xafb   : > { %v5527_v8 = vadd.f32 %v6512_v43, %v11331_v0 }
 0xafc   : > { %v5518_v57 = vpop.f32.mrf.mxu1 }
 0xafd   : > { %5635 = vst.msk [vmem:[%s11338_s7 + $0x30] sm:$0xff] %vm295_vm0, %v5527_v8  ;;  %v5519_v61 = vadd.f32 %v11331_v0, %v5518_v57 }
 0xafe   : > { %v6513_v47 = vpop.f32.mrf.mxu1 }
 0xaff   : > { %5633 = vst.msk [vmem:[%s11338_s7 + $0x20] sm:$0xff] %vm295_vm0, %v5519_v61  ;;  %v5530_v16 = vadd.f32 %v6513_v47, %v11331_v0 }
 0xb00   : > { %v5521_v58 = vpop.f32.mrf.mxu1 }
 0xb01   : > { %5636 = vst.msk [vmem:[%s11338_s7 + $0x38] sm:$0xff] %vm295_vm0, %v5530_v16  ;;  %v5522_v53 = vadd.f32 %v11331_v0, %v5521_v58 }
 0xb03   : > { %5634 = vst.msk [vmem:[%s11338_s7 + $0x28] sm:$0xff] %vm295_vm0, %v5522_v53 }
 0xb25   : > { %v6516_v33 = vpop.f32.mrf.mxu1 }
 0xb26   : > { %v5543_v39 = vadd.f32 %v6516_v33, %v11331_v0 }
 0xb27   : > { %v5534_v21 = vpop.f32.mrf.mxu1 }
 0xb28   : > { %5639 = vst.msk [vmem:[%s11338_s7 + $0x50] sm:$0xff] %vm295_vm0, %v5543_v39  ;;  %v5535_v19 = vadd.f32 %v11331_v0, %v5534_v21 }
 0xb29   : > { %v6517_v18 = vpop.f32.mrf.mxu1 }
 0xb2a   : > { %5637 = vst.msk [vmem:[%s11338_s7 + $0x40] sm:$0xff] %vm295_vm0, %v5535_v19  ;;  %v5546_v55 = vadd.f32 %v6517_v18, %v11331_v0 }
 0xb2b   : > { %v5537_v49 = vpop.f32.mrf.mxu1 }
 0xb2c   : > { %5640 = vst.msk [vmem:[%s11338_s7 + $0x58] sm:$0xff] %vm295_vm0, %v5546_v55  ;;  %v5538_v11 = vadd.f32 %v11331_v0, %v5537_v49 }
 0xb2e   : > { %5638 = vst.msk [vmem:[%s11338_s7 + $0x48] sm:$0xff] %vm295_vm0, %v5538_v11 }
 0xb3d   : > { %v6520_v13 = vpop.f32.mrf.mxu1 }
 0xb3e   : > { %v5559_v34 = vadd.f32 %v6520_v13, %v11331_v0 }
 0xb3f   : > { %v5550_v36 = vpop.f32.mrf.mxu1 }
 0xb40   : > { %5643 = vst.msk [vmem:[%s11338_s7 + $0x70] sm:$0xff] %vm295_vm0, %v5559_v34  ;;  %v5551_v40 = vadd.f32 %v11331_v0, %v5550_v36 }
 0xb41   : > { %v6521_v20 = vpop.f32.mrf.mxu1 }
 0xb42   : > { %5641 = vst.msk [vmem:[%s11338_s7 + $0x60] sm:$0xff] %vm295_vm0, %v5551_v40  ;;  %v5562_v4 = vadd.f32 %v6521_v20, %v11331_v0 }
 0xb43   : > { %v5553_v37 = vpop.f32.mrf.mxu1 }
 0xb44   : > { %5644 = vst.msk [vmem:[%s11338_s7 + $0x78] sm:$0xff] %vm295_vm0, %v5562_v4  ;;  %v5554_v25 = vadd.f32 %v11331_v0, %v5553_v37 }
 0xb46   : > { %5642 = vst.msk [vmem:[%s11338_s7 + $0x68] sm:$0xff] %vm295_vm0, %v5554_v25 }
 0xb55   : > { %v6524_v60 = vpop.f32.mrf.mxu1 }
 0xb56   : > { %v5575_v3 = vadd.f32 %v6524_v60, %v11331_v0 }
 0xb57   : > { %v5566_v2 = vpop.f32.mrf.mxu1 }
 0xb58   : > { %5647 = vst.msk [vmem:[%s11338_s7 + $0x90] sm:$0xff] %vm295_vm0, %v5575_v3  ;;  %v5567_v29 = vadd.f32 %v11331_v0, %v5566_v2 }
 0xb59   : > { %v6525_v62 = vpop.f32.mrf.mxu1 }
 0xb5a   : > { %5645 = vst.msk [vmem:[%s11338_s7 + $0x80] sm:$0xff] %vm295_vm0, %v5567_v29  ;;  %v5578_v1 = vadd.f32 %v6525_v62, %v11331_v0 }
 0xb5b   : > { %v5569_v63 = vpop.f32.mrf.mxu1 }
 0xb5c   : > { %5648 = vst.msk [vmem:[%s11338_s7 + $0x98] sm:$0xff] %vm295_vm0, %v5578_v1  ;;  %v5570_v56 = vadd.f32 %v11331_v0, %v5569_v63 }
 0xb5e   : > { %5646 = vst.msk [vmem:[%s11338_s7 + $0x88] sm:$0xff] %vm295_vm0, %v5570_v56 }
 0xb6d   : > { %v6528_v42 = vpop.f32.mrf.mxu1 }
 0xb6e   : > { %v5591_v32 = vadd.f32 %v6528_v42, %v11331_v0 }
 0xb6f   : > { %v5582_v24 = vpop.f32.mrf.mxu1 }
 0xb70   : > { %5651 = vst.msk [vmem:[%s11338_s7 + $0xb0] sm:$0xff] %vm295_vm0, %v5591_v32  ;;  %v5583_v10 = vadd.f32 %v11331_v0, %v5582_v24 }
 0xb71   : > { %v6529_v54 = vpop.f32.mrf.mxu1 }
 0xb72   : > { %5649 = vst.msk [vmem:[%s11338_s7 + $0xa0] sm:$0xff] %vm295_vm0, %v5583_v10  ;;  %v5594_v35 = vadd.f32 %v6529_v54, %v11331_v0 }
 0xb73   : > { %v5585_v9 = vpop.f32.mrf.mxu1 }
 0xb74   : > { %5652 = vst.msk [vmem:[%s11338_s7 + $0xb8] sm:$0xff] %vm295_vm0, %v5594_v35  ;;  %v5586_v5 = vadd.f32 %v11331_v0, %v5585_v9 }
 0xb76   : > { %5650 = vst.msk [vmem:[%s11338_s7 + $0xa8] sm:$0xff] %vm295_vm0, %v5586_v5 }
 0xb85   : > { %v6532_v52 = vpop.f32.mrf.mxu1 }
 0xb86   : > { %v5607_v17 = vadd.f32 %v6532_v52, %v11331_v0 }
 0xb87   : > { %v5598_v15 = vpop.f32.mrf.mxu1 }
 0xb88   : > { %5655 = vst.msk [vmem:[%s11338_s7 + $0xd0] sm:$0xff] %vm295_vm0, %v5607_v17  ;;  %v5599_v59 = vadd.f32 %v11331_v0, %v5598_v15 }
 0xb89   : > { %v6533_v50 = vpop.f32.mrf.mxu1 }
 0xb8a   : > { %5653 = vst.msk [vmem:[%s11338_s7 + $0xc0] sm:$0xff] %vm295_vm0, %v5599_v59  ;;  %v5610_v31 = vadd.f32 %v6533_v50, %v11331_v0 }
 0xb8b   : > { %v5601_v26 = vpop.f32.mrf.mxu1 }
 0xb8c   : > { %5656 = vst.msk [vmem:[%s11338_s7 + $0xd8] sm:$0xff] %vm295_vm0, %v5610_v31  ;;  %v5602_v7 = vadd.f32 %v11331_v0, %v5601_v26 }
 0xb8e   : > { %5654 = vst.msk [vmem:[%s11338_s7 + $0xc8] sm:$0xff] %vm295_vm0, %v5602_v7 }
 0xbb7   : > { %v6536_v44 = vpop.f32.mrf.mxu1 }
 0xbb8   : > { %v5623_v27 = vadd.f32 %v6536_v44, %v11331_v0 }
 0xbb9   : > { %v5614_v45 = vpop.f32.mrf.mxu1 }
 0xbba   : > { %5659 = vst.msk [vmem:[%s11338_s7 + $0xf0] sm:$0xff] %vm295_vm0, %v5623_v27  ;;  %v5615_v38 = vadd.f32 %v11331_v0, %v5614_v45 }
 0xbbb   : > { %v6537_v46 = vpop.f32.mrf.mxu1 }
 0xbbc   : > { %5657 = vst.msk [vmem:[%s11338_s7 + $0xe0] sm:$0xff] %vm295_vm0, %v5615_v38  ;;  %v5626_v23 = vadd.f32 %v6537_v46, %v11331_v0 }
 0xbbd   : > { %v5617_v6 = vpop.f32.mrf.mxu1 }
 0xbbe   : > { %5660 = vst.msk [vmem:[%s11338_s7 + $0xf8] sm:$0xff] %vm295_vm0, %v5626_v23  ;;  %v5618_v28 = vadd.f32 %v11331_v0, %v5617_v6 }
 0xbc0   : > { %5658 = vst.msk [vmem:[%s11338_s7 + $0xe8] sm:$0xff] %vm295_vm0, %v5618_v28 }
 0xbc1 PF: > { %s14_s15 = sadd.s32 1, %s7376_s15  }
 0xbc2   : > { %p11_p4 = scmp.ge.s32.totalorder %s14_s15, 4  }
 0xbc4   :  { %13 = sbr.rel (!%p11_p4) target bundleno = 1 (0x1), region = 66 }

</bundles_post_ra>
